<compile_context>
chip_gen: v7x
topology: tpu7x:2x2x1
jax: 0.10.0
libtpu: 0.0.40
codegen_flags: <defaults>
</compile_context>

<pallas_src>
import functools
import math

import jax
import jax.numpy as jnp
from jax.experimental import pallas as pl
from jax.experimental.pallas import tpu as pltpu

BN_EPS = 1e-5
K_CNN = (2, 3, 4, 5, 6)
D_INPUT = (531, 21, 23, 3)
D_H = 64


# ----------------------------------------------------------------------------
# Fused kernel: 2 matmuls (all taps of all kernel sizes, M = TILE_B*L rows)
# + shifted adds + folded bias + ReLU + position-max + kernel-size-max.
# One grid step per TILE_B sequences.
# ----------------------------------------------------------------------------
def _fused_kernel(k_cnn, d_h, n_small,
                  xb_ref, xs_ref, wb_ref, ws_ref, bias_ref,
                  pooled_ref, yb_ref, ys_ref):
    tb, L, cb = xb_ref.shape
    cs = xs_ref.shape[2]
    gb = d_h                       # 64  (AAI out-channels per tap)
    gs = n_small * d_h             # 192 (onehot|blosum|paac out-channels per tap)

    # --- MXU phase: one matmul per weight group covering every tap of every
    #     kernel size, with M = TILE_B*L rows (bf16 operands, f32 accumulate).
    xb2 = xb_ref[...].reshape(tb * L, cb)
    xs2 = xs_ref[...].reshape(tb * L, cs)
    yb = jnp.dot(xb2, wb_ref[...], preferred_element_type=jnp.float32)
    ys = jnp.dot(xs2, ws_ref[...], preferred_element_type=jnp.float32)
    # bf16 scratch: halves the store + reload traffic of the matmul-result
    # round trip (single vst slot per bundle on v5e/v6e).
    yb_ref[...] = yb.astype(jnp.bfloat16).reshape(tb, L, yb.shape[-1])
    ys_ref[...] = ys.astype(jnp.bfloat16).reshape(tb, L, ys.shape[-1])

    # --- VPU phase: Conv1d(kernel=h) == h shifted row-slices summed; then the
    #     folded (conv bias + eval BatchNorm1d) affine, ReLU, MaxPool1d(L-h+1)
    #     over positions and max over the 5 kernel sizes (== maxpool_1..4).
    pool_b = pool_s = None
    tap = 0
    for hi, h in enumerate(k_cnn):               # static unroll: 5 kernel sizes
        l_out = L - h + 1
        # init accumulators from the k=0 slice (no zeros filler adds)
        acc_b = yb_ref[:, 0:l_out, tap * gb:(tap + 1) * gb].astype(jnp.float32)
        acc_s = ys_ref[:, 0:l_out, tap * gs:(tap + 1) * gs].astype(jnp.float32)
        for k in range(1, h):                    # remaining shifted adds
            c = tap + k
            acc_b = acc_b + yb_ref[:, k:k + l_out, c * gb:(c + 1) * gb].astype(jnp.float32)
            acc_s = acc_s + ys_ref[:, k:k + l_out, c * gs:(c + 1) * gs].astype(jnp.float32)
        tap += h
        zb = jnp.maximum(acc_b + bias_ref[hi:hi + 1, 0:gb], 0.0)
        zs = jnp.maximum(acc_s + bias_ref[hi:hi + 1, gb:gb + gs], 0.0)
        mb = jnp.max(zb, axis=1)                 # (tb, gb)   max over positions
        ms = jnp.max(zs, axis=1)                 # (tb, gs)
        if hi == 0:                              # init pooling from first kernel size
            pool_b, pool_s = mb, ms
        else:
            pool_b = jnp.maximum(pool_b, mb)
            pool_s = jnp.maximum(pool_s, ms)

    # Lane-dense pooled slab = [AAI(64) | onehot(64) | blosum(64) | paac(64)].
    pooled_ref[...] = jnp.concatenate([pool_b, pool_s], axis=1)[:, None, :]


def _choose_tile_b(B, L, ntb, nts, *, target_rows=256, scratch_budget=8 << 20):
    """Pick TILE_B so M = TILE_B*L ~ 256, grid >= 2 (v7x), scratch within budget."""
    tb = max(1, min(B, target_rows // max(L, 1)))
    if B >= 2:
        tb = min(tb, (B + 1) // 2)               # keep >= 2 grid steps for v7x's 2 TCs
    while tb > 1 and tb * L * (ntb + nts) * 2 > scratch_budget:
        tb -= 1
    while B % tb:                                # use a divisor of B (no padding)
        tb -= 1
    return tb


def forward(packed, aai, onehot, blosum, paac, *, d_h=D_H, k_cnn=K_CNN):
    B, L, c_big = aai.shape
    assert L >= max(k_cnn), "sequence length must be >= max(k_cnn)"
    x_big = aai.astype(jnp.bfloat16)
    x_small = jnp.concatenate([onehot, blosum, paac], axis=-1).astype(jnp.bfloat16)
    c_small = x_small.shape[-1]
    n_small = 3
    n_taps = sum(k_cnn)
    n_k = len(k_cnn)
    gb, gs = d_h, n_small * d_h
    nf = gb + gs                               # 256 = 4 * d_h
    ntb, nts = n_taps * gb, n_taps * gs        # 1280, 3840

    tile_b = _choose_tile_b(B, L, ntb, nts)
    grid = (B // tile_b,)

    # VMEM estimate: double-buffered pipeline operands + bf16 scratch + f32 dot temps.
    act = tile_b * L * (c_big + c_small) * 2
    wts = (c_big * ntb + c_small * nts) * 2    # constant-index; Mosaic elides re-DMA
    fixed = n_k * nf * 4 + tile_b * nf * 4
    scratch = tile_b * L * (ntb + nts) * 2
    f32_tmp = tile_b * L * (ntb + nts) * 4
    est = 2 * (act + wts + fixed) + scratch + f32_tmp
    vmem_limit = None if est <= (14 << 20) else int(min(est + (4 << 20), 40 << 20))

    kern = functools.partial(_fused_kernel, tuple(k_cnn), d_h, n_small)

    pooled3 = pl.pallas_call(
        kern,
        out_shape=jax.ShapeDtypeStruct((B, 1, nf), jnp.float32),
        grid=grid,
        in_specs=[
            pl.BlockSpec((tile_b, L, c_big), lambda b: (b, 0, 0)),    # AAI activations
            pl.BlockSpec((tile_b, L, c_small), lambda b: (b, 0, 0)),  # onehot|blosum|paac
            pl.BlockSpec((c_big, ntb), lambda b: (0, 0)),             # folded AAI weights
            pl.BlockSpec((c_small, nts), lambda b: (0, 0)),           # folded small-group weights
            pl.BlockSpec((n_k, nf), lambda b: (0, 0)),                # folded per-kernel-size biases
        ],
        out_specs=pl.BlockSpec((tile_b, 1, nf), lambda b: (b, 0, 0)), # lane-dense pooled slab
        scratch_shapes=[
            pltpu.VMEM((tile_b, L, ntb), jnp.bfloat16),               # AAI matmul result (bf16)
            pltpu.VMEM((tile_b, L, nts), jnp.bfloat16),               # small-group matmul result
        ],
        compiler_params=pltpu.CompilerParams(
            dimension_semantics=("parallel",),                        # batch axis over v7x's 2 TCs
            vmem_limit_bytes=vmem_limit),
    )(x_big, x_small, packed["w_big"], packed["w_small"], packed["bias"])

    pooled = pooled3[:, 0, :]                                         # (B, 4*d_h)
    # fc (Linear(256 -> 1)) + sigmoid hoisted out of the kernel: tiny XLA matvec,
    # removes a 1-lane masked store + cross-lane reduction + EUP sigmoid from
    # every grid step's epilogue.
    sig = jax.nn.sigmoid(pooled @ packed["fc_w"].T + packed["fc_b"])  # (B, 1)
    out_1, out_2, out_3, out_4 = (
        pooled[:, f * d_h:(f + 1) * d_h][:, :, None] for f in range(4))
    return sig, out_1, out_2, out_3, out_4


# ----------------------------------------------------------------------------
# Deterministic parameter init (synthetic; mirrors the module's __init__ shapes)
# ----------------------------------------------------------------------------
def init_params(key, d_input=D_INPUT, d_h=D_H, k_cnn=K_CNN):
    keys = iter(jax.random.split(key, 256))

    def nrm(shape, s):
        return s * jax.random.normal(next(keys), shape, jnp.float32)

    def uni(shape, lo, hi):
        return jax.random.uniform(next(keys), shape, jnp.float32, lo, hi)

    params = {"convs": [], "in_scale": [], "in_shift": []}

    # batchnorm_4 (applied to PAAC before its conv branch); identity for the others
    for fi, c in enumerate(d_input):
        if fi == 3:
            gamma, beta = uni((1, c), 0.5, 1.5), nrm((1, c), 0.1)
            rmean, rvar = nrm((1, c), 0.1), uni((1, c), 0.5, 1.5)
            scale = gamma / jnp.sqrt(rvar + BN_EPS)
            shift = beta - rmean * scale
        else:
            scale = jnp.ones((1, c), jnp.float32)
            shift = jnp.zeros((1, c), jnp.float32)
        params["in_scale"].append(scale)
        params["in_shift"].append(shift)

    # convs_1..convs_4: Conv1d(c -> d_h, kernel=h) + BatchNorm1d(d_h) (eval mode)
    for c in d_input:
        branch = []
        for h in k_cnn:
            s = 1.0 / math.sqrt(c * h)
            w = nrm((h, c, d_h), s)                 # stored as (taps, C_in, C_out)
            b = nrm((1, d_h), s)
            gamma, beta = uni((1, d_h), 0.5, 1.5), nrm((1, d_h), 0.1)
            rmean, rvar = nrm((1, d_h), 0.1), uni((1, d_h), 0.5, 1.5)
            bn_scale = gamma / jnp.sqrt(rvar + BN_EPS)
            bn_shift = beta - rmean * bn_scale
            branch.append({"w": w, "b": b, "scale": bn_scale, "shift": bn_shift})
        params["convs"].append(branch)

    # fc: Linear(4 * d_h, 1), concat order [AAI | onehot | blosum | PAAC]
    s_fc = 1.0 / math.sqrt(4 * d_h)
    params["fc_w"] = nrm((1, 4 * d_h), s_fc)
    params["fc_b"] = nrm((1, 1), s_fc)
    return params


def _fold_branch(p, in_scale, in_shift):
    """Fold input affine + eval-mode BatchNorm1d + conv bias into (w_taps, bias)."""
    w_fold = p["w"] * in_scale[0][None, :, None] * p["scale"][:, None, :]    # (h, C, d_h)
    bias = (p["b"] + jnp.einsum("oc,hcd->od", in_shift, p["w"])) * p["scale"] + p["shift"]
    return w_fold, bias                                                      # (h,C,d_h), (1,d_h)


def pack_params(params, d_input=D_INPUT, d_h=D_H, k_cnn=K_CNN):
    """Fold affines into the conv weights and concatenate all taps along the output axis."""
    n_taps = sum(k_cnn)
    n_k = len(k_cnn)
    n_small = len(d_input) - 1
    gs = n_small * d_h

    # --- AAI group: columns = [tap (h,k)] x d_h ---
    c_big = d_input[0]
    w_big = jnp.zeros((c_big, n_taps * d_h), jnp.float32)
    bias_big = jnp.zeros((n_k, d_h), jnp.float32)
    tap = 0
    for hi, h in enumerate(k_cnn):
        wf, bf = _fold_branch(params["convs"][0][hi],
                              params["in_scale"][0], params["in_shift"][0])
        for k in range(h):
            w_big = w_big.at[:, (tap + k) * d_h:(tap + k + 1) * d_h].set(wf[k])
        bias_big = bias_big.at[hi].set(bf[0])
        tap += h

    # --- small group (onehot|blosum|paac): block-diagonal inside each 192-wide tap block ---
    c_small = sum(d_input[1:])
    w_small = jnp.zeros((c_small, n_taps * gs), jnp.float32)
    bias_small = jnp.zeros((n_k, gs), jnp.float32)
    row = 0
    for j, c in enumerate(d_input[1:]):
        fi = j + 1
        tap = 0
        for hi, h in enumerate(k_cnn):
            wf, bf = _fold_branch(params["convs"][fi][hi],
                                  params["in_scale"][fi], params["in_shift"][fi])
            for k in range(h):
                col = (tap + k) * gs + j * d_h
                w_small = w_small.at[row:row + c, col:col + d_h].set(wf[k])
            bias_small = bias_small.at[hi, j * d_h:(j + 1) * d_h].set(bf[0])
            tap += h
        row += c

    return {
        "w_big": w_big.astype(jnp.bfloat16),
        "w_small": w_small.astype(jnp.bfloat16),
        "bias": jnp.concatenate([bias_big, bias_small], axis=1),   # (5, 256)
        "fc_w": params["fc_w"],                                    # (1, 256)
        "fc_b": params["fc_b"],                                    # (1, 1)
    }


# ----------------------------------------------------------------------------
# Pure-JAX f32 reference (unfused, unfolded) for a loose-tolerance self-check
# ----------------------------------------------------------------------------
def reference_forward(params, feats, d_h=D_H, k_cnn=K_CNN):
    pooled_feats = []
    for fi, x in enumerate(feats):
        xb = x * params["in_scale"][fi] + params["in_shift"][fi]     # (B, L, C)
        L = x.shape[1]
        per_h = []
        for hi, h in enumerate(k_cnn):
            p = params["convs"][fi][hi]
            l_out = L - h + 1
            acc = jnp.zeros((x.shape[0], l_out, d_h), jnp.float32)
            for k in range(h):
                acc = acc + jnp.einsum("blc,cd->bld", xb[:, k:k + l_out, :], p["w"][k])
            z = (acc + p["b"]) * p["scale"] + p["shift"]
            per_h.append(jnp.max(jnp.maximum(z, 0.0), axis=1))       # (B, d_h)
        pooled_feats.append(jnp.max(jnp.stack(per_h, 0), axis=0))    # (B, d_h)
    pooled = jnp.concatenate(pooled_feats, axis=1)                   # (B, 4*d_h)
    z = jnp.sum(pooled * params["fc_w"], axis=1, keepdims=True) + params["fc_b"]
    return jax.nn.sigmoid(z), pooled


if __name__ == "__main__":
    B, SEQ_LEN = 8, 16          # small demo shapes; exercises TILE_B=4, grid=(2,)
    key = jax.random.PRNGKey(0)
    k_p, k_a, k_o, k_b, k_c = jax.random.split(key, 5)

    params = init_params(k_p)
    packed = pack_params(params)

    aai = jax.random.normal(k_a, (B, SEQ_LEN, D_INPUT[0]), jnp.float32)
    onehot = jax.random.normal(k_o, (B, SEQ_LEN, D_INPUT[1]), jnp.float32)
    blosum = jax.random.normal(k_b, (B, SEQ_LEN, D_INPUT[2]), jnp.float32)
    paac = jax.random.normal(k_c, (B, SEQ_LEN, D_INPUT[3]), jnp.float32)

    fwd = jax.jit(forward)
    outs = jax.block_until_ready(fwd(packed, aai, onehot, blosum, paac))

    sig = outs[0]
    assert sig.shape == (B, 1), sig.shape
    assert all(o.shape == (B, D_H, 1) for o in outs[1:])
    assert bool(jnp.all((sig >= 0.0) & (sig <= 1.0)))

    # Loose-tolerance check vs. pure-JAX f32 reference (kernel uses bf16 operands
    # and bf16 matmul-result scratch).
    ref_sig, ref_pooled = reference_forward(params, (aai, onehot, blosum, paac))
    got_pooled = jnp.concatenate([o[:, :, 0] for o in outs[1:]], axis=1)
    assert bool(jnp.allclose(got_pooled, ref_pooled, atol=0.15, rtol=0.15)), \
        float(jnp.max(jnp.abs(got_pooled - ref_pooled)))
    assert bool(jnp.allclose(sig, ref_sig, atol=0.05, rtol=0.05))

    print("KERNEL_OK")
</pallas_src>

<mosaic_0001>
module attributes {stable_mosaic.version = 11 : i64} {
  func.func @_fused_kernel(%arg0: i32, %arg1: memref<4x16x531xbf16, #tpu.memory_space<vmem>>, %arg2: memref<4x16x47xbf16, #tpu.memory_space<vmem>>, %arg3: memref<531x1280xbf16, #tpu.memory_space<vmem>>, %arg4: memref<47x3840xbf16, #tpu.memory_space<vmem>>, %arg5: memref<5x256xf32, #tpu.memory_space<vmem>>, %arg6: memref<4x1x256xf32, #tpu.memory_space<vmem>>, %arg7: memref<4x16x1280xbf16, #tpu.memory_space<vmem>>, %arg8: memref<4x16x3840xbf16, #tpu.memory_space<vmem>>) attributes {dimension_semantics = [#tpu.dimension_semantics<parallel>], iteration_bounds = array<i64: 2>, scalar_prefetch = 0 : i64, scratch_operands = 2 : i64, tpu.core_type = #tpu.core_type<tc>, window_params = [{transform_indices = @transform_0, window_bounds = array<i64: 4, 16, 531>}, {transform_indices = @transform_1, window_bounds = array<i64: 4, 16, 47>}, {pipeline_mode = #tpu.pipeline_mode<synchronous>, transform_indices = @transform_2, window_bounds = array<i64: 531, 1280>}, {pipeline_mode = #tpu.pipeline_mode<synchronous>, transform_indices = @transform_3, window_bounds = array<i64: 47, 3840>}, {pipeline_mode = #tpu.pipeline_mode<synchronous>, transform_indices = @transform_4, window_bounds = array<i64: 5, 256>}, {transform_indices = @transform_5, window_bounds = array<i64: 4, 1, 256>}]} {
    %c0 = arith.constant 0 : index
    %c0_0 = arith.constant 0 : index
    %c0_1 = arith.constant 0 : index
    %0 = vector.load %arg1[%c0, %c0_0, %c0_1] : memref<4x16x531xbf16, #tpu.memory_space<vmem>>, vector<4x16x531xbf16>
    %1 = vector.shape_cast %0 : vector<4x16x531xbf16> to vector<64x531xbf16>
    %c0_2 = arith.constant 0 : index
    %c0_3 = arith.constant 0 : index
    %c0_4 = arith.constant 0 : index
    %2 = vector.load %arg2[%c0_2, %c0_3, %c0_4] : memref<4x16x47xbf16, #tpu.memory_space<vmem>>, vector<4x16x47xbf16>
    %3 = vector.shape_cast %2 : vector<4x16x47xbf16> to vector<64x47xbf16>
    %c0_5 = arith.constant 0 : index
    %c0_6 = arith.constant 0 : index
    %4 = vector.load %arg3[%c0_5, %c0_6] : memref<531x1280xbf16, #tpu.memory_space<vmem>>, vector<531x1280xbf16>
    %cst = arith.constant dense<0.000000e+00> : vector<64x1280xf32>
    %5 = tpu.matmul %1, %4, %cst {dimension_numbers = #tpu.dot_dimension_numbers<[1], [0], [0], [1], [0, 0, 1, 1], [], []>} : vector<64x531xbf16>, vector<531x1280xbf16>, vector<64x1280xf32> -> vector<64x1280xf32>
    %c0_7 = arith.constant 0 : index
    %c0_8 = arith.constant 0 : index
    %6 = vector.load %arg4[%c0_7, %c0_8] : memref<47x3840xbf16, #tpu.memory_space<vmem>>, vector<47x3840xbf16>
    %cst_9 = arith.constant dense<0.000000e+00> : vector<64x3840xf32>
    %7 = tpu.matmul %3, %6, %cst_9 {dimension_numbers = #tpu.dot_dimension_numbers<[1], [0], [0], [1], [0, 0, 1, 1], [], []>} : vector<64x47xbf16>, vector<47x3840xbf16>, vector<64x3840xf32> -> vector<64x3840xf32>
    %8 = arith.truncf %5 : vector<64x1280xf32> to vector<64x1280xbf16>
    %9 = vector.shape_cast %8 : vector<64x1280xbf16> to vector<4x16x1280xbf16>
    %c0_10 = arith.constant 0 : index
    %c0_11 = arith.constant 0 : index
    %c0_12 = arith.constant 0 : index
    %10 = vector.load %arg7[%c0_10, %c0_11, %c0_12] : memref<4x16x1280xbf16, #tpu.memory_space<vmem>>, vector<4x16x1280xbf16>
    tpu.vector_store %arg7[%c0_10, %c0_11, %c0_12], %9 {strides = array<i32>} : memref<4x16x1280xbf16, #tpu.memory_space<vmem>>, vector<4x16x1280xbf16>,
    %11 = arith.truncf %7 : vector<64x3840xf32> to vector<64x3840xbf16>
    %12 = vector.shape_cast %11 : vector<64x3840xbf16> to vector<4x16x3840xbf16>
    %c0_13 = arith.constant 0 : index
    %c0_14 = arith.constant 0 : index
    %c0_15 = arith.constant 0 : index
    %13 = vector.load %arg8[%c0_13, %c0_14, %c0_15] : memref<4x16x3840xbf16, #tpu.memory_space<vmem>>, vector<4x16x3840xbf16>
    tpu.vector_store %arg8[%c0_13, %c0_14, %c0_15], %12 {strides = array<i32>} : memref<4x16x3840xbf16, #tpu.memory_space<vmem>>, vector<4x16x3840xbf16>,
    %c0_16 = arith.constant 0 : index
    %c0_17 = arith.constant 0 : index
    %c0_18 = arith.constant 0 : index
    %14 = vector.load %arg7[%c0_16, %c0_17, %c0_18] : memref<4x16x1280xbf16, #tpu.memory_space<vmem>>, vector<4x15x64xbf16>
    %15 = arith.extf %14 : vector<4x15x64xbf16> to vector<4x15x64xf32>
    %c0_19 = arith.constant 0 : index
    %c0_20 = arith.constant 0 : index
    %c0_21 = arith.constant 0 : index
    %16 = vector.load %arg8[%c0_19, %c0_20, %c0_21] : memref<4x16x3840xbf16, #tpu.memory_space<vmem>>, vector<4x15x192xbf16>
    %17 = arith.extf %16 : vector<4x15x192xbf16> to vector<4x15x192xf32>
    %c0_22 = arith.constant 0 : index
    %c1 = arith.constant 1 : index
    %c64 = arith.constant 64 : index
    %18 = vector.load %arg7[%c0_22, %c1, %c64] : memref<4x16x1280xbf16, #tpu.memory_space<vmem>>, vector<4x15x64xbf16>
    %19 = arith.extf %18 : vector<4x15x64xbf16> to vector<4x15x64xf32>
    %20 = arith.addf %15, %19 : vector<4x15x64xf32>
    %c0_23 = arith.constant 0 : index
    %c1_24 = arith.constant 1 : index
    %c192 = arith.constant 192 : index
    %21 = vector.load %arg8[%c0_23, %c1_24, %c192] : memref<4x16x3840xbf16, #tpu.memory_space<vmem>>, vector<4x15x192xbf16>
    %22 = arith.extf %21 : vector<4x15x192xbf16> to vector<4x15x192xf32>
    %23 = arith.addf %17, %22 : vector<4x15x192xf32>
    %c0_25 = arith.constant 0 : index
    %c0_26 = arith.constant 0 : index
    %24 = vector.load %arg5[%c0_25, %c0_26] : memref<5x256xf32, #tpu.memory_space<vmem>>, vector<1x64xf32>
    %25 = vector.shape_cast %24 : vector<1x64xf32> to vector<1x1x64xf32>
    %26 = vector.broadcast %25 : vector<1x1x64xf32> to vector<4x15x64xf32>
    %27 = arith.addf %20, %26 : vector<4x15x64xf32>
    %cst_27 = arith.constant 0.000000e+00 : f32
    %28 = vector.broadcast %cst_27 : f32 to vector<4x15x64xf32>
    %29 = arith.maximumf %27, %28 : vector<4x15x64xf32>
    %c0_28 = arith.constant 0 : index
    %c64_29 = arith.constant 64 : index
    %30 = vector.load %arg5[%c0_28, %c64_29] : memref<5x256xf32, #tpu.memory_space<vmem>>, vector<1x192xf32>
    %31 = vector.shape_cast %30 : vector<1x192xf32> to vector<1x1x192xf32>
    %32 = vector.broadcast %31 : vector<1x1x192xf32> to vector<4x15x192xf32>
    %33 = arith.addf %23, %32 : vector<4x15x192xf32>
    %cst_30 = arith.constant 0.000000e+00 : f32
    %34 = vector.broadcast %cst_30 : f32 to vector<4x15x192xf32>
    %35 = arith.maximumf %33, %34 : vector<4x15x192xf32>
    %cst_31 = arith.constant dense<0xFF800000> : vector<4x64xf32>
    %36 = vector.multi_reduction <maximumf>, %29, %cst_31 [1] : vector<4x15x64xf32> to vector<4x64xf32>
    %cst_32 = arith.constant dense<0xFF800000> : vector<4x192xf32>
    %37 = vector.multi_reduction <maximumf>, %35, %cst_32 [1] : vector<4x15x192xf32> to vector<4x192xf32>
    %c0_33 = arith.constant 0 : index
    %c0_34 = arith.constant 0 : index
    %c128 = arith.constant 128 : index
    %38 = vector.load %arg7[%c0_33, %c0_34, %c128] : memref<4x16x1280xbf16, #tpu.memory_space<vmem>>, vector<4x14x64xbf16>
    %39 = arith.extf %38 : vector<4x14x64xbf16> to vector<4x14x64xf32>
    %c0_35 = arith.constant 0 : index
    %c0_36 = arith.constant 0 : index
    %c384 = arith.constant 384 : index
    %40 = vector.load %arg8[%c0_35, %c0_36, %c384] : memref<4x16x3840xbf16, #tpu.memory_space<vmem>>, vector<4x14x192xbf16>
    %41 = arith.extf %40 : vector<4x14x192xbf16> to vector<4x14x192xf32>
    %c0_37 = arith.constant 0 : index
    %c1_38 = arith.constant 1 : index
    %c192_39 = arith.constant 192 : index
    %42 = vector.load %arg7[%c0_37, %c1_38, %c192_39] : memref<4x16x1280xbf16, #tpu.memory_space<vmem>>, vector<4x14x64xbf16>
    %43 = arith.extf %42 : vector<4x14x64xbf16> to vector<4x14x64xf32>
    %44 = arith.addf %39, %43 : vector<4x14x64xf32>
    %c0_40 = arith.constant 0 : index
    %c1_41 = arith.constant 1 : index
    %c576 = arith.constant 576 : index
    %45 = vector.load %arg8[%c0_40, %c1_41, %c576] : memref<4x16x3840xbf16, #tpu.memory_space<vmem>>, vector<4x14x192xbf16>
    %46 = arith.extf %45 : vector<4x14x192xbf16> to vector<4x14x192xf32>
    %47 = arith.addf %41, %46 : vector<4x14x192xf32>
    %c0_42 = arith.constant 0 : index
    %c2 = arith.constant 2 : index
    %c256 = arith.constant 256 : index
    %48 = vector.load %arg7[%c0_42, %c2, %c256] : memref<4x16x1280xbf16, #tpu.memory_space<vmem>>, vector<4x14x64xbf16>
    %49 = arith.extf %48 : vector<4x14x64xbf16> to vector<4x14x64xf32>
    %50 = arith.addf %44, %49 : vector<4x14x64xf32>
    %c0_43 = arith.constant 0 : index
    %c2_44 = arith.constant 2 : index
    %c768 = arith.constant 768 : index
    %51 = vector.load %arg8[%c0_43, %c2_44, %c768] : memref<4x16x3840xbf16, #tpu.memory_space<vmem>>, vector<4x14x192xbf16>
    %52 = arith.extf %51 : vector<4x14x192xbf16> to vector<4x14x192xf32>
    %53 = arith.addf %47, %52 : vector<4x14x192xf32>
    %c1_45 = arith.constant 1 : index
    %c0_46 = arith.constant 0 : index
    %54 = vector.load %arg5[%c1_45, %c0_46] : memref<5x256xf32, #tpu.memory_space<vmem>>, vector<1x64xf32>
    %55 = vector.shape_cast %54 : vector<1x64xf32> to vector<1x1x64xf32>
    %56 = vector.broadcast %55 : vector<1x1x64xf32> to vector<4x14x64xf32>
    %57 = arith.addf %50, %56 : vector<4x14x64xf32>
    %cst_47 = arith.constant 0.000000e+00 : f32
    %58 = vector.broadcast %cst_47 : f32 to vector<4x14x64xf32>
    %59 = arith.maximumf %57, %58 : vector<4x14x64xf32>
    %c1_48 = arith.constant 1 : index
    %c64_49 = arith.constant 64 : index
    %60 = vector.load %arg5[%c1_48, %c64_49] : memref<5x256xf32, #tpu.memory_space<vmem>>, vector<1x192xf32>
    %61 = vector.shape_cast %60 : vector<1x192xf32> to vector<1x1x192xf32>
    %62 = vector.broadcast %61 : vector<1x1x192xf32> to vector<4x14x192xf32>
    %63 = arith.addf %53, %62 : vector<4x14x192xf32>
    %cst_50 = arith.constant 0.000000e+00 : f32
    %64 = vector.broadcast %cst_50 : f32 to vector<4x14x192xf32>
    %65 = arith.maximumf %63, %64 : vector<4x14x192xf32>
    %cst_51 = arith.constant dense<0xFF800000> : vector<4x64xf32>
    %66 = vector.multi_reduction <maximumf>, %59, %cst_51 [1] : vector<4x14x64xf32> to vector<4x64xf32>
    %cst_52 = arith.constant dense<0xFF800000> : vector<4x192xf32>
    %67 = vector.multi_reduction <maximumf>, %65, %cst_52 [1] : vector<4x14x192xf32> to vector<4x192xf32>
    %68 = arith.maximumf %36, %66 : vector<4x64xf32>
    %69 = arith.maximumf %37, %67 : vector<4x192xf32>
    %c0_53 = arith.constant 0 : index
    %c0_54 = arith.constant 0 : index
    %c320 = arith.constant 320 : index
    %70 = vector.load %arg7[%c0_53, %c0_54, %c320] : memref<4x16x1280xbf16, #tpu.memory_space<vmem>>, vector<4x13x64xbf16>
    %71 = arith.extf %70 : vector<4x13x64xbf16> to vector<4x13x64xf32>
    %c0_55 = arith.constant 0 : index
    %c0_56 = arith.constant 0 : index
    %c960 = arith.constant 960 : index
    %72 = vector.load %arg8[%c0_55, %c0_56, %c960] : memref<4x16x3840xbf16, #tpu.memory_space<vmem>>, vector<4x13x192xbf16>
    %73 = arith.extf %72 : vector<4x13x192xbf16> to vector<4x13x192xf32>
    %c0_57 = arith.constant 0 : index
    %c1_58 = arith.constant 1 : index
    %c384_59 = arith.constant 384 : index
    %74 = vector.load %arg7[%c0_57, %c1_58, %c384_59] : memref<4x16x1280xbf16, #tpu.memory_space<vmem>>, vector<4x13x64xbf16>
    %75 = arith.extf %74 : vector<4x13x64xbf16> to vector<4x13x64xf32>
    %76 = arith.addf %71, %75 : vector<4x13x64xf32>
    %c0_60 = arith.constant 0 : index
    %c1_61 = arith.constant 1 : index
    %c1152 = arith.constant 1152 : index
    %77 = vector.load %arg8[%c0_60, %c1_61, %c1152] : memref<4x16x3840xbf16, #tpu.memory_space<vmem>>, vector<4x13x192xbf16>
    %78 = arith.extf %77 : vector<4x13x192xbf16> to vector<4x13x192xf32>
    %79 = arith.addf %73, %78 : vector<4x13x192xf32>
    %c0_62 = arith.constant 0 : index
    %c2_63 = arith.constant 2 : index
    %c448 = arith.constant 448 : index
    %80 = vector.load %arg7[%c0_62, %c2_63, %c448] : memref<4x16x1280xbf16, #tpu.memory_space<vmem>>, vector<4x13x64xbf16>
    %81 = arith.extf %80 : vector<4x13x64xbf16> to vector<4x13x64xf32>
    %82 = arith.addf %76, %81 : vector<4x13x64xf32>
    %c0_64 = arith.constant 0 : index
    %c2_65 = arith.constant 2 : index
    %c1344 = arith.constant 1344 : index
    %83 = vector.load %arg8[%c0_64, %c2_65, %c1344] : memref<4x16x3840xbf16, #tpu.memory_space<vmem>>, vector<4x13x192xbf16>
    %84 = arith.extf %83 : vector<4x13x192xbf16> to vector<4x13x192xf32>
    %85 = arith.addf %79, %84 : vector<4x13x192xf32>
    %c0_66 = arith.constant 0 : index
    %c3 = arith.constant 3 : index
    %c512 = arith.constant 512 : index
    %86 = vector.load %arg7[%c0_66, %c3, %c512] : memref<4x16x1280xbf16, #tpu.memory_space<vmem>>, vector<4x13x64xbf16>
    %87 = arith.extf %86 : vector<4x13x64xbf16> to vector<4x13x64xf32>
    %88 = arith.addf %82, %87 : vector<4x13x64xf32>
    %c0_67 = arith.constant 0 : index
    %c3_68 = arith.constant 3 : index
    %c1536 = arith.constant 1536 : index
    %89 = vector.load %arg8[%c0_67, %c3_68, %c1536] : memref<4x16x3840xbf16, #tpu.memory_space<vmem>>, vector<4x13x192xbf16>
    %90 = arith.extf %89 : vector<4x13x192xbf16> to vector<4x13x192xf32>
    %91 = arith.addf %85, %90 : vector<4x13x192xf32>
    %c2_69 = arith.constant 2 : index
    %c0_70 = arith.constant 0 : index
    %92 = vector.load %arg5[%c2_69, %c0_70] : memref<5x256xf32, #tpu.memory_space<vmem>>, vector<1x64xf32>
    %93 = vector.shape_cast %92 : vector<1x64xf32> to vector<1x1x64xf32>
    %94 = vector.broadcast %93 : vector<1x1x64xf32> to vector<4x13x64xf32>
    %95 = arith.addf %88, %94 : vector<4x13x64xf32>
    %cst_71 = arith.constant 0.000000e+00 : f32
    %96 = vector.broadcast %cst_71 : f32 to vector<4x13x64xf32>
    %97 = arith.maximumf %95, %96 : vector<4x13x64xf32>
    %c2_72 = arith.constant 2 : index
    %c64_73 = arith.constant 64 : index
    %98 = vector.load %arg5[%c2_72, %c64_73] : memref<5x256xf32, #tpu.memory_space<vmem>>, vector<1x192xf32>
    %99 = vector.shape_cast %98 : vector<1x192xf32> to vector<1x1x192xf32>
    %100 = vector.broadcast %99 : vector<1x1x192xf32> to vector<4x13x192xf32>
    %101 = arith.addf %91, %100 : vector<4x13x192xf32>
    %cst_74 = arith.constant 0.000000e+00 : f32
    %102 = vector.broadcast %cst_74 : f32 to vector<4x13x192xf32>
    %103 = arith.maximumf %101, %102 : vector<4x13x192xf32>
    %cst_75 = arith.constant dense<0xFF800000> : vector<4x64xf32>
    %104 = vector.multi_reduction <maximumf>, %97, %cst_75 [1] : vector<4x13x64xf32> to vector<4x64xf32>
    %cst_76 = arith.constant dense<0xFF800000> : vector<4x192xf32>
    %105 = vector.multi_reduction <maximumf>, %103, %cst_76 [1] : vector<4x13x192xf32> to vector<4x192xf32>
    %106 = arith.maximumf %68, %104 : vector<4x64xf32>
    %107 = arith.maximumf %69, %105 : vector<4x192xf32>
    %c0_77 = arith.constant 0 : index
    %c0_78 = arith.constant 0 : index
    %c576_79 = arith.constant 576 : index
    %108 = vector.load %arg7[%c0_77, %c0_78, %c576_79] : memref<4x16x1280xbf16, #tpu.memory_space<vmem>>, vector<4x12x64xbf16>
    %109 = arith.extf %108 : vector<4x12x64xbf16> to vector<4x12x64xf32>
    %c0_80 = arith.constant 0 : index
    %c0_81 = arith.constant 0 : index
    %c1728 = arith.constant 1728 : index
    %110 = vector.load %arg8[%c0_80, %c0_81, %c1728] : memref<4x16x3840xbf16, #tpu.memory_space<vmem>>, vector<4x12x192xbf16>
    %111 = arith.extf %110 : vector<4x12x192xbf16> to vector<4x12x192xf32>
    %c0_82 = arith.constant 0 : index
    %c1_83 = arith.constant 1 : index
    %c640 = arith.constant 640 : index
    %112 = vector.load %arg7[%c0_82, %c1_83, %c640] : memref<4x16x1280xbf16, #tpu.memory_space<vmem>>, vector<4x12x64xbf16>
    %113 = arith.extf %112 : vector<4x12x64xbf16> to vector<4x12x64xf32>
    %114 = arith.addf %109, %113 : vector<4x12x64xf32>
    %c0_84 = arith.constant 0 : index
    %c1_85 = arith.constant 1 : index
    %c1920 = arith.constant 1920 : index
    %115 = vector.load %arg8[%c0_84, %c1_85, %c1920] : memref<4x16x3840xbf16, #tpu.memory_space<vmem>>, vector<4x12x192xbf16>
    %116 = arith.extf %115 : vector<4x12x192xbf16> to vector<4x12x192xf32>
    %117 = arith.addf %111, %116 : vector<4x12x192xf32>
    %c0_86 = arith.constant 0 : index
    %c2_87 = arith.constant 2 : index
    %c704 = arith.constant 704 : index
    %118 = vector.load %arg7[%c0_86, %c2_87, %c704] : memref<4x16x1280xbf16, #tpu.memory_space<vmem>>, vector<4x12x64xbf16>
    %119 = arith.extf %118 : vector<4x12x64xbf16> to vector<4x12x64xf32>
    %120 = arith.addf %114, %119 : vector<4x12x64xf32>
    %c0_88 = arith.constant 0 : index
    %c2_89 = arith.constant 2 : index
    %c2112 = arith.constant 2112 : index
    %121 = vector.load %arg8[%c0_88, %c2_89, %c2112] : memref<4x16x3840xbf16, #tpu.memory_space<vmem>>, vector<4x12x192xbf16>
    %122 = arith.extf %121 : vector<4x12x192xbf16> to vector<4x12x192xf32>
    %123 = arith.addf %117, %122 : vector<4x12x192xf32>
    %c0_90 = arith.constant 0 : index
    %c3_91 = arith.constant 3 : index
    %c768_92 = arith.constant 768 : index
    %124 = vector.load %arg7[%c0_90, %c3_91, %c768_92] : memref<4x16x1280xbf16, #tpu.memory_space<vmem>>, vector<4x12x64xbf16>
    %125 = arith.extf %124 : vector<4x12x64xbf16> to vector<4x12x64xf32>
    %126 = arith.addf %120, %125 : vector<4x12x64xf32>
    %c0_93 = arith.constant 0 : index
    %c3_94 = arith.constant 3 : index
    %c2304 = arith.constant 2304 : index
    %127 = vector.load %arg8[%c0_93, %c3_94, %c2304] : memref<4x16x3840xbf16, #tpu.memory_space<vmem>>, vector<4x12x192xbf16>
    %128 = arith.extf %127 : vector<4x12x192xbf16> to vector<4x12x192xf32>
    %129 = arith.addf %123, %128 : vector<4x12x192xf32>
    %c0_95 = arith.constant 0 : index
    %c4 = arith.constant 4 : index
    %c832 = arith.constant 832 : index
    %130 = vector.load %arg7[%c0_95, %c4, %c832] : memref<4x16x1280xbf16, #tpu.memory_space<vmem>>, vector<4x12x64xbf16>
    %131 = arith.extf %130 : vector<4x12x64xbf16> to vector<4x12x64xf32>
    %132 = arith.addf %126, %131 : vector<4x12x64xf32>
    %c0_96 = arith.constant 0 : index
    %c4_97 = arith.constant 4 : index
    %c2496 = arith.constant 2496 : index
    %133 = vector.load %arg8[%c0_96, %c4_97, %c2496] : memref<4x16x3840xbf16, #tpu.memory_space<vmem>>, vector<4x12x192xbf16>
    %134 = arith.extf %133 : vector<4x12x192xbf16> to vector<4x12x192xf32>
    %135 = arith.addf %129, %134 : vector<4x12x192xf32>
    %c3_98 = arith.constant 3 : index
    %c0_99 = arith.constant 0 : index
    %136 = vector.load %arg5[%c3_98, %c0_99] : memref<5x256xf32, #tpu.memory_space<vmem>>, vector<1x64xf32>
    %137 = vector.shape_cast %136 : vector<1x64xf32> to vector<1x1x64xf32>
    %138 = vector.broadcast %137 : vector<1x1x64xf32> to vector<4x12x64xf32>
    %139 = arith.addf %132, %138 : vector<4x12x64xf32>
    %cst_100 = arith.constant 0.000000e+00 : f32
    %140 = vector.broadcast %cst_100 : f32 to vector<4x12x64xf32>
    %141 = arith.maximumf %139, %140 : vector<4x12x64xf32>
    %c3_101 = arith.constant 3 : index
    %c64_102 = arith.constant 64 : index
    %142 = vector.load %arg5[%c3_101, %c64_102] : memref<5x256xf32, #tpu.memory_space<vmem>>, vector<1x192xf32>
    %143 = vector.shape_cast %142 : vector<1x192xf32> to vector<1x1x192xf32>
    %144 = vector.broadcast %143 : vector<1x1x192xf32> to vector<4x12x192xf32>
    %145 = arith.addf %135, %144 : vector<4x12x192xf32>
    %cst_103 = arith.constant 0.000000e+00 : f32
    %146 = vector.broadcast %cst_103 : f32 to vector<4x12x192xf32>
    %147 = arith.maximumf %145, %146 : vector<4x12x192xf32>
    %cst_104 = arith.constant dense<0xFF800000> : vector<4x64xf32>
    %148 = vector.multi_reduction <maximumf>, %141, %cst_104 [1] : vector<4x12x64xf32> to vector<4x64xf32>
    %cst_105 = arith.constant dense<0xFF800000> : vector<4x192xf32>
    %149 = vector.multi_reduction <maximumf>, %147, %cst_105 [1] : vector<4x12x192xf32> to vector<4x192xf32>
    %150 = arith.maximumf %106, %148 : vector<4x64xf32>
    %151 = arith.maximumf %107, %149 : vector<4x192xf32>
    %c0_106 = arith.constant 0 : index
    %c0_107 = arith.constant 0 : index
    %c896 = arith.constant 896 : index
    %152 = vector.load %arg7[%c0_106, %c0_107, %c896] : memref<4x16x1280xbf16, #tpu.memory_space<vmem>>, vector<4x11x64xbf16>
    %153 = arith.extf %152 : vector<4x11x64xbf16> to vector<4x11x64xf32>
    %c0_108 = arith.constant 0 : index
    %c0_109 = arith.constant 0 : index
    %c2688 = arith.constant 2688 : index
    %154 = vector.load %arg8[%c0_108, %c0_109, %c2688] : memref<4x16x3840xbf16, #tpu.memory_space<vmem>>, vector<4x11x192xbf16>
    %155 = arith.extf %154 : vector<4x11x192xbf16> to vector<4x11x192xf32>
    %c0_110 = arith.constant 0 : index
    %c1_111 = arith.constant 1 : index
    %c960_112 = arith.constant 960 : index
    %156 = vector.load %arg7[%c0_110, %c1_111, %c960_112] : memref<4x16x1280xbf16, #tpu.memory_space<vmem>>, vector<4x11x64xbf16>
    %157 = arith.extf %156 : vector<4x11x64xbf16> to vector<4x11x64xf32>
    %158 = arith.addf %153, %157 : vector<4x11x64xf32>
    %c0_113 = arith.constant 0 : index
    %c1_114 = arith.constant 1 : index
    %c2880 = arith.constant 2880 : index
    %159 = vector.load %arg8[%c0_113, %c1_114, %c2880] : memref<4x16x3840xbf16, #tpu.memory_space<vmem>>, vector<4x11x192xbf16>
    %160 = arith.extf %159 : vector<4x11x192xbf16> to vector<4x11x192xf32>
    %161 = arith.addf %155, %160 : vector<4x11x192xf32>
    %c0_115 = arith.constant 0 : index
    %c2_116 = arith.constant 2 : index
    %c1024 = arith.constant 1024 : index
    %162 = vector.load %arg7[%c0_115, %c2_116, %c1024] : memref<4x16x1280xbf16, #tpu.memory_space<vmem>>, vector<4x11x64xbf16>
    %163 = arith.extf %162 : vector<4x11x64xbf16> to vector<4x11x64xf32>
    %164 = arith.addf %158, %163 : vector<4x11x64xf32>
    %c0_117 = arith.constant 0 : index
    %c2_118 = arith.constant 2 : index
    %c3072 = arith.constant 3072 : index
    %165 = vector.load %arg8[%c0_117, %c2_118, %c3072] : memref<4x16x3840xbf16, #tpu.memory_space<vmem>>, vector<4x11x192xbf16>
    %166 = arith.extf %165 : vector<4x11x192xbf16> to vector<4x11x192xf32>
    %167 = arith.addf %161, %166 : vector<4x11x192xf32>
    %c0_119 = arith.constant 0 : index
    %c3_120 = arith.constant 3 : index
    %c1088 = arith.constant 1088 : index
    %168 = vector.load %arg7[%c0_119, %c3_120, %c1088] : memref<4x16x1280xbf16, #tpu.memory_space<vmem>>, vector<4x11x64xbf16>
    %169 = arith.extf %168 : vector<4x11x64xbf16> to vector<4x11x64xf32>
    %170 = arith.addf %164, %169 : vector<4x11x64xf32>
    %c0_121 = arith.constant 0 : index
    %c3_122 = arith.constant 3 : index
    %c3264 = arith.constant 3264 : index
    %171 = vector.load %arg8[%c0_121, %c3_122, %c3264] : memref<4x16x3840xbf16, #tpu.memory_space<vmem>>, vector<4x11x192xbf16>
    %172 = arith.extf %171 : vector<4x11x192xbf16> to vector<4x11x192xf32>
    %173 = arith.addf %167, %172 : vector<4x11x192xf32>
    %c0_123 = arith.constant 0 : index
    %c4_124 = arith.constant 4 : index
    %c1152_125 = arith.constant 1152 : index
    %174 = vector.load %arg7[%c0_123, %c4_124, %c1152_125] : memref<4x16x1280xbf16, #tpu.memory_space<vmem>>, vector<4x11x64xbf16>
    %175 = arith.extf %174 : vector<4x11x64xbf16> to vector<4x11x64xf32>
    %176 = arith.addf %170, %175 : vector<4x11x64xf32>
    %c0_126 = arith.constant 0 : index
    %c4_127 = arith.constant 4 : index
    %c3456 = arith.constant 3456 : index
    %177 = vector.load %arg8[%c0_126, %c4_127, %c3456] : memref<4x16x3840xbf16, #tpu.memory_space<vmem>>, vector<4x11x192xbf16>
    %178 = arith.extf %177 : vector<4x11x192xbf16> to vector<4x11x192xf32>
    %179 = arith.addf %173, %178 : vector<4x11x192xf32>
    %c0_128 = arith.constant 0 : index
    %c5 = arith.constant 5 : index
    %c1216 = arith.constant 1216 : index
    %180 = vector.load %arg7[%c0_128, %c5, %c1216] : memref<4x16x1280xbf16, #tpu.memory_space<vmem>>, vector<4x11x64xbf16>
    %181 = arith.extf %180 : vector<4x11x64xbf16> to vector<4x11x64xf32>
    %182 = arith.addf %176, %181 : vector<4x11x64xf32>
    %c0_129 = arith.constant 0 : index
    %c5_130 = arith.constant 5 : index
    %c3648 = arith.constant 3648 : index
    %183 = vector.load %arg8[%c0_129, %c5_130, %c3648] : memref<4x16x3840xbf16, #tpu.memory_space<vmem>>, vector<4x11x192xbf16>
    %184 = arith.extf %183 : vector<4x11x192xbf16> to vector<4x11x192xf32>
    %185 = arith.addf %179, %184 : vector<4x11x192xf32>
    %c4_131 = arith.constant 4 : index
    %c0_132 = arith.constant 0 : index
    %186 = vector.load %arg5[%c4_131, %c0_132] : memref<5x256xf32, #tpu.memory_space<vmem>>, vector<1x64xf32>
    %187 = vector.shape_cast %186 : vector<1x64xf32> to vector<1x1x64xf32>
    %188 = vector.broadcast %187 : vector<1x1x64xf32> to vector<4x11x64xf32>
    %189 = arith.addf %182, %188 : vector<4x11x64xf32>
    %cst_133 = arith.constant 0.000000e+00 : f32
    %190 = vector.broadcast %cst_133 : f32 to vector<4x11x64xf32>
    %191 = arith.maximumf %189, %190 : vector<4x11x64xf32>
    %c4_134 = arith.constant 4 : index
    %c64_135 = arith.constant 64 : index
    %192 = vector.load %arg5[%c4_134, %c64_135] : memref<5x256xf32, #tpu.memory_space<vmem>>, vector<1x192xf32>
    %193 = vector.shape_cast %192 : vector<1x192xf32> to vector<1x1x192xf32>
    %194 = vector.broadcast %193 : vector<1x1x192xf32> to vector<4x11x192xf32>
    %195 = arith.addf %185, %194 : vector<4x11x192xf32>
    %cst_136 = arith.constant 0.000000e+00 : f32
    %196 = vector.broadcast %cst_136 : f32 to vector<4x11x192xf32>
    %197 = arith.maximumf %195, %196 : vector<4x11x192xf32>
    %cst_137 = arith.constant dense<0xFF800000> : vector<4x64xf32>
    %198 = vector.multi_reduction <maximumf>, %191, %cst_137 [1] : vector<4x11x64xf32> to vector<4x64xf32>
    %cst_138 = arith.constant dense<0xFF800000> : vector<4x192xf32>
    %199 = vector.multi_reduction <maximumf>, %197, %cst_138 [1] : vector<4x11x192xf32> to vector<4x192xf32>
    %200 = arith.maximumf %150, %198 : vector<4x64xf32>
    %201 = arith.maximumf %151, %199 : vector<4x192xf32>
    %202 = tpu.concatenate %200, %201 in 1 : vector<4x64xf32>, vector<4x192xf32> -> vector<4x256xf32>
    %203 = vector.shape_cast %202 : vector<4x256xf32> to vector<4x1x256xf32>
    %c0_139 = arith.constant 0 : index
    %c0_140 = arith.constant 0 : index
    %c0_141 = arith.constant 0 : index
    %204 = vector.load %arg6[%c0_139, %c0_140, %c0_141] : memref<4x1x256xf32, #tpu.memory_space<vmem>>, vector<4x1x256xf32>
    tpu.vector_store %arg6[%c0_139, %c0_140, %c0_141], %203 {strides = array<i32>} : memref<4x1x256xf32, #tpu.memory_space<vmem>>, vector<4x1x256xf32>,
    return
  }
  func.func @transform_0(%arg0: i32) -> (i32, i32, i32) {
    %c0_i32 = arith.constant 0 : i32
    %c0_i32_0 = arith.constant 0 : i32
    %c0_i32_1 = arith.constant 0 : i32
    return %arg0, %c0_i32, %c0_i32_0 : i32, i32, i32
  }
  func.func @transform_1(%arg0: i32) -> (i32, i32, i32) {
    %c0_i32 = arith.constant 0 : i32
    %c0_i32_0 = arith.constant 0 : i32
    %c0_i32_1 = arith.constant 0 : i32
    return %arg0, %c0_i32, %c0_i32_0 : i32, i32, i32
  }
  func.func @transform_2(%arg0: i32) -> (i32, i32) {
    %c0_i32 = arith.constant 0 : i32
    %c0_i32_0 = arith.constant 0 : i32
    %c0_i32_1 = arith.constant 0 : i32
    return %c0_i32, %c0_i32_0 : i32, i32
  }
  func.func @transform_3(%arg0: i32) -> (i32, i32) {
    %c0_i32 = arith.constant 0 : i32
    %c0_i32_0 = arith.constant 0 : i32
    %c0_i32_1 = arith.constant 0 : i32
    return %c0_i32, %c0_i32_0 : i32, i32
  }
  func.func @transform_4(%arg0: i32) -> (i32, i32) {
    %c0_i32 = arith.constant 0 : i32
    %c0_i32_0 = arith.constant 0 : i32
    %c0_i32_1 = arith.constant 0 : i32
    return %c0_i32, %c0_i32_0 : i32, i32
  }
  func.func @transform_5(%arg0: i32) -> (i32, i32, i32) {
    %c0_i32 = arith.constant 0 : i32
    %c0_i32_0 = arith.constant 0 : i32
    %c0_i32_1 = arith.constant 0 : i32
    return %arg0, %c0_i32, %c0_i32_0 : i32, i32, i32
  }
}

</mosaic_0001>

<bundles_post_ra>
// kernel: forward.1
= control target key start
LH: loop header
LB: loop body
LE: loop exit
PB: predicated region body
PF: predicated region fallthrough
CT: control target
= control target key end

     0   :  { %10 = vsyncpa [#allocation5], 0  ;;  %s14916_s0 = inlined_call_operand.vmem [shape: bf16[8,16,531], index: 0, kind: input, shape index: {}]   ;;  %s14917_s1 = inlined_call_operand.vmem [shape: bf16[8,16,47], index: 1, kind: input, shape index: {}]   ;;  %s14918_s2 = inlined_call_operand.hbm [shape: bf16[531,1280], index: 2, kind: input, shape index: {}]   ;;  %s14919_s3 = inlined_call_operand.hbm [shape: bf16[47,3840], index: 3, kind: input, shape index: {}]   ;;  %s14920_s4 = inlined_call_operand.hbm [shape: f32[5,256], index: 4, kind: input, shape index: {}]   ;;  %s14921_s5 = inlined_call_operand.vmem [shape: f32[8,1,256], index: 5, kind: output, shape index: {}]  }
   0x1   :  { %11 = vsyncpa [#allocation7], 0  ;;  %s11780_s18 = smov 0  }
   0x2 LB: > { %s11739_s19 = smov [#allocation6]   ;;  %s9564_s21 = sadd.s32 4294967295, %s11737_s18   ;;  %s11737_s18 = sphi %s11780_s18, %s17_s18  }
   0x3   : > { %s188_s20 = sshll.u32 %s11739_s19, 4  ;;  %p9566_p0 = scmp.ge.s32.totalorder %s11737_s18, 1  ;;  %s11798_s20 = int_to_ptr.vmem [resolvable:$true] %s188_s20 }
   0x4   : > { %p163_p1 = scmp.lt.s32.totalorder %s11737_s18, 3  ;;  %p11790_p2 = scmp.eq.s32.totalorder %s9564_s21, 0 }
   0x5   : > { %s11740_s24 = smov [#allocation4]   ;;  %s11741_s27 = smov [#allocation8]  }
   0x6   : > { %s15045_s22 = scalar_select %p11790_p2, 1, 0 }
   0x7   : > { %p11794_p3 = pnand %p9566_p0, %p163_p1  ;;  %s175_s25 = sshll.u32 %s11740_s24, 4  ;;  %s11802_s25 = int_to_ptr.vmem [resolvable:$true] %s175_s25 }
   0x8   : > { %s11810_s28 = sshll.u32 %s11741_s27, 4  ;;  %s11639_s6 = scalar_lea.hbm %s14919_s3, 11520  ;;  %s203_s28 = int_to_ptr.vmem [resolvable:$true] %s11810_s28 }
   0x9   : > { %s15046_s23 = scalar_select %p11794_p3, 1, 0 }
   0xa   : > { %p10292_p4 = pneg %p11794_p3  ;;  %p11640_p6 = scmp.ne.s32.totalorder %s14919_s3, %s11639_s6 }
   0xb   : > { %p11646_p10 = scmp.lt.u32.totalorder %s11639_s6, %s14919_s3 }
   0xc   : > { %p11806_p5 = pnand %p11790_p2, %p10292_p4 }
   0xe   : > { %p11820_p7 = pneg %p11806_p5 }
  0x10   : > { %p11642_p8 = pnand %p11820_p7, %p11640_p6 }
  0x12   : > { %p11643_p9 = pneg %p11642_p8 }
  0x14   : > { %p11648_p11 = pnand %p11646_p10, %p11643_p9 }
  0x16   : > { %11651 = shalt.err (!%p11648_p11)
}
  0x17   : > { %s11652_s12 = scalar_lea.vmem %s11798_s20, 11520  ;;  %p11660_p1 = scmp.lt.s32.totalorder %s11798_s20, %s11798_s20 }
  0x18   : > { %p11653_p12 = scmp.ne.s32.totalorder %s11798_s20, %s11652_s12  ;;  %p11661_p4 = scmp.lt.s32.totalorder %s11652_s12, %s11652_s12 }
  0x1a   : > { %p11655_p13 = pnand %p11653_p12, %p11820_p7  ;;  %p11662_p6 = por %p11661_p4, %p11660_p1 }
  0x1c   : > { %p11656_p0 = pneg %p11655_p13 }
  0x1e   : > { %p11663_p8 = pnand %p11662_p6, %p11656_p0 }
  0x20   : > { %11666 = shalt.err (!%p11663_p8)
}
  0x21   : > { %s11742_s13 = smov 1920   ;;  %s11743_s14 = smov 120  }
  0x22   : > { %10298 = dma.hbm_to_vmem [thread:$0]  (!%p11806_p5), %s14919_s3, 11520, %s11798_s20, [#allocation7], %s11742_s13, %s11742_s13, %s11743_s14  }
  0x23   : > { %s11667_s24 = scalar_lea.hbm %s14918_s2, 42880 }
  0x24   : > { %p11668_p9 = scmp.ne.s32.totalorder %s14918_s2, %s11667_s24  ;;  %p11674_p12 = scmp.lt.u32.totalorder %s11667_s24, %s14918_s2 }
  0x26   : > { %p11670_p10 = pnand %p11668_p9, %p11820_p7 }
  0x28   : > { %p11671_p11 = pneg %p11670_p10 }
  0x2a   : > { %p11676_p13 = pnand %p11674_p12, %p11671_p11 }
  0x2c   : > { %11679 = shalt.err (!%p11676_p13)
}
  0x2d   : > { %s11680_s20 = scalar_lea.vmem %s11802_s25, 42880  ;;  %p11688_p6 = scmp.lt.s32.totalorder %s11802_s25, %s11802_s25 }
  0x2e   : > { %p11681_p0 = scmp.ne.s32.totalorder %s11802_s25, %s11680_s20  ;;  %p11689_p8 = scmp.lt.s32.totalorder %s11680_s20, %s11680_s20 }
  0x30   : > { %p11683_p1 = pnand %p11681_p0, %p11820_p7  ;;  %p11690_p9 = por %p11689_p8, %p11688_p6 }
  0x32   : > { %p11684_p4 = pneg %p11683_p1 }
  0x34   : > { %p11691_p10 = pnand %p11690_p9, %p11684_p4 }
  0x36   : > { %11694 = shalt.err (!%p11691_p10)
}
  0x37   : > { %s11744_s7 = smov 640   ;;  %s11745_s8 = smov 40  }
  0x38   : > { %10295 = dma.hbm_to_vmem [thread:$0]  (!%p11806_p5), %s14918_s2, 42880, %s11802_s25, [#allocation5], %s11744_s7, %s11744_s7, %s11745_s8  }
  0x39   : > { %s11695_s14 = scalar_lea.hbm %s14920_s4, 256 }
  0x3a   : > { %p11696_p11 = scmp.ne.s32.totalorder %s14920_s4, %s11695_s14  ;;  %p11702_p0 = scmp.lt.u32.totalorder %s11695_s14, %s14920_s4 }
  0x3c   : > { %p11698_p12 = pnand %p11696_p11, %p11820_p7 }
  0x3e   : > { %p11699_p13 = pneg %p11698_p12 }
  0x40   : > { %p11704_p1 = pnand %p11702_p0, %p11699_p13 }
  0x42   : > { %11707 = shalt.err (!%p11704_p1)
}
  0x43   : > { %s11708_s24 = scalar_lea.vmem %s203_s28, 256  ;;  %p11716_p9 = scmp.lt.s32.totalorder %s203_s28, %s203_s28 }
  0x44   : > { %p11709_p4 = scmp.ne.s32.totalorder %s203_s28, %s11708_s24  ;;  %p11717_p10 = scmp.lt.s32.totalorder %s11708_s24, %s11708_s24 }
  0x46   : > { %p11711_p6 = pnand %p11709_p4, %p11820_p7  ;;  %p11718_p2 = por %p11717_p10, %p11716_p9 }
  0x48   : > { %p11712_p8 = pneg %p11711_p6 }
  0x4a   : > { %p11719_p3 = pnand %p11718_p2, %p11712_p8 }
  0x4c   : > { %11722 = shalt.err (!%p11719_p3)
}
  0x4d   : > { %10301 = dma.hbm_to_vmem [thread:$0]  (!%p11806_p5), %s14920_s4, 256, %s203_s28, [#allocation7]  }
  0x4e   : > { %p15049_p11 = scmp.ne.s32.totalorder %s15046_s23, 0 }
  0x50   : > { %235 = sbr.rel (%p15049_p11) target bundleno = 1396 (0x574), region = 40 }
  0x57   : > { %p15050_p12 = scmp.ne.s32.totalorder %s15045_s22, 0 }
  0x59   : > { %11728 = dma.done.wait (%p15050_p12), [#allocation5], 42880  }
  0x5a   : > { %11730 = vsyncadd (%p15050_p12), [#allocation5], 4294924416 }
  0x5b   : > { %11732 = dma.done.wait (%p15050_p12), [#allocation7], 11776  }
  0x5c   : > { %11734 = vsyncadd (%p15050_p12), [#allocation7], 4294955520  ;;  %v10867_v0 = vld [vmem:[#allocation4 + $0x4] ss:$40 sps:$4 sm:$0xff]   ;;  %v10871_v2 = vld [vmem:[#allocation4] ss:$40 sps:$4 sm:$0xff]  }
  0x5d   : > { %v10869_v1 = vld [vmem:[#allocation4 + $0xc] ss:$40 sps:$4 sm:$0xff]   ;;  %2488 = vmatprep.subr.bf16.mxu0 %v10867_v0  ;;  %v10872_v3 = vld [vmem:[#allocation4 + $0x8] ss:$40 sps:$4 sm:$0xff]   ;;  %v10875_v5 = vld [vmem:[#allocation4 + $0x5c] ss:$40 sps:$4 sm:$0xff]  }
  0x5e   : > { %2707 = vmatprep.subr.bf16.mxu1 %v10869_v1  ;;  %v10873_v4 = vld [vmem:[#allocation4 + $0x54] ss:$40 sps:$4 sm:$0xff]   ;;  %2489 = vmatpush1.bf16.msra.mxu0 %v10871_v2  ;;  %v10877_v6 = vld [vmem:[#allocation4 + $0x50] ss:$40 sps:$4 sm:$0xff]   ;;  %v10879_v8 = vld [vmem:[#allocation4 + $0xa4] ss:$40 sps:$4 sm:$0xff]  }
  0x5f   : > { %2708 = vmatpush1.bf16.msra.mxu1 %v10872_v3  ;;  %2490 = vmatprep.subr.bf16.mxu0 %v10873_v4  ;;  %v10878_v7 = vld [vmem:[#allocation4 + $0x58] ss:$40 sps:$4 sm:$0xff]   ;;  %v10881_v9 = vld [vmem:[#allocation4 + $0xac] ss:$40 sps:$4 sm:$0xff]   ;;  %v10884_v11 = vld [vmem:[#allocation4 + $0xa8] ss:$40 sps:$4 sm:$0xff]  }
  0x60   : > { %2709 = vmatprep.subr.bf16.mxu1 %v10875_v5  ;;  %v10883_v10 = vld [vmem:[#allocation4 + $0xa0] ss:$40 sps:$4 sm:$0xff]   ;;  %v10885_v12 = vld [vmem:[#allocation4 + $0xf4] ss:$40 sps:$4 sm:$0xff]   ;;  %v10889_v14 = vld [vmem:[#allocation4 + $0xf0] ss:$40 sps:$4 sm:$0xff]  }
  0x61   : > { %v10887_v13 = vld [vmem:[#allocation4 + $0xfc] ss:$40 sps:$4 sm:$0xff]   ;;  %v10890_v15 = vld [vmem:[#allocation4 + $0xf8] ss:$40 sps:$4 sm:$0xff]   ;;  %v10893_v17 = vld [vmem:[#allocation4 + $0x14c] ss:$40 sps:$4 sm:$0xff]  }
  0x62   : > { %2491 = vmatpush1.bf16.msra.mxu0 %v10877_v6  ;;  %v10891_v16 = vld [vmem:[#allocation4 + $0x144] ss:$40 sps:$4 sm:$0xff]   ;;  %v10895_v18 = vld [vmem:[#allocation4 + $0x140] ss:$40 sps:$4 sm:$0xff]   ;;  %v10897_v20 = vld [vmem:[#allocation4 + $0x194] ss:$40 sps:$4 sm:$0xff]  }
  0x63   : > { %2710 = vmatpush1.bf16.msra.mxu1 %v10878_v7  ;;  %2492 = vmatprep.subr.bf16.mxu0 %v10879_v8  ;;  %v10896_v19 = vld [vmem:[#allocation4 + $0x148] ss:$40 sps:$4 sm:$0xff]   ;;  %v10899_v21 = vld [vmem:[#allocation4 + $0x19c] ss:$40 sps:$4 sm:$0xff]   ;;  %v10902_v23 = vld [vmem:[#allocation4 + $0x198] ss:$40 sps:$4 sm:$0xff]  }
  0x64   : > { %2711 = vmatprep.subr.bf16.mxu1 %v10881_v9  ;;  %v10901_v22 = vld [vmem:[#allocation4 + $0x190] ss:$40 sps:$4 sm:$0xff]   ;;  %v10903_v24 = vld [vmem:[#allocation4 + $0x1e4] ss:$40 sps:$4 sm:$0xff]   ;;  %v10907_v26 = vld [vmem:[#allocation4 + $0x1e0] ss:$40 sps:$4 sm:$0xff]  }
  0x65   : > { %v10905_v25 = vld [vmem:[#allocation4 + $0x1ec] ss:$40 sps:$4 sm:$0xff]   ;;  %v10908_v27 = vld [vmem:[#allocation4 + $0x1e8] ss:$40 sps:$4 sm:$0xff]   ;;  %v10911_v29 = vld [vmem:[#allocation4 + $0x23c] ss:$40 sps:$4 sm:$0xff]  }
  0x66   : > { %2493 = vmatpush1.bf16.msra.mxu0 %v10883_v10  ;;  %v10909_v28 = vld [vmem:[#allocation4 + $0x234] ss:$40 sps:$4 sm:$0xff]   ;;  %s9575_s22 = sshll.u32 %s9564_s21, 2  ;;  %v10913_v30 = vld [vmem:[#allocation4 + $0x230] ss:$40 sps:$4 sm:$0xff]   ;;  %vm2454_vm0 = vcmask 1040384  }
  0x67   : > { %2712 = vmatpush1.bf16.msra.mxu1 %v10884_v11  ;;  %2494 = vmatprep.subr.bf16.mxu0 %v10885_v12  ;;  %v10914_v31 = vld [vmem:[#allocation4 + $0x238] ss:$40 sps:$4 sm:$0xff]   ;;  %v10915_v32 = vld [vmem:[#allocation4 + $0x284] ss:$40 sps:$4 sm:$0xff]   ;;  %p279_p2 = scmp.lt.s32.totalorder %s9575_s22, 7  ;;  %vm2455_vm1 = vcmask 1041408  }
  0x68   : > { %2713 = vmatprep.subr.bf16.mxu1 %v10887_v13  ;;  %v10917_v33 = vld [vmem:[#allocation4 + $0x28c] ss:$40 sps:$4 sm:$0xff]   ;;  %v10919_v34 = vld [vmem:[#allocation4 + $0x280] ss:$40 sps:$4 sm:$0xff]   ;;  %v10923_v37 = vld [vmem:[#allocation4 + $0x2dc] ss:$40 sps:$4 sm:$0xff]  }
  0x69   : > { %v10920_v35 = vld [vmem:[#allocation4 + $0x288] ss:$40 sps:$4 sm:$0xff]   ;;  %v10921_v36 = vld [vmem:[#allocation4 + $0x2d4] ss:$40 sps:$4 sm:$0xff]   ;;  %s15355_s22 = smov (!%p279_p2, %s9575_s22), 7  ;;  %vm2441_vm2 = vcmask 154624  }
  0x6a   : > { %2495 = vmatpush1.bf16.msra.mxu0 %v10889_v14  ;;  %v10925_v38 = vld [vmem:[#allocation4 + $0x2d0] ss:$40 sps:$4 sm:$0xff]   ;;  %v10927_v40 = vld [vmem:[#allocation4 + $0x324] ss:$40 sps:$4 sm:$0xff]   ;;  %s10279_s21 = smul.u32 40, %s15355_s22  ;;  %s10118_s9 = sshll.u32 %s15355_s22, 3 }
  0x6b   : > { %2714 = vmatpush1.bf16.msra.mxu1 %v10890_v15  ;;  %2496 = vmatprep.subr.bf16.mxu0 %v10891_v16  ;;  %v10926_v39 = vld [vmem:[#allocation4 + $0x2d8] ss:$40 sps:$4 sm:$0xff]   ;;  %v10929_v41 = vld [vmem:[#allocation4 + $0x32c] ss:$40 sps:$4 sm:$0xff]   ;;  %v10932_v43 = vld [vmem:[#allocation4 + $0x328] ss:$40 sps:$4 sm:$0xff]   ;;  %s11955_s6 = scalar_lea.vmem %s14917_s1, %s10118_s9 }
  0x6c   : > { %2715 = vmatprep.subr.bf16.mxu1 %v10893_v17  ;;  %v10931_v42 = vld [vmem:[#allocation4 + $0x320] ss:$40 sps:$4 sm:$0xff]   ;;  %v10933_v44 = vld [vmem:[#allocation4 + $0x374] ss:$40 sps:$4 sm:$0xff]   ;;  %s11901_s28 = scalar_lea.vmem %s14916_s0, %s10279_s21  ;;  %v10937_v46 = vld [vmem:[#allocation4 + $0x370] ss:$40 sps:$4 sm:$0xff]  }
  0x6d   : > { %v10935_v45 = vld [vmem:[#allocation4 + $0x37c] ss:$40 sps:$4 sm:$0xff]   ;;  %v10938_v48 = vld [vmem:[#allocation4 + $0x378] ss:$40 sps:$4 sm:$0xff]   ;;  %v10941_v50 = vld [vmem:[#allocation4 + $0x3cc] ss:$40 sps:$4 sm:$0xff]  }
  0x6e   : > { %2497 = vmatpush1.bf16.msra.mxu0 %v10895_v18  ;;  %v10963_v47 = vld [vmem:[%s11901_s28 + $0x4] ss:$20 sps:$4 sm:$0xff]   ;;  %v10943_v51 = vld [vmem:[#allocation4 + $0x3c0] ss:$40 sps:$4 sm:$0xff]   ;;  %v10945_v53 = vld [vmem:[#allocation4 + $0x414] ss:$40 sps:$4 sm:$0xff]  }
  0x6f   : > { %2716 = vmatpush1.bf16.msra.mxu1 %v10896_v19  ;;  %2498 = vmatprep.subr.bf16.mxu0 %v10897_v20  ;;  %v10939_v49 = vld [vmem:[#allocation4 + $0x3c4] ss:$40 sps:$4 sm:$0xff]   ;;  %v10944_v52 = vld [vmem:[#allocation4 + $0x3c8] ss:$40 sps:$4 sm:$0xff]   ;;  %v10950_v56 = vld [vmem:[#allocation4 + $0x418] ss:$40 sps:$4 sm:$0xff]  }
  0x70   : > { %2717 = vmatprep.subr.bf16.mxu1 %v10899_v21  ;;  %2520 = vmatprep.mubr.bf16.mxu0 %v10963_v47  ;;  %v10947_v54 = vld [vmem:[#allocation4 + $0x41c] ss:$40 sps:$4 sm:$0xff]   ;;  %v10949_v55 = vld [vmem:[#allocation4 + $0x410] ss:$40 sps:$4 sm:$0xff]   ;;  %v10953_v58 = vld [vmem:[#allocation4 + $0x46c] ss:$40 sps:$4 sm:$0xff]  }
  0x71   : > { %2739 = vmatprep.mubr.bf16.mxu1 %v10963_v47  ;;  %v10951_v57 = vld [vmem:[#allocation4 + $0x464] ss:$40 sps:$4 sm:$0xff]   ;;  %v10955_v59 = vld [vmem:[#allocation4 + $0x460] ss:$40 sps:$4 sm:$0xff]   ;;  %v10957_v61 = vld [vmem:[#allocation4 + $0x4b4] ss:$40 sps:$4 sm:$0xff]  }
  0x72   : > { %2499 = vmatpush1.bf16.msra.mxu0 %v10901_v22  ;;  %v10956_v60 = vld [vmem:[#allocation4 + $0x468] ss:$40 sps:$4 sm:$0xff]   ;;  %v10959_v62 = vld [vmem:[#allocation4 + $0x4bc] ss:$40 sps:$4 sm:$0xff]   ;;  %v10962_v0 = vld [vmem:[#allocation4 + $0x4b8] ss:$40 sps:$4 sm:$0xff]  }
  0x73   : > { %2718 = vmatpush1.bf16.msra.mxu1 %v10902_v23  ;;  %2500 = vmatprep.subr.bf16.mxu0 %v10903_v24  ;;  %v10961_v63 = vld [vmem:[#allocation4 + $0x4b0] ss:$40 sps:$4 sm:$0xff]   ;;  %v10967_v1 = vld [vmem:[#allocation4 + $0x504] ss:$40 sps:$4 sm:$0xff]   ;;  %v10965_v3 = vld [vmem:[#allocation4 + $0x500] ss:$40 sps:$4 sm:$0xff]  }
  0x74   : > { %2719 = vmatprep.subr.bf16.mxu1 %v10905_v25  ;;  %v10970_v2 = vld [vmem:[#allocation4 + $0x50c] ss:$40 sps:$4 sm:$0xff]   ;;  %v10968_v4 = vld [vmem:[#allocation4 + $0x508] ss:$40 sps:$4 sm:$0xff]   ;;  %v10977_v7 = vld [vmem:[#allocation4 + $0x55c] ss:$40 sps:$4 sm:$0xff]  }
  0x75   : > { %v10971_v5 = vld [vmem:[%s11901_s28] ss:$20 sps:$4 sm:$0xff]   ;;  %v10972_v8 = vld [vmem:[#allocation4 + $0x550] ss:$40 sps:$4 sm:$0xff]   ;;  %v10980_v10 = vld [vmem:[#allocation4 + $0x5a4] ss:$40 sps:$4 sm:$0xff]  }
  0x76   : > { %2501 = vmatpush1.bf16.msra.mxu0 %v10907_v26  ;;  %v10974_v6 = vld [vmem:[#allocation4 + $0x554] ss:$40 sps:$4 sm:$0xff]   ;;  %v10975_v9 = vld [vmem:[#allocation4 + $0x558] ss:$40 sps:$4 sm:$0xff]   ;;  %v10981_v13 = vld [vmem:[#allocation4 + $0x5a8] ss:$40 sps:$4 sm:$0xff]  }
  0x77   : > { %2720 = vmatpush1.bf16.msra.mxu1 %v10908_v27  ;;  %2502 = vmatprep.subr.bf16.mxu0 %v10909_v28  ;;  %v10983_v11 = vld [vmem:[#allocation4 + $0x5ac] ss:$40 sps:$4 sm:$0xff]   ;;  %v10978_v12 = vld [vmem:[#allocation4 + $0x5a0] ss:$40 sps:$4 sm:$0xff]   ;;  %v10989_v17 = vld [vmem:[#allocation4 + $0x5fc] ss:$40 sps:$4 sm:$0xff]  }
  0x78   : > { %2721 = vmatprep.subr.bf16.mxu1 %v10911_v29  ;;  %v11026_v14 = vld [vmem:[%s11901_s28 + $0x2c] ss:$20 sps:$4 sm:$0xff]   ;;  %v11028_v15 = vld [vmem:[%s11901_s28 + $0x28] ss:$20 sps:$4 sm:$0xff]   ;;  %v10984_v18 = vld [vmem:[#allocation4 + $0x5f0] ss:$40 sps:$4 sm:$0xff]  }
  0x79   : > { %v10986_v16 = vld [vmem:[#allocation4 + $0x5f4] ss:$40 sps:$4 sm:$0xff]   ;;  %v10987_v19 = vld [vmem:[#allocation4 + $0x5f8] ss:$40 sps:$4 sm:$0xff]   ;;  %v10992_v20 = vld [vmem:[#allocation4 + $0x644] ss:$40 sps:$4 sm:$0xff]  }
  0x7a   : > { %2503 = vmatpush1.bf16.msra.mxu0 %v10913_v30  ;;  %v10995_v21 = vld [vmem:[#allocation4 + $0x64c] ss:$40 sps:$4 sm:$0xff]   ;;  %v10990_v22 = vld [vmem:[#allocation4 + $0x640] ss:$40 sps:$4 sm:$0xff]   ;;  %v11043_v25 = vld [vmem:[%s11901_s28 + $0x50] ss:$20 sps:$4 sm:$0xff]  }
  0x7b   : > { %2722 = vmatpush1.bf16.msra.mxu1 %v10914_v31  ;;  %2504 = vmatprep.subr.bf16.mxu0 %v10915_v32  ;;  %v11041_v23 = vld [vmem:[%s11901_s28 + $0x54] ss:$20 sps:$4 sm:$0xff]   ;;  %v11001_v27 = vld [vmem:[#allocation4 + $0x69c] ss:$40 sps:$4 sm:$0xff]   ;;  %v10996_v28 = vld [vmem:[#allocation4 + $0x690] ss:$40 sps:$4 sm:$0xff]  }
  0x7c   : > { %2723 = vmatprep.subr.bf16.mxu1 %v10917_v33  ;;  %v10993_v24 = vld [vmem:[#allocation4 + $0x648] ss:$40 sps:$4 sm:$0xff]   ;;  %v10998_v26 = vld [vmem:[#allocation4 + $0x694] ss:$40 sps:$4 sm:$0xff]   ;;  %v10999_v29 = vld [vmem:[#allocation4 + $0x698] ss:$40 sps:$4 sm:$0xff]  }
  0x7d   : > { %v11004_v30 = vld [vmem:[#allocation4 + $0x6e4] ss:$40 sps:$4 sm:$0xff]   ;;  %v11056_v31 = vld [vmem:[%s11901_s28 + $0x7c] ss:$20 sps:$4 sm:$0xff]   ;;  %v11002_v33 = vld [vmem:[#allocation4 + $0x6e0] ss:$40 sps:$4 sm:$0xff]  }
  0x7e   : > { %2505 = vmatpush1.bf16.msra.mxu0 %v10919_v34  ;;  %v11007_v32 = vld [vmem:[#allocation4 + $0x6ec] ss:$40 sps:$4 sm:$0xff]   ;;  %v11005_v34 = vld [vmem:[#allocation4 + $0x6e8] ss:$40 sps:$4 sm:$0xff]   ;;  %s11748_s20 = smov 64   ;;  %vm4126_vm3 = vcmask 1046528  }
  0x7f   : > { %2724 = vmatpush1.bf16.msra.mxu1 %v10920_v35  ;;  %2506 = vmatprep.subr.bf16.mxu0 %v10921_v36  ;;  %v11058_v35 = vld [vmem:[%s11901_s28 + $0x78] ss:$20 sps:$4 sm:$0xff]   ;;  %v11010_v36 = vld [vmem:[#allocation4 + $0x734] ss:$40 sps:$4 sm:$0xff]   ;;  %vm4127_vm4 = vcmask 1047552   ;;  %vm4113_vm5 = vcmask 384000  }
  0x80   : > { %2725 = vmatprep.subr.bf16.mxu1 %v10923_v37  ;;  %v11013_v37 = vld [vmem:[#allocation4 + $0x73c] ss:$40 sps:$4 sm:$0xff]   ;;  %v11020_v47 = vld [vmem:[#allocation4 + $0x7d0] ss:$40 sps:$4 sm:$0xff]   ;;  %vm6275_vm6 = vcmask 1045504   ;;  %vm6984_vm7 = vcmask 1044480  }
  0x81   : > { %vm5807_vm8 = vcmask 523264   ;;  %vm5915_vm9 = vcmask 522240   ;;  %vm6468_vm10 = vcmask 521216   ;;  %vm8001_vm11 = vcmask 1043456   ;;  %s9581_s7 = sshll.u32 %s15355_s22, 1 }
  0x82   : > { %2507 = vmatpush1.bf16.msra.mxu0 %v10925_v38  ;;  %v11008_v38 = vld [vmem:[#allocation4 + $0x730] ss:$40 sps:$4 sm:$0xff]   ;;  %vm7231_vm12 = vcmask 1048064   ;;  %vm7233_vm13 = vcmask 1044992   ;;  %vm8193_vm14 = vcmask 1043968   ;;  %vm9021_vm15 = vcmask 1042432   ;;  %s296_s11 = scalar_lea.vmem %s14921_s5, %s9581_s7 }
  0x83   : > { %2726 = vmatpush1.bf16.msra.mxu1 %v10926_v39  ;;  %2508 = vmatprep.subr.bf16.mxu0 %v10927_v40  ;;  %v11011_v39 = vld [vmem:[#allocation4 + $0x738] ss:$40 sps:$4 sm:$0xff]  }
  0x84   : > { %2727 = vmatprep.subr.bf16.mxu1 %v10929_v41  ;;  %v11071_v40 = vld [vmem:[%s11901_s28 + $0xc] ss:$20 sps:$4 sm:$0xff]  }
  0x85   : > { %v11016_v41 = vld [vmem:[#allocation4 + $0x784] ss:$40 sps:$4 sm:$0xff]  }
  0x86   : > { %2509 = vmatpush1.bf16.msra.mxu0 %v10931_v42  ;;  %v11019_v42 = vld [vmem:[#allocation4 + $0x78c] ss:$40 sps:$4 sm:$0xff]  }
  0x87   : > { %2728 = vmatpush1.bf16.msra.mxu1 %v10932_v43  ;;  %2510 = vmatprep.subr.bf16.mxu0 %v10933_v44  ;;  %v11014_v43 = vld [vmem:[#allocation4 + $0x780] ss:$40 sps:$4 sm:$0xff]  }
  0x88   : > { %2729 = vmatprep.subr.bf16.mxu1 %v10935_v45  ;;  %v11017_v44 = vld [vmem:[#allocation4 + $0x788] ss:$40 sps:$4 sm:$0xff]   ;;  %v11022_v45 = vld [vmem:[#allocation4 + $0x7d4] ss:$40 sps:$4 sm:$0xff]  }
  0x8a   : > { %2511 = vmatpush1.bf16.msra.mxu0 %v10937_v46  ;;  %v11025_v46 = vld [vmem:[#allocation4 + $0x7dc] ss:$40 sps:$4 sm:$0xff]  }
  0x8b   : > { %2730 = vmatpush1.bf16.msra.mxu1 %v10938_v48  ;;  %2512 = vmatprep.subr.bf16.mxu0 %v10939_v49  ;;  %v11023_v48 = vld [vmem:[#allocation4 + $0x7d8] ss:$40 sps:$4 sm:$0xff]   ;;  %v11031_v49 = vld [vmem:[#allocation4 + $0x824] ss:$40 sps:$4 sm:$0xff]  }
  0x8c   : > { %2731 = vmatprep.subr.bf16.mxu1 %v10941_v50  ;;  %v11034_v50 = vld [vmem:[#allocation4 + $0x82c] ss:$40 sps:$4 sm:$0xff]  }
  0x8e   : > { %2513 = vmatpush1.bf16.msra.mxu0 %v10943_v51  ;;  %v11029_v51 = vld [vmem:[#allocation4 + $0x820] ss:$40 sps:$4 sm:$0xff]  }
  0x8f   : > { %2732 = vmatpush1.bf16.msra.mxu1 %v10944_v52  ;;  %2514 = vmatprep.subr.bf16.mxu0 %v10945_v53  ;;  %v11032_v52 = vld [vmem:[#allocation4 + $0x828] ss:$40 sps:$4 sm:$0xff]   ;;  %v11037_v53 = vld [vmem:[#allocation4 + $0x874] ss:$40 sps:$4 sm:$0xff]  }
  0x90   : > { %2733 = vmatprep.subr.bf16.mxu1 %v10947_v54  ;;  %v11040_v54 = vld [vmem:[#allocation4 + $0x87c] ss:$40 sps:$4 sm:$0xff]  }
  0x92   : > { %2515 = vmatpush1.bf16.msra.mxu0 %v10949_v55  ;;  %v11035_v55 = vld [vmem:[#allocation4 + $0x870] ss:$40 sps:$4 sm:$0xff]  }
  0x93   : > { %2734 = vmatpush1.bf16.msra.mxu1 %v10950_v56  ;;  %2516 = vmatprep.subr.bf16.mxu0 %v10951_v57  ;;  %v11038_v56 = vld [vmem:[#allocation4 + $0x878] ss:$40 sps:$4 sm:$0xff]   ;;  %v11046_v57 = vld [vmem:[#allocation4 + $0x8c4] ss:$40 sps:$4 sm:$0xff]  }
  0x94   : > { %2735 = vmatprep.subr.bf16.mxu1 %v10953_v58  ;;  %v11049_v58 = vld [vmem:[#allocation4 + $0x8cc] ss:$40 sps:$4 sm:$0xff]  }
  0x96   : > { %2517 = vmatpush1.bf16.msra.mxu0 %v10955_v59  ;;  %v11044_v59 = vld [vmem:[#allocation4 + $0x8c0] ss:$40 sps:$4 sm:$0xff]  }
  0x97   : > { %2736 = vmatpush1.bf16.msra.mxu1 %v10956_v60  ;;  %2518 = vmatprep.subr.bf16.mxu0 %v10957_v61  ;;  %v11047_v60 = vld [vmem:[#allocation4 + $0x8c8] ss:$40 sps:$4 sm:$0xff]   ;;  %v11052_v61 = vld [vmem:[#allocation4 + $0x914] ss:$40 sps:$4 sm:$0xff]  }
  0x98   : > { %2737 = vmatprep.subr.bf16.mxu1 %v10959_v62  ;;  %v11055_v62 = vld [vmem:[#allocation4 + $0x91c] ss:$40 sps:$4 sm:$0xff]  }
  0x9a   : > { %2519 = vmatpush1.bf16.msra.mxu0 %v10961_v63  ;;  %v11050_v63 = vld [vmem:[#allocation4 + $0x910] ss:$40 sps:$4 sm:$0xff]  }
  0x9b   : > { %2738 = vmatpush1.bf16.msra.mxu1 %v10962_v0  ;;  %2561 = vmatprep.subr.bf16.mxu0 %v10967_v1  ;;  %v11053_v0 = vld [vmem:[#allocation4 + $0x918] ss:$40 sps:$4 sm:$0xff]   ;;  %v11061_v1 = vld [vmem:[#allocation4 + $0x964] ss:$40 sps:$4 sm:$0xff]  }
  0x9c   : > { %2780 = vmatprep.subr.bf16.mxu1 %v10970_v2  ;;  %v11064_v2 = vld [vmem:[#allocation4 + $0x96c] ss:$40 sps:$4 sm:$0xff]  }
  0x9d   : > { %2521 = vmatmul.mubr.bf16.vlgmr.msra.gmra.mrb[0].mxu0 %v10971_v5 }
  0x9e   : > { %2740 = vmatmul.mubr.bf16.vlgmr.msra.gmra.mrb[0].mxu1 %v10971_v5  ;;  %2562 = vmatpush1.bf16.msra.mxu0 %v10965_v3  ;;  %v11059_v3 = vld [vmem:[#allocation4 + $0x960] ss:$40 sps:$4 sm:$0xff]   ;;  %v11067_v5 = vld [vmem:[#allocation4 + $0x9b4] ss:$40 sps:$4 sm:$0xff]  }
  0x9f   : > { %2781 = vmatpush1.bf16.msra.mxu1 %v10968_v4  ;;  %2563 = vmatprep.subr.bf16.mxu0 %v10974_v6  ;;  %v11062_v4 = vld [vmem:[#allocation4 + $0x968] ss:$40 sps:$4 sm:$0xff]   ;;  %v11070_v6 = vld [vmem:[#allocation4 + $0x9bc] ss:$40 sps:$4 sm:$0xff]  }
  0xa0   : > { %2782 = vmatprep.subr.bf16.mxu1 %v10977_v7  ;;  %2530 = vmatprep.mubr.bf16.mxu0 %v11026_v14  ;;  %v661_v7 = vld [vmem:[#allocation4 + $0xa50] sm:$0x33] }
  0xa1   : > { %2749 = vmatprep.mubr.bf16.mxu1 %v11026_v14  ;;  %v11084_v14 = vld [vmem:[#allocation4 + $0xa0c] ss:$40 sps:$4 sm:$0xff]  }
  0xa2   : > { %2564 = vmatpush1.bf16.msra.mxu0 %v10972_v8  ;;  %v11065_v8 = vld [vmem:[#allocation4 + $0x9b0] ss:$40 sps:$4 sm:$0xff]  }
  0xa3   : > { %2783 = vmatpush1.bf16.msra.mxu1 %v10975_v9  ;;  %2565 = vmatprep.subr.bf16.mxu0 %v10980_v10  ;;  %v11746_v9 = vmov 65535  }
  0xa4   : > { %2784 = vmatprep.subr.bf16.mxu1 %v10983_v11  ;;  %v2456_v10 = vsel %vm2454_vm0, 4294967295, %v11746_v9  ;;  %v11068_v11 = vld [vmem:[#allocation4 + $0x9b8] ss:$40 sps:$4 sm:$0xff]   ;;  %vm9270_vm0 = vcmask 518144  }
  0xa5   : > { %2531 = vmatmul.mubr.bf16.gmra.mrb[4].mxu0 %v11028_v15 }
  0xa6   : > { %2750 = vmatmul.mubr.bf16.gmra.mrb[4].mxu1 %v11028_v15  ;;  %2566 = vmatpush1.bf16.msra.mxu0 %v10978_v12  ;;  %v662_v12 = vld [vmem:[#allocation4 + $0xa58] sm:$0x33]  ;;  %v9933_v15 = vcombine.high %v661_v7, %v661_v7 }
  0xa7   : > { %2785 = vmatpush1.bf16.msra.mxu1 %v10981_v13  ;;  %2567 = vmatprep.subr.bf16.mxu0 %v10986_v16  ;;  %v11076_v13 = vld [vmem:[#allocation4 + $0xa04] ss:$40 sps:$4 sm:$0xff]   ;;  %v11913_v16 = vsel %vm2455_vm1, %v2456_v10, 0  ;;  %v11145_v10 = vld [vmem:[#allocation4 + $0x290] ss:$40 sps:$4 sm:$0xff]   ;;  %vm9391_vm1 = vcmask 1041409  }
  0xa8   : > { %2786 = vmatprep.subr.bf16.mxu1 %v10989_v17  ;;  %2540 = vmatprep.mubr.bf16.mxu0 %v11041_v23  ;;  %v11073_v17 = vld [vmem:[%s11901_s28 + $0x8] ss:$20 sps:$4 sm:$0xff]  }
  0xa9   : > { %2759 = vmatprep.mubr.bf16.mxu1 %v11041_v23  ;;  %v11082_v23 = vld [vmem:[#allocation4 + $0xa08] ss:$40 sps:$4 sm:$0xff]  }
  0xaa   : > { %2568 = vmatpush1.bf16.msra.mxu0 %v10984_v18  ;;  %v9935_v18 = vcombine.high %v662_v12, %v662_v12 }
  0xab   : > { %2787 = vmatpush1.bf16.msra.mxu1 %v10987_v19  ;;  %2569 = vmatprep.subr.bf16.mxu0 %v10992_v20  ;;  %v11074_v19 = vld [vmem:[#allocation4 + $0xa00] ss:$40 sps:$4 sm:$0xff]  }
  0xac   : > { %2788 = vmatprep.subr.bf16.mxu1 %v10995_v21  ;;  %v11077_v20 = vld [vmem:[%s11901_s28 + $0x34] ss:$20 sps:$4 sm:$0xff]   ;;  %v9932_v21 = vcombine.low %v661_v7, %v661_v7  ;;  %v11150_v7 = vld [vmem:[#allocation4 + $0x29c] ss:$40 sps:$4 sm:$0xff]  }
  0xad   : > { %2541 = vmatmul.mubr.bf16.gmra.mrb[8].mxu0 %v11043_v25 }
  0xae   : > { %2760 = vmatmul.mubr.bf16.gmra.mrb[8].mxu1 %v11043_v25  ;;  %2570 = vmatpush1.bf16.msra.mxu0 %v10990_v22  ;;  %v2462_v22 = vand.u32 %v9933_v15, %v11913_v16  ;;  %v2468_v25 = vand.u32 %v9935_v18, %v11913_v16  ;;  %v11154_v15 = vld [vmem:[#allocation4 + $0x2e8] ss:$40 sps:$4 sm:$0xff]   ;;  %v11162_v18 = vld [vmem:[#allocation4 + $0x33c] ss:$40 sps:$4 sm:$0xff]  }
  0xaf   : > { %2789 = vmatpush1.bf16.msra.mxu1 %v10993_v24  ;;  %2571 = vmatprep.subr.bf16.mxu0 %v10998_v26  ;;  %v9934_v24 = vcombine.low %v662_v12, %v662_v12  ;;  %v2459_v26 = vand.u32 %v9932_v21, %v11913_v16  ;;  %v11153_v12 = vld [vmem:[#allocation4 + $0x2e4] ss:$40 sps:$4 sm:$0xff]  }
  0xb0   : > { %2790 = vmatprep.subr.bf16.mxu1 %v11001_v27  ;;  %2550 = vmatprep.mubr.bf16.mxu0 %v11056_v31  ;;  %v11095_v27 = vld [vmem:[#allocation4 + $0x14] ss:$40 sps:$4 sm:$0xff]   ;;  %v11165_v21 = vld [vmem:[#allocation4 + $0x384] ss:$40 sps:$4 sm:$0xff]  }
  0xb1   : > { %2769 = vmatprep.mubr.bf16.mxu1 %v11056_v31  ;;  %v11098_v31 = vld [vmem:[#allocation4 + $0x1c] ss:$40 sps:$4 sm:$0xff]  }
  0xb2   : > { %2572 = vmatpush1.bf16.msra.mxu0 %v10996_v28  ;;  %v2465_v28 = vand.u32 %v9934_v24, %v11913_v16  ;;  %v11166_v24 = vld [vmem:[#allocation4 + $0x388] ss:$40 sps:$4 sm:$0xff]  }
  0xb3   : > { %2791 = vmatpush1.bf16.msra.mxu1 %v10999_v29  ;;  %2573 = vmatprep.subr.bf16.mxu0 %v11004_v30  ;;  %v11079_v29 = vld [vmem:[%s11901_s28 + $0x30] ss:$20 sps:$4 sm:$0xff]  }
  0xb4   : > { %2792 = vmatprep.subr.bf16.mxu1 %v11007_v32  ;;  %v11080_v30 = vld [vmem:[%s11901_s28 + $0x5c] ss:$20 sps:$4 sm:$0xff]   ;;  %v11085_v32 = vld [vmem:[%s11901_s28 + $0x58] ss:$20 sps:$4 sm:$0xff]  }
  0xb5   : > { %2551 = vmatmul.mubr.bf16.gmra.mrb[12].mxu0 %v11058_v35 }
  0xb6   : > { %2770 = vmatmul.mubr.bf16.gmra.mrb[12].mxu1 %v11058_v35  ;;  %2574 = vmatpush1.bf16.msra.mxu0 %v11002_v33  ;;  %v11088_v33 = vld [vmem:[%s11901_s28 + $0x84] ss:$20 sps:$4 sm:$0xff]   ;;  %v14932_v35 = vmov 0  }
  0xb7   : > { %2793 = vmatpush1.bf16.msra.mxu1 %v11005_v34  ;;  %2575 = vmatprep.subr.bf16.mxu0 %v11010_v36  ;;  %v11090_v34 = vld [vmem:[%s11901_s28 + $0x80] ss:$20 sps:$4 sm:$0xff]   ;;  %v11099_v36 = vld [vmem:[%s11901_s28 + $0x10] ss:$20 sps:$4 sm:$0xff]  }
  0xb8   : > { %2794 = vmatprep.subr.bf16.mxu1 %v11013_v37  ;;  %2593 = vmatprep.mubr.bf16.mxu0 %v11071_v40  ;;  %v11093_v37 = vld [vmem:[#allocation4 + $0x10] ss:$40 sps:$4 sm:$0xff]  }
  0xb9   : > { %2812 = vmatprep.mubr.bf16.mxu1 %v11071_v40  ;;  %v11105_v40 = vld [vmem:[#allocation4 + $0x6c] ss:$40 sps:$4 sm:$0xff]  }
  0xba   : > { %2576 = vmatpush1.bf16.msra.mxu0 %v11008_v38  ;;  %v11096_v38 = vld [vmem:[#allocation4 + $0x18] ss:$40 sps:$4 sm:$0xff]  }
  0xbb   : > { %2795 = vmatpush1.bf16.msra.mxu1 %v11011_v39  ;;  %2577 = vmatprep.subr.bf16.mxu0 %v11016_v41  ;;  %v11102_v39 = vld [vmem:[#allocation4 + $0x64] ss:$40 sps:$4 sm:$0xff]   ;;  %v11100_v41 = vld [vmem:[#allocation4 + $0x60] ss:$40 sps:$4 sm:$0xff]  }
  0xbc   : > { %2796 = vmatprep.subr.bf16.mxu1 %v11019_v42  ;;  %v11103_v42 = vld [vmem:[#allocation4 + $0x68] ss:$40 sps:$4 sm:$0xff]  }
  0xbe   : > { %2578 = vmatpush1.bf16.msra.mxu0 %v11014_v43  ;;  %v11108_v43 = vld [vmem:[#allocation4 + $0xb4] ss:$40 sps:$4 sm:$0xff]  }
  0xbf   : > { %2797 = vmatpush1.bf16.msra.mxu1 %v11017_v44  ;;  %2579 = vmatprep.subr.bf16.mxu0 %v11022_v45  ;;  %v11111_v44 = vld [vmem:[#allocation4 + $0xbc] ss:$40 sps:$4 sm:$0xff]   ;;  %v11112_v45 = vld [vmem:[%s11901_s28 + $0x38] ss:$20 sps:$4 sm:$0xff]  }
  0xc0   : > { %2798 = vmatprep.subr.bf16.mxu1 %v11025_v46  ;;  %v11106_v46 = vld [vmem:[#allocation4 + $0xb0] ss:$40 sps:$4 sm:$0xff]  }
  0xc2   : > { %2580 = vmatpush1.bf16.msra.mxu0 %v11020_v47  ;;  %v11109_v47 = vld [vmem:[#allocation4 + $0xb8] ss:$40 sps:$4 sm:$0xff]  }
  0xc3   : > { %2799 = vmatpush1.bf16.msra.mxu1 %v11023_v48  ;;  %2581 = vmatprep.subr.bf16.mxu0 %v11031_v49  ;;  %v11115_v48 = vld [vmem:[#allocation4 + $0x104] ss:$40 sps:$4 sm:$0xff]  }
  0xc4   : > { %2800 = vmatprep.subr.bf16.mxu1 %v11034_v50  ;;  %v11118_v49 = vld [vmem:[#allocation4 + $0x10c] ss:$40 sps:$4 sm:$0xff]   ;;  %v11113_v50 = vld [vmem:[#allocation4 + $0x100] ss:$40 sps:$4 sm:$0xff]  }
  0xc6   : > { %2582 = vmatpush1.bf16.msra.mxu0 %v11029_v51  ;;  %v11116_v51 = vld [vmem:[#allocation4 + $0x108] ss:$40 sps:$4 sm:$0xff]  }
  0xc7   : > { %2801 = vmatpush1.bf16.msra.mxu1 %v11032_v52  ;;  %2583 = vmatprep.subr.bf16.mxu0 %v11037_v53  ;;  %v11121_v52 = vld [vmem:[#allocation4 + $0x154] ss:$40 sps:$4 sm:$0xff]  }
  0xc8   : > { %2802 = vmatprep.subr.bf16.mxu1 %v11040_v54  ;;  %v11124_v53 = vld [vmem:[#allocation4 + $0x15c] ss:$40 sps:$4 sm:$0xff]   ;;  %v11125_v54 = vld [vmem:[%s11901_s28 + $0x60] ss:$20 sps:$4 sm:$0xff]  }
  0xca   : > { %2584 = vmatpush1.bf16.msra.mxu0 %v11035_v55  ;;  %v11119_v55 = vld [vmem:[#allocation4 + $0x150] ss:$40 sps:$4 sm:$0xff]  }
  0xcb   : > { %2803 = vmatpush1.bf16.msra.mxu1 %v11038_v56  ;;  %2585 = vmatprep.subr.bf16.mxu0 %v11046_v57  ;;  %v11122_v56 = vld [vmem:[#allocation4 + $0x158] ss:$40 sps:$4 sm:$0xff]   ;;  %v11128_v57 = vld [vmem:[#allocation4 + $0x1a4] ss:$40 sps:$4 sm:$0xff]  }
  0xcc   : > { %2804 = vmatprep.subr.bf16.mxu1 %v11049_v58  ;;  %v11131_v58 = vld [vmem:[#allocation4 + $0x1ac] ss:$40 sps:$4 sm:$0xff]  }
  0xce   : > { %2586 = vmatpush1.bf16.msra.mxu0 %v11044_v59  ;;  %v11126_v59 = vld [vmem:[#allocation4 + $0x1a0] ss:$40 sps:$4 sm:$0xff]  }
  0xcf   : > { %2805 = vmatpush1.bf16.msra.mxu1 %v11047_v60  ;;  %2587 = vmatprep.subr.bf16.mxu0 %v11052_v61  ;;  %v11129_v60 = vld [vmem:[#allocation4 + $0x1a8] ss:$40 sps:$4 sm:$0xff]   ;;  %v11134_v61 = vld [vmem:[#allocation4 + $0x1f4] ss:$40 sps:$4 sm:$0xff]  }
  0xd0   : > { %2806 = vmatprep.subr.bf16.mxu1 %v11055_v62  ;;  %v11137_v62 = vld [vmem:[#allocation4 + $0x1fc] ss:$40 sps:$4 sm:$0xff]  }
  0xd2   : > { %2588 = vmatpush1.bf16.msra.mxu0 %v11050_v63  ;;  %v11138_v63 = vld [vmem:[%s11901_s28 + $0x88] ss:$20 sps:$4 sm:$0xff]  }
  0xd3   : > { %2807 = vmatpush1.bf16.msra.mxu1 %v11053_v0  ;;  %2589 = vmatprep.subr.bf16.mxu0 %v11061_v1  ;;  %v11132_v0 = vld [vmem:[#allocation4 + $0x1f0] ss:$40 sps:$4 sm:$0xff]  }
  0xd4   : > { %2808 = vmatprep.subr.bf16.mxu1 %v11064_v2  ;;  %v11135_v1 = vld [vmem:[#allocation4 + $0x1f8] ss:$40 sps:$4 sm:$0xff]   ;;  %v11141_v2 = vld [vmem:[#allocation4 + $0x244] ss:$40 sps:$4 sm:$0xff]  }
  0xd6   : > { %2590 = vmatpush1.bf16.msra.mxu0 %v11059_v3  ;;  %v11144_v3 = vld [vmem:[#allocation4 + $0x24c] ss:$40 sps:$4 sm:$0xff]  }
  0xd7   : > { %2809 = vmatpush1.bf16.msra.mxu1 %v11062_v4  ;;  %2591 = vmatprep.subr.bf16.mxu0 %v11067_v5  ;;  %v11139_v4 = vld [vmem:[#allocation4 + $0x240] ss:$40 sps:$4 sm:$0xff]  }
  0xd8   : > { %2810 = vmatprep.subr.bf16.mxu1 %v11070_v6  ;;  %v11142_v5 = vld [vmem:[#allocation4 + $0x248] ss:$40 sps:$4 sm:$0xff]   ;;  %v11147_v6 = vld [vmem:[#allocation4 + $0x294] ss:$40 sps:$4 sm:$0xff]  }
  0xda   : > { %2592 = vmatpush1.bf16.msra.mxu0 %v11065_v8  ;;  %v11947_v8 = vld [vmem:[%s11901_s28 + $0x4] ss:$20 sps:$4 sm:$0xff]  }
  0xdb   : > { %2811 = vmatpush1.bf16.msra.mxu1 %v11068_v11  ;;  %2634 = vmatprep.subr.bf16.mxu0 %v11076_v13  ;;  %v11148_v11 = vld [vmem:[#allocation4 + $0x298] ss:$40 sps:$4 sm:$0xff]   ;;  %v11156_v13 = vld [vmem:[#allocation4 + $0x2ec] ss:$40 sps:$4 sm:$0xff]  }
  0xdc   : > { %2853 = vmatprep.subr.bf16.mxu1 %v11084_v14  ;;  %v11151_v14 = vld [vmem:[#allocation4 + $0x2e0] ss:$40 sps:$4 sm:$0xff]  }
  0xdd   : > { %2594 = vmatmul.mubr.bf16.vlgmr.msra.gmra.mrb[0].mxu0 %v11073_v17 }
  0xde   : > { %2813 = vmatmul.mubr.bf16.vlgmr.msra.gmra.mrb[0].mxu1 %v11073_v17  ;;  %2635 = vmatpush1.bf16.msra.mxu0 %v11074_v19  ;;  %v11159_v17 = vld [vmem:[#allocation4 + $0x334] ss:$40 sps:$4 sm:$0xff]   ;;  %v11157_v19 = vld [vmem:[#allocation4 + $0x330] ss:$40 sps:$4 sm:$0xff]  }
  0xdf   : > { %2603 = vmatprep.mubr.bf16.mxu0 %v11077_v20  ;;  %2822 = vmatprep.mubr.bf16.mxu1 %v11077_v20  ;;  %v11160_v20 = vld [vmem:[#allocation4 + $0x338] ss:$40 sps:$4 sm:$0xff]  }
  0xe0   : > { %2636 = vmatprep.subr.bf16.mxu0 %v2462_v22  ;;  %2854 = vmatpush1.bf16.msra.mxu1 %v11082_v23  ;;  %v11168_v22 = vld [vmem:[#allocation4 + $0x38c] ss:$40 sps:$4 sm:$0xff]   ;;  %v11163_v23 = vld [vmem:[#allocation4 + $0x380] ss:$40 sps:$4 sm:$0xff]  }
  0xe1   : > { %2855 = vmatprep.subr.bf16.mxu1 %v2468_v25  ;;  %v11171_v25 = vld [vmem:[#allocation4 + $0x3d4] ss:$40 sps:$4 sm:$0xff]  }
  0xe2   : > { %2637 = vmatpush1.bf16.msra.mxu0 %v2459_v26  ;;  %v11174_v26 = vld [vmem:[#allocation4 + $0x3dc] ss:$40 sps:$4 sm:$0xff]  }
  0xe3   : > { %2926 = vmatprep.subr.bf16.mxu0 %v11095_v27  ;;  %v11169_v27 = vld [vmem:[#allocation4 + $0x3d0] ss:$40 sps:$4 sm:$0xff]  }
  0xe4   : > { %2856 = vmatpush1.bf16.msra.mxu1 %v2465_v28  ;;  %v11172_v28 = vld [vmem:[#allocation4 + $0x3d8] ss:$40 sps:$4 sm:$0xff]  }
  0xe5   : > { %2604 = vmatmul.mubr.bf16.gmra.mrb[4].mxu0 %v11079_v29  ;;  %3145 = vmatprep.subr.bf16.mxu1 %v11098_v31  ;;  %v11175_v31 = vld [vmem:[#allocation4 + $0x420] ss:$40 sps:$4 sm:$0xff]  }
  0xe6   : > { %2823 = vmatmul.mubr.bf16.gmra.mrb[4].mxu1 %v11079_v29  ;;  %2613 = vmatprep.mubr.bf16.mxu0 %v11080_v30  ;;  %v11177_v29 = vld [vmem:[#allocation4 + $0x424] ss:$40 sps:$4 sm:$0xff]  }
  0xe7   : > { %2832 = vmatprep.mubr.bf16.mxu1 %v11080_v30  ;;  %v11180_v30 = vld [vmem:[#allocation4 + $0x42c] ss:$40 sps:$4 sm:$0xff]  }
  0xed   : > { %2614 = vmatmul.mubr.bf16.gmra.mrb[8].mxu0 %v11085_v32 }
  0xee   : > { %2833 = vmatmul.mubr.bf16.gmra.mrb[8].mxu1 %v11085_v32  ;;  %2623 = vmatprep.mubr.bf16.mxu0 %v11088_v33  ;;  %v11178_v32 = vld [vmem:[#allocation4 + $0x428] ss:$40 sps:$4 sm:$0xff]  }
  0xef   : > { %2842 = vmatprep.mubr.bf16.mxu1 %v11088_v33  ;;  %v11183_v33 = vld [vmem:[#allocation4 + $0x474] ss:$40 sps:$4 sm:$0xff]  }
  0xf5   : > { %2624 = vmatmul.mubr.bf16.gmra.mrb[12].mxu0 %v11090_v34 }
  0xf6   : > { %2843 = vmatmul.mubr.bf16.gmra.mrb[12].mxu1 %v11090_v34  ;;  %2666 = vmatprep.mubr.bf16.mxu0 %v14932_v35  ;;  %v11186_v34 = vld [vmem:[#allocation4 + $0x47c] ss:$40 sps:$4 sm:$0xff]  }
  0xf7   : > { %2885 = vmatprep.mubr.bf16.mxu1 %v14932_v35 }
  0xfd   : > { %9942 = vmatmul.mubr.msk.bf16.vlgmr.msra.gmra.mrb[0].mxu0 %vm2441_vm2, %v11099_v36 }
  0xfe   : > { %9946 = vmatmul.mubr.msk.bf16.vlgmr.msra.gmra.mrb[0].mxu1 %vm2441_vm2, %v11099_v36  ;;  %2927 = vmatpush1.bf16.msra.mxu0 %v11093_v37  ;;  %v11181_v36 = vld [vmem:[#allocation4 + $0x470] ss:$40 sps:$4 sm:$0xff]  }
  0xff   : > { %3146 = vmatpush1.bf16.msra.mxu1 %v11096_v38  ;;  %2928 = vmatprep.subr.bf16.mxu0 %v11102_v39  ;;  %v11184_v37 = vld [vmem:[#allocation4 + $0x478] ss:$40 sps:$4 sm:$0xff]   ;;  %v11189_v38 = vld [vmem:[#allocation4 + $0x4c4] ss:$40 sps:$4 sm:$0xff]  }
 0x100   : > { %3147 = vmatprep.subr.bf16.mxu1 %v11105_v40  ;;  %2676 = vmatprep.mubr.bf16.mxu0 %v14932_v35  ;;  %v11192_v39 = vld [vmem:[#allocation4 + $0x4cc] ss:$40 sps:$4 sm:$0xff]   ;;  %v11187_v40 = vld [vmem:[#allocation4 + $0x4c0] ss:$40 sps:$4 sm:$0xff]  }
 0x101   : > { %2895 = vmatprep.mubr.bf16.mxu1 %v14932_v35 }
 0x102   : > { %2929 = vmatpush1.bf16.msra.mxu0 %v11100_v41  ;;  %v11190_v41 = vld [vmem:[#allocation4 + $0x4c8] ss:$40 sps:$4 sm:$0xff]  }
 0x103   : > { %3148 = vmatpush1.bf16.msra.mxu1 %v11103_v42  ;;  %2930 = vmatprep.subr.bf16.mxu0 %v11108_v43  ;;  %v11195_v42 = vld [vmem:[#allocation4 + $0x514] ss:$40 sps:$4 sm:$0xff]  }
 0x104   : > { %3149 = vmatprep.subr.bf16.mxu1 %v11111_v44  ;;  %v11198_v43 = vld [vmem:[#allocation4 + $0x51c] ss:$40 sps:$4 sm:$0xff]   ;;  %v11193_v44 = vld [vmem:[#allocation4 + $0x510] ss:$40 sps:$4 sm:$0xff]  }
 0x105   : > { %9943 = vmatmul.mubr.msk.bf16.gmra.mrb[4].mxu0 %vm2441_vm2, %v11112_v45 }
 0x106   : > { %9947 = vmatmul.mubr.msk.bf16.gmra.mrb[4].mxu1 %vm2441_vm2, %v11112_v45  ;;  %2931 = vmatpush1.bf16.msra.mxu0 %v11106_v46  ;;  %v11196_v45 = vld [vmem:[#allocation4 + $0x518] ss:$40 sps:$4 sm:$0xff]   ;;  %v11201_v46 = vld [vmem:[#allocation4 + $0x564] ss:$40 sps:$4 sm:$0xff]  }
 0x107   : > { %3150 = vmatpush1.bf16.msra.mxu1 %v11109_v47  ;;  %2932 = vmatprep.subr.bf16.mxu0 %v11115_v48  ;;  %v11204_v47 = vld [vmem:[#allocation4 + $0x56c] ss:$40 sps:$4 sm:$0xff]   ;;  %v11199_v48 = vld [vmem:[#allocation4 + $0x560] ss:$40 sps:$4 sm:$0xff]  }
 0x108   : > { %3151 = vmatprep.subr.bf16.mxu1 %v11118_v49  ;;  %2686 = vmatprep.mubr.bf16.mxu0 %v14932_v35  ;;  %v11202_v49 = vld [vmem:[#allocation4 + $0x568] ss:$40 sps:$4 sm:$0xff]  }
 0x109   : > { %2905 = vmatprep.mubr.bf16.mxu1 %v14932_v35 }
 0x10a   : > { %2933 = vmatpush1.bf16.msra.mxu0 %v11113_v50  ;;  %v11958_v50 = vld [vmem:[%s11901_s28] ss:$20 sps:$4 sm:$0xff]  }
 0x10b   : > { %3152 = vmatpush1.bf16.msra.mxu1 %v11116_v51  ;;  %2934 = vmatprep.subr.bf16.mxu0 %v11121_v52  ;;  %v11207_v51 = vld [vmem:[#allocation4 + $0x5b4] ss:$40 sps:$4 sm:$0xff]  }
 0x10c   : > { %3153 = vmatprep.subr.bf16.mxu1 %v11124_v53  ;;  %v11210_v52 = vld [vmem:[#allocation4 + $0x5bc] ss:$40 sps:$4 sm:$0xff]   ;;  %v11205_v53 = vld [vmem:[#allocation4 + $0x5b0] ss:$40 sps:$4 sm:$0xff]  }
 0x10d   : > { %9944 = vmatmul.mubr.msk.bf16.gmra.mrb[8].mxu0 %vm2441_vm2, %v11125_v54 }
 0x10e   : > { %9948 = vmatmul.mubr.msk.bf16.gmra.mrb[8].mxu1 %vm2441_vm2, %v11125_v54  ;;  %2935 = vmatpush1.bf16.msra.mxu0 %v11119_v55  ;;  %v11208_v54 = vld [vmem:[#allocation4 + $0x5b8] ss:$40 sps:$4 sm:$0xff]  }
 0x10f   : > { %3154 = vmatpush1.bf16.msra.mxu1 %v11122_v56  ;;  %2936 = vmatprep.subr.bf16.mxu0 %v11128_v57  ;;  %v11963_v55 = vld [vmem:[%s11901_s28 + $0x2c] ss:$20 sps:$4 sm:$0xff]  }
 0x110   : > { %3155 = vmatprep.subr.bf16.mxu1 %v11131_v58  ;;  %2696 = vmatprep.mubr.bf16.mxu0 %v14932_v35  ;;  %v11213_v56 = vld [vmem:[#allocation4 + $0x604] ss:$40 sps:$4 sm:$0xff]   ;;  %v11211_v58 = vld [vmem:[#allocation4 + $0x600] ss:$40 sps:$4 sm:$0xff]  }
 0x111   : > { %2915 = vmatprep.mubr.bf16.mxu1 %v14932_v35  ;;  %v11216_v57 = vld [vmem:[#allocation4 + $0x60c] ss:$40 sps:$4 sm:$0xff]  }
 0x112   : > { %2937 = vmatpush1.bf16.msra.mxu0 %v11126_v59  ;;  %v11214_v59 = vld [vmem:[#allocation4 + $0x608] ss:$40 sps:$4 sm:$0xff]  }
 0x113   : > { %3156 = vmatpush1.bf16.msra.mxu1 %v11129_v60  ;;  %2938 = vmatprep.subr.bf16.mxu0 %v11134_v61  ;;  %v11968_v60 = vld [vmem:[%s11901_s28 + $0x28] ss:$20 sps:$4 sm:$0xff]  }
 0x114   : > { %3157 = vmatprep.subr.bf16.mxu1 %v11137_v62  ;;  %v11219_v61 = vld [vmem:[#allocation4 + $0x654] ss:$40 sps:$4 sm:$0xff]  }
 0x115   : > { %9945 = vmatmul.mubr.msk.bf16.gmra.mrb[12].mxu0 %vm2441_vm2, %v11138_v63  ;;  %v11222_v62 = vld [vmem:[#allocation4 + $0x65c] ss:$40 sps:$4 sm:$0xff]  }
 0x116   : > { %9949 = vmatmul.mubr.msk.bf16.gmra.mrb[12].mxu1 %vm2441_vm2, %v11138_v63  ;;  %2939 = vmatpush1.bf16.msra.mxu0 %v11132_v0  ;;  %v11973_v63 = vld [vmem:[%s11901_s28 + $0x54] ss:$20 sps:$4 sm:$0xff]   ;;  %v11217_v0 = vld [vmem:[#allocation4 + $0x650] ss:$40 sps:$4 sm:$0xff]  }
 0x117   : > { %3158 = vmatpush1.bf16.msra.mxu1 %v11135_v1  ;;  %2940 = vmatprep.subr.bf16.mxu0 %v11141_v2  ;;  %v11220_v1 = vld [vmem:[#allocation4 + $0x658] ss:$40 sps:$4 sm:$0xff]   ;;  %v14925_v2 = vlaneseq }
 0x118   : > { %3159 = vmatprep.subr.bf16.mxu1 %v11144_v3  ;;  %2958 = vmatprep.mubr.bf16.mxu0 %v11947_v8  ;;  %v11225_v3 = vld [vmem:[#allocation4 + $0x6a4] ss:$40 sps:$4 sm:$0xff]  }
 0x119   : > { %3177 = vmatprep.mubr.bf16.mxu1 %v11947_v8 }
 0x11a   : > { %2941 = vmatpush1.bf16.msra.mxu0 %v11139_v4  ;;  %v11228_v4 = vld [vmem:[#allocation4 + $0x6ac] ss:$40 sps:$4 sm:$0xff]  }
 0x11b   : > { %3160 = vmatpush1.bf16.msra.mxu1 %v11142_v5  ;;  %2942 = vmatprep.subr.bf16.mxu0 %v11147_v6  ;;  %v11223_v5 = vld [vmem:[#allocation4 + $0x6a0] ss:$40 sps:$4 sm:$0xff]  }
 0x11c   : > { %3161 = vmatprep.subr.bf16.mxu1 %v11150_v7  ;;  %v11226_v6 = vld [vmem:[#allocation4 + $0x6a8] ss:$40 sps:$4 sm:$0xff]   ;;  %v11978_v7 = vshrl.u32 %v14925_v2, 7 }
 0x11e   : > { %2943 = vmatpush1.bf16.msra.mxu0 %v11145_v10  ;;  %15051 = vst [vmem:[#allocation11_spill] sm:$0xff] %v11978_v7  ;;  %v11981_v10 = vld [vmem:[%s11901_s28 + $0x50] ss:$20 sps:$4 sm:$0xff]  }
 0x11f   : > { %3162 = vmatpush1.bf16.msra.mxu1 %v11148_v11  ;;  %2944 = vmatprep.subr.bf16.mxu0 %v11153_v12  ;;  %v11231_v11 = vld [vmem:[#allocation4 + $0x6f4] ss:$40 sps:$4 sm:$0xff]  }
 0x120   : > { %3163 = vmatprep.subr.bf16.mxu1 %v11156_v13  ;;  %v11234_v12 = vld [vmem:[#allocation4 + $0x6fc] ss:$40 sps:$4 sm:$0xff]   ;;  %v11986_v13 = vsub.s32 0, %v11978_v7 }
 0x122   : > { %2945 = vmatpush1.bf16.msra.mxu0 %v11151_v14  ;;  %15052 = vst [vmem:[#allocation12_spill] sm:$0xff] %v11986_v13  ;;  %v5865_v14 = vld [vmem:[#allocation8] ss:$8 sm:$0x3] }
 0x123   : > { %3164 = vmatpush1.bf16.msra.mxu1 %v11154_v15  ;;  %2946 = vmatprep.subr.bf16.mxu0 %v11159_v17  ;;  %v11229_v15 = vld [vmem:[#allocation4 + $0x6f0] ss:$40 sps:$4 sm:$0xff]  }
 0x124   : > { %3165 = vmatprep.subr.bf16.mxu1 %v11162_v18  ;;  %v11232_v17 = vld [vmem:[#allocation4 + $0x6f8] ss:$40 sps:$4 sm:$0xff]   ;;  %v11989_v18 = vld [vmem:[%s11901_s28 + $0x7c] ss:$20 sps:$4 sm:$0xff]  }
 0x126   : > { %2947 = vmatpush1.bf16.msra.mxu0 %v11157_v19  ;;  %v5870_v19 = vrot.slane %v5865_v14, %v11986_v13 }
 0x127   : > { %3166 = vmatpush1.bf16.msra.mxu1 %v11160_v20  ;;  %2948 = vmatprep.subr.bf16.mxu0 %v11165_v21  ;;  %v11237_v20 = vld [vmem:[#allocation4 + $0x744] ss:$40 sps:$4 sm:$0xff]  }
 0x128   : > { %3167 = vmatprep.subr.bf16.mxu1 %v11168_v22  ;;  %v11240_v21 = vld [vmem:[#allocation4 + $0x74c] ss:$40 sps:$4 sm:$0xff]   ;;  %v6418_v22 = vld [vmem:[#allocation8 + $0x1] ss:$8 sm:$0x3]  ;;  %5875 = vrot.lane.b32.xlu0 %v5870_v19, %s11748_s20 }
 0x12a   : > { %2949 = vmatpush1.bf16.msra.mxu0 %v11163_v23  ;;  %v11996_v23 = vld [vmem:[%s11901_s28 + $0x78] ss:$20 sps:$4 sm:$0xff]  }
 0x12b   : > { %3168 = vmatpush1.bf16.msra.mxu1 %v11166_v24  ;;  %2950 = vmatprep.subr.bf16.mxu0 %v11171_v25  ;;  %v6423_v24 = vrot.slane %v6418_v22, %v11986_v13  ;;  %v11235_v25 = vld [vmem:[#allocation4 + $0x740] ss:$40 sps:$4 sm:$0xff]  }
 0x12c   : > { %3169 = vmatprep.subr.bf16.mxu1 %v11174_v26  ;;  %v11238_v26 = vld [vmem:[#allocation4 + $0x748] ss:$40 sps:$4 sm:$0xff]  }
 0x12d   : > { %6428 = vrot.lane.b32.xlu0 %v6423_v24, %s11748_s20  ;;  %v11292_v24 = vld [vmem:[#allocation4 + $0xa18] ss:$40 sps:$4 sm:$0xff]  }
 0x12e   : > { %2951 = vmatpush1.bf16.msra.mxu0 %v11169_v27  ;;  %v11243_v27 = vld [vmem:[#allocation4 + $0x794] ss:$40 sps:$4 sm:$0xff]  }
 0x12f   : > { %3170 = vmatpush1.bf16.msra.mxu1 %v11172_v28  ;;  %2952 = vmatprep.subr.bf16.mxu0 %v11177_v29  ;;  %v11246_v28 = vld [vmem:[#allocation4 + $0x79c] ss:$40 sps:$4 sm:$0xff]   ;;  %v11241_v29 = vld [vmem:[#allocation4 + $0x790] ss:$40 sps:$4 sm:$0xff]  }
 0x130   : > { %3171 = vmatprep.subr.bf16.mxu1 %v11180_v30  ;;  %v11244_v30 = vld [vmem:[#allocation4 + $0x798] ss:$40 sps:$4 sm:$0xff]  }
 0x132   : > { %2953 = vmatpush1.bf16.msra.mxu0 %v11175_v31  ;;  %v12002_v31 = vld [vmem:[%s11901_s28 + $0xc] ss:$20 sps:$4 sm:$0xff]  }
 0x133   : > { %3172 = vmatpush1.bf16.msra.mxu1 %v11178_v32  ;;  %2954 = vmatprep.subr.bf16.mxu0 %v11183_v33  ;;  %v12007_v32 = vsub.s32 1, %v11978_v7  ;;  %v11249_v33 = vld [vmem:[#allocation4 + $0x7e4] ss:$40 sps:$4 sm:$0xff]  }
 0x134   : > { %3173 = vmatprep.subr.bf16.mxu1 %v11186_v34  ;;  %v7165_v34 = vld [vmem:[#allocation8 + $0x2] ss:$0 sm:$0xff] }
 0x135   : > { %15053 = vst [vmem:[#allocation13_spill] sm:$0xff] %v12007_v32  ;;  %7167 = vrot.lane.b32.xlu0 %v7165_v34, %s11748_s20  ;;  %v11316_v34 = vld [vmem:[#allocation6 + $0x4] ss:$120 sps:$4 sm:$0xff]  }
 0x136   : > { %2955 = vmatpush1.bf16.msra.mxu0 %v11181_v36  ;;  %v5874_v36 = vrot.slane %v5865_v14, %v12007_v32  ;;  %v11291_v14 = vld [vmem:[#allocation4 + $0xa14] ss:$40 sps:$4 sm:$0xff]  }
 0x137   : > { %3174 = vmatpush1.bf16.msra.mxu1 %v11184_v37  ;;  %2956 = vmatprep.subr.bf16.mxu0 %v11189_v38  ;;  %v11252_v37 = vld [vmem:[#allocation4 + $0x7ec] ss:$40 sps:$4 sm:$0xff]   ;;  %v11247_v38 = vld [vmem:[#allocation4 + $0x7e0] ss:$40 sps:$4 sm:$0xff]  }
 0x138   : > { %3175 = vmatprep.subr.bf16.mxu1 %v11192_v39  ;;  %v11250_v39 = vld [vmem:[#allocation4 + $0x7e8] ss:$40 sps:$4 sm:$0xff]   ;;  %5877 = vrot.lane.b32.xlu1 %v5874_v36, %s11748_s20 }
 0x139   : > { %v12031_v36 = vld [vmem:[%s11901_s28 + $0x30] ss:$20 sps:$4 sm:$0xff]  }
 0x13a   : > { %2957 = vmatpush1.bf16.msra.mxu0 %v11187_v40  ;;  %v6427_v40 = vrot.slane %v6418_v22, %v12007_v32 }
 0x13b   : > { %3176 = vmatpush1.bf16.msra.mxu1 %v11190_v41  ;;  %2999 = vmatprep.subr.bf16.mxu0 %v11195_v42  ;;  %v11255_v41 = vld [vmem:[#allocation4 + $0x834] ss:$40 sps:$4 sm:$0xff]  }
 0x13c   : > { %3218 = vmatprep.subr.bf16.mxu1 %v11198_v43  ;;  %v11258_v42 = vld [vmem:[#allocation4 + $0x83c] ss:$40 sps:$4 sm:$0xff]   ;;  %v11253_v43 = vld [vmem:[#allocation4 + $0x830] ss:$40 sps:$4 sm:$0xff]   ;;  %6430 = vrot.lane.b32.xlu1 %v6427_v40, %s11748_s20  ;;  %v12051_v40 = vld [vmem:[%s11901_s28 + $0x80] ss:$20 sps:$4 sm:$0xff]  }
 0x13d   : > { %2959 = vmatmul.mubr.bf16.vlgmr.msra.gmra.mrb[16].mxu0 %v11958_v50 }
 0x13e   : > { %3178 = vmatmul.mubr.bf16.vlgmr.msra.gmra.mrb[16].mxu1 %v11958_v50  ;;  %3000 = vmatpush1.bf16.msra.mxu0 %v11193_v44  ;;  %v11256_v44 = vld [vmem:[#allocation4 + $0x838] ss:$40 sps:$4 sm:$0xff]  }
 0x13f   : > { %3219 = vmatpush1.bf16.msra.mxu1 %v11196_v45  ;;  %3001 = vmatprep.subr.bf16.mxu0 %v11201_v46  ;;  %v11261_v45 = vld [vmem:[#allocation4 + $0x884] ss:$40 sps:$4 sm:$0xff]   ;;  %v8126_v46 = vld [vmem:[#allocation8 + $0x3] ss:$0 sm:$0xff] }
 0x140   : > { %3220 = vmatprep.subr.bf16.mxu1 %v11204_v47  ;;  %2968 = vmatprep.mubr.bf16.mxu0 %v11963_v55  ;;  %v11264_v47 = vld [vmem:[#allocation4 + $0x88c] ss:$40 sps:$4 sm:$0xff]  }
 0x141   : > { %3187 = vmatprep.mubr.bf16.mxu1 %v11963_v55  ;;  %8128 = vrot.lane.b32.xlu1 %v8126_v46, %s11748_s20  ;;  %v4128_v46 = vsel %vm4126_vm3, 4294967295, %v11746_v9  ;;  %v11310_v9 = vld [vmem:[#allocation4 + $0x114] ss:$40 sps:$4 sm:$0xff]  }
 0x142   : > { %3002 = vmatpush1.bf16.msra.mxu0 %v11199_v48  ;;  %v11259_v48 = vld [vmem:[#allocation4 + $0x880] ss:$40 sps:$4 sm:$0xff]  }
 0x143   : > { %3221 = vmatpush1.bf16.msra.mxu1 %v11202_v49  ;;  %3003 = vmatprep.subr.bf16.mxu0 %v11207_v51  ;;  %v11262_v49 = vld [vmem:[#allocation4 + $0x888] ss:$40 sps:$4 sm:$0xff]   ;;  %v11267_v51 = vld [vmem:[#allocation4 + $0x8d4] ss:$40 sps:$4 sm:$0xff]  }
 0x144   : > { %3222 = vmatprep.subr.bf16.mxu1 %v11210_v52  ;;  %v11270_v52 = vld [vmem:[#allocation4 + $0x8dc] ss:$40 sps:$4 sm:$0xff]  }
 0x145   : > { %2969 = vmatmul.mubr.bf16.gmra.mrb[20].mxu0 %v11968_v60 }
 0x146   : > { %3188 = vmatmul.mubr.bf16.gmra.mrb[20].mxu1 %v11968_v60  ;;  %3004 = vmatpush1.bf16.msra.mxu0 %v11205_v53  ;;  %v11265_v53 = vld [vmem:[#allocation4 + $0x8d0] ss:$40 sps:$4 sm:$0xff]  }
 0x147   : > { %3223 = vmatpush1.bf16.msra.mxu1 %v11208_v54  ;;  %3005 = vmatprep.subr.bf16.mxu0 %v11213_v56  ;;  %v11268_v54 = vld [vmem:[#allocation4 + $0x8d8] ss:$40 sps:$4 sm:$0xff]   ;;  %v11273_v56 = vld [vmem:[#allocation4 + $0x924] ss:$40 sps:$4 sm:$0xff]  }
 0x148   : > { %3224 = vmatprep.subr.bf16.mxu1 %v11216_v57  ;;  %2978 = vmatprep.mubr.bf16.mxu0 %v11973_v63  ;;  %v11276_v57 = vld [vmem:[#allocation4 + $0x92c] ss:$40 sps:$4 sm:$0xff]  }
 0x149   : > { %3197 = vmatprep.mubr.bf16.mxu1 %v11973_v63 }
 0x14a   : > { %3006 = vmatpush1.bf16.msra.mxu0 %v11211_v58  ;;  %v11271_v58 = vld [vmem:[#allocation4 + $0x920] ss:$40 sps:$4 sm:$0xff]  }
 0x14b   : > { %3225 = vmatpush1.bf16.msra.mxu1 %v11214_v59  ;;  %3007 = vmatprep.subr.bf16.mxu0 %v11219_v61  ;;  %v11274_v59 = vld [vmem:[#allocation4 + $0x928] ss:$40 sps:$4 sm:$0xff]   ;;  %v11279_v61 = vld [vmem:[#allocation4 + $0x974] ss:$40 sps:$4 sm:$0xff]  }
 0x14c   : > { %3226 = vmatprep.subr.bf16.mxu1 %v11222_v62  ;;  %v11282_v62 = vld [vmem:[#allocation4 + $0x97c] ss:$40 sps:$4 sm:$0xff]  }
 0x14d   : > { %2979 = vmatmul.mubr.bf16.gmra.mrb[24].mxu0 %v11981_v10 }
 0x14e   : > { %3198 = vmatmul.mubr.bf16.gmra.mrb[24].mxu1 %v11981_v10  ;;  %3008 = vmatpush1.bf16.msra.mxu0 %v11217_v0  ;;  %v11277_v0 = vld [vmem:[#allocation4 + $0x970] ss:$40 sps:$4 sm:$0xff]  }
 0x14f   : > { %3227 = vmatpush1.bf16.msra.mxu1 %v11220_v1  ;;  %3009 = vmatprep.subr.bf16.mxu0 %v11225_v3  ;;  %v11280_v1 = vld [vmem:[#allocation4 + $0x978] ss:$40 sps:$4 sm:$0xff]   ;;  %v11285_v3 = vld [vmem:[#allocation4 + $0x9c4] ss:$40 sps:$4 sm:$0xff]  }
 0x150   : > { %3228 = vmatprep.subr.bf16.mxu1 %v11228_v4  ;;  %2988 = vmatprep.mubr.bf16.mxu0 %v11989_v18  ;;  %v11288_v4 = vld [vmem:[#allocation4 + $0x9cc] ss:$40 sps:$4 sm:$0xff]  }
 0x151   : > { %3207 = vmatprep.mubr.bf16.mxu1 %v11989_v18 }
 0x152   : > { %3010 = vmatpush1.bf16.msra.mxu0 %v11223_v5  ;;  %v663_v5 = vld [vmem:[#allocation4 + $0xa60] sm:$0x33] }
 0x153   : > { %3229 = vmatpush1.bf16.msra.mxu1 %v11226_v6  ;;  %3011 = vmatprep.subr.bf16.mxu0 %v11231_v11  ;;  %v11283_v6 = vld [vmem:[#allocation4 + $0x9c0] ss:$40 sps:$4 sm:$0xff]  }
 0x154   : > { %3230 = vmatprep.subr.bf16.mxu1 %v11234_v12  ;;  %v11286_v11 = vld [vmem:[#allocation4 + $0x9c8] ss:$40 sps:$4 sm:$0xff]  }
 0x155   : > { %2989 = vmatmul.mubr.bf16.gmra.mrb[28].mxu0 %v11996_v23  ;;  %v664_v12 = vld [vmem:[#allocation4 + $0xa68] sm:$0x33] }
 0x156   : > { %3208 = vmatmul.mubr.bf16.gmra.mrb[28].mxu1 %v11996_v23  ;;  %3012 = vmatpush1.bf16.msra.mxu0 %v11229_v15  ;;  %v11294_v15 = vld [vmem:[#allocation4 + $0xa1c] ss:$40 sps:$4 sm:$0xff]   ;;  %v9939_v19 = vcombine.high %v664_v12, %v664_v12 }
 0x157   : > { %3231 = vmatpush1.bf16.msra.mxu1 %v11232_v17  ;;  %3013 = vmatprep.subr.bf16.mxu0 %v11237_v20  ;;  %v9937_v17 = vcombine.high %v663_v5, %v663_v5  ;;  %v11289_v20 = vld [vmem:[#allocation4 + $0xa10] ss:$40 sps:$4 sm:$0xff]  }
 0x158   : > { %3232 = vmatprep.subr.bf16.mxu1 %v11240_v21  ;;  %3031 = vmatprep.mubr.bf16.mxu0 %v12002_v31  ;;  %v9936_v21 = vcombine.low %v663_v5, %v663_v5  ;;  %v11322_v5 = vld [vmem:[#allocation4 + $0x204] ss:$40 sps:$4 sm:$0xff]  }
 0x159   : > { %3250 = vmatprep.mubr.bf16.mxu1 %v12002_v31  ;;  %v2474_v22 = vand.u32 %v9937_v17, %v11913_v16  ;;  %v12100_v17 = vld [vmem:[%s11955_s6] sm:$0xff]  }
 0x15a   : > { %3014 = vmatpush1.bf16.msra.mxu0 %v11235_v25  ;;  %v9938_v25 = vcombine.low %v664_v12, %v664_v12  ;;  %v12091_v12 = vld [vmem:[%s11901_s28 + $0x88] ss:$20 sps:$4 sm:$0xff]  }
 0x15b   : > { %3233 = vmatpush1.bf16.msra.mxu1 %v11238_v26  ;;  %3015 = vmatprep.subr.bf16.mxu0 %v11243_v27  ;;  %v12018_v26 = vld [vmem:[%s11901_s28 + $0x8] ss:$20 sps:$4 sm:$0xff]   ;;  %v2480_v27 = vand.u32 %v9939_v19, %v11913_v16 }
 0x15c   : > { %3234 = vmatprep.subr.bf16.mxu1 %v11246_v28  ;;  %v12024_v28 = vld [vmem:[%s11901_s28 + $0x34] ss:$20 sps:$4 sm:$0xff]  }
 0x15d   : > { %v11332_v19 = vld [vmem:[#allocation4 + $0x2a0] ss:$40 sps:$4 sm:$0xff]  }
 0x15e   : > { %3016 = vmatpush1.bf16.msra.mxu0 %v11241_v29  ;;  %v2471_v29 = vand.u32 %v9936_v21, %v11913_v16  ;;  %v11349_v21 = vld [vmem:[#allocation6 + $0x8] ss:$120 sps:$4 sm:$0xff]  }
 0x15f   : > { %3235 = vmatpush1.bf16.msra.mxu1 %v11244_v30  ;;  %3017 = vmatprep.subr.bf16.mxu0 %v11249_v33  ;;  %v11301_v30 = vld [vmem:[#allocation4 + $0x24] ss:$40 sps:$4 sm:$0xff]   ;;  %v2477_v33 = vand.u32 %v9938_v25, %v11913_v16  ;;  %v11336_v25 = vld [vmem:[#allocation4 + $0x2f0] ss:$40 sps:$4 sm:$0xff]  }
 0x160   : > { %3236 = vmatprep.subr.bf16.mxu1 %v11252_v37  ;;  %v12036_v37 = vld [vmem:[%s11901_s28 + $0x5c] ss:$20 sps:$4 sm:$0xff]  }
 0x162   : > { %3018 = vmatpush1.bf16.msra.mxu0 %v11247_v38  ;;  %v12041_v38 = vld [vmem:[%s11901_s28 + $0x58] ss:$20 sps:$4 sm:$0xff]  }
 0x163   : > { %3237 = vmatpush1.bf16.msra.mxu1 %v11250_v39  ;;  %3019 = vmatprep.subr.bf16.mxu0 %v11255_v41  ;;  %v12046_v39 = vld [vmem:[%s11901_s28 + $0x84] ss:$20 sps:$4 sm:$0xff]   ;;  %v11299_v41 = vld [vmem:[#allocation4 + $0x20] ss:$40 sps:$4 sm:$0xff]  }
 0x164   : > { %3238 = vmatprep.subr.bf16.mxu1 %v11258_v42  ;;  %v11304_v42 = vld [vmem:[#allocation4 + $0x74] ss:$40 sps:$4 sm:$0xff]  }
 0x166   : > { %3020 = vmatpush1.bf16.msra.mxu0 %v11253_v43  ;;  %v11314_v43 = vld [vmem:[#allocation6] ss:$120 sps:$4 sm:$0xff]  }
 0x167   : > { %3239 = vmatpush1.bf16.msra.mxu1 %v11256_v44  ;;  %3021 = vmatprep.subr.bf16.mxu0 %v11261_v45  ;;  %v12058_v44 = vld [vmem:[%s11901_s28 + $0x10] ss:$20 sps:$4 sm:$0xff]  }
 0x168   : > { %3240 = vmatprep.subr.bf16.mxu1 %v11264_v47  ;;  %v11325_v45 = vld [vmem:[#allocation6 + $0xf4] ss:$120 sps:$4 sm:$0xff]   ;;  %v11302_v47 = vld [vmem:[#allocation4 + $0x70] ss:$40 sps:$4 sm:$0xff]  }
 0x16a   : > { %3022 = vmatpush1.bf16.msra.mxu0 %v11259_v48  ;;  %v11307_v48 = vld [vmem:[#allocation4 + $0xc4] ss:$40 sps:$4 sm:$0xff]  }
 0x16b   : > { %3241 = vmatpush1.bf16.msra.mxu1 %v11262_v49  ;;  %3023 = vmatprep.subr.bf16.mxu0 %v11267_v51  ;;  %v11323_v49 = vld [vmem:[#allocation6 + $0xf0] ss:$120 sps:$4 sm:$0xff]   ;;  %v11331_v51 = vld [vmem:[#allocation6 + $0x1e4] ss:$120 sps:$4 sm:$0xff]  }
 0x16c   : > { %3242 = vmatprep.subr.bf16.mxu1 %v11270_v52  ;;  %v12068_v52 = vsel %vm4127_vm4, %v4128_v46, 0  ;;  %v11348_v46 = vld [vmem:[#allocation4 + $0x3e4] ss:$40 sps:$4 sm:$0xff]  }
 0x16e   : > { %3024 = vmatpush1.bf16.msra.mxu0 %v11265_v53  ;;  %v11329_v53 = vld [vmem:[#allocation6 + $0x1e0] ss:$120 sps:$4 sm:$0xff]  }
 0x16f   : > { %3243 = vmatpush1.bf16.msra.mxu1 %v11268_v54  ;;  %3025 = vmatprep.subr.bf16.mxu0 %v11273_v56  ;;  %v11305_v54 = vld [vmem:[#allocation4 + $0xc0] ss:$40 sps:$4 sm:$0xff]   ;;  %v4134_v56 = vand.u32 %v11331_v51, %v12068_v52  ;;  %v11353_v51 = vld [vmem:[#allocation4 + $0x430] ss:$40 sps:$4 sm:$0xff]  }
 0x170   : > { %3244 = vmatprep.subr.bf16.mxu1 %v11276_v57  ;;  %v12072_v57 = vld [vmem:[%s11901_s28 + $0x38] ss:$20 sps:$4 sm:$0xff]  }
 0x172   : > { %3026 = vmatpush1.bf16.msra.mxu0 %v11271_v58  ;;  %v4131_v58 = vand.u32 %v11329_v53, %v12068_v52  ;;  %v11358_v53 = vld [vmem:[#allocation4 + $0x484] ss:$40 sps:$4 sm:$0xff]  }
 0x173   : > { %3245 = vmatpush1.bf16.msra.mxu1 %v11274_v59  ;;  %3027 = vmatprep.subr.bf16.mxu0 %v11279_v61  ;;  %v11308_v59 = vld [vmem:[#allocation4 + $0x110] ss:$40 sps:$4 sm:$0xff]   ;;  %v11351_v61 = vld [vmem:[#allocation6 + $0xc] ss:$120 sps:$4 sm:$0xff]  }
 0x174   : > { %3246 = vmatprep.subr.bf16.mxu1 %v11282_v62  ;;  %v11313_v62 = vld [vmem:[#allocation4 + $0x164] ss:$40 sps:$4 sm:$0xff]  }
 0x176   : > { %3028 = vmatpush1.bf16.msra.mxu0 %v11277_v0  ;;  %v11311_v0 = vld [vmem:[#allocation4 + $0x160] ss:$40 sps:$4 sm:$0xff]  }
 0x177   : > { %3247 = vmatpush1.bf16.msra.mxu1 %v11280_v1  ;;  %3029 = vmatprep.subr.bf16.mxu0 %v11285_v3  ;;  %v11319_v1 = vld [vmem:[#allocation4 + $0x1b4] ss:$40 sps:$4 sm:$0xff]  }
 0x178   : > { %3248 = vmatprep.subr.bf16.mxu1 %v11288_v4  ;;  %v12082_v3 = vld [vmem:[%s11901_s28 + $0x60] ss:$20 sps:$4 sm:$0xff]   ;;  %v11317_v4 = vld [vmem:[#allocation4 + $0x1b0] ss:$40 sps:$4 sm:$0xff]  }
 0x17a   : > { %3030 = vmatpush1.bf16.msra.mxu0 %v11283_v6  ;;  %v11320_v6 = vld [vmem:[#allocation4 + $0x200] ss:$40 sps:$4 sm:$0xff]  }
 0x17b   : > { %3249 = vmatpush1.bf16.msra.mxu1 %v11286_v11  ;;  %3072 = vmatprep.subr.bf16.mxu0 %v11291_v14  ;;  %v11328_v11 = vld [vmem:[#allocation4 + $0x254] ss:$40 sps:$4 sm:$0xff]   ;;  %v11326_v14 = vld [vmem:[#allocation4 + $0x250] ss:$40 sps:$4 sm:$0xff]  }
 0x17c   : > { %3291 = vmatprep.subr.bf16.mxu1 %v11294_v15  ;;  %v11334_v15 = vld [vmem:[#allocation4 + $0x2a4] ss:$40 sps:$4 sm:$0xff]  }
 0x17d   : > { %3032 = vmatmul.mubr.bf16.vlgmr.msra.gmra.mrb[16].mxu0 %v12018_v26 }
 0x17e   : > { %3251 = vmatmul.mubr.bf16.vlgmr.msra.gmra.mrb[16].mxu1 %v12018_v26  ;;  %3073 = vmatpush1.bf16.msra.mxu0 %v11289_v20  ;;  %v11338_v20 = vld [vmem:[#allocation4 + $0x2f4] ss:$40 sps:$4 sm:$0xff]  }
 0x17f   : > { %3041 = vmatprep.mubr.bf16.mxu0 %v12024_v28  ;;  %3260 = vmatprep.mubr.bf16.mxu1 %v12024_v28 }
 0x180   : > { %3074 = vmatprep.subr.bf16.mxu0 %v2474_v22  ;;  %3292 = vmatpush1.bf16.msra.mxu1 %v11292_v24  ;;  %v11362_v22 = vld [vmem:[#allocation6 + $0xfc] ss:$120 sps:$4 sm:$0xff]   ;;  %v11368_v24 = vld [vmem:[#allocation6 + $0x1ec] ss:$120 sps:$4 sm:$0xff]  }
 0x181   : > { %3293 = vmatprep.subr.bf16.mxu1 %v2480_v27  ;;  %v11360_v27 = vld [vmem:[#allocation6 + $0xf8] ss:$120 sps:$4 sm:$0xff]  }
 0x182   : > { %3075 = vmatpush1.bf16.msra.mxu0 %v2471_v29  ;;  %v11366_v29 = vld [vmem:[#allocation6 + $0x1e8] ss:$120 sps:$4 sm:$0xff]  }
 0x183   : > { %3364 = vmatprep.subr.bf16.mxu0 %v11301_v30  ;;  %v4140_v30 = vand.u32 %v11368_v24, %v12068_v52 }
 0x184   : > { %3294 = vmatpush1.bf16.msra.mxu1 %v2477_v33  ;;  %v12107_v33 = vld [vmem:[%s11955_s6 + $0x8] sm:$0xff]  }
 0x185   : > { %3042 = vmatmul.mubr.bf16.gmra.mrb[20].mxu0 %v12031_v36  ;;  %4220 = vmatprep.subr.bf16.mxu1 %v11316_v34  ;;  %v11339_v34 = vld [vmem:[#allocation4 + $0x340] ss:$40 sps:$4 sm:$0xff]  }
 0x186   : > { %3261 = vmatmul.mubr.bf16.gmra.mrb[20].mxu1 %v12031_v36  ;;  %3051 = vmatprep.mubr.bf16.mxu0 %v12036_v37 }
 0x187   : > { %3270 = vmatprep.mubr.bf16.mxu1 %v12036_v37 }
 0x18d   : > { %3052 = vmatmul.mubr.bf16.gmra.mrb[24].mxu0 %v12041_v38 }
 0x18e   : > { %3271 = vmatmul.mubr.bf16.gmra.mrb[24].mxu1 %v12041_v38  ;;  %3061 = vmatprep.mubr.bf16.mxu0 %v12046_v39 }
 0x18f   : > { %3280 = vmatprep.mubr.bf16.mxu1 %v12046_v39 }
 0x195   : > { %3062 = vmatmul.mubr.bf16.gmra.mrb[28].mxu0 %v12051_v40 }
 0x196   : > { %3281 = vmatmul.mubr.bf16.gmra.mrb[28].mxu1 %v12051_v40  ;;  %3104 = vmatprep.mubr.bf16.mxu0 %v14932_v35 }
 0x197   : > { %3323 = vmatprep.mubr.bf16.mxu1 %v14932_v35 }
 0x19d   : > { %9950 = vmatmul.mubr.msk.bf16.vlgmr.msra.gmra.mrb[16].mxu0 %vm2441_vm2, %v12058_v44 }
 0x19e   : > { %9954 = vmatmul.mubr.msk.bf16.vlgmr.msra.gmra.mrb[16].mxu1 %vm2441_vm2, %v12058_v44  ;;  %3365 = vmatpush1.bf16.msra.mxu0 %v11299_v41  ;;  %v11345_v41 = vld [vmem:[#allocation4 + $0x394] ss:$40 sps:$4 sm:$0xff]  }
 0x19f   : > { %3114 = vmatprep.mubr.bf16.mxu0 %v14932_v35  ;;  %3366 = vmatprep.subr.bf16.mxu0 %v11304_v42  ;;  %v4137_v42 = vand.u32 %v11366_v29, %v12068_v52 }
 0x1a0   : > { %3333 = vmatprep.mubr.bf16.mxu1 %v14932_v35  ;;  %4221 = vmatpush1.bf16.msra.mxu1 %v11314_v43  ;;  %v11386_v43 = vld [vmem:[#allocation6 + $0x14] ss:$120 sps:$4 sm:$0xff]  }
 0x1a1   : > { %4222 = vmatprep.subr.bf16.mxu1 %v11325_v45  ;;  %v11343_v45 = vld [vmem:[#allocation4 + $0x390] ss:$40 sps:$4 sm:$0xff]  }
 0x1a2   : > { %3367 = vmatpush1.bf16.msra.mxu0 %v11302_v47  ;;  %v12114_v47 = vld [vmem:[%s11955_s6 + $0x10] sm:$0xff]  }
 0x1a3   : > { %3368 = vmatprep.subr.bf16.mxu0 %v11307_v48  ;;  %v11346_v48 = vld [vmem:[#allocation4 + $0x3e0] ss:$40 sps:$4 sm:$0xff]  }
 0x1a4   : > { %4223 = vmatpush1.bf16.msra.mxu1 %v11323_v49  ;;  %v11355_v49 = vld [vmem:[#allocation4 + $0x434] ss:$40 sps:$4 sm:$0xff]  }
 0x1a5   : > { %9951 = vmatmul.mubr.msk.bf16.gmra.mrb[20].mxu0 %vm2441_vm2, %v12072_v57  ;;  %4224 = vmatprep.subr.bf16.mxu1 %v4134_v56 }
 0x1a6   : > { %9955 = vmatmul.mubr.msk.bf16.gmra.mrb[20].mxu1 %vm2441_vm2, %v12072_v57  ;;  %3369 = vmatpush1.bf16.msra.mxu0 %v11305_v54 }
 0x1a7   : > { %3124 = vmatprep.mubr.bf16.mxu0 %v14932_v35  ;;  %3370 = vmatprep.subr.bf16.mxu0 %v11310_v9 }
 0x1a8   : > { %3343 = vmatprep.mubr.bf16.mxu1 %v14932_v35  ;;  %4225 = vmatpush1.bf16.msra.mxu1 %v4131_v58 }
 0x1a9   : > { %4293 = vmatprep.subr.bf16.mxu1 %v11351_v61 }
 0x1aa   : > { %3371 = vmatpush1.bf16.msra.mxu0 %v11308_v59  ;;  %v12120_v59 = vld [vmem:[%s11955_s6 + $0x18] sm:$0xff]  }
 0x1ab   : > { %3372 = vmatprep.subr.bf16.mxu0 %v11313_v62 }
 0x1ad   : > { %9952 = vmatmul.mubr.msk.bf16.gmra.mrb[24].mxu0 %vm2441_vm2, %v12082_v3 }
 0x1ae   : > { %9956 = vmatmul.mubr.msk.bf16.gmra.mrb[24].mxu1 %vm2441_vm2, %v12082_v3  ;;  %3373 = vmatpush1.bf16.msra.mxu0 %v11311_v0  ;;  %v11356_v0 = vld [vmem:[#allocation4 + $0x480] ss:$40 sps:$4 sm:$0xff]  }
 0x1af   : > { %3134 = vmatprep.mubr.bf16.mxu0 %v14932_v35  ;;  %3374 = vmatprep.subr.bf16.mxu0 %v11319_v1 }
 0x1b0   : > { %3353 = vmatprep.mubr.bf16.mxu1 %v14932_v35 }
 0x1b2   : > { %3375 = vmatpush1.bf16.msra.mxu0 %v11317_v4 }
 0x1b3   : > { %3376 = vmatprep.subr.bf16.mxu0 %v11322_v5 }
 0x1b5   : > { %9953 = vmatmul.mubr.msk.bf16.gmra.mrb[28].mxu0 %vm2441_vm2, %v12091_v12 }
 0x1b6   : > { %9957 = vmatmul.mubr.msk.bf16.gmra.mrb[28].mxu1 %vm2441_vm2, %v12091_v12  ;;  %3377 = vmatpush1.bf16.msra.mxu0 %v11320_v6 }
 0x1b7   : > { %4252 = vmatprep.mubr.bf16.mxu1 %v14932_v35  ;;  %3378 = vmatprep.subr.bf16.mxu0 %v11328_v11  ;;  %v11365_v11 = vld [vmem:[#allocation4 + $0x4d4] ss:$40 sps:$4 sm:$0xff]  }
 0x1b8   : > { %3396 = vmatprep.mubr.bf16.mxu0 %v11947_v8  ;;  %v11341_v8 = vld [vmem:[#allocation4 + $0x344] ss:$40 sps:$4 sm:$0xff]  }
 0x1ba   : > { %3379 = vmatpush1.bf16.msra.mxu0 %v11326_v14 }
 0x1bb   : > { %3380 = vmatprep.subr.bf16.mxu0 %v11334_v15 }
 0x1be   : > { %10056 = vmatmul.mubr.msk.bf16.vlgmr.msra.gmra.mrb[32].mxu1 %vm4113_vm5, %v12100_v17  ;;  %3381 = vmatpush1.bf16.msra.mxu0 %v11332_v19 }
 0x1bf   : > { %4262 = vmatprep.mubr.bf16.mxu1 %v14932_v35  ;;  %3382 = vmatprep.subr.bf16.mxu0 %v11338_v20 }
 0x1c0   : > { %4294 = vmatpush1.bf16.msra.mxu1 %v11349_v21  ;;  %v11363_v21 = vld [vmem:[#allocation4 + $0x4d0] ss:$40 sps:$4 sm:$0xff]  }
 0x1c1   : > { %4295 = vmatprep.subr.bf16.mxu1 %v11362_v22  ;;  %v11371_v22 = vld [vmem:[#allocation4 + $0x524] ss:$40 sps:$4 sm:$0xff]  }
 0x1c2   : > { %3383 = vmatpush1.bf16.msra.mxu0 %v11336_v25 }
 0x1c3   : > { %3384 = vmatprep.subr.bf16.mxu0 %v11341_v8 }
 0x1c4   : > { %4296 = vmatpush1.bf16.msra.mxu1 %v11360_v27 }
 0x1c5   : > { %4297 = vmatprep.subr.bf16.mxu1 %v4140_v30 }
 0x1c6   : > { %10057 = vmatmul.mubr.msk.bf16.gmra.mrb[36].mxu1 %vm4113_vm5, %v12107_v33  ;;  %3385 = vmatpush1.bf16.msra.mxu0 %v11339_v34 }
 0x1c7   : > { %4272 = vmatprep.mubr.bf16.mxu1 %v14932_v35  ;;  %3386 = vmatprep.subr.bf16.mxu0 %v11345_v41 }
 0x1c8   : > { %4298 = vmatpush1.bf16.msra.mxu1 %v4137_v42 }
 0x1c9   : > { %4366 = vmatprep.subr.bf16.mxu1 %v11386_v43 }
 0x1ca   : > { %3387 = vmatpush1.bf16.msra.mxu0 %v11343_v45 }
 0x1cb   : > { %3388 = vmatprep.subr.bf16.mxu0 %v11348_v46  ;;  %v11369_v46 = vld [vmem:[#allocation4 + $0x520] ss:$40 sps:$4 sm:$0xff]  }
 0x1ce   : > { %10058 = vmatmul.mubr.msk.bf16.gmra.mrb[40].mxu1 %vm4113_vm5, %v12114_v47  ;;  %3389 = vmatpush1.bf16.msra.mxu0 %v11346_v48 }
 0x1cf   : > { %4282 = vmatprep.mubr.bf16.mxu1 %v14932_v35  ;;  %3390 = vmatprep.subr.bf16.mxu0 %v11355_v49 }
 0x1d0   : > { %v2668_v54 = vpop.f32.mrb[0].mxu0 }
 0x1d1   : > { %v2887_v9 = vpop.f32.mrb[0].mxu1  ;;  %v2670_v56 = vpop.f32.mrb[1].mxu0 }
 0x1d2   : > { %v2889_v58 = vpop.f32.mrb[1].mxu1  ;;  %3391 = vmatpush1.bf16.msra.mxu0 %v11353_v51  ;;  %v2672_v61 = vpop.f32.mrb[2].mxu0  ;;  %v6075_v29 = vrot.slane %v2670_v56, 1 }
 0x1d3   : > { %v2891_v62 = vpop.f32.mrb[2].mxu1  ;;  %v12122_v1 = vpack.c.bf16 %v2672_v61, %v2668_v54  ;;  %v2674_v5 = vpop.f32.mrb[3].mxu0  ;;  %3392 = vmatprep.subr.bf16.mxu0 %v11358_v53 }
 0x1d4   : > { %v5317_v4 = vpack.c.bf16 %v2891_v62, %v2887_v9  ;;  %v2893_v6 = vpop.f32.mrb[3].mxu1  ;;  %v5316_v14 = vpack.c.bf16 %v2674_v5, %v2670_v56  ;;  %v6076_v30 = vrot.slane %v2674_v5, 1  ;;  %v11384_v56 = vld [vmem:[#allocation6 + $0x10] ss:$120 sps:$4 sm:$0xff]  }
 0x1d5   : > { %v5318_v15 = vpack.c.bf16 %v2893_v6, %v2889_v58  ;;  %v5639_v19 = vunpack.c.l.bf16 %v12122_v1  ;;  %v5640_v20 = vunpack.c.h.bf16 %v12122_v1  ;;  %v11374_v58 = vld [vmem:[#allocation4 + $0x574] ss:$40 sps:$4 sm:$0xff]  }
 0x1d6   : > { %5357 = vst [vmem:[#allocation2 + $0x10] sm:$0xff] %v5317_v4  ;;  %10059 = vmatmul.mubr.msk.bf16.gmra.mrb[44].mxu1 %vm4113_vm5, %v12120_v59  ;;  %5356 = vst [vmem:[#allocation2 + $0x8] sm:$0xff] %v5316_v14  ;;  %3393 = vmatpush1.bf16.msra.mxu0 %v11356_v0  ;;  %v6077_v49 = vsel %vm4126_vm3, %v6075_v29, %v6076_v30  ;;  %v11395_v0 = vld [vmem:[#allocation6 + $0x104] ss:$120 sps:$4 sm:$0xff]   ;;  %v11372_v14 = vld [vmem:[#allocation4 + $0x570] ss:$40 sps:$4 sm:$0xff]  }
 0x1d7   : > { %5358 = vst [vmem:[#allocation2 + $0x18] sm:$0xff] %v5318_v15  ;;  %4325 = vmatprep.mubr.bf16.mxu1 %v14932_v35  ;;  %3394 = vmatprep.subr.bf16.mxu0 %v11365_v11  ;;  %v5679_v24 = vrot.slane %v5639_v19, 1  ;;  %v5680_v25 = vrot.slane %v5640_v20, 1  ;;  %v10332_v4 = vpack.i.bf16 %v6076_v30, %v6077_v49  ;;  %v11377_v15 = vld [vmem:[#allocation4 + $0x5c4] ss:$40 sps:$4 sm:$0xff]  }
 0x1d8   : > { %v2678_v8 = vpop.f32.mrb[4].mxu0 }
 0x1d9   : > { %v2897_v27 = vpop.f32.mrb[4].mxu1  ;;  %v2680_v34 = vpop.f32.mrb[5].mxu0  ;;  %v5681_v42 = vsel %vm4126_vm3, %v5679_v24, %v5680_v25 }
 0x1da   : > { %v2899_v41 = vpop.f32.mrb[5].mxu1  ;;  %3395 = vmatpush1.bf16.msra.mxu0 %v11363_v21  ;;  %v2682_v43 = vpop.f32.mrb[6].mxu0  ;;  %v10327_v48 = vpack.i.bf16 %v5680_v25, %v5681_v42  ;;  %v11393_v25 = vld [vmem:[#allocation6 + $0x100] ss:$120 sps:$4 sm:$0xff]   ;;  %v6078_v42 = vrot.slane %v2680_v34, 1 }
 0x1db   : > { %v2901_v45 = vpop.f32.mrb[6].mxu1  ;;  %v12135_v51 = vpack.c.bf16 %v2682_v43, %v2678_v8  ;;  %v2684_v54 = vpop.f32.mrb[7].mxu0  ;;  %3437 = vmatprep.subr.bf16.mxu0 %v11371_v22  ;;  %v11401_v8 = vld [vmem:[#allocation6 + $0x1f4] ss:$120 sps:$4 sm:$0xff]  }
 0x1dc   : > { %v5327_v53 = vpack.c.bf16 %v2901_v45, %v2897_v27  ;;  %v2903_v9 = vpop.f32.mrb[7].mxu1  ;;  %v5326_v61 = vpack.c.bf16 %v2684_v54, %v2680_v34  ;;  %10328 = vrot.lane.b32.xlu0 %v10327_v48, %s11748_s20  ;;  %v6079_v43 = vrot.slane %v2684_v54, 1  ;;  %v11399_v48 = vld [vmem:[#allocation6 + $0x1f0] ss:$120 sps:$4 sm:$0xff]  }
 0x1dd   : > { %v5328_v62 = vpack.c.bf16 %v2903_v9, %v2899_v41  ;;  %3397 = vmatmul.mubr.bf16.vlgmr.msra.gmra.mrb[32].mxu0 %v11958_v50  ;;  %v14930_v6 = vunpack.c.l.bf16 %v12135_v51  ;;  %v14931_v11 = vunpack.c.h.bf16 %v12135_v51  ;;  %v11375_v9 = vld [vmem:[#allocation4 + $0x5c0] ss:$40 sps:$4 sm:$0xff]  }
 0x1de   : > { %5367 = vst [vmem:[#allocation2 + $0x60] sm:$0xff] %v5327_v53  ;;  %10060 = vmatmul.mubr.msk.bf16.vlgmr.msra.gmra.mrb[48].mxu1 %vm4113_vm5, %v12100_v17  ;;  %v6620_v5 = vld [vmem:[#allocation2 + $0x18] sm:$0x7f]  ;;  %5366 = vst [vmem:[#allocation2 + $0x58] sm:$0xff] %v5326_v61  ;;  %3438 = vmatpush1.bf16.msra.mxu0 %v11369_v46 }
 0x1df   : > { %5368 = vst [vmem:[#allocation2 + $0x68] sm:$0xff] %v5328_v62  ;;  %4335 = vmatprep.mubr.bf16.mxu1 %v14932_v35  ;;  %v6624_v21 = vunpack.c.l.bf16 %v6620_v5  ;;  %v6625_v22 = vunpack.c.h.bf16 %v6620_v5  ;;  %3439 = vmatprep.subr.bf16.mxu0 %v11374_v58  ;;  %v5682_v50 = vrot.slane %v14930_v6, 1  ;;  %v12148_v24 = vrot.slane %v14931_v11, 1 }
 0x1e0   : > { %4367 = vmatpush1.bf16.msra.mxu1 %v11384_v56  ;;  %v2688_v27 = vpop.f32.mrb[8].mxu0  ;;  %10333 = vrot.lane.b32.xlu0 %v10332_v4, %s11748_s20  ;;  %v6080_v56 = vsel %vm4126_vm3, %v6078_v42, %v6079_v43 }
 0x1e1   : > { %v2907_v29 = vpop.f32.mrb[8].mxu1  ;;  %v6640_v30 = vrot.slane %v6624_v21, 1  ;;  %v6641_v41 = vrot.slane %v6625_v22, 1  ;;  %4368 = vmatprep.subr.bf16.mxu1 %v11395_v0  ;;  %v12151_v45 = vpop.f32.mrb[9].mxu0  ;;  %3406 = vmatprep.mubr.bf16.mxu0 %v11963_v55  ;;  %v11380_v0 = vld [vmem:[#allocation4 + $0x614] ss:$40 sps:$4 sm:$0xff]   ;;  %v10347_v5 = vpack.i.bf16 %v6079_v43, %v6080_v56  ;;  %v4146_v22 = vand.u32 %v11401_v8, %v12068_v52 }
 0x1e2   : > { %v2909_v46 = vpop.f32.mrb[9].mxu1  ;;  %3440 = vmatpush1.bf16.msra.mxu0 %v11372_v14  ;;  %v2692_v49 = vpop.f32.mrb[10].mxu0  ;;  %v5684_v14 = vsel %vm4126_vm3, %v5682_v50, %v12148_v24  ;;  %v11378_v50 = vld [vmem:[#allocation4 + $0x610] ss:$40 sps:$4 sm:$0xff]   ;;  %v6081_v56 = vrot.slane %v12151_v45, 1 }
 0x1e3   : > { %v2911_v53 = vpop.f32.mrb[10].mxu1  ;;  %v6642_v58 = vsel %vm4126_vm3, %v6640_v30, %v6641_v41  ;;  %v12156_v61 = vpack.c.bf16 %v2692_v49, %v2688_v27  ;;  %v2694_v34 = vpop.f32.mrb[11].mxu0  ;;  %3441 = vmatprep.subr.bf16.mxu0 %v11377_v15  ;;  %v4143_v30 = vand.u32 %v11399_v48, %v12068_v52  ;;  %10348 = vrot.lane.b32.xlu1 %v10347_v5, %s11748_s20  ;;  %v11419_v48 = vld [vmem:[#allocation6 + $0x1c] ss:$120 sps:$4 sm:$0xff]   ;;  %v11381_v5 = vld [vmem:[#allocation4 + $0x660] ss:$40 sps:$4 sm:$0xff]  }
 0x1e4   : > { %v5337_v62 = vpack.c.bf16 %v2911_v53, %v2907_v29  ;;  %v2913_v54 = vpop.f32.mrb[11].mxu1  ;;  %v10337_v4 = vpack.i.bf16 %v6641_v41, %v6642_v58  ;;  %v5336_v21 = vpack.c.bf16 %v2694_v34, %v12151_v45  ;;  %4369 = vmatpush1.bf16.msra.mxu1 %v11393_v25  ;;  %v11383_v41 = vld [vmem:[#allocation4 + $0x664] ss:$40 sps:$4 sm:$0xff]   ;;  %v10342_v42 = vpack.i.bf16 %v12148_v24, %v5684_v14 }
 0x1e5   : > { %v5338_v55 = vpack.c.bf16 %v2913_v54, %v2909_v46  ;;  %v14928_v15 = vunpack.c.l.bf16 %v12156_v61  ;;  %v14929_v29 = vunpack.c.h.bf16 %v12156_v61  ;;  %4370 = vmatprep.subr.bf16.mxu1 %v4146_v22  ;;  %3407 = vmatmul.mubr.bf16.gmra.mrb[36].mxu0 %v11968_v60  ;;  %v11389_v22 = vld [vmem:[#allocation4 + $0x6b4] ss:$40 sps:$4 sm:$0xff]  }
 0x1e6   : > { %5377 = vst [vmem:[#allocation2 + $0xb0] sm:$0xff] %v5337_v62  ;;  %10061 = vmatmul.mubr.msk.bf16.gmra.mrb[52].mxu1 %vm4113_vm5, %v12107_v33  ;;  %10338 = vrot.lane.b32.xlu0 %v10337_v4, %s11748_s20  ;;  %v6621_v27 = vld [vmem:[#allocation2 + $0x68] sm:$0x7f]  ;;  %5376 = vst [vmem:[#allocation2 + $0xa8] sm:$0xff] %v5336_v21  ;;  %v6082_v62 = vrot.slane %v2694_v34, 1 }
 0x1e7   : > { %5378 = vst [vmem:[#allocation2 + $0xb8] sm:$0xff] %v5338_v55  ;;  %3442 = vmatpush1.bf16.msra.mxu0 %v11375_v9  ;;  %4345 = vmatprep.mubr.bf16.mxu1 %v14932_v35  ;;  %v6626_v25 = vunpack.c.l.bf16 %v6621_v27  ;;  %v6627_v8 = vunpack.c.h.bf16 %v6621_v27  ;;  %v5685_v43 = vrot.slane %v14928_v15, 1  ;;  %v5686_v46 = vrot.slane %v14929_v29, 1 }
 0x1e8   : > { %3443 = vmatprep.subr.bf16.mxu0 %v11380_v0  ;;  %v2698_v53 = vpop.f32.mrb[12].mxu0  ;;  %4371 = vmatpush1.bf16.msra.mxu1 %v4143_v30  ;;  %v6083_v55 = vsel %vm4126_vm3, %v6081_v56, %v6082_v62 }
 0x1e9   : > { %v2917_v49 = vpop.f32.mrb[12].mxu1  ;;  %v6643_v9 = vrot.slane %v6626_v25, 1  ;;  %v6644_v58 = vrot.slane %v6627_v8, 1  ;;  %v12177_v54 = vpop.f32.mrb[13].mxu0  ;;  %3416 = vmatprep.mubr.bf16.mxu0 %v11973_v63  ;;  %v10362_v25 = vpack.i.bf16 %v6082_v62, %v6083_v55  ;;  %v5687_v8 = vsel %vm4126_vm3, %v5685_v43, %v5686_v46  ;;  %4439 = vmatprep.subr.bf16.mxu1 %v11419_v48  ;;  %v11392_v48 = vld [vmem:[#allocation4 + $0x704] ss:$40 sps:$4 sm:$0xff]  }
 0x1ea   : > { %v2919_v24 = vpop.f32.mrb[13].mxu1  ;;  %10343 = vrot.lane.b32.xlu0 %v10342_v42, %s11748_s20  ;;  %v2702_v0 = vpop.f32.mrb[14].mxu0  ;;  %v11398_v55 = vld [vmem:[#allocation4 + $0x754] ss:$40 sps:$4 sm:$0xff]  }
 0x1eb   : > { %3444 = vmatpush1.bf16.msra.mxu0 %v11378_v50  ;;  %v2921_v4 = vpop.f32.mrb[14].mxu1  ;;  %v6645_v21 = vsel %vm4126_vm3, %v6643_v9, %v6644_v58  ;;  %v12183_v45 = vpack.c.bf16 %v2702_v0, %v2698_v53  ;;  %v2704_v60 = vpop.f32.mrb[15].mxu0  ;;  %v10357_v9 = vpack.i.bf16 %v5686_v46, %v5687_v8  ;;  %v11390_v46 = vld [vmem:[#allocation4 + $0x700] ss:$40 sps:$4 sm:$0xff]  }
 0x1ec   : > { %v5347_v34 = vpack.c.bf16 %v2921_v4, %v2917_v49  ;;  %v2923_v14 = vpop.f32.mrb[15].mxu1  ;;  %3445 = vmatprep.subr.bf16.mxu0 %v11383_v41  ;;  %v10352_v27 = vpack.i.bf16 %v6644_v58, %v6645_v21  ;;  %v5346_v30 = vpack.c.bf16 %v2704_v60, %v12177_v54  ;;  %v11387_v49 = vld [vmem:[#allocation4 + $0x6b0] ss:$40 sps:$4 sm:$0xff]   ;;  %v6085_v21 = vrot.slane %v2704_v60, 1  ;;  %v11402_v8 = vld [vmem:[#allocation4 + $0x7a0] ss:$40 sps:$4 sm:$0xff]  }
 0x1ed   : > { %v5348_v50 = vpack.c.bf16 %v2923_v14, %v2919_v24  ;;  %v14926_v42 = vunpack.c.l.bf16 %v12183_v45  ;;  %v14927_v41 = vunpack.c.h.bf16 %v12183_v45  ;;  %3417 = vmatmul.mubr.bf16.gmra.mrb[40].mxu0 %v11981_v10 }
 0x1ee   : > { %5387 = vst [vmem:[#allocation2 + $0x100] sm:$0xff] %v5347_v34  ;;  %10062 = vmatmul.mubr.msk.bf16.gmra.mrb[56].mxu1 %vm4113_vm5, %v12114_v47  ;;  %10353 = vrot.lane.b32.xlu1 %v10352_v27, %s11748_s20  ;;  %v6622_v63 = vld [vmem:[#allocation2 + $0xb8] sm:$0x7f]  ;;  %5386 = vst [vmem:[#allocation2 + $0xf8] sm:$0xff] %v5346_v30 }
 0x1ef   : > { %5388 = vst [vmem:[#allocation2 + $0x108] sm:$0xff] %v5348_v50  ;;  %3446 = vmatpush1.bf16.msra.mxu0 %v11381_v5  ;;  %4355 = vmatprep.mubr.bf16.mxu1 %v14932_v35  ;;  %v6628_v53 = vunpack.c.l.bf16 %v6622_v63  ;;  %v6629_v43 = vunpack.c.h.bf16 %v6622_v63  ;;  %v5688_v58 = vrot.slane %v14926_v42, 1  ;;  %v5689_v56 = vrot.slane %v14927_v41, 1 }
 0x1f0   : > { %3447 = vmatprep.subr.bf16.mxu0 %v11389_v22  ;;  %10363 = vrot.lane.b32.xlu0 %v10362_v25, %s11748_s20  ;;  %v6084_v5 = vrot.slane %v12177_v54, 1  ;;  %v11396_v22 = vld [vmem:[#allocation4 + $0x750] ss:$40 sps:$4 sm:$0xff]   ;;  %v11404_v54 = vld [vmem:[#allocation4 + $0x7a4] ss:$40 sps:$4 sm:$0xff]  }
 0x1f1   : > { %v6646_v62 = vrot.slane %v6628_v53, 1  ;;  %v6647_v24 = vrot.slane %v6629_v43, 1  ;;  %v5690_v0 = vsel %vm4126_vm3, %v5688_v58, %v5689_v56  ;;  %3426 = vmatprep.mubr.bf16.mxu0 %v11989_v18  ;;  %v11417_v43 = vld [vmem:[#allocation6 + $0x18] ss:$120 sps:$4 sm:$0xff]   ;;  %v11426_v58 = vld [vmem:[#allocation6 + $0x108] ss:$120 sps:$4 sm:$0xff]  }
 0x1f2   : > { %10358 = vrot.lane.b32.xlu1 %v10357_v9, %s11748_s20  ;;  %v10372_v14 = vpack.i.bf16 %v5689_v56, %v5690_v0  ;;  %v6086_v18 = vsel %vm4126_vm3, %v6084_v5, %v6085_v21  ;;  %v11434_v9 = vld [vmem:[#allocation6 + $0x1fc] ss:$120 sps:$4 sm:$0xff]   ;;  %v11432_v56 = vld [vmem:[#allocation6 + $0x1f8] ss:$120 sps:$4 sm:$0xff]  }
 0x1f3   : > { %3448 = vmatpush1.bf16.msra.mxu0 %v11387_v49  ;;  %v6648_v4 = vsel %vm4126_vm3, %v6646_v62, %v6647_v24  ;;  %v10377_v50 = vpack.i.bf16 %v6085_v21, %v6086_v18  ;;  %v11407_v49 = vld [vmem:[#allocation4 + $0x7f4] ss:$40 sps:$4 sm:$0xff]   ;;  %v4152_v62 = vand.u32 %v11434_v9, %v12068_v52  ;;  %v11411_v5 = vld [vmem:[#allocation4 + $0x890] ss:$40 sps:$4 sm:$0xff]   ;;  %v11416_v21 = vld [vmem:[#allocation4 + $0x8e4] ss:$40 sps:$4 sm:$0xff]  }
 0x1f4   : > { %3449 = vmatprep.subr.bf16.mxu0 %v11392_v48  ;;  %v10367_v34 = vpack.i.bf16 %v6647_v24, %v6648_v4  ;;  %v11428_v48 = vld [vmem:[#allocation6 + $0x10c] ss:$120 sps:$4 sm:$0xff]   ;;  %v11408_v24 = vld [vmem:[#allocation4 + $0x840] ss:$40 sps:$4 sm:$0xff]  }
 0x1f5   : > { %3427 = vmatmul.mubr.bf16.gmra.mrb[44].mxu0 %v11996_v23  ;;  %v11405_v23 = vld [vmem:[#allocation4 + $0x7f0] ss:$40 sps:$4 sm:$0xff]   ;;  %v11413_v0 = vld [vmem:[#allocation4 + $0x894] ss:$40 sps:$4 sm:$0xff]   ;;  %v11443_v9 = vld [vmem:[#allocation6 + $0x110] ss:$120 sps:$4 sm:$0xff]  }
 0x1f6   : > { %10063 = vmatmul.mubr.msk.bf16.gmra.mrb[60].mxu1 %vm4113_vm5, %v12120_v59  ;;  %10368 = vrot.lane.b32.xlu0 %v10367_v34, %s11748_s20  ;;  %v6623_v10 = vld [vmem:[#allocation2 + $0x108] sm:$0x7f]  ;;  %v11442_v4 = vld [vmem:[#allocation6 + $0x24] ss:$120 sps:$4 sm:$0xff]  }
 0x1f7   : > { %3450 = vmatpush1.bf16.msra.mxu0 %v11390_v46  ;;  %4398 = vmatprep.mubr.bf16.mxu1 %v14932_v35  ;;  %v6630_v27 = vunpack.c.l.bf16 %v6623_v10  ;;  %v6631_v25 = vunpack.c.h.bf16 %v6623_v10  ;;  %v4149_v46 = vand.u32 %v11432_v56, %v12068_v52  ;;  %v11422_v34 = vld [vmem:[#allocation4 + $0x934] ss:$40 sps:$4 sm:$0xff]   ;;  %v11425_v10 = vld [vmem:[#allocation4 + $0x984] ss:$40 sps:$4 sm:$0xff]  }
 0x1f8   : > { %3451 = vmatprep.subr.bf16.mxu0 %v11398_v55  ;;  %10373 = vrot.lane.b32.xlu1 %v10372_v14, %s11748_s20  ;;  %v11414_v55 = vld [vmem:[#allocation4 + $0x8e0] ss:$40 sps:$4 sm:$0xff]   ;;  %v11420_v14 = vld [vmem:[#allocation4 + $0x930] ss:$40 sps:$4 sm:$0xff]   ;;  %v11431_v18 = vld [vmem:[#allocation4 + $0x9d4] ss:$40 sps:$4 sm:$0xff]  }
 0x1f9   : > { %v6649_v60 = vrot.slane %v6630_v27, 1  ;;  %v6650_v30 = vrot.slane %v6631_v25, 1  ;;  %3469 = vmatprep.mubr.bf16.mxu0 %v12002_v31  ;;  %v11410_v31 = vld [vmem:[#allocation4 + $0x844] ss:$40 sps:$4 sm:$0xff]   ;;  %v665_v27 = vld [vmem:[#allocation4 + $0xa70] sm:$0x33] }
 0x1fa   : > { %v11429_v25 = vld [vmem:[#allocation4 + $0x9d0] ss:$40 sps:$4 sm:$0xff]  }
 0x1fb   : > { %3452 = vmatpush1.bf16.msra.mxu0 %v11396_v22  ;;  %v6651_v63 = vsel %vm4126_vm3, %v6649_v60, %v6650_v30  ;;  %v11423_v22 = vld [vmem:[#allocation4 + $0x980] ss:$40 sps:$4 sm:$0xff]   ;;  %v9941_v60 = vcombine.high %v665_v27, %v665_v27 }
 0x1fc   : > { %3453 = vmatprep.subr.bf16.mxu0 %v11404_v54  ;;  %10378 = vrot.lane.b32.xlu1 %v10377_v50, %s11748_s20  ;;  %v10382_v53 = vpack.i.bf16 %v6650_v30, %v6651_v63  ;;  %v11437_v54 = vld [vmem:[#allocation4 + $0xa24] ss:$40 sps:$4 sm:$0xff]   ;;  %v11435_v30 = vld [vmem:[#allocation4 + $0xa20] ss:$40 sps:$4 sm:$0xff]   ;;  %v9940_v50 = vcombine.low %v665_v27, %v665_v27  ;;  %v11440_v63 = vld [vmem:[#allocation6 + $0x20] ss:$120 sps:$4 sm:$0xff]  }
 0x1fd   : > { %v11479_v27 = vld [vmem:[#allocation6 + $0x130] ss:$120 sps:$4 sm:$0xff]  }
 0x1fe   : > { %10064 = vmatmul.mubr.msk.bf16.vlgmr.msra.gmra.mrb[64].mxu1 %vm4113_vm5, %v12100_v17 }
 0x1ff   : > { %3454 = vmatpush1.bf16.msra.mxu0 %v11402_v8  ;;  %4408 = vmatprep.mubr.bf16.mxu1 %v14932_v35  ;;  %v2486_v8 = vand.u32 %v9941_v60, %v11913_v16 }
 0x200   : > { %3455 = vmatprep.subr.bf16.mxu0 %v11407_v49  ;;  %10383 = vrot.lane.b32.xlu1 %v10382_v53, %s11748_s20  ;;  %v11445_v49 = vld [vmem:[#allocation6 + $0x114] ss:$120 sps:$4 sm:$0xff]   ;;  %v2483_v53 = vand.u32 %v9940_v50, %v11913_v16 }
 0x201   : > { %4440 = vmatpush1.bf16.msra.mxu1 %v11417_v43  ;;  %v11448_v43 = vld [vmem:[#allocation6 + $0x204] ss:$120 sps:$4 sm:$0xff]   ;;  %v11457_v16 = vld [vmem:[#allocation6 + $0x34] ss:$120 sps:$4 sm:$0xff]  }
 0x202   : > { %4441 = vmatprep.subr.bf16.mxu1 %v11428_v48  ;;  %v11451_v48 = vld [vmem:[#allocation6 + $0x2c] ss:$120 sps:$4 sm:$0xff]  }
 0x203   : > { %3456 = vmatpush1.bf16.msra.mxu0 %v11405_v23  ;;  %v11446_v23 = vld [vmem:[#allocation6 + $0x200] ss:$120 sps:$4 sm:$0xff]   ;;  %v11496_v50 = vld [vmem:[#allocation6 + $0x54] ss:$120 sps:$4 sm:$0xff]  }
 0x204   : > { %3457 = vmatprep.subr.bf16.mxu0 %v11410_v31  ;;  %v4155_v31 = vand.u32 %v11446_v23, %v12068_v52 }
 0x205   : > { %4442 = vmatpush1.bf16.msra.mxu1 %v11426_v58  ;;  %v11458_v58 = vld [vmem:[#allocation6 + $0x208] ss:$120 sps:$4 sm:$0xff]  }
 0x206   : > { %10065 = vmatmul.mubr.msk.bf16.gmra.mrb[68].mxu1 %vm4113_vm5, %v12107_v33  ;;  %4443 = vmatprep.subr.bf16.mxu1 %v4152_v62  ;;  %v11466_v62 = vld [vmem:[#allocation6 + $0x214] ss:$120 sps:$4 sm:$0xff]  }
 0x207   : > { %3458 = vmatpush1.bf16.msra.mxu0 %v11408_v24  ;;  %4418 = vmatprep.mubr.bf16.mxu1 %v14932_v35  ;;  %v11461_v24 = vld [vmem:[#allocation6 + $0x120] ss:$120 sps:$4 sm:$0xff]  }
 0x208   : > { %3459 = vmatprep.subr.bf16.mxu0 %v11413_v0  ;;  %v11464_v0 = vld [vmem:[#allocation6 + $0x210] ss:$120 sps:$4 sm:$0xff]  }
 0x209   : > { %4444 = vmatpush1.bf16.msra.mxu1 %v4149_v46  ;;  %v4170_v46 = vand.u32 %v11466_v62, %v12068_v52 }
 0x20a   : > { %4512 = vmatprep.subr.bf16.mxu1 %v11442_v4  ;;  %v4167_v4 = vand.u32 %v11464_v0, %v12068_v52 }
 0x20b   : > { %3460 = vmatpush1.bf16.msra.mxu0 %v11411_v5  ;;  %v11469_v5 = vld [vmem:[#allocation6 + $0x3c] ss:$120 sps:$4 sm:$0xff]  }
 0x20c   : > { %3461 = vmatprep.subr.bf16.mxu0 %v11416_v21  ;;  %v11475_v21 = vld [vmem:[#allocation6 + $0x44] ss:$120 sps:$4 sm:$0xff]  }
 0x20e   : > { %10066 = vmatmul.mubr.msk.bf16.gmra.mrb[72].mxu1 %vm4113_vm5, %v12114_v47 }
 0x20f   : > { %3462 = vmatpush1.bf16.msra.mxu0 %v11414_v55  ;;  %4428 = vmatprep.mubr.bf16.mxu1 %v14932_v35  ;;  %v11472_v55 = vld [vmem:[#allocation6 + $0x12c] ss:$120 sps:$4 sm:$0xff]  }
 0x210   : > { %3463 = vmatprep.subr.bf16.mxu0 %v11422_v34  ;;  %v11473_v34 = vld [vmem:[#allocation6 + $0x40] ss:$120 sps:$4 sm:$0xff]  }
 0x213   : > { %3464 = vmatpush1.bf16.msra.mxu0 %v11420_v14  ;;  %v11481_v14 = vld [vmem:[#allocation6 + $0x134] ss:$120 sps:$4 sm:$0xff]  }
 0x214   : > { %3465 = vmatprep.subr.bf16.mxu0 %v11425_v10  ;;  %v11476_v10 = vld [vmem:[#allocation6 + $0x218] ss:$120 sps:$4 sm:$0xff]  }
 0x216   : > { %10067 = vmatmul.mubr.msk.bf16.gmra.mrb[76].mxu1 %vm4113_vm5, %v12120_v59 }
 0x217   : > { %3466 = vmatpush1.bf16.msra.mxu0 %v11423_v22  ;;  %4471 = vmatprep.mubr.bf16.mxu1 %v14932_v35 }
 0x218   : > { %3467 = vmatprep.subr.bf16.mxu0 %v11431_v18  ;;  %v11484_v18 = vld [vmem:[#allocation6 + $0x224] ss:$120 sps:$4 sm:$0xff]  }
 0x21b   : > { %3468 = vmatpush1.bf16.msra.mxu0 %v11429_v25  ;;  %v11482_v25 = vld [vmem:[#allocation6 + $0x220] ss:$120 sps:$4 sm:$0xff]  }
 0x21c   : > { %3510 = vmatprep.subr.bf16.mxu0 %v11437_v54  ;;  %v4182_v54 = vand.u32 %v11484_v18, %v12068_v52  ;;  %v4179_v60 = vand.u32 %v11482_v25, %v12068_v52 }
 0x21e   : > { %3470 = vmatmul.mubr.bf16.vlgmr.msra.gmra.mrb[32].mxu0 %v12018_v26  ;;  %10068 = vmatmul.mubr.msk.bf16.vlgmr.msra.gmra.mrb[80].mxu1 %vm4113_vm5, %v12100_v17  ;;  %v4158_v26 = vand.u32 %v11448_v43, %v12068_v52 }
 0x21f   : > { %3511 = vmatpush1.bf16.msra.mxu0 %v11435_v30  ;;  %3479 = vmatprep.mubr.bf16.mxu0 %v12024_v28  ;;  %v11449_v28 = vld [vmem:[#allocation6 + $0x28] ss:$120 sps:$4 sm:$0xff]   ;;  %v11487_v30 = vld [vmem:[#allocation6 + $0x4c] ss:$120 sps:$4 sm:$0xff]  }
 0x220   : > { %4481 = vmatprep.mubr.bf16.mxu1 %v14932_v35  ;;  %3512 = vmatprep.subr.bf16.mxu0 %v2486_v8  ;;  %v12297_v8 = vpop.permute.xlu0 %5875 }
 0x221   : > { %4513 = vmatpush1.bf16.msra.mxu1 %v11440_v63  ;;  %15054 = vst [vmem:[#allocation14_spill] sm:$0xff] %v12297_v8  ;;  %v6255_v63 = vld [vmem:[#allocation2 + $0x10] sm:$0xfe] }
 0x222   : > { %4514 = vmatprep.subr.bf16.mxu1 %v11445_v49  ;;  %v6260_v43 = vunpack.c.h.bf16 %v6255_v63  ;;  %v11506_v8 = vld [vmem:[#allocation6 + $0x60] ss:$120 sps:$4 sm:$0xff]  }
 0x223   : > { %3513 = vmatpush1.bf16.msra.mxu0 %v2483_v53  ;;  %v6259_v53 = vunpack.c.l.bf16 %v6255_v63 }
 0x224   : > { %4585 = vmatprep.subr.bf16.mxu0 %v11451_v48  ;;  %v12305_v49 = vpop.permute.xlu0 %6428  ;;  %v6257_v48 = vld [vmem:[#allocation2 + $0xb0] sm:$0xfe] }
 0x225   : > { %4515 = vmatpush1.bf16.msra.mxu1 %v11443_v9  ;;  %15055 = vst [vmem:[#allocation15_spill] sm:$0xff] %v12305_v49  ;;  %v6276_v0 = vrot.slane %v6259_v53, 2 }
 0x226   : > { %3480 = vmatmul.mubr.bf16.gmra.mrb[36].mxu0 %v12031_v36  ;;  %10069 = vmatmul.mubr.msk.bf16.gmra.mrb[84].mxu1 %vm4113_vm5, %v12107_v33  ;;  %v11454_v36 = vld [vmem:[#allocation6 + $0x11c] ss:$120 sps:$4 sm:$0xff]  }
 0x227   : > { %3489 = vmatprep.mubr.bf16.mxu0 %v12036_v37  ;;  %4491 = vmatprep.mubr.bf16.mxu1 %v14932_v35  ;;  %v11460_v37 = vld [vmem:[#allocation6 + $0x20c] ss:$120 sps:$4 sm:$0xff]  }
 0x228   : > { %4516 = vmatprep.subr.bf16.mxu1 %v4158_v26  ;;  %v4164_v56 = vand.u32 %v11460_v37, %v12068_v52 }
 0x229   : > { %4517 = vmatpush1.bf16.msra.mxu1 %v4155_v31 }
 0x22a   : > { %4658 = vmatprep.subr.bf16.mxu1 %v11457_v16 }
 0x22e   : > { %3490 = vmatmul.mubr.bf16.gmra.mrb[40].mxu0 %v12041_v38  ;;  %10070 = vmatmul.mubr.msk.bf16.gmra.mrb[88].mxu1 %vm4113_vm5, %v12114_v47  ;;  %v11455_v38 = vld [vmem:[#allocation6 + $0x30] ss:$120 sps:$4 sm:$0xff]  }
 0x22f   : > { %3499 = vmatprep.mubr.bf16.mxu0 %v12046_v39  ;;  %4501 = vmatprep.mubr.bf16.mxu1 %v14932_v35  ;;  %v11463_v39 = vld [vmem:[#allocation6 + $0x124] ss:$120 sps:$4 sm:$0xff]  }
 0x236   : > { %3500 = vmatmul.mubr.bf16.gmra.mrb[44].mxu0 %v12051_v40  ;;  %10071 = vmatmul.mubr.msk.bf16.gmra.mrb[92].mxu1 %vm4113_vm5, %v12120_v59  ;;  %v11452_v40 = vld [vmem:[#allocation6 + $0x118] ss:$120 sps:$4 sm:$0xff]  }
 0x237   : > { %3542 = vmatprep.mubr.bf16.mxu0 %v14932_v35  ;;  %4544 = vmatprep.mubr.bf16.mxu1 %v14932_v35 }
 0x23e   : > { %9958 = vmatmul.mubr.msk.bf16.vlgmr.msra.gmra.mrb[32].mxu0 %vm2441_vm2, %v12058_v44  ;;  %10072 = vmatmul.mubr.msk.bf16.vlgmr.msra.gmra.mrb[96].mxu1 %vm4113_vm5, %v12100_v17  ;;  %v4161_v44 = vand.u32 %v11458_v58, %v12068_v52 }
 0x23f   : > { %4586 = vmatpush1.bf16.msra.mxu0 %v11449_v28  ;;  %3552 = vmatprep.mubr.bf16.mxu0 %v14932_v35 }
 0x240   : > { %4554 = vmatprep.mubr.bf16.mxu1 %v14932_v35  ;;  %4587 = vmatprep.subr.bf16.mxu0 %v11454_v36  ;;  %v7187_v36 = vld [vmem:[#allocation8 + $0x2] ss:$8 sm:$0x3] }
 0x241   : > { %4659 = vmatpush1.bf16.msra.mxu1 %v11455_v38 }
 0x242   : > { %4660 = vmatprep.subr.bf16.mxu1 %v11463_v39  ;;  %v6263_v39 = vunpack.c.l.bf16 %v6257_v48 }
 0x243   : > { %4588 = vmatpush1.bf16.msra.mxu0 %v11452_v40  ;;  %v6264_v40 = vunpack.c.h.bf16 %v6257_v48 }
 0x244   : > { %4589 = vmatprep.subr.bf16.mxu0 %v4164_v56  ;;  %v6282_v18 = vrot.slane %v6263_v39, 2 }
 0x245   : > { %4661 = vmatpush1.bf16.msra.mxu1 %v11461_v24 }
 0x246   : > { %9959 = vmatmul.mubr.msk.bf16.gmra.mrb[36].mxu0 %vm2441_vm2, %v12072_v57  ;;  %10073 = vmatmul.mubr.msk.bf16.gmra.mrb[100].mxu1 %vm4113_vm5, %v12107_v33  ;;  %v11467_v57 = vld [vmem:[#allocation6 + $0x38] ss:$120 sps:$4 sm:$0xff]  }
 0x247   : > { %3562 = vmatprep.mubr.bf16.mxu0 %v14932_v35  ;;  %4564 = vmatprep.mubr.bf16.mxu1 %v14932_v35 }
 0x248   : > { %4590 = vmatpush1.bf16.msra.mxu0 %v4161_v44  ;;  %4662 = vmatprep.subr.bf16.mxu1 %v4170_v46  ;;  %v12307_v44 = vrot.slane %v6260_v43, 2 }
 0x249   : > { %4663 = vmatpush1.bf16.msra.mxu1 %v4167_v4  ;;  %4731 = vmatprep.subr.bf16.mxu0 %v11469_v5  ;;  %v12309_v5 = vld [vmem:[#allocation2 + $0x18] sm:$0xfe] }
 0x24a   : > { %4804 = vmatprep.subr.bf16.mxu1 %v11475_v21  ;;  %v12311_v21 = vld [vmem:[#allocation2 + $0x8] sm:$0x7f]  ;;  %v6824_v25 = vunpack.c.l.bf16 %v12309_v5  ;;  %v6825_v39 = vunpack.c.h.bf16 %v12309_v5 }
 0x24e   : > { %9960 = vmatmul.mubr.msk.bf16.gmra.mrb[40].mxu0 %vm2441_vm2, %v12082_v3  ;;  %10074 = vmatmul.mubr.msk.bf16.gmra.mrb[104].mxu1 %vm4113_vm5, %v12114_v47  ;;  %v11478_v3 = vld [vmem:[#allocation6 + $0x21c] ss:$120 sps:$4 sm:$0xff]  }
 0x24f   : > { %3572 = vmatprep.mubr.bf16.mxu0 %v14932_v35  ;;  %4574 = vmatprep.mubr.bf16.mxu1 %v14932_v35  ;;  %v4176_v22 = vand.u32 %v11478_v3, %v12068_v52  ;;  %v12320_v3 = vrot.slane %v7187_v36, %v11986_v13 }
 0x251   : > { %15056 = vst [vmem:[#allocation16_spill] sm:$0xff] %v12320_v3 }
 0x256   : > { %9961 = vmatmul.mubr.msk.bf16.gmra.mrb[44].mxu0 %vm2441_vm2, %v12091_v12  ;;  %10075 = vmatmul.mubr.msk.bf16.gmra.mrb[108].mxu1 %vm4113_vm5, %v12120_v59  ;;  %v11470_v12 = vld [vmem:[#allocation6 + $0x128] ss:$120 sps:$4 sm:$0xff]   ;;  %vm9394_vm2 = vcmask 1042434  }
 0x257   : > { %4617 = vmatprep.mubr.bf16.mxu0 %v14932_v35  ;;  %4690 = vmatprep.mubr.bf16.mxu1 %v14932_v35 }
 0x25e   : > { %10076 = vmatmul.mubr.msk.bf16.vlgmr.msra.gmra.mrb[48].mxu0 %vm4113_vm5, %v12100_v17  ;;  %10080 = vmatmul.mubr.msk.bf16.vlgmr.msra.gmra.mrb[112].mxu1 %vm4113_vm5, %v12100_v17  ;;  %v4173_v17 = vand.u32 %v11476_v10, %v12068_v52  ;;  %v12332_v10 = vrot.slane %v7187_v36, %v12007_v32 }
 0x25f   : > { %4732 = vmatpush1.bf16.msra.mxu0 %v11467_v57  ;;  %4627 = vmatprep.mubr.bf16.mxu0 %v14932_v35 }
 0x260   : > { %4700 = vmatprep.mubr.bf16.mxu1 %v14932_v35  ;;  %4733 = vmatprep.subr.bf16.mxu0 %v11472_v55  ;;  %15058 = vst [vmem:[#allocation18_spill] sm:$0xff] %v12332_v10 }
 0x261   : > { %4805 = vmatpush1.bf16.msra.mxu1 %v11473_v34 }
 0x262   : > { %4806 = vmatprep.subr.bf16.mxu1 %v11481_v14  ;;  %v12325_v14 = vld [vmem:[#allocation2 + $0x10] sm:$0x7f] }
 0x263   : > { %4734 = vmatpush1.bf16.msra.mxu0 %v11470_v12  ;;  %v12327_v12 = vld [vmem:[#allocation2 + $0x58] sm:$0x7f] }
 0x264   : > { %4735 = vmatprep.subr.bf16.mxu0 %v4176_v22  ;;  %v12336_v22 = vld [vmem:[#allocation2 + $0x60] sm:$0x7f] }
 0x265   : > { %4807 = vmatpush1.bf16.msra.mxu1 %v11479_v27  ;;  %v12338_v27 = vrot.slane %v6264_v40, 2 }
 0x266   : > { %10077 = vmatmul.mubr.msk.bf16.gmra.mrb[52].mxu0 %vm4113_vm5, %v12107_v33  ;;  %10081 = vmatmul.mubr.msk.bf16.gmra.mrb[116].mxu1 %vm4113_vm5, %v12107_v33  ;;  %v6256_v33 = vld [vmem:[#allocation2 + $0x60] sm:$0xfe] }
 0x267   : > { %4637 = vmatprep.mubr.bf16.mxu0 %v14932_v35  ;;  %4710 = vmatprep.mubr.bf16.mxu1 %v14932_v35  ;;  %v6261_v26 = vunpack.c.l.bf16 %v6256_v33  ;;  %v6262_v31 = vunpack.c.h.bf16 %v6256_v33  ;;  %v12367_v40 = vsel %vm6275_vm6, %v6282_v18, %v12338_v27  ;;  %v12375_v18 = vld [vmem:[#allocation2 + $0xb0] sm:$0x7f] }
 0x268   : > { %4736 = vmatpush1.bf16.msra.mxu0 %v4173_v17  ;;  %4808 = vmatprep.subr.bf16.mxu1 %v4182_v54  ;;  %v12346_v54 = vsel %vm6275_vm6, %v6276_v0, %v12307_v44  ;;  %v11490_v0 = vld [vmem:[#allocation6 + $0x13c] ss:$120 sps:$4 sm:$0xff]  }
 0x269   : > { %4809 = vmatpush1.bf16.msra.mxu1 %v4179_v60  ;;  %4877 = vmatprep.subr.bf16.mxu0 %v11487_v30  ;;  %v6279_v57 = vrot.slane %v6261_v26, 2  ;;  %v12313_v55 = vrot.slane %v6262_v31, 2  ;;  %v11497_v60 = vld [vmem:[#allocation6 + $0x140] ss:$120 sps:$4 sm:$0xff]  }
 0x26a   : > { %4950 = vmatprep.subr.bf16.mxu1 %v11496_v50 }
 0x26b   : > { %v12354_v43 = vsel %vm6275_vm6, %v6279_v57, %v12313_v55  ;;  %v12405_v57 = vld [vmem:[#allocation2 + $0xb8] sm:$0xfe] }
 0x26e   : > { %10078 = vmatmul.mubr.msk.bf16.gmra.mrb[56].mxu0 %vm4113_vm5, %v12114_v47  ;;  %10082 = vmatmul.mubr.msk.bf16.gmra.mrb[120].mxu1 %vm4113_vm5, %v12114_v47  ;;  %v8148_v47 = vld [vmem:[#allocation8 + $0x3] ss:$8 sm:$0x3] }
 0x26f   : > { %4647 = vmatprep.mubr.bf16.mxu0 %v14932_v35  ;;  %4720 = vmatprep.mubr.bf16.mxu1 %v14932_v35  ;;  %v12323_v34 = vrot.slane %v8148_v47, %v11986_v13  ;;  %v12342_v17 = vrot.slane %v8148_v47, %v12007_v32  ;;  %v12362_v47 = vld [vmem:[#allocation6 + $0x22c] ss:$120 sps:$4 sm:$0xff]  }
 0x270   : > { %v3106_v9 = vpop.f32.mrb[16].mxu0  ;;  %v4188_v15 = vand.u32 %v12362_v47, %v12068_v52  ;;  %v12398_v47 = vld [vmem:[#allocation6 + $0x230] ss:$120 sps:$4 sm:$0xff]  }
 0x271   : > { %v3325_v23 = vpop.f32.mrb[16].mxu1  ;;  %v3108_v16 = vpop.f32.mrb[17].mxu0  ;;  %15057 = vst [vmem:[#allocation17_spill] sm:$0xff] %v12323_v34  ;;  %15060 = vst [vmem:[#allocation20_spill] sm:$0xff] %v12342_v17 }
 0x272   : > { %v3327_v28 = vpop.f32.mrb[17].mxu1  ;;  %v3110_v37 = vpop.f32.mrb[18].mxu0 }
 0x273   : > { %v3329_v38 = vpop.f32.mrb[18].mxu1  ;;  %v5319_v58 = vpack.c.bf16 %v3110_v37, %v3106_v9  ;;  %v3112_v24 = vpop.f32.mrb[19].mxu0  ;;  %v12357_v9 = vld [vmem:[#allocation2 + $0xa8] sm:$0x7f] }
 0x274   : > { %v5321_v56 = vpack.c.bf16 %v3329_v38, %v3325_v23  ;;  %v3331_v62 = vpop.f32.mrb[19].mxu1  ;;  %v5320_v4 = vpack.c.bf16 %v3112_v24, %v3108_v16  ;;  %v11485_v38 = vld [vmem:[#allocation6 + $0x48] ss:$120 sps:$4 sm:$0xff]  }
 0x275   : > { %v5322_v46 = vpack.c.bf16 %v3331_v62, %v3327_v28  ;;  %5359 = vst [vmem:[#allocation2 + $0x20] sm:$0xff] %v5319_v58  ;;  %v11494_v16 = vld [vmem:[#allocation6 + $0x50] ss:$120 sps:$4 sm:$0xff]  }
 0x276   : > { %5361 = vst [vmem:[#allocation2 + $0x30] sm:$0xff] %v5321_v56  ;;  %10079 = vmatmul.mubr.msk.bf16.gmra.mrb[60].mxu0 %vm4113_vm5, %v12120_v59  ;;  %10083 = vmatmul.mubr.msk.bf16.gmra.mrb[124].mxu1 %vm4113_vm5, %v12120_v59  ;;  %5360 = vst [vmem:[#allocation2 + $0x28] sm:$0xff] %v5320_v4  ;;  %v12334_v59 = vpop.permute.xlu0 %7167  ;;  %v12373_v28 = vld [vmem:[#allocation2 + $0x68] sm:$0xfe] }
 0x277   : > { %5362 = vst [vmem:[#allocation2 + $0x38] sm:$0xff] %v5322_v46  ;;  %4763 = vmatprep.mubr.bf16.mxu0 %v14932_v35  ;;  %4836 = vmatprep.mubr.bf16.mxu1 %v14932_v35  ;;  %15059 = vst [vmem:[#allocation19_spill] sm:$0xff] %v12334_v59  ;;  %v12369_v46 = vrot.slane %v6824_v25, 2  ;;  %v12531_v59 = vld [vmem:[#allocation6 + $0x23c] ss:$120 sps:$4 sm:$0xff]  }
 0x278   : > { %v3116_v50 = vpop.f32.mrb[20].mxu0 }
 0x279   : > { %v3335_v63 = vpop.f32.mrb[20].mxu1  ;;  %v3118_v23 = vpop.f32.mrb[21].mxu0 }
 0x27a   : > { %v3337_v26 = vpop.f32.mrb[21].mxu1  ;;  %v3120_v36 = vpop.f32.mrb[22].mxu0 }
 0x27b   : > { %v3339_v37 = vpop.f32.mrb[22].mxu1  ;;  %v5329_v58 = vpack.c.bf16 %v3120_v36, %v3116_v50  ;;  %v3122_v62 = vpop.f32.mrb[23].mxu0  ;;  %v12378_v50 = vld [vmem:[%s11955_s6] sm:$0xff]  }
 0x27c   : > { %v5331_v56 = vpack.c.bf16 %v3339_v37, %v3335_v63  ;;  %v3341_v24 = vpop.f32.mrb[23].mxu1  ;;  %v5330_v2 = vpack.c.bf16 %v3122_v62, %v3118_v23  ;;  %v6964_v5 = vld [vmem:[#allocation2 + $0x20] sm:$0xfe]  ;;  %15061 = vst [vmem:[#allocation21_spill] sm:$0xff] %v12378_v50  ;;  %v11499_v37 = vld [vmem:[#allocation6 + $0x144] ss:$120 sps:$4 sm:$0xff]   ;;  %v12389_v29 = vpop.permute.xlu0 %10328 }
 0x27d   : > { %v5332_v42 = vpack.c.bf16 %v3341_v24, %v3337_v26  ;;  %v7781_v41 = vld [vmem:[#allocation2 + $0x30] sm:$0xfe]  ;;  %5369 = vst [vmem:[#allocation2 + $0x70] sm:$0xff] %v5329_v58  ;;  %v6968_v23 = vunpack.c.l.bf16 %v6964_v5  ;;  %v6969_v26 = vunpack.c.h.bf16 %v6964_v5  ;;  %v7437_v36 = vld [vmem:[#allocation2 + $0x28] sm:$0x7f] }
 0x27e   : > { %5371 = vst [vmem:[#allocation2 + $0x80] sm:$0xff] %v5331_v56  ;;  %10084 = vmatmul.mubr.msk.bf16.vlgmr.msra.gmra.mrb[64].mxu0 %vm4113_vm5, %v12378_v50  ;;  %10088 = vmatmul.mubr.msk.bf16.vlgmr.msra.gmra.mrb[128].mxu1 %vm4113_vm5, %v12378_v50  ;;  %v7785_v25 = vunpack.c.l.bf16 %v7781_v41  ;;  %v7786_v63 = vunpack.c.h.bf16 %v7781_v41  ;;  %5370 = vst [vmem:[#allocation2 + $0x78] sm:$0xff] %v5330_v2  ;;  %v11488_v58 = vld [vmem:[#allocation6 + $0x138] ss:$120 sps:$4 sm:$0xff]   ;;  %v7441_v56 = vunpack.c.l.bf16 %v7437_v36  ;;  %v7442_v62 = vunpack.c.h.bf16 %v7437_v36  ;;  %v12385_v24 = vld [vmem:[#allocation6 + $0x228] ss:$120 sps:$4 sm:$0xff]  }
 0x27f   : > { %5372 = vst [vmem:[#allocation2 + $0x88] sm:$0xff] %v5332_v42  ;;  %4878 = vmatpush1.bf16.msra.mxu0 %v11485_v38  ;;  %4773 = vmatprep.mubr.bf16.mxu0 %v14932_v35  ;;  %v6985_v2 = vrot.slane %v6968_v23, 3  ;;  %v6986_v42 = vrot.slane %v6969_v26, 3  ;;  %v12392_v38 = vld [vmem:[#allocation6 + $0x234] ss:$120 sps:$4 sm:$0xff]   ;;  %v12402_v23 = vrot.slane %v6825_v39, 2 }
 0x280   : > { %4846 = vmatprep.mubr.bf16.mxu1 %v14932_v35  ;;  %v7801_v41 = vrot.slane %v7785_v25, 3  ;;  %v7802_v5 = vrot.slane %v7786_v63, 3  ;;  %4879 = vmatprep.subr.bf16.mxu0 %v11490_v0  ;;  %v3126_v4 = vpop.f32.mrb[24].mxu0  ;;  %v7457_v33 = vrot.slane %v7441_v56, 1  ;;  %v12396_v53 = vrot.slane %v7442_v62, 1 }
 0x281   : > { %v3345_v6 = vpop.f32.mrb[24].mxu1  ;;  %4951 = vmatpush1.bf16.msra.mxu1 %v11494_v16  ;;  %v3128_v11 = vpop.f32.mrb[25].mxu0  ;;  %v6987_v0 = vsel %vm6984_vm7, %v6985_v2, %v6986_v42  ;;  %v4185_v16 = vand.u32 %v12385_v24, %v12068_v52 }
 0x282   : > { %v3347_v25 = vpop.f32.mrb[25].mxu1  ;;  %v7803_v63 = vsel %vm6984_vm7, %v7801_v41, %v7802_v5  ;;  %4952 = vmatprep.subr.bf16.mxu1 %v11499_v37  ;;  %v3130_v36 = vpop.f32.mrb[26].mxu0  ;;  %v10387_v31 = vpack.i.bf16 %v6986_v42, %v6987_v0  ;;  %v7459_v39 = vsel %vm4126_vm3, %v7457_v33, %v12396_v53  ;;  %v12428_v0 = vld [vmem:[#allocation2 + $0x100] sm:$0x7f] }
 0x283   : > { %v3349_v56 = vpop.f32.mrb[26].mxu1  ;;  %v10392_v62 = vpack.i.bf16 %v7802_v5, %v7803_v63  ;;  %4880 = vmatpush1.bf16.msra.mxu0 %v11488_v58  ;;  %v5339_v41 = vpack.c.bf16 %v3130_v36, %v3126_v4  ;;  %v3132_v2 = vpop.f32.mrb[27].mxu0  ;;  %v4194_v5 = vand.u32 %v12392_v38, %v12068_v52  ;;  %v12419_v63 = vld [vmem:[#allocation2 + $0x100] sm:$0xfe]  ;;  %15062 = vst [vmem:[#allocation22_spill] sm:$0xff] %v12428_v0 }
 0x284   : > { %v5341_v30 = vpack.c.bf16 %v3349_v56, %v3345_v6  ;;  %v3351_v37 = vpop.f32.mrb[27].mxu1  ;;  %4881 = vmatprep.subr.bf16.mxu0 %v4188_v15  ;;  %v5340_v42 = vpack.c.bf16 %v3132_v2, %v3128_v11  ;;  %10388 = vrot.lane.b32.xlu0 %v10387_v31, %s11748_s20  ;;  %v6965_v4 = vld [vmem:[#allocation2 + $0x70] sm:$0xfe]  ;;  %v4191_v6 = vand.u32 %v12398_v47, %v12068_v52  ;;  %v12422_v15 = vld [vmem:[%s11955_s6 + $0x8] sm:$0xff]   ;;  %v6265_v36 = vunpack.c.l.bf16 %v12419_v63 }
 0x285   : > { %v5342_v58 = vpack.c.bf16 %v3351_v37, %v3347_v25  ;;  %10393 = vrot.lane.b32.xlu1 %v10392_v62, %s11748_s20  ;;  %v7782_v24 = vld [vmem:[#allocation2 + $0x80] sm:$0xfe]  ;;  %5379 = vst [vmem:[#allocation2 + $0xc0] sm:$0xff] %v5339_v41  ;;  %v6970_v31 = vunpack.c.l.bf16 %v6965_v4  ;;  %v6971_v38 = vunpack.c.h.bf16 %v6965_v4  ;;  %v7438_v25 = vld [vmem:[#allocation2 + $0x78] sm:$0x7f]  ;;  %v12433_v41 = vpop.permute.xlu1 %5877  ;;  %4953 = vmatpush1.bf16.msra.mxu1 %v11497_v60  ;;  %v6266_v48 = vunpack.c.h.bf16 %v12419_v63 }
 0x286   : > { %5381 = vst [vmem:[#allocation2 + $0xd0] sm:$0xff] %v5341_v30  ;;  %10085 = vmatmul.mubr.msk.bf16.gmra.mrb[68].mxu0 %vm4113_vm5, %v12422_v15  ;;  %10089 = vmatmul.mubr.msk.bf16.gmra.mrb[132].mxu1 %vm4113_vm5, %v12422_v15  ;;  %v7787_v11 = vunpack.c.l.bf16 %v7782_v24  ;;  %v7788_v33 = vunpack.c.h.bf16 %v7782_v24  ;;  %v11505_v47 = vld [vmem:[#allocation6 + $0x5c] ss:$120 sps:$4 sm:$0xff]   ;;  %5380 = vst [vmem:[#allocation2 + $0xc8] sm:$0xff] %v5340_v42  ;;  %v10397_v30 = vpack.i.bf16 %v12396_v53, %v7459_v39  ;;  %v7443_v56 = vunpack.c.l.bf16 %v7438_v25 }
 0x287   : > { %5382 = vst [vmem:[#allocation2 + $0xd8] sm:$0xff] %v5342_v58  ;;  %4783 = vmatprep.mubr.bf16.mxu0 %v14932_v35  ;;  %4856 = vmatprep.mubr.bf16.mxu1 %v14932_v35  ;;  %v7444_v62 = vunpack.c.h.bf16 %v7438_v25  ;;  %15063 = vst [vmem:[#allocation23_spill] sm:$0xff] %v12433_v41  ;;  %v6988_v24 = vrot.slane %v6970_v31, 3  ;;  %v6989_v4 = vrot.slane %v6971_v38, 3  ;;  %v11567_v63 = vadd.high.f32.bf16 %v5640_v20, %v12389_v29  ;;  %v11508_v60 = vld [vmem:[#allocation6 + $0x64] ss:$120 sps:$4 sm:$0xff]  }
 0x288   : > { %v7804_v2 = vrot.slane %v7787_v11, 3  ;;  %v7805_v37 = vrot.slane %v7788_v33, 3  ;;  %4882 = vmatpush1.bf16.msra.mxu0 %v4185_v16  ;;  %v3136_v53 = vpop.f32.mrb[28].mxu0  ;;  %v7460_v39 = vrot.slane %v7443_v56, 1  ;;  %4954 = vmatprep.subr.bf16.mxu1 %v4194_v5  ;;  %v12445_v5 = vsel %vm6275_vm6, %v12369_v46, %v12402_v23  ;;  %v12535_v41 = vld [vmem:[#allocation6 + $0x244] ss:$120 sps:$4 sm:$0xff]  }
 0x289   : > { %v3355_v42 = vpop.f32.mrb[28].mxu1  ;;  %10398 = vrot.lane.b32.xlu1 %v10397_v30, %s11748_s20  ;;  %v7461_v58 = vrot.slane %v7444_v62, 1  ;;  %v3138_v26 = vpop.f32.mrb[29].mxu0  ;;  %v6990_v16 = vsel %vm6984_vm7, %v6988_v24, %v6989_v4  ;;  %5023 = vmatprep.subr.bf16.mxu0 %v11505_v47 }
 0x28a   : > { %v3357_v11 = vpop.f32.mrb[29].mxu1  ;;  %v7806_v33 = vsel %vm6984_vm7, %v7804_v2, %v7805_v37  ;;  %v3140_v31 = vpop.f32.mrb[30].mxu0  ;;  %v10402_v35 = vpack.i.bf16 %v6989_v4, %v6990_v16  ;;  %4955 = vmatpush1.bf16.msra.mxu1 %v4191_v6  ;;  %v6285_v4 = vrot.slane %v6265_v36, 2  ;;  %v12461_v6 = vld [vmem:[%s11955_s6 + $0x10] sm:$0xff]  }
 0x28b   : > { %v3359_v38 = vpop.f32.mrb[30].mxu1  ;;  %v10407_v30 = vpack.i.bf16 %v7805_v37, %v7806_v33  ;;  %v5349_v56 = vpack.c.bf16 %v3140_v31, %v3136_v53  ;;  %v3142_v2 = vpop.f32.mrb[31].mxu0  ;;  %v7462_v47 = vsel %vm4126_vm3, %v7460_v39, %v7461_v58  ;;  %v11568_v37 = vadd.low.f32.bf16 %v5639_v19, %v12389_v29  ;;  %v12456_v53 = vld [vmem:[#allocation8] ss:$0 sm:$0xff]  ;;  %5096 = vmatprep.subr.bf16.mxu1 %v11508_v60 }
 0x28c   : > { %v5351_v62 = vpack.c.bf16 %v3359_v38, %v3355_v42  ;;  %v3361_v24 = vpop.f32.mrb[31].mxu1  ;;  %v5350_v46 = vpack.c.bf16 %v3142_v2, %v3138_v26  ;;  %v6966_v42 = vld [vmem:[#allocation2 + $0xc0] sm:$0xfe]  ;;  %v12458_v16 = vpop.permute.xlu1 %6430  ;;  %v12469_v39 = vrot.slane %v6266_v48, 2  ;;  %v10412_v31 = vpack.i.bf16 %v7461_v58, %v7462_v47 }
 0x28d   : > { %v5352_v33 = vpack.c.bf16 %v3361_v24, %v3357_v11  ;;  %10408 = vrot.lane.b32.xlu0 %v10407_v30, %s11748_s20  ;;  %10403 = vrot.lane.b32.xlu1 %v10402_v35, %s11748_s20  ;;  %v7783_v20 = vld [vmem:[#allocation2 + $0xd0] sm:$0xfe]  ;;  %15064 = vst [vmem:[#allocation24_spill] sm:$0xff] %v12458_v16  ;;  %5389 = vst [vmem:[#allocation2 + $0x110] sm:$0xff] %v5349_v56  ;;  %v6972_v29 = vunpack.c.l.bf16 %v6966_v42  ;;  %v6973_v35 = vunpack.c.h.bf16 %v6966_v42  ;;  %v7439_v26 = vld [vmem:[#allocation2 + $0xc8] sm:$0x7f]  ;;  %v12467_v36 = vpop.permute.xlu0 %10333  ;;  %v15069_v42 = vunpack.c.h.bf16 %v12373_v28 }
 0x28e   : > { %5391 = vst [vmem:[#allocation2 + $0x120] sm:$0xff] %v5351_v62  ;;  %10086 = vmatmul.mubr.msk.bf16.gmra.mrb[72].mxu0 %vm4113_vm5, %v12461_v6  ;;  %10090 = vmatmul.mubr.msk.bf16.gmra.mrb[136].mxu1 %vm4113_vm5, %v12461_v6  ;;  %v7789_v1 = vunpack.c.l.bf16 %v7783_v20  ;;  %v7790_v19 = vunpack.c.h.bf16 %v7783_v20  ;;  %15065 = vst [vmem:[#allocation25_spill] sm:$0xff] %v12469_v39  ;;  %v12471_v11 = vld [vmem:[#allocation2 + $0xf8] sm:$0x7f]  ;;  %v15066_v38 = vmov 0   ;;  %v7445_v30 = vunpack.c.l.bf16 %v7439_v26 }
 0x28f   : > { %5390 = vst [vmem:[#allocation2 + $0x118] sm:$0xff] %v5350_v46  ;;  %5392 = vst [vmem:[#allocation2 + $0x128] sm:$0xff] %v5352_v33  ;;  %4793 = vmatprep.mubr.bf16.mxu0 %v15066_v38  ;;  %4866 = vmatprep.mubr.bf16.mxu1 %v15066_v38  ;;  %v7446_v56 = vunpack.c.h.bf16 %v7439_v26  ;;  %v6991_v24 = vrot.slane %v6972_v29, 3  ;;  %v6992_v20 = vrot.slane %v6973_v35, 3  ;;  %v12476_v48 = vadd.f32 %v11567_v63, %v12456_v53 }
 0x290   : > { %v7807_v62 = vrot.slane %v7789_v1, 3  ;;  %v7808_v2 = vrot.slane %v7790_v19, 3  ;;  %v12479_v46 = vadd.f32 %v11568_v37, %v12456_v53  ;;  %v7463_v58 = vrot.slane %v7445_v30, 1 }
 0x291   : > { %10413 = vrot.lane.b32.xlu0 %v10412_v31, %s11748_s20  ;;  %v7464_v47 = vrot.slane %v7446_v56, 1  ;;  %v4254_v33 = vpop.f32.mrb[32].mxu1  ;;  %v6993_v1 = vsel %vm6984_vm7, %v6991_v24, %v6992_v20  ;;  %v12488_v63 = vsel %vm6275_vm6, %v6285_v4, %v12469_v39  ;;  %v12490_v31 = vpop.permute.xlu1 %8128  ;;  %v12499_v60 = vrot.slane %v15069_v42, 2 }
 0x292   : > { %v7809_v26 = vsel %vm6984_vm7, %v7807_v62, %v7808_v2  ;;  %v4256_v19 = vpop.f32.mrb[33].mxu1  ;;  %v10417_v29 = vpack.i.bf16 %v6992_v20, %v6993_v1  ;;  %15067 = vst [vmem:[#allocation26_spill] sm:$0xff] %v12490_v31  ;;  %v15068_v62 = vunpack.c.l.bf16 %v12373_v28  ;;  %v5858_v4 = vmax.f32 %v12476_v48, 0.0  ;;  %v12503_v20 = vpop.permute.xlu0 %10338  ;;  %v12510_v1 = vld [vmem:[%s11955_s6 + $0x18] sm:$0xff]  }
 0x293   : > { %v10422_v37 = vpack.i.bf16 %v7808_v2, %v7809_v26  ;;  %v4258_v35 = vpop.f32.mrb[34].mxu1  ;;  %v7465_v30 = vsel %vm4126_vm3, %v7463_v58, %v7464_v47  ;;  %v5857_v2 = vmax.f32 %v12479_v46, 0.0 }
 0x294   : > { %v5395_v56 = vpack.c.bf16 %v4258_v35, %v4254_v33  ;;  %v4260_v25 = vpop.f32.mrb[35].mxu1  ;;  %v12495_v24 = vrot.slane %v15068_v62, 2  ;;  %v6967_v33 = vld [vmem:[#allocation2 + $0x110] sm:$0xfe]  ;;  %v6823_v35 = vld [vmem:[#allocation2 + $0x108] sm:$0xfe] }
 0x295   : > { %10423 = vrot.lane.b32.xlu1 %v10422_v37, %s11748_s20  ;;  %10418 = vrot.lane.b32.xlu0 %v10417_v29, %s11748_s20  ;;  %v7784_v58 = vld [vmem:[#allocation2 + $0x120] sm:$0xfe]  ;;  %v12507_v26 = vpack.c.bf16 %v4260_v25, %v4256_v19  ;;  %v6974_v46 = vunpack.c.l.bf16 %v6967_v33  ;;  %v6975_v42 = vunpack.c.h.bf16 %v6967_v33  ;;  %v15070_v29 = vunpack.c.l.bf16 %v12311_v21 }
 0x296   : > { %10087 = vmatmul.mubr.msk.bf16.gmra.mrb[76].mxu0 %vm4113_vm5, %v12510_v1  ;;  %10091 = vmatmul.mubr.msk.bf16.gmra.mrb[140].mxu1 %vm4113_vm5, %v12510_v1  ;;  %v7791_v28 = vunpack.c.l.bf16 %v7784_v58  ;;  %v7792_v48 = vunpack.c.h.bf16 %v7784_v58  ;;  %5515 = vst [vmem:[#allocation3] sm:$0xff] %v5395_v56  ;;  %v7440_v37 = vld [vmem:[#allocation2 + $0x118] sm:$0x7f]  ;;  %v10427_v19 = vpack.i.bf16 %v7464_v47, %v7465_v30  ;;  %v15071_v56 = vunpack.c.h.bf16 %v12311_v21  ;;  %v10349_v30 = vpop.permute.xlu1 %10348 }
 0x297   : > { %v11569_v25 = vadd.low.f32.bf16 %v15070_v29, %v12467_v36  ;;  %4909 = vmatprep.mubr.bf16.mxu0 %v15066_v38  ;;  %4982 = vmatprep.mubr.bf16.mxu1 %v15066_v38  ;;  %v7447_v62 = vunpack.c.l.bf16 %v7440_v37  ;;  %v7448_v7 = vunpack.c.h.bf16 %v7440_v37  ;;  %v6994_v10 = vrot.slane %v6974_v46, 3 }
 0x298   : > { %v7810_v17 = vrot.slane %v7791_v28, 3  ;;  %v7811_v34 = vrot.slane %v7792_v48, 3  ;;  %v6995_v58 = vrot.slane %v6975_v42, 3  ;;  %v11570_v33 = vadd.high.f32.bf16 %v15071_v56, %v12467_v36  ;;  %v11503_v28 = vld [vmem:[#allocation6 + $0x58] ss:$120 sps:$4 sm:$0xff]  }
 0x299   : > { %10428 = vrot.lane.b32.xlu1 %v10427_v19, %s11748_s20  ;;  %v7466_v3 = vrot.slane %v7447_v62, 1  ;;  %v7467_v13 = vrot.slane %v7448_v7, 1  ;;  %v4264_v29 = vpop.f32.mrb[36].mxu1  ;;  %v6830_v47 = vunpack.c.l.bf16 %v6823_v35  ;;  %v15072_v48 = vunpack.c.l.bf16 %v12405_v57  ;;  %v10344_v19 = vpop.permute.xlu0 %10343 }
 0x29a   : > { %v7812_v32 = vsel %vm6984_vm7, %v7810_v17, %v7811_v34  ;;  %v6996_v31 = vsel %vm6984_vm7, %v6994_v10, %v6995_v58  ;;  %v4266_v37 = vpop.f32.mrb[37].mxu1  ;;  %v6831_v42 = vunpack.c.h.bf16 %v6823_v35  ;;  %v5916_v21 = vsel %vm5915_vm9, %v5858_v4, -inf }
 0x29b   : > { %v6846_v46 = vrot.slane %v15072_v48, 2  ;;  %v5914_v36 = vsel %vm5807_vm8, %v5857_v2, -inf  ;;  %v10437_v62 = vpack.i.bf16 %v7811_v34, %v7812_v32  ;;  %v10432_v7 = vpack.i.bf16 %v6995_v58, %v6996_v31  ;;  %v4268_v56 = vpop.f32.mrb[38].mxu1  ;;  %v12541_v2 = vld [vmem:[#allocation8 + $0x1] ss:$0 sm:$0xff] }
 0x29c   : > { %v6296_v17 = vadd.f32 %v11569_v25, %v12346_v54  ;;  %v7468_v10 = vsel %vm4126_vm3, %v7466_v3, %v7467_v13  ;;  %v5425_v49 = vpack.c.bf16 %v4268_v56, %v4264_v29  ;;  %v4270_v16 = vpop.f32.mrb[39].mxu1  ;;  %v15073_v35 = vunpack.c.h.bf16 %v12405_v57  ;;  %v11511_v3 = vld [vmem:[#allocation6 + $0x14c] ss:$120 sps:$4 sm:$0xff]   ;;  %v12548_v54 = vpop.permute.xlu1 %10353  ;;  %v11515_v58 = vld [vmem:[#allocation6 + $0x238] ss:$120 sps:$4 sm:$0xff]  }
 0x29d   : > { %v6297_v32 = vadd.f32 %v11570_v33, %v12307_v44  ;;  %10438 = vrot.lane.b32.xlu0 %v10437_v62, %s11748_s20  ;;  %10433 = vrot.lane.b32.xlu1 %v10432_v7, %s11748_s20  ;;  %v12546_v34 = vpack.c.bf16 %v4270_v16, %v4266_v37  ;;  %v11514_v57 = vld [vmem:[#allocation6 + $0x154] ss:$120 sps:$4 sm:$0xff]   ;;  %v12557_v44 = vsel %vm6275_vm6, %v12495_v24, %v12499_v60  ;;  %v6849_v31 = vrot.slane %v6830_v47, 2  ;;  %v11518_v29 = vld [vmem:[#allocation6 + $0x240] ss:$120 sps:$4 sm:$0xff]  }
 0x29e   : > { %v12539_v4 = vrot.slane %v15073_v35, 2  ;;  %10092 = vmatmul.mubr.msk.bf16.vlgmr.msra.gmra.mrb[80].mxu0 %vm4113_vm5, %v12378_v50  ;;  %10096 = vmatmul.mubr.msk.bf16.vlgmr.msra.gmra.mrb[144].mxu1 %vm4113_vm5, %v12378_v50  ;;  %5545 = vst [vmem:[#allocation3 + $0xf0] sm:$0xff] %v5425_v49  ;;  %v5917_v25 = vmax.f32 %v5914_v36, %v5916_v21  ;;  %v10442_v16 = vpack.i.bf16 %v7467_v13, %v7468_v10  ;;  %v12563_v37 = vrot.slane %v6831_v42, 2  ;;  %v11509_v24 = vld [vmem:[#allocation6 + $0x148] ss:$120 sps:$4 sm:$0xff]   ;;  %v10364_v10 = vpop.permute.xlu0 %10363 }
 0x29f   : > { %15074 = vst [vmem:[#allocation27_spill] sm:$0xff] %v12546_v34  ;;  %4919 = vmatprep.mubr.bf16.mxu0 %v15066_v38  ;;  %4992 = vmatprep.mubr.bf16.mxu1 %v15066_v38  ;;  %v4200_v33 = vand.u32 %v12531_v59, %v12068_v52  ;;  %v12566_v49 = vadd.f32 %v12541_v2, %v6296_v17  ;;  %v11512_v47 = vld [vmem:[#allocation6 + $0x150] ss:$120 sps:$4 sm:$0xff]   ;;  %v15076_v21 = vunpack.c.l.bf16 %v12327_v12  ;;  %v15077_v59 = vunpack.c.h.bf16 %v12327_v12 }
 0x2a0   : > { %15075 = vst [vmem:[#allocation28_spill] sm:$0xff] %v12563_v37  ;;  %5024 = vmatpush1.bf16.msra.mxu0 %v11503_v28  ;;  %5097 = vmatpush1.bf16.msra.mxu1 %v11506_v8  ;;  %v4206_v13 = vand.u32 %v12535_v41, %v12068_v52  ;;  %v12571_v48 = vadd.f32 %v12541_v2, %v6297_v32  ;;  %v15078_v8 = vunpack.c.h.bf16 %v12135_v51  ;;  %v5918_v17 = vrot.slane %v5917_v25, 4 }
 0x2a1   : > { %v11571_v36 = vadd.low.f32.bf16 %v15076_v21, %v10349_v30  ;;  %v11572_v42 = vadd.high.f32.bf16 %v15077_v59, %v10349_v30  ;;  %10443 = vrot.lane.b32.xlu0 %v10442_v16, %s11748_s20  ;;  %v4274_v28 = vpop.f32.mrb[40].mxu1  ;;  %5025 = vmatprep.subr.bf16.mxu0 %v11511_v3  ;;  %v12583_v41 = vsel %vm6275_vm6, %v6846_v46, %v12539_v4  ;;  %v15079_v12 = vunpack.c.h.bf16 %v12325_v14  ;;  %v12590_v16 = vld [vmem:[#allocation6 + $0x248] ss:$120 sps:$4 sm:$0xff]   ;;  %v12592_v21 = vld [vmem:[#allocation6 + $0x24c] ss:$120 sps:$4 sm:$0xff]  }
 0x2a2   : > { %v11573_v7 = vadd.high.f32.bf16 %v15078_v8, %v10344_v19  ;;  %v4276_v56 = vpop.f32.mrb[41].mxu1  ;;  %5098 = vmatprep.subr.bf16.mxu1 %v11514_v57  ;;  %v4197_v32 = vand.u32 %v11515_v58, %v12068_v52  ;;  %v4203_v3 = vand.u32 %v11518_v29, %v12068_v52  ;;  %v12596_v46 = vsel %vm6275_vm6, %v6849_v31, %v12563_v37  ;;  %v10359_v58 = vpop.permute.xlu1 %10358 }
 0x2a3   : > { %v11574_v30 = vadd.high.f32.bf16 %v15079_v12, %v12503_v20  ;;  %v4278_v35 = vpop.f32.mrb[42].mxu1  ;;  %v6409_v57 = vmax.f32 %v12566_v49, 0.0  ;;  %v15080_v59 = vunpack.c.l.bf16 %v12325_v14  ;;  %v15081_v12 = vunpack.c.l.bf16 %v12135_v51  ;;  %v11523_v14 = vld [vmem:[#allocation6 + $0x6c] ss:$120 sps:$4 sm:$0xff]  }
 0x2a4   : > { %v5455_v0 = vpack.c.bf16 %v4278_v35, %v4274_v28  ;;  %v4280_v29 = vpop.f32.mrb[43].mxu1  ;;  %5026 = vmatpush1.bf16.msra.mxu0 %v11509_v24  ;;  %5099 = vmatpush1.bf16.msra.mxu1 %v11512_v47  ;;  %v6410_v39 = vmax.f32 %v12571_v48, 0.0  ;;  %v6298_v50 = vadd.f32 %v11571_v36, %v12354_v43  ;;  %v6299_v31 = vadd.f32 %v11572_v42, %v12313_v55  ;;  %v12623_v24 = vld [vmem:[#allocation6 + $0x250] ss:$120 sps:$4 sm:$0xff]  }
 0x2a5   : > { %v11575_v8 = vadd.low.f32.bf16 %v15080_v59, %v12503_v20  ;;  %v11576_v62 = vadd.low.f32.bf16 %v15081_v12, %v10344_v19  ;;  %v12607_v37 = vpack.c.bf16 %v4280_v29, %v4276_v56  ;;  %5027 = vmatprep.subr.bf16.mxu0 %v4200_v33  ;;  %5100 = vmatprep.subr.bf16.mxu1 %v4206_v13  ;;  %v11526_v20 = vld [vmem:[#allocation6 + $0x74] ss:$120 sps:$4 sm:$0xff]   ;;  %v6467_v36 = vsel %vm5807_vm8, %v6409_v57, -inf }
 0x2a6   : > { %v5852_v51 = vadd.f32 %v11573_v7, %v12456_v53  ;;  %10093 = vmatmul.mubr.msk.bf16.gmra.mrb[84].mxu0 %vm4113_vm5, %v12422_v15  ;;  %10097 = vmatmul.mubr.msk.bf16.gmra.mrb[148].mxu1 %vm4113_vm5, %v12422_v15  ;;  %5575 = vst [vmem:[#allocation3 + $0x1e0] sm:$0xff] %v5455_v0  ;;  %v5919_v19 = vmax.f32 %v5917_v25, %v5918_v17  ;;  %v12620_v33 = vld [vmem:[#allocation6 + $0x254] ss:$120 sps:$4 sm:$0xff]   ;;  %v15084_v7 = vunpack.c.h.bf16 %v12357_v9  ;;  %v6469_v59 = vsel %vm6468_vm10, %v6410_v39, -inf  ;;  %v10374_v12 = vpop.permute.xlu1 %10373 }
 0x2a7   : > { %15082 = vst [vmem:[#allocation29_spill] sm:$0xff] %v12607_v37  ;;  %4929 = vmatprep.mubr.bf16.mxu0 %v15066_v38  ;;  %5002 = vmatprep.mubr.bf16.mxu1 %v15066_v38  ;;  %v4212_v55 = vand.u32 %v12592_v21, %v12068_v52  ;;  %v4209_v43 = vand.u32 %v12590_v16, %v12068_v52 }
 0x2a8   : > { %v5851_v49 = vadd.f32 %v11576_v62, %v12456_v53  ;;  %5028 = vmatpush1.bf16.msra.mxu0 %v4197_v32  ;;  %5101 = vmatpush1.bf16.msra.mxu1 %v4203_v3  ;;  %v12626_v0 = vadd.f32 %v11575_v8, %v12445_v5  ;;  %v12629_v25 = vadd.f32 %v11574_v30, %v12402_v23  ;;  %v5860_v42 = vmax.f32 %v5852_v51, 0.0  ;;  %v10369_v32 = vpop.permute.xlu0 %10368 }
 0x2a9   : > { %v6403_v47 = vadd.f32 %v12541_v2, %v6298_v50  ;;  %v6404_v13 = vadd.f32 %v12541_v2, %v6299_v31  ;;  %v4284_v48 = vpop.f32.mrb[44].mxu1  ;;  %5169 = vmatprep.subr.bf16.mxu0 %v11523_v14  ;;  %5242 = vmatprep.subr.bf16.mxu1 %v11526_v20  ;;  %v15083_v62 = vunpack.c.l.bf16 %v12357_v9  ;;  %v11578_v5 = vadd.high.f32.bf16 %v15084_v7, %v10364_v10 }
 0x2aa   : > { %v4286_v56 = vpop.f32.mrb[45].mxu1  ;;  %v5920_v17 = vrot.slane %v5919_v19, 2  ;;  %v15085_v23 = vunpack.c.h.bf16 %v12156_v61  ;;  %v15086_v50 = vunpack.c.l.bf16 %v12156_v61  ;;  %v4218_v57 = vand.u32 %v12620_v33, %v12068_v52 }
 0x2ab   : > { %v11577_v28 = vadd.low.f32.bf16 %v15083_v62, %v10364_v10  ;;  %v4288_v3 = vpop.f32.mrb[46].mxu1  ;;  %v5859_v8 = vmax.f32 %v5851_v49, 0.0  ;;  %v15087_v9 = vunpack.c.h.bf16 %v12336_v22  ;;  %v6411_v61 = vmax.f32 %v6403_v47, 0.0 }
 0x2ac   : > { %v11579_v30 = vadd.high.f32.bf16 %v15085_v23, %v10359_v58  ;;  %v11580_v35 = vadd.low.f32.bf16 %v15086_v50, %v10359_v58  ;;  %v5485_v29 = vpack.c.bf16 %v4288_v3, %v4284_v48  ;;  %v4290_v31 = vpop.f32.mrb[47].mxu1  ;;  %v6412_v58 = vmax.f32 %v6404_v13, 0.0 }
 0x2ad   : > { %v11581_v10 = vadd.high.f32.bf16 %v15087_v9, %v12548_v54  ;;  %v15088_v20 = vunpack.c.l.bf16 %v12336_v22  ;;  %v12653_v62 = vpack.c.bf16 %v4290_v31, %v4286_v56  ;;  %v5925_v39 = vsel %vm5915_vm9, %v5860_v42, -inf }
 0x2ae   : > { %v6300_v49 = vadd.f32 %v11577_v28, %v12367_v40  ;;  %v6301_v7 = vadd.f32 %v11578_v5, %v12338_v27  ;;  %10094 = vmatmul.mubr.msk.bf16.gmra.mrb[88].mxu0 %vm4113_vm5, %v12461_v6  ;;  %5605 = vst [vmem:[#allocation3 + $0x2d0] sm:$0xff] %v5485_v29  ;;  %10098 = vmatmul.mubr.msk.bf16.gmra.mrb[152].mxu1 %vm4113_vm5, %v12461_v6  ;;  %v5924_v27 = vsel %vm5807_vm8, %v5859_v8, -inf  ;;  %v14952_v42 = vunpack.c.l.bf16 %v12507_v26 }
 0x2af   : > { %v11582_v51 = vadd.low.f32.bf16 %v15088_v20, %v12548_v54  ;;  %15089 = vst [vmem:[#allocation30_spill] sm:$0xff] %v12653_v62  ;;  %v12662_v47 = vmax.f32 %v5919_v19, %v5920_v17  ;;  %v5854_v22 = vadd.f32 %v11579_v30, %v12456_v53  ;;  %v5853_v54 = vadd.f32 %v11580_v35, %v12456_v53  ;;  %v10379_v17 = vpop.permute.xlu1 %10378 }
 0x2b0   : > { %4939 = vmatprep.mubr.bf16.mxu0 %v15066_v38  ;;  %5012 = vmatprep.mubr.bf16.mxu1 %v15066_v38  ;;  %v6470_v40 = vmax.f32 %v6467_v36, %v6469_v59  ;;  %v12670_v13 = vadd.f32 %v11581_v10, %v12499_v60  ;;  %v14953_v19 = vunpack.c.h.bf16 %v12507_v26  ;;  %v6477_v5 = vsel %vm5807_vm8, %v6411_v61, -inf }
 0x2b1   : > { %v4327_v48 = vpop.f32.mrb[48].mxu1  ;;  %v12675_v28 = vadd.f32 %v11582_v51, %v12557_v44  ;;  %v12679_v56 = vadd.f32 %v12541_v2, %v6300_v49  ;;  %v12682_v36 = vadd.f32 %v12541_v2, %v6301_v7  ;;  %v5922_v60 = vrot.slane %v12662_v47, 1 }
 0x2b2   : > { %v4329_v23 = vpop.f32.mrb[49].mxu1  ;;  %v6478_v30 = vsel %vm6468_vm10, %v6412_v58, -inf  ;;  %v5862_v50 = vmax.f32 %v5854_v22, 0.0  ;;  %v5861_v35 = vmax.f32 %v5853_v54, 0.0  ;;  %v15090_v3 = vunpack.c.h.bf16 %v12375_v18 }
 0x2b3   : > { %v4331_v59 = vpop.f32.mrb[50].mxu1  ;;  %v6471_v8 = vrot.slane %v6470_v40, 4  ;;  %v15091_v9 = vunpack.c.l.bf16 %v12375_v18  ;;  %v15092_v29 = vunpack.c.h.bf16 %v12183_v45  ;;  %v5752_v51 = vrot.slane %v14953_v19, 1 }
 0x2b4   : > { %v11583_v44 = vadd.high.f32.bf16 %v15090_v3, %v10369_v32  ;;  %v4333_v61 = vpop.f32.mrb[51].mxu1  ;;  %v5751_v58 = vrot.slane %v14952_v42, 1  ;;  %v6413_v49 = vmax.f32 %v12679_v56, 0.0  ;;  %v5934_v18 = vsel %vm5915_vm9, %v5862_v50, -inf  ;;  %v7637_v56 = vld [vmem:[#allocation2 + $0x28] sm:$0x7e] }
 0x2b5   : > { %v11584_v10 = vadd.low.f32.bf16 %v15091_v9, %v10369_v32  ;;  %v11585_v31 = vadd.high.f32.bf16 %v15092_v29, %v10374_v12  ;;  %v5398_v20 = vpack.c.bf16 %v4333_v61, %v4329_v23  ;;  %v5933_v32 = vsel %vm5807_vm8, %v5861_v35, -inf }
 0x2b6   : > { %10095 = vmatmul.mubr.msk.bf16.gmra.mrb[92].mxu0 %vm4113_vm5, %v12510_v1  ;;  %10099 = vmatmul.mubr.msk.bf16.gmra.mrb[156].mxu1 %vm4113_vm5, %v12510_v1  ;;  %v6472_v22 = vmax.f32 %v6470_v40, %v6471_v8  ;;  %v5755_v54 = vrot.slane %v4331_v59, 1  ;;  %v5754_v23 = vrot.slane %v4327_v48, 1  ;;  %v5926_v9 = vmax.f32 %v5924_v27, %v5925_v39 }
 0x2b7   : > { %5518 = vst [vmem:[#allocation3 + $0x18] sm:$0xff] %v5398_v20  ;;  %5055 = vmatprep.mubr.bf16.mxu0 %v15066_v38  ;;  %5128 = vmatprep.mubr.bf16.mxu1 %v15066_v38  ;;  %v12707_v3 = vadd.f32 %v11584_v10, %v12583_v41  ;;  %v12710_v29 = vadd.f32 %v11585_v31, %v12456_v53  ;;  %v15093_v61 = vunpack.c.l.bf16 %v12183_v45  ;;  %v15094_v35 = vunpack.c.l.bf16 %v12471_v11 }
 0x2b8   : > { %v5753_v19 = vsel %vm4126_vm3, %v5751_v58, %v5752_v51  ;;  %v10447_v40 = vpack.i.bf16 %v5755_v54, %v5752_v51  ;;  %v5756_v48 = vsel %vm4126_vm3, %v5754_v23, %v5755_v54  ;;  %v14958_v41 = vunpack.c.l.bf16 %v12546_v34  ;;  %v11524_v58 = vld [vmem:[#allocation6 + $0x70] ss:$120 sps:$4 sm:$0xff]  }
 0x2b9   : > { %v11586_v50 = vadd.low.f32.bf16 %v15093_v61, %v10374_v12  ;;  %v11587_v20 = vadd.low.f32.bf16 %v15094_v35, %v10379_v17  ;;  %v4337_v42 = vpop.f32.mrb[52].mxu1  ;;  %v14959_v39 = vunpack.c.h.bf16 %v12546_v34  ;;  %v15095_v27 = vunpack.c.h.bf16 %v12471_v11  ;;  %v11521_v61 = vld [vmem:[#allocation6 + $0x68] ss:$120 sps:$4 sm:$0xff]  }
 0x2ba   : > { %v4339_v7 = vpop.f32.mrb[53].mxu1  ;;  %v10452_v45 = vpack.i.bf16 %v5756_v48, %v5753_v19  ;;  %v6473_v12 = vrot.slane %v6472_v22, 2  ;;  %v6479_v10 = vmax.f32 %v6477_v5, %v6478_v30  ;;  %10448 = vrot.lane.b32.xlu1 %v10447_v40, %s11748_s20  ;;  %v12724_v51 = vadd.f32 %v11583_v44, %v12539_v4  ;;  %v11529_v19 = vld [vmem:[#allocation6 + $0x15c] ss:$120 sps:$4 sm:$0xff]   ;;  %v10384_v30 = vpop.permute.xlu1 %10383 }
 0x2bb   : > { %v11588_v59 = vadd.high.f32.bf16 %v15095_v27, %v10379_v17  ;;  %v4341_v8 = vpop.f32.mrb[54].mxu1  ;;  %v5927_v54 = vrot.slane %v5926_v9, 4  ;;  %v5935_v23 = vmax.f32 %v5933_v32, %v5934_v18  ;;  %v5855_v35 = vadd.f32 %v11586_v50, %v12456_v53  ;;  %v11532_v17 = vld [vmem:[#allocation6 + $0x164] ss:$120 sps:$4 sm:$0xff]   ;;  %v15097_v40 = vld [vmem:[#allocation21_spill] sm:$0xff] }
 0x2bc   : > { %v4343_v31 = vpop.f32.mrb[55].mxu1  ;;  %v6302_v14 = vadd.f32 %v11587_v20, %v12488_v63  ;;  %10453 = vrot.lane.b32.xlu0 %v10452_v45, %s11748_s20  ;;  %v12730_v5 = vmax.f32 %v12662_v47, %v5922_v60  ;;  %v5758_v53 = vrot.slane %v14959_v39, 1  ;;  %v5757_v63 = vrot.slane %v14958_v41, 1  ;;  %v15098_v44 = vld [vmem:[#allocation25_spill] sm:$0xff] }
 0x2bd   : > { %v5428_v11 = vpack.c.bf16 %v4343_v31, %v4339_v7  ;;  %v5864_v4 = vmax.f32 %v12710_v29, 0.0  ;;  %v6303_v7 = vadd.f32 %v11588_v59, %v15098_v44  ;;  %v6474_v47 = vmax.f32 %v6472_v22, %v6473_v12  ;;  %v11527_v50 = vld [vmem:[#allocation6 + $0x158] ss:$120 sps:$4 sm:$0xff]  }
 0x2be   : > { %15096 = vst [vmem:[#allocation31_spill] sm:$0xff] %v12730_v5  ;;  %10100 = vmatmul.mubr.msk.bf16.vlgmr.msra.gmra.mrb[96].mxu0 %vm4113_vm5, %v15097_v40  ;;  %10104 = vmatmul.mubr.msk.bf16.vlgmr.msra.gmra.mrb[160].mxu1 %vm4113_vm5, %v15097_v40  ;;  %v6480_v60 = vrot.slane %v6479_v10, 4  ;;  %v5761_v18 = vrot.slane %v4341_v8, 1  ;;  %v5760_v32 = vrot.slane %v4337_v42, 1  ;;  %v5928_v20 = vmax.f32 %v5926_v9, %v5927_v54  ;;  %v15099_v40 = vld [vmem:[#allocation22_spill] sm:$0xff] }
 0x2bf   : > { %5548 = vst [vmem:[#allocation3 + $0x108] sm:$0xff] %v5428_v11  ;;  %5065 = vmatprep.mubr.bf16.mxu0 %v15066_v38  ;;  %5138 = vmatprep.mubr.bf16.mxu1 %v15066_v38  ;;  %v5936_v48 = vrot.slane %v5935_v23, 4  ;;  %v5863_v27 = vmax.f32 %v5855_v35, 0.0  ;;  %v14956_v29 = vunpack.c.l.bf16 %v12607_v37  ;;  %v14957_v59 = vunpack.c.h.bf16 %v12607_v37  ;;  %v11530_v11 = vld [vmem:[#allocation6 + $0x160] ss:$120 sps:$4 sm:$0xff]  }
 0x2c0   : > { %5170 = vmatpush1.bf16.msra.mxu0 %v11521_v61  ;;  %5243 = vmatpush1.bf16.msra.mxu1 %v11524_v58  ;;  %v12747_v31 = vadd.f32 %v12541_v2, %v6302_v14  ;;  %v10457_v12 = vpack.i.bf16 %v5761_v18, %v5758_v53  ;;  %v5759_v42 = vsel %vm4126_vm3, %v5757_v63, %v5758_v53  ;;  %v6475_v54 = vrot.slane %v6474_v47, 1 }
 0x2c1   : > { %v4347_v45 = vpop.f32.mrb[56].mxu1  ;;  %5171 = vmatprep.subr.bf16.mxu0 %v11529_v19  ;;  %5244 = vmatprep.subr.bf16.mxu1 %v11532_v17  ;;  %v5762_v8 = vsel %vm4126_vm3, %v5760_v32, %v5761_v18  ;;  %v12752_v9 = vadd.f32 %v12541_v2, %v6303_v7  ;;  %v5929_v19 = vrot.slane %v5928_v20, 2  ;;  %v12755_v14 = vmax.f32 %v6479_v10, %v6480_v60 }
 0x2c2   : > { %v4349_v22 = vpop.f32.mrb[57].mxu1  ;;  %v10462_v58 = vpack.i.bf16 %v5762_v8, %v5759_v42  ;;  %10458 = vrot.lane.b32.xlu1 %v10457_v12, %s11748_s20  ;;  %v12757_v17 = vmax.f32 %v5935_v23, %v5936_v48  ;;  %v15100_v53 = vunpack.c.l.bf16 %v15099_v40  ;;  %v5764_v2 = vrot.slane %v14957_v59, 1 }
 0x2c3   : > { %v4351_v61 = vpop.f32.mrb[58].mxu1  ;;  %v5763_v7 = vrot.slane %v14956_v29, 1  ;;  %v5943_v10 = vsel %vm5915_vm9, %v5864_v4, -inf  ;;  %v12777_v23 = vsel %vm5807_vm8, %v6413_v49, -inf  ;;  %v5942_v60 = vsel %vm5807_vm8, %v5863_v27, -inf }
 0x2c4   : > { %v4353_v35 = vpop.f32.mrb[59].mxu1  ;;  %5172 = vmatpush1.bf16.msra.mxu0 %v11527_v50  ;;  %v11589_v63 = vadd.low.f32.bf16 %v15100_v53, %v10384_v30  ;;  %10463 = vrot.lane.b32.xlu0 %v10462_v58, %s11748_s20  ;;  %v6415_v18 = vmax.f32 %v12747_v31, 0.0  ;;  %v6416_v21 = vmax.f32 %v12752_v9, 0.0  ;;  %v5766_v32 = vrot.slane %v4347_v45, 1  ;;  %v15103_v58 = vld [vmem:[#allocation28_spill] sm:$0xff] }
 0x2c5   : > { %v5458_v44 = vpack.c.bf16 %v4353_v35, %v4349_v22  ;;  %5173 = vmatprep.subr.bf16.mxu0 %v4212_v55  ;;  %v15101_v55 = vunpack.c.h.bf16 %v15099_v40  ;;  %5245 = vmatpush1.bf16.msra.mxu1 %v11530_v11  ;;  %v12789_v49 = vmax.f32 %v6474_v47, %v6475_v54  ;;  %v5930_v50 = vmax.f32 %v5928_v20, %v5929_v19 }
 0x2c6   : > { %10101 = vmatmul.mubr.msk.bf16.gmra.mrb[100].mxu0 %vm4113_vm5, %v12422_v15  ;;  %10105 = vmatmul.mubr.msk.bf16.gmra.mrb[164].mxu1 %vm4113_vm5, %v12422_v15  ;;  %v5767_v15 = vrot.slane %v4351_v61, 1  ;;  %v5765_v27 = vsel %vm4126_vm3, %v5763_v7, %v5764_v2  ;;  %v12796_v45 = vadd.f32 %v11589_v63, %v12596_v46  ;;  %v6482_v22 = vrot.slane %v12755_v14, 2 }
 0x2c7   : > { %v11590_v4 = vadd.high.f32.bf16 %v15101_v55, %v10384_v30  ;;  %5578 = vst [vmem:[#allocation3 + $0x1f8] sm:$0xff] %v5458_v44  ;;  %5075 = vmatprep.mubr.bf16.mxu0 %v15066_v38  ;;  %5148 = vmatprep.mubr.bf16.mxu1 %v15066_v38  ;;  %15102 = vst [vmem:[#allocation21_spill] sm:$0xff] %v12789_v49  ;;  %v7981_v30 = vld [vmem:[#allocation2 + $0x30] sm:$0xfc]  ;;  %v5938_v16 = vrot.slane %v12757_v17, 2  ;;  %v14954_v12 = vunpack.c.l.bf16 %v12653_v62  ;;  %v14955_v42 = vunpack.c.h.bf16 %v12653_v62 }
 0x2c8   : > { %5174 = vmatpush1.bf16.msra.mxu0 %v4209_v43  ;;  %5246 = vmatprep.subr.bf16.mxu1 %v4218_v57  ;;  %v10467_v47 = vpack.i.bf16 %v5767_v15, %v5764_v2  ;;  %v5768_v20 = vsel %vm4126_vm3, %v5766_v32, %v5767_v15  ;;  %v7641_v57 = vunpack.c.l.bf16 %v7637_v56  ;;  %v7642_v61 = vunpack.c.h.bf16 %v7637_v56 }
 0x2c9   : > { %v4357_v48 = vpop.f32.mrb[60].mxu1  ;;  %v10472_v33 = vpack.i.bf16 %v5768_v20, %v5765_v27  ;;  %v12804_v54 = vadd.f32 %v11590_v4, %v15103_v58  ;;  %v15104_v35 = vand.u32 %v12623_v24, %v12068_v52  ;;  %v7985_v11 = vunpack.c.l.bf16 %v7981_v30 }
 0x2ca   : > { %v4359_v43 = vpop.f32.mrb[61].mxu1  ;;  %10468 = vrot.lane.b32.xlu1 %v10467_v47, %s11748_s20  ;;  %v7986_v19 = vunpack.c.h.bf16 %v7981_v30  ;;  %v15105_v40 = vmax.f32 %v12682_v36, 0.0  ;;  %v5931_v2 = vrot.slane %v5930_v50, 1  ;;  %v12816_v7 = vmax.f32 %v5942_v60, %v5943_v10  ;;  %v7638_v36 = vld [vmem:[#allocation2 + $0x78] sm:$0x7e] }
 0x2cb   : > { %v4361_v8 = vpop.f32.mrb[62].mxu1  ;;  %5247 = vmatpush1.bf16.msra.mxu1 %v15104_v35  ;;  %10473 = vrot.lane.b32.xlu0 %v10472_v33, %s11748_s20  ;;  %v5770_v52 = vrot.slane %v14955_v42, 1  ;;  %v5769_v24 = vrot.slane %v14954_v12, 1  ;;  %v12828_v10 = vld [vmem:[#allocation2 + $0x20] sm:$0x3f]  ;;  %v7657_v60 = vrot.slane %v7641_v57, 2  ;;  %v12833_v4 = vmax.f32 %v12755_v14, %v6482_v22 }
 0x2cc   : > { %v4363_v46 = vpop.f32.mrb[63].mxu1  ;;  %v6487_v53 = vsel %vm6468_vm10, %v15105_v40, -inf  ;;  %v12830_v55 = vrot.slane %v7642_v61, 2  ;;  %v5773_v15 = vrot.slane %v4361_v8, 1  ;;  %v5772_v32 = vrot.slane %v4357_v48, 1 }
 0x2cd   : > { %v5488_v63 = vpack.c.bf16 %v4363_v46, %v4359_v43  ;;  %v8002_v56 = vrot.slane %v7985_v11, 4  ;;  %v12838_v27 = vrot.slane %v7986_v19, 4  ;;  %v7982_v30 = vld [vmem:[#allocation2 + $0x80] sm:$0xfc]  ;;  %v12840_v47 = vld [vmem:[#allocation2 + $0x70] sm:$0x3f]  ;;  %v7643_v20 = vunpack.c.l.bf16 %v7638_v36 }
 0x2ce   : > { %10102 = vmatmul.mubr.msk.bf16.gmra.mrb[104].mxu0 %vm4113_vm5, %v12461_v6  ;;  %10106 = vmatmul.mubr.msk.bf16.gmra.mrb[168].mxu1 %vm4113_vm5, %v12461_v6  ;;  %v12836_v6 = vmax.f32 %v12757_v17, %v5938_v16  ;;  %v12842_v33 = vmax.f32 %v5930_v50, %v5931_v2  ;;  %v12845_v57 = vmax.f32 %v12777_v23, %v6487_v53  ;;  %v5945_v14 = vrot.slane %v12816_v7, 4  ;;  %v7639_v11 = vld [vmem:[#allocation2 + $0xc8] sm:$0x7e] }
 0x2cf   : > { %5608 = vst [vmem:[#allocation3 + $0x2e8] sm:$0xff] %v5488_v63  ;;  %5085 = vmatprep.mubr.bf16.mxu0 %v15066_v38  ;;  %5158 = vmatprep.mubr.bf16.mxu1 %v15066_v38  ;;  %v10477_v17 = vpack.i.bf16 %v5773_v15, %v5770_v52  ;;  %v5771_v16 = vsel %vm4126_vm3, %v5769_v24, %v5770_v52  ;;  %v7644_v35 = vunpack.c.h.bf16 %v7638_v36  ;;  %v7987_v50 = vunpack.c.l.bf16 %v7982_v30 }
 0x2d0   : > { %15106 = vst [vmem:[#allocation25_spill] sm:$0xff] %v12842_v33  ;;  %v5774_v48 = vsel %vm4126_vm3, %v5772_v32, %v5773_v15  ;;  %v12855_v40 = vsel %vm6275_vm6, %v7657_v60, %v12830_v55  ;;  %v12859_v53 = vsel %vm8001_vm11, %v8002_v56, %v12838_v27  ;;  %v7660_v52 = vrot.slane %v7643_v20, 2  ;;  %v7983_v15 = vld [vmem:[#allocation2 + $0xd0] sm:$0xfc] }
 0x2d1   : > { %v4400_v43 = vpop.f32.mrb[64].mxu1  ;;  %v10482_v58 = vpack.i.bf16 %v5774_v48, %v5771_v16  ;;  %10478 = vrot.lane.b32.xlu1 %v10477_v17, %s11748_s20  ;;  %v7988_v24 = vunpack.c.h.bf16 %v7982_v30  ;;  %v7645_v36 = vunpack.c.l.bf16 %v7639_v11  ;;  %v7646_v60 = vunpack.c.h.bf16 %v7639_v11 }
 0x2d2   : > { %v4402_v22 = vpop.f32.mrb[65].mxu1  ;;  %v12870_v32 = vrot.slane %v7644_v35, 2  ;;  %v8005_v56 = vrot.slane %v7987_v50, 4  ;;  %v6159_v17 = vrot.slane %v4400_v43, 1  ;;  %v6495_v30 = vsel %vm5807_vm8, %v6415_v18, -inf }
 0x2d3   : > { %v4404_v61 = vpop.f32.mrb[66].mxu1  ;;  %10483 = vrot.lane.b32.xlu0 %v10482_v58, %s11748_s20  ;;  %v6162_v58 = vrot.slane %v4402_v22, 1  ;;  %v12878_v11 = vrot.slane %v7988_v24, 4  ;;  %v7989_v35 = vunpack.c.l.bf16 %v7983_v15  ;;  %v12883_v50 = vrot.slane %v7646_v60, 2 }
 0x2d4   : > { %v5399_v19 = vpack.c.bf16 %v4404_v61, %v4400_v43  ;;  %v4406_v23 = vpop.f32.mrb[67].mxu1  ;;  %v6160_v20 = vrot.slane %v4404_v61, 1  ;;  %v7663_v61 = vrot.slane %v7645_v36, 2  ;;  %v7990_v31 = vunpack.c.h.bf16 %v7983_v15 }
 0x2d5   : > { %v6163_v48 = vrot.slane %v4406_v23, 1  ;;  %v12888_v22 = vsel %vm6275_vm6, %v7660_v52, %v12870_v32  ;;  %v12895_v60 = vsel %vm8001_vm11, %v8005_v56, %v12878_v11  ;;  %v8008_v15 = vrot.slane %v7989_v35, 4  ;;  %v11563_v52 = vld [vmem:[%s11955_s6] sm:$0xff]   ;;  %v12911_v56 = vld [vmem:[#allocation2 + $0x110] sm:$0x3f] }
 0x2d6   : > { %5519 = vst [vmem:[#allocation3 + $0x20] sm:$0xff] %v5399_v19  ;;  %10103 = vmatmul.mubr.msk.bf16.gmra.mrb[108].mxu0 %vm4113_vm5, %v12510_v1  ;;  %10107 = vmatmul.mubr.msk.bf16.gmra.mrb[172].mxu1 %vm4113_vm5, %v12510_v1  ;;  %v6496_v1 = vsel %vm6468_vm10, %v6416_v21, -inf  ;;  %v12880_v19 = vld [vmem:[#allocation2 + $0xc0] sm:$0x3f]  ;;  %v6161_v43 = vsel %vm4126_vm3, %v6159_v17, %v6160_v20  ;;  %v7640_v17 = vld [vmem:[#allocation2 + $0x118] sm:$0x7e] }
 0x2d7   : > { %5201 = vmatprep.mubr.bf16.mxu0 %v15066_v38  ;;  %5274 = vmatprep.mubr.bf16.mxu1 %v15066_v38  ;;  %v10487_v9 = vpack.i.bf16 %v6163_v48, %v6160_v20  ;;  %v6164_v21 = vsel %vm4126_vm3, %v6162_v58, %v6163_v48  ;;  %v6497_v23 = vmax.f32 %v6495_v30, %v6496_v1  ;;  %v12907_v1 = vrot.slane %v7990_v31, 4  ;;  %v7984_v48 = vld [vmem:[#allocation2 + $0x120] sm:$0xfc] }
 0x2d8   : > { %v10492_v42 = vpack.i.bf16 %v6164_v21, %v6161_v43  ;;  %v12898_v20 = vmax.f32 %v12816_v7, %v5945_v14  ;;  %v12905_v30 = vsel %vm6275_vm6, %v7663_v61, %v12883_v50  ;;  %v6489_v7 = vrot.slane %v12845_v57, 4 }
 0x2d9   : > { %v4410_v16 = vpop.f32.mrb[68].mxu1  ;;  %10488 = vrot.lane.b32.xlu1 %v10487_v9, %s11748_s20  ;;  %v6498_v14 = vrot.slane %v6497_v23, 4  ;;  %v7647_v43 = vunpack.c.l.bf16 %v7640_v17  ;;  %v7648_v9 = vunpack.c.h.bf16 %v7640_v17 }
 0x2da   : > { %v4412_v44 = vpop.f32.mrb[69].mxu1  ;;  %10493 = vrot.lane.b32.xlu0 %v10492_v42, %s11748_s20  ;;  %v6165_v58 = vrot.slane %v4410_v16, 1  ;;  %v12918_v42 = vsel %vm8001_vm11, %v8008_v15, %v12907_v1 }
 0x2db   : > { %v4414_v18 = vpop.f32.mrb[70].mxu1  ;;  %v6168_v31 = vrot.slane %v4412_v44, 1  ;;  %v6490_v44 = vmax.f32 %v12845_v57, %v6489_v7  ;;  %v7666_v2 = vrot.slane %v7647_v43, 2  ;;  %v12926_v15 = vrot.slane %v7648_v9, 2  ;;  %v15108_v9 = vld [vmem:[#allocation14_spill] sm:$0xff] }
 0x2dc   : > { %v5429_v24 = vpack.c.bf16 %v4414_v18, %v4410_v16  ;;  %v4416_v12 = vpop.f32.mrb[71].mxu1  ;;  %v6166_v35 = vrot.slane %v4414_v18, 1  ;;  %v12922_v16 = vld [vmem:[#allocation3] sm:$0xff]  ;;  %v6484_v57 = vrot.slane %v12833_v4, 1 }
 0x2dd   : > { %v6169_v21 = vrot.slane %v4416_v12, 1 }
 0x2de   : > { %5549 = vst [vmem:[#allocation3 + $0x110] sm:$0xff] %v5429_v24  ;;  %10108 = vmatmul.mubr.msk.bf16.vlgmr.msra.gmra.mrb[112].mxu0 %vm4113_vm5, %v11563_v52  ;;  %10112 = vmatmul.mubr.msk.bf16.vlgmr.msra.gmra.mrb[176].mxu1 %vm4113_vm5, %v11563_v52  ;;  %v7991_v24 = vunpack.c.l.bf16 %v7984_v48  ;;  %v7992_v52 = vunpack.c.h.bf16 %v7984_v48  ;;  %v6167_v41 = vsel %vm4126_vm3, %v6165_v58, %v6166_v35  ;;  %v6499_v48 = vmax.f32 %v6497_v23, %v6498_v14 }
 0x2df   : > { %5211 = vmatprep.mubr.bf16.mxu0 %v15066_v38  ;;  %5284 = vmatprep.mubr.bf16.mxu1 %v15066_v38  ;;  %v10497_v17 = vpack.i.bf16 %v6169_v21, %v6166_v35  ;;  %v6170_v12 = vsel %vm4126_vm3, %v6168_v31, %v6169_v21  ;;  %v11564_v35 = vld [vmem:[%s11955_s6 + $0x8] sm:$0xff]   ;;  %v6491_v23 = vrot.slane %v6490_v44, 2  ;;  %v5947_v31 = vrot.slane %v12898_v20, 2 }
 0x2e0   : > { %v10502_v63 = vpack.i.bf16 %v6170_v12, %v6167_v41  ;;  %v8011_v39 = vrot.slane %v7991_v24, 4  ;;  %v12929_v29 = vrot.slane %v7992_v52, 4  ;;  %v5940_v41 = vrot.slane %v12836_v6, 1 }
 0x2e1   : > { %v4420_v61 = vpop.f32.mrb[72].mxu1  ;;  %10498 = vrot.lane.b32.xlu1 %v10497_v17, %s11748_s20  ;;  %v6500_v7 = vrot.slane %v6499_v48, 2  ;;  %v12959_v8 = vmax.f32 %v12833_v4, %v6484_v57  ;;  %v6492_v49 = vmax.f32 %v6490_v44, %v6491_v23  ;;  %v5948_v4 = vmax.f32 %v12898_v20, %v5947_v31  ;;  %v15111_v57 = vld [vmem:[#allocation24_spill] sm:$0xff]  ;;  %v12987_v31 = vld [vmem:[#allocation2 + $0xd8] sm:$0x3f] }
 0x2e2   : > { %v4422_v59 = vpop.f32.mrb[73].mxu1  ;;  %10503 = vrot.lane.b32.xlu0 %v10502_v63, %s11748_s20  ;;  %v6171_v14 = vrot.slane %v4420_v61, 1  ;;  %v12948_v63 = vsel %vm6275_vm6, %v7666_v2, %v12926_v15  ;;  %v12995_v20 = vld [vmem:[#allocation3 + $0x1e0] sm:$0xff] }
 0x2e3   : > { %v4424_v18 = vpop.f32.mrb[74].mxu1  ;;  %v6174_v17 = vrot.slane %v4422_v59, 1  ;;  %15109 = vst [vmem:[#allocation22_spill] sm:$0xff] %v12959_v8  ;;  %v12962_v59 = vmax.f32 %v12836_v6, %v5940_v41  ;;  %v6501_v5 = vmax.f32 %v6499_v48, %v6500_v7  ;;  %v15112_v41 = vld [vmem:[#allocation15_spill] sm:$0xff]  ;;  %v11565_v48 = vld [vmem:[%s11955_s6 + $0x10] sm:$0xff]   ;;  %v6493_v23 = vrot.slane %v6492_v49, 1 }
 0x2e4   : > { %v5459_v36 = vpack.c.bf16 %v4424_v18, %v4420_v61  ;;  %v4426_v58 = vpop.f32.mrb[75].mxu1  ;;  %v6172_v43 = vrot.slane %v4424_v18, 1  ;;  %v12951_v61 = vld [vmem:[#allocation3 + $0xf0] sm:$0xff]  ;;  %v12974_v34 = vsel %vm5807_vm8, %v15112_v41, %v15111_v57  ;;  %15115 = vst [vmem:[#allocation15_spill] sm:$0xff] %v12987_v31 }
 0x2e5   : > { %v6175_v52 = vrot.slane %v4426_v58, 1  ;;  %v12964_v58 = vld [vmem:[#allocation2 + $0x38] sm:$0x3f]  ;;  %v6502_v7 = vrot.slane %v6501_v5, 1  ;;  %v13004_v8 = vmax.f32 %v6492_v49, %v6493_v23  ;;  %v13008_v57 = vld [vmem:[#allocation3 + $0x2d0] sm:$0xff] }
 0x2e6   : > { %5579 = vst [vmem:[#allocation3 + $0x200] sm:$0xff] %v5459_v36  ;;  %10109 = vmatmul.mubr.msk.bf16.gmra.mrb[116].mxu0 %vm4113_vm5, %v11564_v35  ;;  %10113 = vmatmul.mubr.msk.bf16.gmra.mrb[180].mxu1 %vm4113_vm5, %v11564_v35  ;;  %v15107_v36 = vld [vmem:[#allocation23_spill] sm:$0xff]  ;;  %v6173_v35 = vsel %vm4126_vm3, %v6171_v14, %v6172_v43  ;;  %15110 = vst [vmem:[#allocation28_spill] sm:$0xff] %v12964_v58  ;;  %v14969_v44 = vunpack.c.l.bf16 %v12964_v58 }
 0x2e7   : > { %5221 = vmatprep.mubr.bf16.mxu0 %v15066_v38  ;;  %5294 = vmatprep.mubr.bf16.mxu1 %v15066_v38  ;;  %v12943_v21 = vsel %vm5807_vm8, %v15108_v9, %v15107_v36  ;;  %v12956_v9 = vsel %vm8001_vm11, %v8011_v39, %v12929_v29  ;;  %v10507_v12 = vpack.i.bf16 %v6175_v52, %v6172_v43  ;;  %v12976_v43 = vld [vmem:[#allocation2 + $0x88] sm:$0x3f] }
 0x2e8   : > { %v6176_v46 = vsel %vm4126_vm3, %v6174_v17, %v6175_v52  ;;  %15113 = vst [vmem:[#allocation23_spill] sm:$0xff] %v12974_v34  ;;  %15114 = vst [vmem:[#allocation14_spill] sm:$0xff] %v12976_v43  ;;  %v8405_v6 = vrot.slane %v14969_v44, 1  ;;  %v13006_v44 = vmax.f32 %v6501_v5, %v6502_v7 }
 0x2e9   : > { %v4430_v24 = vpop.f32.mrb[76].mxu1  ;;  %v10512_v37 = vpack.i.bf16 %v6176_v46, %v6173_v35  ;;  %10508 = vrot.lane.b32.xlu1 %v10507_v12, %s11748_s20  ;;  %v5949_v46 = vrot.slane %v5948_v4, 1  ;;  %15118 = vst [vmem:[#allocation33_spill] sm:$0xff] %v13004_v8 }
 0x2ea   : > { %v4432_v18 = vpop.f32.mrb[77].mxu1  ;;  %v6177_v52 = vrot.slane %v4430_v24, 1  ;;  %15119 = vst [vmem:[#allocation34_spill] sm:$0xff] %v13006_v44 }
 0x2eb   : > { %v4434_v2 = vpop.f32.mrb[78].mxu1  ;;  %10513 = vrot.lane.b32.xlu0 %v10512_v37, %s11748_s20  ;;  %v13021_v7 = vmax.f32 %v5948_v4, %v5949_v46 }
 0x2ec   : > { %v5489_v14 = vpack.c.bf16 %v4434_v2, %v4430_v24  ;;  %v4436_v62 = vpop.f32.mrb[79].mxu1  ;;  %v6178_v17 = vrot.slane %v4434_v2, 1  ;;  %v15116_v2 = vunpack.c.h.bf16 %v12964_v58 }
 0x2ed   : > { %v6181_v35 = vrot.slane %v4436_v62, 1  ;;  %15124 = vst [vmem:[#allocation37_spill] sm:$0xff] %v13021_v7  ;;  %v13089_v7 = vld [vmem:[#allocation3 + $0x20] sm:$0x7f] }
 0x2ee   : > { %5609 = vst [vmem:[#allocation3 + $0x2f0] sm:$0xff] %v5489_v14  ;;  %10110 = vmatmul.mubr.msk.bf16.gmra.mrb[120].mxu0 %vm4113_vm5, %v11565_v48  ;;  %10114 = vmatmul.mubr.msk.bf16.gmra.mrb[184].mxu1 %vm4113_vm5, %v11565_v48  ;;  %v6180_v14 = vrot.slane %v4432_v18, 1  ;;  %v6179_v48 = vsel %vm4126_vm3, %v6177_v52, %v6178_v17  ;;  %v13001_v12 = vrot.slane %v15116_v2, 1  ;;  %v15121_v2 = vunpack.c.h.bf16 %v12976_v43 }
 0x2ef   : > { %5231 = vmatprep.mubr.bf16.mxu0 %v15066_v38  ;;  %5304 = vmatprep.mubr.bf16.mxu1 %v15066_v38  ;;  %v10517_v62 = vpack.i.bf16 %v6181_v35, %v6178_v17  ;;  %v15120_v38 = vunpack.c.l.bf16 %v12976_v43  ;;  %v13016_v17 = vld [vmem:[#allocation2 + $0x128] sm:$0x3f] }
 0x2f0   : > { %15117 = vst [vmem:[#allocation32_spill] sm:$0xff] %v13001_v12  ;;  %v6182_v18 = vsel %vm4126_vm3, %v6180_v14, %v6181_v35  ;;  %v13014_v58 = vrot.slane %v15121_v2, 1  ;;  %15123 = vst [vmem:[#allocation36_spill] sm:$0xff] %v13016_v17  ;;  %v13026_v35 = vld [vmem:[#allocation3 + $0x18] sm:$0x7f]  ;;  %v13040_v46 = vsel %vm4126_vm3, %v8405_v6, %v13001_v12 }
 0x2f1   : > { %v4473_v41 = vpop.f32.mrb[80].mxu1  ;;  %v10522_v52 = vpack.i.bf16 %v6182_v18, %v6179_v48  ;;  %v8408_v24 = vrot.slane %v15120_v38, 1  ;;  %10518 = vrot.lane.b32.xlu1 %v10517_v62, %s11748_s20  ;;  %v13028_v14 = vld [vmem:[#allocation3 + $0x108] sm:$0x7f]  ;;  %v15126_v48 = vunpack.c.h.bf16 %v12987_v31  ;;  %15127 = vst [vmem:[#allocation38_spill] sm:$0xff] %v13040_v46  ;;  %v15129_v62 = vunpack.c.l.bf16 %v13016_v17 }
 0x2f2   : > { %v4475_v39 = vpop.f32.mrb[81].mxu1  ;;  %15122 = vst [vmem:[#allocation35_spill] sm:$0xff] %v13014_v58  ;;  %v13080_v46 = vld [vmem:[#allocation3 + $0x2e8] sm:$0x7f] }
 0x2f3   : > { %v4477_v37 = vpop.f32.mrb[82].mxu1  ;;  %10523 = vrot.lane.b32.xlu0 %v10522_v52, %s11748_s20  ;;  %v13036_v4 = vrot.slane %v15126_v48, 1  ;;  %v13055_v48 = vsel %vm4126_vm3, %v8408_v24, %v13014_v58  ;;  %v15133_v58 = vunpack.c.l.bf16 %v12828_v10 }
 0x2f4   : > { %v5401_v33 = vpack.c.bf16 %v4477_v37, %v4473_v41  ;;  %v4479_v34 = vpop.f32.mrb[83].mxu1  ;;  %v11566_v37 = vld [vmem:[%s11955_s6 + $0x18] sm:$0xff]   ;;  %15128 = vst [vmem:[#allocation39_spill] sm:$0xff] %v13055_v48 }
 0x2f5   : > { %v5402_v5 = vpack.c.bf16 %v4479_v34, %v4475_v39  ;;  %v15125_v34 = vunpack.c.l.bf16 %v12987_v31  ;;  %v8414_v31 = vrot.slane %v15129_v62, 1 }
 0x2f6   : > { %10111 = vmatmul.mubr.msk.bf16.gmra.mrb[124].mxu0 %vm4113_vm5, %v11566_v37  ;;  %5521 = vst [vmem:[#allocation3 + $0x30] sm:$0xff] %v5401_v33  ;;  %v10389_v33 = vpop.permute.xlu0 %10388  ;;  %10115 = vmatmul.mubr.msk.bf16.gmra.mrb[188].mxu1 %vm4113_vm5, %v11566_v37 }
 0x2f7   : > { %v8411_v39 = vrot.slane %v15125_v34, 1  ;;  %v13042_v38 = vpop.permute.xlu1 %10393  ;;  %5522 = vst [vmem:[#allocation3 + $0x38] sm:$0xff] %v5402_v5  ;;  %v13049_v34 = vld [vmem:[#allocation3 + $0x1f8] sm:$0x7f]  ;;  %v11591_v23 = vadd.high.f32.bf16 %v12629_v25, %v10389_v33  ;;  %v11592_v49 = vadd.low.f32.bf16 %v12626_v0, %v10389_v33  ;;  %v15130_v25 = vunpack.c.h.bf16 %v13016_v17 }
 0x2f8   : > { %v15131_v33 = vld [vmem:[#allocation19_spill] sm:$0xff]  ;;  %v15132_v17 = vunpack.c.h.bf16 %v12828_v10 }
 0x2f9   : > { %v4483_v5 = vpop.f32.mrb[84].mxu1  ;;  %v13067_v24 = vsel %vm4126_vm3, %v8411_v39, %v13036_v4  ;;  %v13076_v0 = vrot.slane %v15130_v25, 1  ;;  %v7171_v6 = vadd.f32 %v11591_v23, %v15131_v33  ;;  %v7170_v43 = vadd.f32 %v11592_v49, %v15131_v33 }
 0x2fa   : > { %v4485_v2 = vpop.f32.mrb[85].mxu1 }
 0x2fb   : > { %v10399_v52 = vpop.permute.xlu1 %10398  ;;  %v4487_v37 = vpop.f32.mrb[86].mxu1  ;;  %v7179_v48 = vmax.f32 %v7171_v6, 0.0  ;;  %v7178_v62 = vmax.f32 %v7170_v43, 0.0 }
 0x2fc   : > { %v4489_v39 = vpop.f32.mrb[87].mxu1  ;;  %v5431_v12 = vpack.c.bf16 %v4487_v37, %v4483_v5  ;;  %v11593_v25 = vadd.high.f32.bf16 %v15132_v17, %v10399_v52  ;;  %v11594_v23 = vadd.low.f32.bf16 %v15133_v58, %v10399_v52  ;;  %v13096_v5 = vsel %vm4126_vm3, %v8414_v31, %v13076_v0 }
 0x2fd   : > { %v5432_v44 = vpack.c.bf16 %v4489_v39, %v4485_v2  ;;  %15134 = vst [vmem:[#allocation19_spill] sm:$0xff] %v13096_v5  ;;  %v7234_v43 = vsel %vm7233_vm13, %v7179_v48, -inf  ;;  %v7232_v17 = vsel %vm7231_vm12, %v7178_v62, -inf }
 0x2fe   : > { %5551 = vst [vmem:[#allocation3 + $0x120] sm:$0xff] %v5431_v12  ;;  %v7678_v10 = vadd.f32 %v11593_v25, %v12830_v55  ;;  %v7677_v58 = vadd.f32 %v11594_v23, %v12855_v40  ;;  %v7235_v31 = vmax.f32 %v7232_v17, %v7234_v43  ;;  %v15137_v40 = vld [vmem:[#allocation26_spill] sm:$0xff] }
 0x2ff   : > { %v13091_v49 = vpop.permute.xlu0 %10408  ;;  %v10404_v8 = vpop.permute.xlu1 %10403  ;;  %5552 = vst [vmem:[#allocation3 + $0x128] sm:$0xff] %v5432_v44 }
 0x300   : > { %v11595_v44 = vadd.high.f32.bf16 %v7678_v10, %v13042_v38  ;;  %v11596_v37 = vadd.low.f32.bf16 %v7677_v58, %v13042_v38  ;;  %v11597_v48 = vadd.high.f32.bf16 %v12670_v13, %v10404_v8  ;;  %v11598_v62 = vadd.low.f32.bf16 %v12675_v28, %v10404_v8 }
 0x301   : > { %v4493_v52 = vpop.f32.mrb[88].mxu1  ;;  %v7236_v17 = vrot.slane %v7235_v31, 4  ;;  %v15135_v13 = vunpack.c.h.bf16 %v12840_v47  ;;  %v15136_v8 = vunpack.c.l.bf16 %v12840_v47 }
 0x302   : > { %v4495_v39 = vpop.f32.mrb[89].mxu1  ;;  %v8023_v23 = vadd.f32 %v11595_v44, %v12838_v27  ;;  %v8022_v12 = vadd.f32 %v11596_v37, %v12859_v53  ;;  %v7173_v38 = vadd.f32 %v11597_v48, %v15131_v33  ;;  %v7172_v43 = vadd.f32 %v11598_v62, %v15131_v33 }
 0x303   : > { %v10414_v55 = vpop.permute.xlu0 %10413  ;;  %v4497_v25 = vpop.f32.mrb[90].mxu1  ;;  %v7237_v6 = vmax.f32 %v7235_v31, %v7236_v17 }
 0x304   : > { %v4499_v10 = vpop.f32.mrb[91].mxu1  ;;  %v5461_v58 = vpack.c.bf16 %v4497_v25, %v4493_v52  ;;  %v11599_v28 = vadd.high.f32.bf16 %v15135_v13, %v10414_v55  ;;  %v11600_v2 = vadd.low.f32.bf16 %v15136_v8, %v10414_v55  ;;  %v8131_v18 = vadd.f32 %v15137_v40, %v8022_v12 }
 0x305   : > { %v5462_v41 = vpack.c.bf16 %v4499_v10, %v4495_v39  ;;  %v7181_v27 = vmax.f32 %v7173_v38, 0.0  ;;  %v7180_v44 = vmax.f32 %v7172_v43, 0.0  ;;  %v8132_v48 = vadd.f32 %v15137_v40, %v8023_v23 }
 0x306   : > { %5581 = vst [vmem:[#allocation3 + $0x210] sm:$0xff] %v5461_v58  ;;  %v7680_v52 = vadd.f32 %v11599_v28, %v12870_v32  ;;  %v7679_v62 = vadd.f32 %v11600_v2, %v12888_v22  ;;  %v7238_v25 = vrot.slane %v7237_v6, 2  ;;  %v8139_v38 = vmax.f32 %v8131_v18, 0.0 }
 0x307   : > { %v13120_v53 = vpop.permute.xlu1 %10423  ;;  %v10419_v37 = vpop.permute.xlu0 %10418  ;;  %5582 = vst [vmem:[#allocation3 + $0x218] sm:$0xff] %v5462_v41  ;;  %v7243_v47 = vsel %vm7233_vm13, %v7181_v27, -inf  ;;  %v7242_v39 = vsel %vm7231_vm12, %v7180_v44, -inf  ;;  %v8140_v22 = vmax.f32 %v8132_v48, 0.0  ;;  %v15138_v18 = vunpack.c.h.bf16 %v12880_v19 }
 0x308   : > { %v11601_v12 = vadd.low.f32.bf16 %v7679_v62, %v13091_v49  ;;  %v11602_v31 = vadd.high.f32.bf16 %v7680_v52, %v13091_v49  ;;  %v11603_v43 = vadd.high.f32.bf16 %v12724_v51, %v10419_v37  ;;  %v11604_v23 = vadd.low.f32.bf16 %v12707_v3, %v10419_v37 }
 0x309   : > { %v4503_v55 = vpop.f32.mrb[92].mxu1  ;;  %v7244_v58 = vmax.f32 %v7242_v39, %v7243_v47  ;;  %v7239_v8 = vmax.f32 %v7237_v6, %v7238_v25  ;;  %v15139_v51 = vunpack.c.l.bf16 %v12880_v19  ;;  %v8192_v37 = vsel %vm7231_vm12, %v8139_v38, -inf }
 0x30a   : > { %v4505_v10 = vpop.f32.mrb[93].mxu1  ;;  %v8024_v41 = vadd.f32 %v11601_v12, %v12895_v60  ;;  %v7175_v13 = vadd.f32 %v11603_v43, %v15131_v33  ;;  %v7174_v28 = vadd.f32 %v11604_v23, %v15131_v33  ;;  %v8194_v39 = vsel %vm8193_vm14, %v8140_v22, -inf }
 0x30b   : > { %v10429_v32 = vpop.permute.xlu1 %10428  ;;  %v4507_v17 = vpop.f32.mrb[94].mxu1  ;;  %v7240_v62 = vrot.slane %v7239_v8, 1  ;;  %v8025_v6 = vadd.f32 %v11602_v31, %v12878_v11  ;;  %v7245_v31 = vrot.slane %v7244_v58, 4 }
 0x30c   : > { %v4509_v2 = vpop.f32.mrb[95].mxu1  ;;  %v5491_v27 = vpack.c.bf16 %v4507_v17, %v4503_v55  ;;  %v11605_v49 = vadd.high.f32.bf16 %v15138_v18, %v10429_v32  ;;  %v11606_v44 = vadd.low.f32.bf16 %v15139_v51, %v10429_v32  ;;  %v7183_v48 = vmax.f32 %v7175_v13, 0.0 }
 0x30d   : > { %v5492_v3 = vpack.c.bf16 %v4509_v2, %v4505_v10  ;;  %v7182_v52 = vmax.f32 %v7174_v28, 0.0  ;;  %v7241_v25 = vmax.f32 %v7239_v8, %v7240_v62  ;;  %v8195_v17 = vmax.f32 %v8192_v37, %v8194_v39 }
 0x30e   : > { %5611 = vst [vmem:[#allocation3 + $0x300] sm:$0xff] %v5491_v27  ;;  %v7682_v55 = vadd.f32 %v11605_v49, %v12883_v50  ;;  %v7681_v12 = vadd.f32 %v11606_v44, %v12905_v30  ;;  %v7252_v19 = vsel %vm7233_vm13, %v7183_v48, -inf  ;;  %v8133_v13 = vadd.f32 %v15137_v40, %v8024_v41 }
 0x30f   : > { %v13139_v60 = vpop.permute.xlu0 %10438  ;;  %v10434_v47 = vpop.permute.xlu1 %10433  ;;  %5612 = vst [vmem:[#allocation3 + $0x308] sm:$0xff] %v5492_v3  ;;  %v7251_v43 = vsel %vm7231_vm12, %v7182_v52, -inf  ;;  %7341 = vrot.lane.b32.xlu1 %v7241_v25, %s11748_s20  ;;  %v8134_v51 = vadd.f32 %v15137_v40, %v8025_v6  ;;  %v8196_v37 = vrot.slane %v8195_v17, 4  ;;  %v7246_v48 = vmax.f32 %v7244_v58, %v7245_v31 }
 0x310   : > { %v11607_v23 = vadd.high.f32.bf16 %v7682_v55, %v13120_v53  ;;  %v11608_v22 = vadd.low.f32.bf16 %v7681_v12, %v13120_v53  ;;  %v11609_v11 = vadd.high.f32.bf16 %v12804_v54, %v10434_v47  ;;  %v11610_v8 = vadd.low.f32.bf16 %v12796_v45, %v10434_v47 }
 0x311   : > { %v3544_v10 = vpop.f32.mrb[32].mxu0  ;;  %v4546_v38 = vpop.f32.mrb[96].mxu1  ;;  %v15141_v45 = vunpack.c.l.bf16 %v12911_v56  ;;  %v8197_v55 = vmax.f32 %v8195_v17, %v8196_v37  ;;  %v7247_v12 = vrot.slane %v7246_v48, 2  ;;  %v8141_v25 = vmax.f32 %v8133_v13, 0.0 }
 0x312   : > { %v3546_v32 = vpop.f32.mrb[33].mxu0  ;;  %v4548_v2 = vpop.f32.mrb[97].mxu1  ;;  %v8027_v28 = vadd.f32 %v11607_v23, %v12907_v1  ;;  %v7177_v53 = vadd.f32 %v11609_v11, %v15131_v33  ;;  %v7176_v54 = vadd.f32 %v11610_v8, %v15131_v33  ;;  %v15140_v1 = vunpack.c.h.bf16 %v12911_v56 }
 0x313   : > { %v3548_v50 = vpop.f32.mrb[34].mxu0  ;;  %v10444_v30 = vpop.permute.xlu0 %10443  ;;  %v8026_v33 = vadd.f32 %v11608_v22, %v12918_v42  ;;  %v8142_v23 = vmax.f32 %v8134_v51, 0.0  ;;  %v8198_v11 = vrot.slane %v8197_v55, 2  ;;  %v8202_v17 = vsel %vm7231_vm12, %v8141_v25, -inf }
 0x314   : > { %v5323_v27 = vpack.c.bf16 %v3548_v50, %v3544_v10  ;;  %v3550_v18 = vpop.f32.mrb[35].mxu0  ;;  %v4550_v49 = vpop.f32.mrb[98].mxu1  ;;  %v7185_v41 = vmax.f32 %v7177_v53, 0.0  ;;  %v11611_v62 = vadd.high.f32.bf16 %v15140_v1, %v10444_v30  ;;  %v11612_v47 = vadd.low.f32.bf16 %v15141_v45, %v10444_v30 }
 0x315   : > { %v5324_v44 = vpack.c.bf16 %v3550_v18, %v3546_v32  ;;  %v4552_v3 = vpop.f32.mrb[99].mxu1  ;;  %v5403_v52 = vpack.c.bf16 %v4550_v49, %v4546_v38  ;;  %v7184_v6 = vmax.f32 %v7176_v54, 0.0  ;;  %v8135_v1 = vadd.f32 %v15137_v40, %v8026_v33 }
 0x316   : > { %5363 = vst [vmem:[#allocation2 + $0x40] sm:$0xff] %v5323_v27  ;;  %v5404_v39 = vpack.c.bf16 %v4552_v3, %v4548_v2  ;;  %v7684_v10 = vadd.f32 %v11611_v62, %v12926_v15  ;;  %v7683_v58 = vadd.f32 %v11612_v47, %v12948_v63  ;;  %v7261_v56 = vsel %vm7233_vm13, %v7185_v41, -inf }
 0x317   : > { %5364 = vst [vmem:[#allocation2 + $0x48] sm:$0xff] %v5324_v44  ;;  %5523 = vst [vmem:[#allocation3 + $0x40] sm:$0xff] %v5403_v52  ;;  %v7248_v2 = vmax.f32 %v7246_v48, %v7247_v12  ;;  %v8203_v15 = vsel %vm8193_vm14, %v8142_v23, -inf  ;;  %v7253_v63 = vmax.f32 %v7251_v43, %v7252_v19  ;;  %v7260_v8 = vsel %vm7231_vm12, %v7184_v6, -inf }
 0x318   : > { %5524 = vst [vmem:[#allocation3 + $0x48] sm:$0xff] %v5404_v39  ;;  %v11613_v31 = vadd.high.f32.bf16 %v7684_v10, %v13139_v60  ;;  %v11614_v42 = vadd.low.f32.bf16 %v7683_v58, %v13139_v60  ;;  %v8199_v27 = vmax.f32 %v8197_v55, %v8198_v11  ;;  %v8204_v51 = vmax.f32 %v8202_v17, %v8203_v15  ;;  %v13175_v39 = vld [vmem:[#allocation3 + $0x110] sm:$0x7f] }
 0x319   : > { %v3554_v38 = vpop.f32.mrb[36].mxu0  ;;  %v4556_v32 = vpop.f32.mrb[100].mxu1  ;;  %v7254_v37 = vrot.slane %v7253_v63, 4  ;;  %v7249_v60 = vrot.slane %v7248_v2, 1  ;;  %v8136_v62 = vadd.f32 %v15137_v40, %v8027_v28  ;;  %v8143_v12 = vmax.f32 %v8135_v1, 0.0 }
 0x31a   : > { %v3556_v50 = vpop.f32.mrb[37].mxu0  ;;  %v4558_v30 = vpop.f32.mrb[101].mxu1  ;;  %v8029_v44 = vadd.f32 %v11613_v31, %v12929_v29  ;;  %v8028_v3 = vadd.f32 %v11614_v42, %v12956_v9  ;;  %v8200_v48 = vrot.slane %v8199_v27, 1  ;;  %v8205_v52 = vrot.slane %v8204_v51, 4 }
 0x31b   : > { %v3558_v22 = vpop.f32.mrb[38].mxu0  ;;  %v4560_v13 = vpop.f32.mrb[102].mxu1  ;;  %v7255_v19 = vmax.f32 %v7253_v63, %v7254_v37  ;;  %v7262_v29 = vmax.f32 %v7260_v8, %v7261_v56  ;;  %v8144_v25 = vmax.f32 %v8136_v62, 0.0  ;;  %v7250_v33 = vmax.f32 %v7248_v2, %v7249_v60  ;;  %v6304_v2 = vld [vmem:[#allocation3 + $0x30] sm:$0xfe] }
 0x31c   : > { %v5333_v18 = vpack.c.bf16 %v3558_v22, %v3554_v38  ;;  %v3560_v49 = vpop.f32.mrb[39].mxu0  ;;  %v4562_v53 = vpop.f32.mrb[103].mxu1  ;;  %v5433_v41 = vpack.c.bf16 %v4560_v13, %v4556_v32  ;;  %v8201_v45 = vmax.f32 %v8199_v27, %v8200_v48  ;;  %v8206_v47 = vmax.f32 %v8204_v51, %v8205_v52  ;;  %v6305_v48 = vld [vmem:[#allocation3 + $0x38] sm:$0xfe] }
 0x31d   : > { %v5334_v54 = vpack.c.bf16 %v3560_v49, %v3556_v50  ;;  %v5434_v43 = vpack.c.bf16 %v4562_v53, %v4558_v30  ;;  %v8137_v9 = vadd.f32 %v15137_v40, %v8028_v3  ;;  %v7256_v55 = vrot.slane %v7255_v19, 2  ;;  %v13182_v53 = vld [vmem:[#allocation3 + $0x200] sm:$0x7f] }
 0x31e   : > { %5373 = vst [vmem:[#allocation2 + $0x90] sm:$0xff] %v5333_v18  ;;  %5553 = vst [vmem:[#allocation3 + $0x130] sm:$0xff] %v5433_v41  ;;  %v8138_v58 = vadd.f32 %v15137_v40, %v8029_v44  ;;  %8301 = vrot.lane.b32.xlu0 %v8201_v45, %s11748_s20  ;;  %v8207_v28 = vrot.slane %v8206_v47, 2  ;;  %v7263_v32 = vrot.slane %v7262_v29, 4  ;;  %v8211_v17 = vsel %vm7231_vm12, %v8143_v12, -inf }
 0x31f   : > { %5374 = vst [vmem:[#allocation2 + $0x98] sm:$0xff] %v5334_v54  ;;  %5554 = vst [vmem:[#allocation3 + $0x138] sm:$0xff] %v5434_v43  ;;  %v8145_v56 = vmax.f32 %v8137_v9, 0.0  ;;  %v7257_v50 = vmax.f32 %v7255_v19, %v7256_v55  ;;  %v8212_v30 = vsel %vm8193_vm14, %v8144_v25, -inf  ;;  %v6684_v41 = vld [vmem:[#allocation3 + $0x48] sm:$0x7f]  ;;  %v6312_v19 = vunpack.c.l.bf16 %v6304_v2 }
 0x320   : > { %v8146_v42 = vmax.f32 %v8138_v58, 0.0  ;;  %v8208_v22 = vmax.f32 %v8206_v47, %v8207_v28  ;;  %v8213_v40 = vmax.f32 %v8211_v17, %v8212_v30  ;;  %v7264_v18 = vmax.f32 %v7262_v29, %v7263_v32 }
 0x321   : > { %v3564_v6 = vpop.f32.mrb[40].mxu0  ;;  %v4566_v10 = vpop.f32.mrb[104].mxu1  ;;  %v8220_v54 = vsel %vm7231_vm12, %v8145_v56, -inf  ;;  %v6314_v43 = vunpack.c.h.bf16 %v6304_v2  ;;  %v7258_v62 = vrot.slane %v7257_v50, 1  ;;  %v6313_v55 = vunpack.c.l.bf16 %v6305_v48 }
 0x322   : > { %v3566_v38 = vpop.f32.mrb[41].mxu0  ;;  %v4568_v23 = vpop.f32.mrb[105].mxu1  ;;  %7343 = vrot.lane.b32.xlu0 %v7250_v33, %s11748_s20  ;;  %v8209_v44 = vrot.slane %v8208_v22, 1  ;;  %v8214_v3 = vrot.slane %v8213_v40, 4  ;;  %v8221_v37 = vsel %vm8193_vm14, %v8146_v42, -inf  ;;  %v7265_v60 = vrot.slane %v7264_v18, 2 }
 0x323   : > { %v3568_v11 = vpop.f32.mrb[42].mxu0  ;;  %v4570_v31 = vpop.f32.mrb[106].mxu1  ;;  %v8222_v52 = vmax.f32 %v8220_v54, %v8221_v37  ;;  %v6692_v28 = vunpack.c.l.bf16 %v6684_v41  ;;  %v13191_v30 = vrot.slane %v6312_v19, 2  ;;  %v7259_v42 = vmax.f32 %v7257_v50, %v7258_v62 }
 0x324   : > { %v5343_v15 = vpack.c.bf16 %v3568_v11, %v3564_v6  ;;  %v3570_v63 = vpop.f32.mrb[43].mxu0  ;;  %v5463_v13 = vpack.c.bf16 %v4570_v31, %v4566_v10  ;;  %v4572_v8 = vpop.f32.mrb[107].mxu1  ;;  %v8210_v1 = vmax.f32 %v8208_v22, %v8209_v44  ;;  %v8215_v45 = vmax.f32 %v8213_v40, %v8214_v3 }
 0x325   : > { %v5344_v27 = vpack.c.bf16 %v3570_v63, %v3566_v38  ;;  %v5464_v49 = vpack.c.bf16 %v4572_v8, %v4568_v23  ;;  %v8223_v6 = vrot.slane %v8222_v52, 4  ;;  %v6694_v38 = vunpack.c.h.bf16 %v6684_v41 }
 0x326   : > { %5383 = vst [vmem:[#allocation2 + $0xe0] sm:$0xff] %v5343_v15  ;;  %5583 = vst [vmem:[#allocation3 + $0x220] sm:$0xff] %v5463_v13  ;;  %8303 = vrot.lane.b32.xlu1 %v8210_v1, %s11748_s20  ;;  %v8216_v10 = vrot.slane %v8215_v45, 2  ;;  %v6315_v23 = vunpack.c.h.bf16 %v6305_v48  ;;  %v7266_v56 = vmax.f32 %v7264_v18, %v7265_v60  ;;  %v13193_v31 = vrot.slane %v6314_v43, 2 }
 0x327   : > { %5384 = vst [vmem:[#allocation2 + $0xe8] sm:$0xff] %v5344_v27  ;;  %5584 = vst [vmem:[#allocation3 + $0x228] sm:$0xff] %v5464_v49  ;;  %v8224_v17 = vmax.f32 %v8222_v52, %v8223_v6  ;;  %v6686_v49 = vld [vmem:[#allocation3 + $0x138] sm:$0x7f]  ;;  %v13195_v44 = vrot.slane %v6313_v55, 2  ;;  %v13198_v54 = vrot.slane %v6692_v28, 1 }
 0x328   : > { %v8217_v22 = vmax.f32 %v8215_v45, %v8216_v10  ;;  %v13200_v50 = vrot.slane %v6694_v38, 1  ;;  %v13202_v37 = vrot.slane %v6315_v23, 2  ;;  %v7267_v48 = vrot.slane %v7266_v56, 1 }
 0x329   : > { %v3574_v29 = vpop.f32.mrb[44].mxu0  ;;  %v4576_v9 = vpop.f32.mrb[108].mxu1  ;;  %v8225_v2 = vrot.slane %v8224_v17, 2  ;;  %v15142_v10 = vunpack.c.h.bf16 %v12507_v26  ;;  %v6698_v28 = vunpack.c.h.bf16 %v6686_v49 }
 0x32a   : > { %v3576_v58 = vpop.f32.mrb[45].mxu0  ;;  %v4578_v33 = vpop.f32.mrb[109].mxu1  ;;  %7345 = vrot.lane.b32.xlu1 %v7259_v42, %s11748_s20  ;;  %v8218_v18 = vrot.slane %v8217_v22, 1 }
 0x32b   : > { %v3578_v32 = vpop.f32.mrb[46].mxu0  ;;  %v4580_v11 = vpop.f32.mrb[110].mxu1  ;;  %v8226_v60 = vmax.f32 %v8224_v17, %v8225_v2  ;;  %v15144_v17 = vunpack.c.l.bf16 %v12507_v26  ;;  %v15145_v26 = vunpack.c.l.bf16 %v12922_v16 }
 0x32c   : > { %v5353_v15 = vpack.c.bf16 %v3578_v32, %v3574_v29  ;;  %v3580_v63 = vpop.f32.mrb[47].mxu0  ;;  %v5493_v40 = vpack.c.bf16 %v4580_v11, %v4576_v9  ;;  %v4582_v13 = vpop.f32.mrb[111].mxu1  ;;  %v8219_v1 = vmax.f32 %v8217_v22, %v8218_v18  ;;  %v6696_v29 = vunpack.c.l.bf16 %v6686_v49  ;;  %v13214_v49 = vld [vmem:[#allocation3 + $0x2f0] sm:$0x7f] }
 0x32d   : > { %v5354_v8 = vpack.c.bf16 %v3580_v63, %v3576_v58  ;;  %v5494_v27 = vpack.c.bf16 %v4582_v13, %v4578_v33  ;;  %v10449_v3 = vpop.permute.xlu1 %10448  ;;  %v8227_v6 = vrot.slane %v8226_v60, 1  ;;  %v15143_v32 = vunpack.c.h.bf16 %v12922_v16  ;;  %v15147_v16 = vld [vmem:[#allocation27_spill] sm:$0xff] }
 0x32e   : > { %5393 = vst [vmem:[#allocation2 + $0x130] sm:$0xff] %v5353_v15  ;;  %5613 = vst [vmem:[#allocation3 + $0x310] sm:$0xff] %v5493_v40  ;;  %v10451_v52 = vunpack.i.h.bf16 %v10449_v3  ;;  %v10450_v41 = vunpack.i.l.bf16 %v10449_v3  ;;  %v10454_v19 = vpop.permute.xlu0 %10453  ;;  %v6688_v43 = vld [vmem:[#allocation3 + $0x228] sm:$0x7f]  ;;  %8305 = vrot.lane.b32.xlu0 %v8219_v1, %s11748_s20  ;;  %v7268_v63 = vmax.f32 %v7266_v56, %v7267_v48  ;;  %v15148_v25 = vunpack.c.h.bf16 %v15147_v16 }
 0x32f   : > { %5394 = vst [vmem:[#allocation2 + $0x138] sm:$0xff] %v5354_v8  ;;  %5614 = vst [vmem:[#allocation3 + $0x318] sm:$0xff] %v5494_v27  ;;  %v10456_v62 = vunpack.i.h.bf16 %v10454_v19  ;;  %v10455_v45 = vunpack.i.l.bf16 %v10454_v19  ;;  %v6700_v15 = vunpack.c.l.bf16 %v6688_v43  ;;  %v8228_v40 = vmax.f32 %v8226_v60, %v8227_v6  ;;  %v13224_v6 = vld [vmem:[#allocation3 + $0x120] sm:$0xfe] }
 0x330   : > { %v5835_v58 = vadd.f32 %v10451_v52, %v15142_v10  ;;  %v5809_v33 = vsel %vm5807_vm8, %v10450_v41, %v10451_v52  ;;  %v6702_v27 = vunpack.c.h.bf16 %v6688_v43  ;;  %v6730_v60 = vrot.slane %v6696_v29, 1 }
 0x331   : > { %v4619_v9 = vpop.f32.mrb[48].mxu0  ;;  %v4692_v55 = vpop.f32.mrb[112].mxu1  ;;  %v5834_v11 = vadd.f32 %v5809_v33, %v15143_v32  ;;  %v5833_v42 = vadd.f32 %v10456_v62, %v15144_v17  ;;  %v5808_v22 = vsel %vm5807_vm8, %v10455_v45, %v10456_v62  ;;  %8307 = vrot.lane.b32.xlu1 %v8228_v40, %s11748_s20  ;;  %v13220_v62 = vrot.slane %v6698_v28, 1 }
 0x332   : > { %v4621_v38 = vpop.f32.mrb[49].mxu0  ;;  %v4694_v23 = vpop.f32.mrb[113].mxu1  ;;  %v5885_v2 = vadd.f32 %v15107_v36, %v5835_v58  ;;  %v5832_v1 = vadd.f32 %v5808_v22, %v15145_v26  ;;  %7347 = vrot.lane.b32.xlu0 %v7268_v63, %s11748_s20  ;;  %v13243_v17 = vsel %vm6275_vm6, %v13195_v44, %v13202_v37  ;;  %v6316_v40 = vunpack.c.l.bf16 %v13224_v6 }
 0x333   : > { %v4623_v13 = vpop.f32.mrb[50].mxu0  ;;  %v4696_v8 = vpop.f32.mrb[114].mxu1  ;;  %v5883_v19 = vadd.f32 %v15107_v36, %v5833_v42  ;;  %v5884_v43 = vadd.f32 %v12943_v21, %v5834_v11  ;;  %v13238_v11 = vsel %vm6275_vm6, %v13191_v30, %v13193_v31  ;;  %v13252_v63 = vsel %vm4126_vm3, %v6730_v60, %v13220_v62 }
 0x334   : > { %v5405_v18 = vpack.c.bf16 %v4623_v13, %v4619_v9  ;;  %v4625_v3 = vpop.f32.mrb[51].mxu0  ;;  %v5407_v52 = vpack.c.bf16 %v4696_v8, %v4692_v55  ;;  %v4698_v41 = vpop.f32.mrb[115].mxu1  ;;  %v6736_v9 = vrot.slane %v6700_v15, 1  ;;  %v13226_v55 = vld [vmem:[#allocation3 + $0x128] sm:$0xfe]  ;;  %v5901_v29 = vmax.f32 %v5885_v2, 0.0 }
 0x335   : > { %v5406_v56 = vpack.c.bf16 %v4625_v3, %v4621_v38  ;;  %v5408_v48 = vpack.c.bf16 %v4698_v41, %v4694_v23  ;;  %v10459_v45 = vpop.permute.xlu1 %10458  ;;  %v13230_v38 = vrot.slane %v6702_v27, 1  ;;  %v5899_v23 = vmax.f32 %v5883_v19, 0.0 }
 0x336   : > { %5525 = vst [vmem:[#allocation3 + $0x50] sm:$0xff] %v5405_v18  ;;  %5527 = vst [vmem:[#allocation3 + $0x60] sm:$0xff] %v5407_v52  ;;  %v10461_v58 = vunpack.i.h.bf16 %v10459_v45  ;;  %v10460_v33 = vunpack.i.l.bf16 %v10459_v45  ;;  %v10464_v28 = vpop.permute.xlu0 %10463  ;;  %v13233_v32 = vadd.f32 %v12943_v21, %v5832_v1  ;;  %v13248_v15 = vsel %vm4126_vm3, %v13198_v54, %v13200_v50  ;;  %v13256_v18 = vld [vmem:[#allocation3 + $0x318] sm:$0x7f] }
 0x337   : > { %5526 = vst [vmem:[#allocation3 + $0x58] sm:$0xff] %v5406_v56  ;;  %5528 = vst [vmem:[#allocation3 + $0x68] sm:$0xff] %v5408_v48  ;;  %v5900_v13 = vmax.f32 %v5884_v43, 0.0  ;;  %v10466_v44 = vunpack.i.h.bf16 %v10464_v28  ;;  %v10465_v27 = vunpack.i.l.bf16 %v10464_v28  ;;  %v5960_v54 = vsel %vm5915_vm9, %v5901_v29, -inf }
 0x338   : > { %15146 = vst [vmem:[#allocation26_spill] sm:$0xff] %v13233_v32  ;;  %v5811_v19 = vsel %vm5807_vm8, %v10460_v33, %v10461_v58  ;;  %v13263_v26 = vsel %vm4126_vm3, %v6736_v9, %v13230_v38  ;;  %v5959_v56 = vsel %vm5807_vm8, %v5899_v23, -inf  ;;  %v5839_v12 = vadd.f32 %v10461_v58, %v15148_v25 }
 0x339   : > { %v4629_v42 = vpop.f32.mrb[52].mxu0  ;;  %v4702_v22 = vpop.f32.mrb[116].mxu1  ;;  %v6704_v47 = vunpack.c.l.bf16 %v13256_v18  ;;  %v15149_v9 = vunpack.c.h.bf16 %v12951_v61  ;;  %v5810_v23 = vsel %vm5807_vm8, %v10465_v27, %v10466_v44 }
 0x33a   : > { %v4631_v8 = vpop.f32.mrb[53].mxu0  ;;  %v4704_v2 = vpop.f32.mrb[117].mxu1 }
 0x33b   : > { %v4633_v52 = vpop.f32.mrb[54].mxu0  ;;  %v4706_v41 = vpop.f32.mrb[118].mxu1  ;;  %v5838_v30 = vadd.f32 %v5811_v19, %v15149_v9 }
 0x33c   : > { %v5435_v60 = vpack.c.bf16 %v4633_v52, %v4629_v42  ;;  %v4635_v43 = vpop.f32.mrb[55].mxu0  ;;  %v5437_v45 = vpack.c.bf16 %v4706_v41, %v4702_v22  ;;  %v4708_v28 = vpop.f32.mrb[119].mxu1  ;;  %v13275_v22 = vsel %vm4126_vm3, %v5900_v13, -inf  ;;  %v15152_v41 = vunpack.c.l.bf16 %v15147_v16 }
 0x33d   : > { %v5436_v10 = vpack.c.bf16 %v4635_v43, %v4631_v8  ;;  %v5438_v29 = vpack.c.bf16 %v4708_v28, %v4704_v2  ;;  %v6685_v33 = vld [vmem:[#allocation3 + $0x50] sm:$0x7f]  ;;  %v10469_v52 = vpop.permute.xlu1 %10468  ;;  %15150 = vst [vmem:[#allocation27_spill] sm:$0xff] %v13275_v22  ;;  %v13277_v8 = vmax.f32 %v5959_v56, %v5960_v54  ;;  %v13279_v2 = vpop.permute.xlu0 %10473  ;;  %v7029_v27 = vld [vmem:[#allocation3 + $0x60] sm:$0xfe]  ;;  %v5889_v28 = vadd.f32 %v15107_v36, %v5839_v12 }
 0x33e   : > { %5555 = vst [vmem:[#allocation3 + $0x140] sm:$0xff] %v5435_v60  ;;  %5557 = vst [vmem:[#allocation3 + $0x150] sm:$0xff] %v5437_v45  ;;  %v6695_v48 = vunpack.c.h.bf16 %v6685_v33  ;;  %v6693_v42 = vunpack.c.l.bf16 %v6685_v33  ;;  %v10471_v25 = vunpack.i.h.bf16 %v10469_v52  ;;  %v10470_v58 = vunpack.i.l.bf16 %v10469_v52  ;;  %v7030_v1 = vld [vmem:[#allocation3 + $0x68] sm:$0xfe] }
 0x33f   : > { %15151 = vst [vmem:[#allocation40_spill] sm:$0xff] %v13277_v8  ;;  %5556 = vst [vmem:[#allocation3 + $0x148] sm:$0xff] %v5436_v10  ;;  %v5837_v60 = vadd.f32 %v10466_v44, %v15152_v41  ;;  %v15153_v13 = vunpack.c.l.bf16 %v12951_v61  ;;  %v13288_v33 = vrot.slane %v6704_v47, 1  ;;  %v13291_v9 = vadd.f32 %v12943_v21, %v5838_v30  ;;  %v15154_v41 = vld [vmem:[#allocation29_spill] sm:$0xff] }
 0x340   : > { %5558 = vst [vmem:[#allocation3 + $0x158] sm:$0xff] %v5438_v29  ;;  %v6728_v19 = vrot.slane %v6695_v48, 1  ;;  %v6727_v43 = vrot.slane %v6693_v42, 1  ;;  %v10476_v29 = vunpack.i.h.bf16 %v13279_v2  ;;  %v13295_v52 = vrot.slane %v6316_v40, 2 }
 0x341   : > { %v5836_v54 = vadd.f32 %v5810_v23, %v15153_v13  ;;  %v4639_v56 = vpop.f32.mrb[56].mxu0  ;;  %v4712_v10 = vpop.f32.mrb[120].mxu1  ;;  %v15155_v13 = vunpack.c.h.bf16 %v15154_v41  ;;  %v5813_v47 = vsel %vm5807_vm8, %v10470_v58, %v10471_v25  ;;  %v7037_v30 = vunpack.c.l.bf16 %v7029_v27 }
 0x342   : > { %v4641_v16 = vpop.f32.mrb[57].mxu0  ;;  %v10527_v44 = vpack.i.bf16 %v6728_v19, %v13200_v50  ;;  %v4714_v48 = vpop.f32.mrb[121].mxu1  ;;  %v6729_v42 = vsel %vm4126_vm3, %v6727_v43, %v6728_v19  ;;  %v13302_v51 = vadd.f32 %v15107_v36, %v5837_v60  ;;  %v15156_v45 = vunpack.c.l.bf16 %v15154_v41 }
 0x343   : > { %v4643_v12 = vpop.f32.mrb[58].mxu0  ;;  %v10532_v61 = vpack.i.bf16 %v6729_v42, %v13248_v15  ;;  %v4716_v23 = vpop.f32.mrb[122].mxu1  ;;  %v5843_v3 = vadd.f32 %v10471_v25, %v15155_v13  ;;  %v5905_v42 = vmax.f32 %v5889_v28, 0.0  ;;  %v13308_v8 = vadd.f32 %v12943_v21, %v5836_v54 }
 0x344   : > { %v5465_v50 = vpack.c.bf16 %v4643_v12, %v4639_v56  ;;  %10528 = vrot.lane.b32.xlu1 %v10527_v44, %s11748_s20  ;;  %v4645_v19 = vpop.f32.mrb[59].mxu0  ;;  %v5467_v40 = vpack.c.bf16 %v4716_v23, %v4712_v10  ;;  %v4718_v43 = vpop.f32.mrb[123].mxu1  ;;  %v5841_v15 = vadd.f32 %v10476_v29, %v15156_v45  ;;  %v15158_v58 = vunpack.c.h.bf16 %v12995_v20 }
 0x345   : > { %15157 = vst [vmem:[#allocation29_spill] sm:$0xff] %v13308_v8  ;;  %v5466_v13 = vpack.c.bf16 %v4645_v19, %v4641_v16  ;;  %10533 = vrot.lane.b32.xlu0 %v10532_v61, %s11748_s20  ;;  %v5468_v25 = vpack.c.bf16 %v4718_v43, %v4714_v48  ;;  %v10475_v56 = vunpack.i.l.bf16 %v13279_v2  ;;  %v7039_v10 = vunpack.c.h.bf16 %v7029_v27  ;;  %v6687_v12 = vld [vmem:[#allocation3 + $0x140] sm:$0x7f] }
 0x346   : > { %5585 = vst [vmem:[#allocation3 + $0x230] sm:$0xff] %v5465_v50  ;;  %5587 = vst [vmem:[#allocation3 + $0x240] sm:$0xff] %v5467_v40  ;;  %v5842_v60 = vadd.f32 %v5813_v47, %v15158_v58  ;;  %v7040_v44 = vunpack.c.h.bf16 %v7030_v1  ;;  %v5904_v45 = vmax.f32 %v13291_v9, 0.0  ;;  %v5893_v28 = vadd.f32 %v15107_v36, %v5843_v3  ;;  %v13318_v47 = vpop.permute.xlu1 %10478 }
 0x347   : > { %5586 = vst [vmem:[#allocation3 + $0x238] sm:$0xff] %v5466_v13  ;;  %5588 = vst [vmem:[#allocation3 + $0x248] sm:$0xff] %v5468_v25  ;;  %v7069_v54 = vrot.slane %v7037_v30, 3  ;;  %v7038_v16 = vunpack.c.l.bf16 %v7030_v1  ;;  %v5903_v48 = vmax.f32 %v13302_v51, 0.0  ;;  %v5891_v61 = vadd.f32 %v15107_v36, %v5841_v15 }
 0x348   : > { %v7070_v23 = vrot.slane %v7039_v10, 3  ;;  %v7073_v41 = vrot.slane %v7040_v44, 3  ;;  %v5977_v2 = vsel %vm5915_vm9, %v5905_v42, -inf  ;;  %v6699_v9 = vunpack.c.h.bf16 %v6687_v12 }
 0x349   : > { %v7072_v27 = vrot.slane %v7038_v16, 3  ;;  %v4649_v50 = vpop.f32.mrb[60].mxu0  ;;  %v4722_v19 = vpop.f32.mrb[124].mxu1  ;;  %v6697_v40 = vunpack.c.l.bf16 %v6687_v12  ;;  %v13322_v43 = vadd.f32 %v12943_v21, %v5842_v60  ;;  %v5812_v3 = vsel %vm5807_vm8, %v10475_v56, %v10476_v29  ;;  %v7031_v56 = vld [vmem:[#allocation3 + $0x150] sm:$0xfe] }
 0x34a   : > { %v10537_v1 = vpack.i.bf16 %v7073_v41, %v7070_v23  ;;  %v7071_v51 = vsel %vm6984_vm7, %v7069_v54, %v7070_v23  ;;  %v4651_v30 = vpop.f32.mrb[61].mxu0  ;;  %v4724_v15 = vpop.f32.mrb[125].mxu1  ;;  %v5909_v13 = vmax.f32 %v5893_v28, 0.0  ;;  %v6734_v42 = vrot.slane %v6699_v9, 1 }
 0x34b   : > { %v7074_v25 = vsel %vm6984_vm7, %v7072_v27, %v7073_v41  ;;  %v4653_v58 = vpop.f32.mrb[62].mxu0  ;;  %v6733_v10 = vrot.slane %v6697_v40, 1  ;;  %v4726_v44 = vpop.f32.mrb[126].mxu1  ;;  %v5907_v16 = vmax.f32 %v5891_v61, 0.0  ;;  %v7032_v41 = vld [vmem:[#allocation3 + $0x158] sm:$0xfe]  ;;  %v7043_v40 = vunpack.c.h.bf16 %v7031_v56 }
 0x34c   : > { %10538 = vrot.lane.b32.xlu1 %v10537_v1, %s11748_s20  ;;  %v10542_v12 = vpack.i.bf16 %v7074_v25, %v7071_v51  ;;  %v5495_v60 = vpack.c.bf16 %v4653_v58, %v4649_v50  ;;  %v4655_v32 = vpop.f32.mrb[63].mxu0  ;;  %v5497_v22 = vpack.c.bf16 %v4726_v44, %v4722_v19  ;;  %v4728_v29 = vpop.f32.mrb[127].mxu1  ;;  %v10547_v54 = vpack.i.bf16 %v6734_v42, %v13220_v62 }
 0x34d   : > { %v5496_v23 = vpack.c.bf16 %v4655_v32, %v4651_v30  ;;  %v6735_v28 = vsel %vm4126_vm3, %v6733_v10, %v6734_v42  ;;  %v5498_v5 = vpack.c.bf16 %v4728_v29, %v4724_v15  ;;  %v10481_v50 = vunpack.i.h.bf16 %v13318_v47  ;;  %v6689_v15 = vld [vmem:[#allocation3 + $0x230] sm:$0x7f] }
 0x34e   : > { %10543 = vrot.lane.b32.xlu0 %v10542_v12, %s11748_s20  ;;  %5615 = vst [vmem:[#allocation3 + $0x320] sm:$0xff] %v5495_v60  ;;  %v10552_v61 = vpack.i.bf16 %v6735_v28, %v13252_v63  ;;  %5617 = vst [vmem:[#allocation3 + $0x330] sm:$0xff] %v5497_v22  ;;  %v10480_v19 = vunpack.i.l.bf16 %v13318_v47  ;;  %v13336_v9 = vsel %vm4126_vm3, %v5904_v45, -inf  ;;  %v5976_v62 = vsel %vm5807_vm8, %v5903_v48, -inf  ;;  %v13343_v63 = vpop.permute.xlu0 %10483  ;;  %v13345_v45 = vpop.permute.xlu1 %10488 }
 0x34f   : > { %15159 = vst [vmem:[#allocation41_spill] sm:$0xff] %v13336_v9  ;;  %5616 = vst [vmem:[#allocation3 + $0x328] sm:$0xff] %v5496_v23  ;;  %v7041_v32 = vunpack.c.l.bf16 %v7031_v56  ;;  %v5908_v1 = vmax.f32 %v13322_v43, 0.0  ;;  %v15160_v51 = vunpack.c.l.bf16 %v12995_v20  ;;  %v7044_v22 = vunpack.c.h.bf16 %v7032_v41  ;;  %v15162_v20 = vld [vmem:[#allocation30_spill] sm:$0xff] }
 0x350   : > { %5618 = vst [vmem:[#allocation3 + $0x338] sm:$0xff] %v5498_v5  ;;  %10548 = vrot.lane.b32.xlu1 %v10547_v54, %s11748_s20  ;;  %v7042_v47 = vunpack.c.l.bf16 %v7032_v41  ;;  %v5994_v48 = vsel %vm5915_vm9, %v5909_v13, -inf  ;;  %v5993_v5 = vsel %vm5807_vm8, %v5907_v16, -inf  ;;  %v7076_v58 = vrot.slane %v7043_v40, 3 }
 0x351   : > { %v5840_v30 = vadd.f32 %v5812_v3, %v15160_v51  ;;  %v7075_v25 = vrot.slane %v7041_v32, 3  ;;  %v4765_v42 = vpop.f32.mrb[64].mxu0  ;;  %v4838_v43 = vpop.f32.mrb[128].mxu1  ;;  %v13349_v10 = vmax.f32 %v5976_v62, %v5977_v2  ;;  %v15163_v3 = vunpack.c.h.bf16 %v15162_v20 }
 0x352   : > { %10553 = vrot.lane.b32.xlu0 %v10552_v61, %s11748_s20  ;;  %v5815_v12 = vsel %vm5807_vm8, %v10480_v19, %v10481_v50  ;;  %v7079_v60 = vrot.slane %v7044_v22, 3  ;;  %v4767_v29 = vpop.f32.mrb[65].mxu0  ;;  %v4840_v56 = vpop.f32.mrb[129].mxu1  ;;  %v10486_v13 = vunpack.i.h.bf16 %v13343_v63  ;;  %v7078_v54 = vrot.slane %v7042_v47, 3 }
 0x353   : > { %15161 = vst [vmem:[#allocation42_spill] sm:$0xff] %v13349_v10  ;;  %v5847_v44 = vadd.f32 %v10481_v50, %v15163_v3  ;;  %v7077_v16 = vsel %vm6984_vm7, %v7075_v25, %v7076_v58  ;;  %v4769_v23 = vpop.f32.mrb[66].mxu0  ;;  %v4842_v28 = vpop.f32.mrb[130].mxu1  ;;  %v6703_v41 = vunpack.c.h.bf16 %v6689_v15  ;;  %v13358_v2 = vsel %vm4126_vm3, %v5908_v1, -inf  ;;  %v7033_v3 = vld [vmem:[#allocation3 + $0x240] sm:$0xfe] }
 0x354   : > { %15164 = vst [vmem:[#allocation30_spill] sm:$0xff] %v13358_v2  ;;  %v13360_v61 = vmax.f32 %v5993_v5, %v5994_v48  ;;  %v13363_v62 = vadd.f32 %v12943_v21, %v5840_v30  ;;  %v10557_v50 = vpack.i.bf16 %v7079_v60, %v7076_v58  ;;  %v4771_v19 = vpop.f32.mrb[67].mxu0  ;;  %v4844_v32 = vpop.f32.mrb[131].mxu1  ;;  %v15167_v40 = vunpack.c.h.bf16 %v13008_v57  ;;  %v7034_v5 = vld [vmem:[#allocation3 + $0x248] sm:$0xfe] }
 0x355   : > { %v7080_v22 = vsel %vm6984_vm7, %v7078_v54, %v7079_v60  ;;  %v5409_v47 = vpack.c.bf16 %v4769_v23, %v4765_v42  ;;  %v5411_v25 = vpack.c.bf16 %v4842_v28, %v4838_v43  ;;  %v13369_v27 = vadd.f32 %v15107_v36, %v5847_v44 }
 0x356   : > { %15165 = vst [vmem:[#allocation43_spill] sm:$0xff] %v13360_v61  ;;  %15166 = vst [vmem:[#allocation44_spill] sm:$0xff] %v13363_v62  ;;  %v5846_v51 = vadd.f32 %v5815_v12, %v15167_v40  ;;  %v10485_v1 = vunpack.i.l.bf16 %v13343_v63  ;;  %10558 = vrot.lane.b32.xlu1 %v10557_v50, %s11748_s20  ;;  %v10562_v30 = vpack.i.bf16 %v7080_v22, %v7077_v16  ;;  %v6740_v48 = vrot.slane %v6703_v41, 1  ;;  %v10494_v16 = vpop.permute.xlu0 %10493 }
 0x357   : > { %v15168_v58 = vunpack.c.l.bf16 %v15162_v20  ;;  %5529 = vst [vmem:[#allocation3 + $0x70] sm:$0xff] %v5409_v47  ;;  %5531 = vst [vmem:[#allocation3 + $0x80] sm:$0xff] %v5411_v25  ;;  %v6701_v12 = vunpack.c.l.bf16 %v6689_v15  ;;  %v5410_v60 = vpack.c.bf16 %v4771_v19, %v4767_v29  ;;  %v10491_v42 = vunpack.i.h.bf16 %v13345_v45 }
 0x358   : > { %10563 = vrot.lane.b32.xlu0 %v10562_v30, %s11748_s20  ;;  %v10567_v43 = vpack.i.bf16 %v6740_v48, %v13230_v38  ;;  %v10490_v63 = vunpack.i.l.bf16 %v13345_v45  ;;  %v7045_v44 = vunpack.c.l.bf16 %v7033_v3  ;;  %v7047_v54 = vunpack.c.h.bf16 %v7033_v3 }
 0x359   : > { %v5845_v61 = vadd.f32 %v10486_v13, %v15168_v58  ;;  %v13380_v23 = vadd.f32 %v12943_v21, %v5846_v51  ;;  %v6739_v20 = vrot.slane %v6701_v12, 1  ;;  %5530 = vst [vmem:[#allocation3 + $0x78] sm:$0xff] %v5410_v60  ;;  %v7048_v28 = vunpack.c.h.bf16 %v7034_v5  ;;  %v4775_v15 = vpop.f32.mrb[68].mxu0  ;;  %v4848_v29 = vpop.f32.mrb[132].mxu1 }
 0x35a   : > { %v7046_v41 = vunpack.c.l.bf16 %v7034_v5  ;;  %10568 = vrot.lane.b32.xlu1 %v10567_v43, %s11748_s20  ;;  %v15169_v50 = vunpack.c.h.bf16 %v13089_v7  ;;  %v7081_v38 = vrot.slane %v7045_v44, 3  ;;  %v7082_v40 = vrot.slane %v7047_v54, 3  ;;  %v4777_v22 = vpop.f32.mrb[69].mxu0  ;;  %v13385_v47 = vpop.f32.mrb[133].mxu1 }
 0x35b   : > { %v5412_v45 = vpack.c.bf16 %v4844_v32, %v4840_v56  ;;  %v5895_v51 = vadd.f32 %v15107_v36, %v5845_v61  ;;  %v5814_v25 = vsel %vm5807_vm8, %v10485_v1, %v10486_v13  ;;  %v6741_v3 = vsel %vm4126_vm3, %v6739_v20, %v6740_v48  ;;  %v4779_v5 = vpop.f32.mrb[70].mxu0  ;;  %v4852_v58 = vpop.f32.mrb[134].mxu1  ;;  %v6691_v1 = vld [vmem:[#allocation3 + $0x320] sm:$0x7f] }
 0x35c   : > { %v6242_v19 = vadd.f32 %v10491_v42, %v15169_v50  ;;  %v7085_v30 = vrot.slane %v7048_v28, 3  ;;  %v10572_v12 = vpack.i.bf16 %v6741_v3, %v13263_v26  ;;  %v6216_v60 = vsel %vm5807_vm8, %v10490_v63, %v10491_v42  ;;  %v4781_v56 = vpop.f32.mrb[71].mxu0  ;;  %v13392_v32 = vpop.f32.mrb[135].mxu1 }
 0x35d   : > { %v7084_v43 = vrot.slane %v7046_v41, 3  ;;  %5532 = vst [vmem:[#allocation3 + $0x88] sm:$0xff] %v5412_v45  ;;  %v10496_v44 = vunpack.i.h.bf16 %v10494_v16  ;;  %v5913_v54 = vmax.f32 %v13369_v27, 0.0  ;;  %v10495_v61 = vunpack.i.l.bf16 %v10494_v16 }
 0x35e   : > { %v10577_v36 = vpack.i.bf16 %v7085_v30, %v7082_v40  ;;  %v7083_v13 = vsel %vm6984_vm7, %v7081_v38, %v7082_v40  ;;  %v15170_v48 = vunpack.c.l.bf16 %v13008_v57  ;;  %10573 = vrot.lane.b32.xlu0 %v10572_v12, %s11748_s20  ;;  %v6387_v26 = vadd.f32 %v13202_v37, %v6242_v19  ;;  %v10499_v19 = vpop.permute.xlu1 %10498  ;;  %v15175_v12 = vld [vmem:[#allocation24_spill] sm:$0xff] }
 0x35f   : > { %v7086_v42 = vsel %vm6984_vm7, %v7084_v43, %v7085_v30  ;;  %v5439_v63 = vpack.c.bf16 %v4779_v5, %v4775_v15  ;;  %v5912_v28 = vmax.f32 %v13380_v23, 0.0  ;;  %v5911_v41 = vmax.f32 %v5895_v51, 0.0  ;;  %v7035_v43 = vld [vmem:[#allocation3 + $0x330] sm:$0xfe] }
 0x360   : > { %v5844_v20 = vadd.f32 %v5814_v25, %v15170_v48  ;;  %v15171_v27 = vunpack.c.h.bf16 %v13026_v35  ;;  %10578 = vrot.lane.b32.xlu1 %v10577_v36, %s11748_s20  ;;  %v10582_v16 = vpack.i.bf16 %v7086_v42, %v7083_v13  ;;  %v15172_v57 = vunpack.c.l.bf16 %v13089_v7  ;;  %v7036_v42 = vld [vmem:[#allocation3 + $0x338] sm:$0xfe] }
 0x361   : > { %5559 = vst [vmem:[#allocation3 + $0x160] sm:$0xff] %v5439_v63  ;;  %v5441_v45 = vpack.c.bf16 %v4852_v58, %v4848_v29  ;;  %v6707_v37 = vunpack.c.h.bf16 %v6691_v1  ;;  %v13409_v15 = vsel %vm5915_vm9, %v5913_v54, -inf  ;;  %v6215_v23 = vsel %vm5807_vm8, %v10495_v61, %v10496_v44  ;;  %v13414_v30 = vpop.f32.mrb[72].mxu0  ;;  %v13416_v5 = vpop.f32.mrb[136].mxu1 }
 0x362   : > { %v6241_v50 = vadd.f32 %v6216_v60, %v15171_v27  ;;  %v6240_v40 = vadd.f32 %v10496_v44, %v15172_v57  ;;  %v15173_v51 = vunpack.c.h.bf16 %v13256_v18  ;;  %v6705_v3 = vunpack.c.l.bf16 %v6691_v1  ;;  %10583 = vrot.lane.b32.xlu0 %v10582_v16, %s11748_s20  ;;  %v13423_v44 = vpop.f32.mrb[73].mxu0  ;;  %v13425_v18 = vpop.f32.mrb[137].mxu1 }
 0x363   : > { %v13419_v7 = vadd.f32 %v12943_v21, %v5844_v20  ;;  %v6438_v29 = vadd.f32 %v15175_v12, %v6387_v26  ;;  %5561 = vst [vmem:[#allocation3 + $0x170] sm:$0xff] %v5441_v45  ;;  %v6746_v58 = vrot.slane %v6707_v37, 1  ;;  %v5440_v60 = vpack.c.bf16 %v4781_v56, %v4777_v22  ;;  %v4789_v13 = vpop.f32.mrb[74].mxu0  ;;  %v13434_v1 = vpop.f32.mrb[138].mxu1 }
 0x364   : > { %v6743_v25 = vrot.slane %v15173_v51, 1  ;;  %v13428_v54 = vsel %vm4126_vm3, %v5912_v28, -inf  ;;  %v13431_v36 = vsel %vm5807_vm8, %v5911_v41, -inf  ;;  %v6386_v21 = vadd.f32 %v13193_v31, %v6241_v50  ;;  %v4791_v63 = vpop.f32.mrb[75].mxu0  ;;  %v13439_v28 = vpop.f32.mrb[139].mxu1 }
 0x365   : > { %15174 = vst [vmem:[#allocation45_spill] sm:$0xff] %v13419_v7  ;;  %15176 = vst [vmem:[#allocation24_spill] sm:$0xff] %v13428_v54  ;;  %v6745_v61 = vrot.slane %v6705_v3, 1  ;;  %v6385_v48 = vadd.f32 %v13243_v17, %v6240_v40  ;;  %v15177_v22 = vunpack.c.l.bf16 %v13026_v35  ;;  %v10501_v26 = vunpack.i.h.bf16 %v10499_v19  ;;  %v10504_v3 = vpop.permute.xlu0 %10503 }
 0x366   : > { %v10587_v20 = vpack.i.bf16 %v6746_v58, %v6743_v25  ;;  %5560 = vst [vmem:[#allocation3 + $0x168] sm:$0xff] %v5440_v60  ;;  %v6744_v41 = vsel %vm4126_vm3, %v13288_v33, %v6743_v25  ;;  %v10500_v27 = vunpack.i.l.bf16 %v10499_v19  ;;  %v7049_v50 = vunpack.c.l.bf16 %v7035_v43 }
 0x367   : > { %v6239_v56 = vadd.f32 %v6215_v23, %v15177_v22  ;;  %v6747_v31 = vsel %vm4126_vm3, %v6745_v61, %v6746_v58  ;;  %v6454_v16 = vmax.f32 %v6438_v29, 0.0  ;;  %v15178_v35 = vunpack.c.h.bf16 %v13175_v39 }
 0x368   : > { %10588 = vrot.lane.b32.xlu1 %v10587_v20, %s11748_s20  ;;  %v10592_v17 = vpack.i.bf16 %v6747_v31, %v6744_v41  ;;  %v7051_v40 = vunpack.c.h.bf16 %v7035_v43  ;;  %v6218_v45 = vsel %vm5807_vm8, %v10500_v27, %v10501_v26  ;;  %v7052_v37 = vunpack.c.h.bf16 %v7036_v42 }
 0x369   : > { %v6246_v57 = vadd.f32 %v10501_v26, %v15178_v35  ;;  %v7087_v23 = vrot.slane %v7049_v50, 3  ;;  %v7050_v51 = vunpack.c.l.bf16 %v7036_v42  ;;  %v6384_v33 = vadd.f32 %v13238_v11, %v6239_v56  ;;  %v13458_v20 = vpop.f32.mrb[76].mxu0  ;;  %v13460_v26 = vpop.f32.mrb[140].mxu1  ;;  %v7502_v35 = vld [vmem:[#allocation3 + $0x80] sm:$0x7f] }
 0x36a   : > { %10593 = vrot.lane.b32.xlu0 %v10592_v17, %s11748_s20  ;;  %v15179_v19 = vunpack.c.h.bf16 %v13226_v55  ;;  %v7088_v29 = vrot.slane %v7051_v40, 3  ;;  %v5442_v58 = vpack.c.bf16 %v13392_v32, %v13385_v47  ;;  %v6436_v43 = vadd.f32 %v15175_v12, %v6385_v48  ;;  %v13465_v27 = vpop.f32.mrb[77].mxu0  ;;  %v13467_v47 = vpop.f32.mrb[141].mxu1 }
 0x36b   : > { %v7091_v61 = vrot.slane %v7052_v37, 3  ;;  %v7090_v22 = vrot.slane %v7050_v51, 3  ;;  %v15180_v56 = vunpack.c.h.bf16 %v13028_v14  ;;  %v10506_v41 = vunpack.i.h.bf16 %v10504_v3  ;;  %v13472_v40 = vpop.f32.mrb[78].mxu0  ;;  %v15182_v37 = vld [vmem:[#allocation23_spill] sm:$0xff] }
 0x36c   : > { %v13452_v25 = vrot.slane %v15179_v19, 2  ;;  %5562 = vst [vmem:[#allocation3 + $0x178] sm:$0xff] %v5442_v58  ;;  %v10505_v31 = vunpack.i.l.bf16 %v10504_v3  ;;  %v7089_v48 = vsel %vm6984_vm7, %v7087_v23, %v7088_v29  ;;  %v5469_v17 = vpack.c.bf16 %v4789_v13, %v13414_v30  ;;  %v13487_v58 = vpop.f32.mrb[79].mxu0 }
 0x36d   : > { %v6245_v42 = vadd.f32 %v6218_v45, %v15180_v56  ;;  %v10597_v32 = vpack.i.bf16 %v7091_v61, %v7088_v29  ;;  %v7092_v50 = vsel %vm6984_vm7, %v7090_v22, %v7091_v61  ;;  %v13477_v45 = vsel %vm6468_vm10, %v6454_v16, -inf  ;;  %v7501_v29 = vld [vmem:[#allocation3 + $0x78] sm:$0x7f] }
 0x36e   : > { %v6391_v11 = vadd.f32 %v13452_v25, %v6246_v57  ;;  %v13474_v57 = vpop.f32.mrb[142].mxu1  ;;  %15181 = vst [vmem:[#allocation46_spill] sm:$0xff] %v13477_v45  ;;  %v13480_v51 = vadd.f32 %v15182_v37, %v6386_v21  ;;  %v13483_v3 = vadd.f32 %v15182_v37, %v6384_v33  ;;  %v15183_v23 = vunpack.c.h.bf16 %v13224_v6  ;;  %5589 = vst [vmem:[#allocation3 + $0x250] sm:$0xff] %v5469_v17  ;;  %v10509_v17 = vpop.permute.xlu1 %10508 }
 0x36f   : > { %10598 = vrot.lane.b32.xlu1 %v10597_v32, %s11748_s20  ;;  %v6217_v30 = vsel %vm5807_vm8, %v10505_v31, %v10506_v41  ;;  %v10602_v13 = vpack.i.bf16 %v7092_v50, %v7089_v48  ;;  %v5470_v16 = vpack.c.bf16 %v4791_v63, %v13423_v44  ;;  %v5471_v21 = vpack.c.bf16 %v13434_v1, %v13416_v5  ;;  %v13494_v61 = vpop.f32.mrb[143].mxu1 }
 0x370   : > { %v6351_v19 = vrot.slane %v15183_v23, 2  ;;  %v6452_v33 = vmax.f32 %v6436_v43, 0.0  ;;  %v15184_v6 = vunpack.c.l.bf16 %v13226_v55  ;;  %v13499_v56 = vadd.f32 %v15175_v12, %v6391_v11  ;;  %v6309_v11 = vld [vmem:[#allocation3 + $0x218] sm:$0xfe] }
 0x371   : > { %v7510_v23 = vunpack.c.l.bf16 %v7502_v35  ;;  %10603 = vrot.lane.b32.xlu0 %v10602_v13, %s11748_s20  ;;  %5590 = vst [vmem:[#allocation3 + $0x258] sm:$0xff] %v5470_v16  ;;  %5591 = vst [vmem:[#allocation3 + $0x260] sm:$0xff] %v5471_v21  ;;  %v7511_v31 = vunpack.c.h.bf16 %v7501_v29  ;;  %v7512_v44 = vunpack.c.h.bf16 %v7502_v35  ;;  %v7509_v63 = vunpack.c.l.bf16 %v7501_v29  ;;  %v13508_v60 = vpop.f32.mrb[80].mxu0  ;;  %v13510_v35 = vpop.f32.mrb[144].mxu1 }
 0x372   : > { %v6353_v22 = vrot.slane %v15184_v6, 2  ;;  %v6390_v32 = vadd.f32 %v6351_v19, %v6245_v42  ;;  %v15185_v1 = vunpack.c.l.bf16 %v13175_v39  ;;  %v15186_v55 = vunpack.c.l.bf16 %v13028_v14  ;;  %v10514_v6 = vpop.permute.xlu0 %10513 }
 0x373   : > { %v7544_v50 = vrot.slane %v7510_v23, 1  ;;  %v7542_v13 = vrot.slane %v7511_v31, 1  ;;  %v7545_v16 = vrot.slane %v7512_v44, 1  ;;  %v7541_v21 = vrot.slane %v7509_v63, 1  ;;  %v13522_v23 = vpop.f32.mrb[145].mxu1 }
 0x374   : > { %v6244_v43 = vadd.f32 %v10506_v41, %v15185_v1  ;;  %v6243_v48 = vadd.f32 %v6217_v30, %v15186_v55  ;;  %v13513_v29 = vsel %vm5807_vm8, %v6452_v33, -inf  ;;  %v6352_v14 = vsel %vm6275_vm6, %v13295_v52, %v6351_v19  ;;  %v13520_v30 = vpop.f32.mrb[81].mxu0  ;;  %v6308_v1 = vld [vmem:[#allocation3 + $0x210] sm:$0xfe]  ;;  %v13531_v38 = vpop.f32.mrb[146].mxu1 }
 0x375   : > { %15187 = vst [vmem:[#allocation23_spill] sm:$0xff] %v13513_v29  ;;  %v6355_v41 = vsel %vm6275_vm6, %v6353_v22, %v13452_v25  ;;  %v13525_v31 = vadd.f32 %v15182_v37, %v6390_v32  ;;  %v10607_v44 = vpack.i.bf16 %v7545_v16, %v7542_v13  ;;  %v7543_v63 = vsel %vm4126_vm3, %v7541_v21, %v7542_v13  ;;  %v13529_v55 = vpop.f32.mrb[82].mxu0  ;;  %v13535_v5 = vpop.f32.mrb[147].mxu1 }
 0x376   : > { %v7546_v33 = vsel %vm4126_vm3, %v7544_v50, %v7545_v16  ;;  %v6389_v52 = vadd.f32 %v6355_v41, %v6244_v43  ;;  %v6388_v19 = vadd.f32 %v6352_v14, %v6243_v48  ;;  %v6321_v22 = vunpack.c.l.bf16 %v6309_v11  ;;  %v13533_v42 = vpop.f32.mrb[83].mxu0  ;;  %v7503_v14 = vld [vmem:[#allocation3 + $0x168] sm:$0x7f]  ;;  %v7504_v41 = vld [vmem:[#allocation3 + $0x170] sm:$0x7f]  ;;  %v13593_v2 = vpop.permute.xlu0 %10523 }
 0x377   : > { %15188 = vst [vmem:[#allocation47_spill] sm:$0xff] %v13525_v31  ;;  %v10612_v25 = vpack.i.bf16 %v7546_v33, %v7543_v63  ;;  %10608 = vrot.lane.b32.xlu0 %v10607_v44, %s11748_s20  ;;  %v6323_v32 = vunpack.c.h.bf16 %v6309_v11  ;;  %v10511_v39 = vunpack.i.h.bf16 %v10509_v17  ;;  %v10510_v13 = vunpack.i.l.bf16 %v10509_v17 }
 0x378   : > { %v5472_v50 = vpack.c.bf16 %v13439_v28, %v13425_v18  ;;  %v6322_v16 = vunpack.c.h.bf16 %v6308_v1  ;;  %v10516_v21 = vunpack.i.h.bf16 %v10514_v6  ;;  %v10515_v43 = vunpack.i.l.bf16 %v10514_v6 }
 0x379   : > { %10613 = vrot.lane.b32.xlu1 %v10612_v25, %s11748_s20  ;;  %v5499_v48 = vpack.c.bf16 %v13472_v40, %v13458_v20  ;;  %v6320_v63 = vunpack.c.l.bf16 %v6308_v1  ;;  %v15189_v33 = vunpack.c.h.bf16 %v13182_v53  ;;  %v6220_v11 = vsel %vm5807_vm8, %v10510_v13, %v10511_v39 }
 0x37a   : > { %5592 = vst [vmem:[#allocation3 + $0x268] sm:$0xff] %v5472_v50  ;;  %v5500_v18 = vpack.c.bf16 %v13487_v58, %v13465_v27  ;;  %v13549_v28 = vadd.f32 %v15175_v12, %v6389_v52  ;;  %v6359_v17 = vrot.slane %v6321_v22, 2  ;;  %v15190_v6 = vunpack.c.h.bf16 %v13049_v34  ;;  %v13556_v50 = vpop.f32.mrb[84].mxu0  ;;  %v13558_v27 = vpop.f32.mrb[148].mxu1 }
 0x37b   : > { %v6250_v44 = vadd.f32 %v10511_v39, %v15189_v33  ;;  %5619 = vst [vmem:[#allocation3 + $0x340] sm:$0xff] %v5499_v48  ;;  %v5501_v20 = vpack.c.bf16 %v13474_v57, %v13460_v26  ;;  %v6360_v40 = vrot.slane %v6323_v32, 2  ;;  %v6219_v1 = vsel %vm5807_vm8, %v10515_v43, %v10516_v21  ;;  %v13564_v26 = vpop.f32.mrb[149].mxu1 }
 0x37c   : > { %v6249_v25 = vadd.f32 %v6220_v11, %v15190_v6  ;;  %5620 = vst [vmem:[#allocation3 + $0x348] sm:$0xff] %v5500_v18  ;;  %v7514_v39 = vunpack.c.l.bf16 %v7504_v41  ;;  %v7515_v13 = vunpack.c.h.bf16 %v7503_v14  ;;  %v6357_v58 = vrot.slane %v6322_v16, 2  ;;  %v6311_v11 = vld [vmem:[#allocation3 + $0x308] sm:$0xfe]  ;;  %v13562_v6 = vpop.f32.mrb[85].mxu0  ;;  %v13568_v54 = vpop.f32.mrb[150].mxu1 }
 0x37d   : > { %v15191_v52 = vunpack.c.l.bf16 %v13182_v53  ;;  %5621 = vst [vmem:[#allocation3 + $0x350] sm:$0xff] %v5501_v20  ;;  %v7516_v33 = vunpack.c.h.bf16 %v7504_v41  ;;  %v7513_v48 = vunpack.c.l.bf16 %v7503_v14  ;;  %v6356_v57 = vrot.slane %v6320_v63, 2  ;;  %v13566_v7 = vpop.f32.mrb[86].mxu0 }
 0x37e   : > { %v6395_v32 = vadd.f32 %v6360_v40, %v6250_v44  ;;  %v7548_v43 = vrot.slane %v7515_v13, 1  ;;  %v7550_v18 = vrot.slane %v7514_v39, 1  ;;  %v6394_v16 = vadd.f32 %v6357_v58, %v6249_v25  ;;  %v13572_v14 = vpop.f32.mrb[87].mxu0 }
 0x37f   : > { %v6248_v22 = vadd.f32 %v10516_v21, %v15191_v52  ;;  %v15192_v53 = vunpack.c.l.bf16 %v13049_v34  ;;  %v7551_v20 = vrot.slane %v7516_v33, 1  ;;  %v7547_v41 = vrot.slane %v7513_v48, 1  ;;  %v13574_v52 = vpop.f32.mrb[151].mxu1  ;;  %v13587_v48 = vpop.permute.xlu1 %10518 }
 0x380   : > { %v15193_v62 = vmax.f32 %v13499_v56, 0.0  ;;  %v13582_v44 = vadd.f32 %v15182_v37, %v6388_v19  ;;  %v6361_v39 = vsel %vm6275_vm6, %v6359_v17, %v6360_v40  ;;  %v6325_v25 = vunpack.c.l.bf16 %v6311_v11 }
 0x381   : > { %v6247_v21 = vadd.f32 %v6219_v1, %v15192_v53  ;;  %v6393_v1 = vadd.f32 %v6361_v39, %v6248_v22  ;;  %v10617_v13 = vpack.i.bf16 %v7551_v20, %v7548_v43  ;;  %v7549_v33 = vsel %vm4126_vm3, %v7547_v41, %v7548_v43  ;;  %v13599_v43 = vld [vmem:[#allocation3 + $0x300] sm:$0xfe] }
 0x382   : > { %v13579_v63 = vsel %vm6468_vm10, %v15193_v62, -inf  ;;  %15195 = vst [vmem:[#allocation49_spill] sm:$0xff] %v13582_v44  ;;  %v6456_v53 = vmax.f32 %v13549_v28, 0.0  ;;  %v6446_v56 = vadd.f32 %v15175_v12, %v6395_v32  ;;  %v6358_v62 = vsel %vm6275_vm6, %v6356_v57, %v6357_v58 }
 0x383   : > { %15194 = vst [vmem:[#allocation48_spill] sm:$0xff] %v13579_v63  ;;  %v7552_v19 = vsel %vm4126_vm3, %v7550_v18, %v7551_v20  ;;  %v13596_v17 = vadd.f32 %v15182_v37, %v6394_v16  ;;  %v6392_v40 = vadd.f32 %v6358_v62, %v6247_v21  ;;  %10618 = vrot.lane.b32.xlu0 %v10617_v13, %s11748_s20  ;;  %v6327_v41 = vunpack.c.h.bf16 %v6311_v11  ;;  %v7505_v18 = vld [vmem:[#allocation3 + $0x258] sm:$0x7f]  ;;  %v13607_v20 = vpop.f32.mrb[88].mxu0  ;;  %v13609_v16 = vpop.f32.mrb[152].mxu1 }
 0x384   : > { %v10622_v22 = vpack.i.bf16 %v7552_v19, %v7549_v33  ;;  %v13603_v28 = vmax.f32 %v13431_v36, %v13409_v15  ;;  %v6365_v57 = vrot.slane %v6325_v25, 2  ;;  %v14993_v32 = vunpack.i.h.bf16 %v13587_v48  ;;  %v7506_v36 = vld [vmem:[#allocation3 + $0x260] sm:$0x7f]  ;;  %v13616_v13 = vpop.f32.mrb[89].mxu0  ;;  %v13618_v25 = vpop.f32.mrb[153].mxu1 }
 0x385   : > { %15196 = vst [vmem:[#allocation50_spill] sm:$0xff] %v13596_v17  ;;  %v6444_v21 = vadd.f32 %v15175_v12, %v6393_v1  ;;  %v6366_v39 = vrot.slane %v6327_v41, 2  ;;  %v14996_v11 = vunpack.i.h.bf16 %v13593_v2  ;;  %v5413_v15 = vpack.c.bf16 %v13529_v55, %v13508_v60  ;;  %v13629_v41 = vpop.f32.mrb[90].mxu0  ;;  %v13631_v60 = vpop.f32.mrb[154].mxu1 }
 0x386   : > { %15197 = vst [vmem:[#allocation51_spill] sm:$0xff] %v13603_v28  ;;  %10623 = vrot.lane.b32.xlu1 %v10622_v22, %s11748_s20  ;;  %v13621_v33 = vsel %vm5807_vm8, %v6456_v53, -inf  ;;  %v6462_v62 = vmax.f32 %v6446_v56, 0.0  ;;  %v15199_v19 = vunpack.c.h.bf16 %v13214_v49  ;;  %v5414_v22 = vpack.c.bf16 %v13533_v42, %v13520_v30  ;;  %v13644_v42 = vpop.f32.mrb[155].mxu1 }
 0x387   : > { %15198 = vst [vmem:[#allocation52_spill] sm:$0xff] %v13621_v33  ;;  %v13635_v58 = vadd.f32 %v15182_v37, %v6392_v40  ;;  %v6324_v53 = vunpack.c.l.bf16 %v13599_v43  ;;  %v15201_v56 = vunpack.c.l.bf16 %v13214_v49  ;;  %5533 = vst [vmem:[#allocation3 + $0x90] sm:$0xff] %v5413_v15  ;;  %v7518_v55 = vunpack.c.l.bf16 %v7506_v36 }
 0x388   : > { %v6254_v1 = vadd.f32 %v14993_v32, %v15199_v19  ;;  %v13642_v19 = vpop.f32.mrb[91].mxu0  ;;  %v6367_v32 = vsel %vm6275_vm6, %v6365_v57, %v6366_v39  ;;  %5534 = vst [vmem:[#allocation3 + $0x98] sm:$0xff] %v5414_v22  ;;  %v7519_v28 = vunpack.c.h.bf16 %v7505_v18  ;;  %v6460_v40 = vmax.f32 %v6444_v21, 0.0  ;;  %v7342_v22 = vpop.permute.xlu1 %7341 }
 0x389   : > { %15200 = vst [vmem:[#allocation53_spill] sm:$0xff] %v13635_v58  ;;  %v6252_v34 = vadd.f32 %v14996_v11, %v15201_v56  ;;  %v7520_v33 = vunpack.c.h.bf16 %v7506_v36  ;;  %v7517_v63 = vunpack.c.l.bf16 %v7505_v18  ;;  %v13648_v49 = vsel %vm6468_vm10, %v6462_v62, -inf  ;;  %v7508_v36 = vld [vmem:[#allocation3 + $0x350] sm:$0x7f]  ;;  %v13658_v62 = vpop.f32.mrb[156].mxu1 }
 0x38a   : > { %v6399_v30 = vadd.f32 %v6366_v39, %v6254_v1  ;;  %15202 = vst [vmem:[#allocation54_spill] sm:$0xff] %v13648_v49  ;;  %v7554_v15 = vrot.slane %v7519_v28, 1  ;;  %v7556_v11 = vrot.slane %v7518_v55, 1  ;;  %v7507_v39 = vld [vmem:[#allocation3 + $0x348] sm:$0x7f]  ;;  %v5443_v18 = vpack.c.bf16 %v13566_v7, %v13556_v50  ;;  %v4941_v28 = vpop.f32.mrb[92].mxu0 }
 0x38b   : > { %v6397_v17 = vadd.f32 %v6367_v32, %v6252_v34  ;;  %v7557_v31 = vrot.slane %v7520_v33, 1  ;;  %v7553_v57 = vrot.slane %v7517_v63, 1  ;;  %v5502_v32 = vpack.c.bf16 %v13494_v61, %v13467_v47  ;;  %v4943_v33 = vpop.f32.mrb[93].mxu0 }
 0x38c   : > { %v6450_v56 = vadd.f32 %v15175_v12, %v6399_v30  ;;  %v13661_v55 = vsel %vm5807_vm8, %v6460_v40, -inf  ;;  %v13664_v30 = vpop.f32.mrb[157].mxu1  ;;  %5563 = vst [vmem:[#allocation3 + $0x180] sm:$0xff] %v5443_v18  ;;  %v5444_v61 = vpack.c.bf16 %v13572_v14, %v13562_v6  ;;  %v4945_v50 = vpop.f32.mrb[94].mxu0  ;;  %v15205_v6 = vld [vmem:[#allocation31_spill] sm:$0xff]  ;;  %v15206_v14 = vld [vmem:[#allocation21_spill] sm:$0xff] }
 0x38d   : > { %v6448_v1 = vadd.f32 %v15175_v12, %v6397_v17  ;;  %15203 = vst [vmem:[#allocation55_spill] sm:$0xff] %v13661_v55  ;;  %v10627_v63 = vpack.i.bf16 %v7557_v31, %v7554_v15  ;;  %v7555_v17 = vsel %vm4126_vm3, %v7553_v57, %v7554_v15  ;;  %v7558_v7 = vsel %vm4126_vm3, %v7556_v11, %v7557_v31  ;;  %v13672_v40 = vpop.f32.mrb[158].mxu1  ;;  %v4947_v21 = vpop.f32.mrb[95].mxu0 }
 0x38e   : > { %v6466_v34 = vmax.f32 %v6450_v56, 0.0  ;;  %v13666_v56 = vrot.slane %v6324_v53, 2  ;;  %5622 = vst [vmem:[#allocation3 + $0x358] sm:$0xff] %v5502_v32  ;;  %v10632_v15 = vpack.i.bf16 %v7558_v7, %v7555_v17  ;;  %v7522_v57 = vunpack.c.l.bf16 %v7508_v36  ;;  %v7845_v44 = vld [vmem:[#allocation3 + $0x90] sm:$0xfe]  ;;  %5564 = vst [vmem:[#allocation3 + $0x188] sm:$0xff] %v5444_v61 }
 0x38f   : > { %v6464_v12 = vmax.f32 %v6448_v1, 0.0  ;;  %10628 = vrot.lane.b32.xlu0 %v10627_v63, %s11748_s20  ;;  %v7523_v53 = vunpack.c.h.bf16 %v7507_v39  ;;  %v7524_v11 = vunpack.c.h.bf16 %v7508_v36  ;;  %v7521_v32 = vunpack.c.l.bf16 %v7507_v39 }
 0x390   : > { %v6564_v47 = vsel %vm6468_vm10, %v6466_v34, -inf  ;;  %v13676_v34 = vpop.f32.mrb[159].mxu1  ;;  %v15207_v18 = vmax.f32 %v15205_v6, %v15206_v14  ;;  %10633 = vrot.lane.b32.xlu1 %v10632_v15, %s11748_s20  ;;  %v7562_v17 = vrot.slane %v7522_v57, 1  ;;  %v5473_v7 = vpack.c.bf16 %v13629_v41, %v13607_v20 }
 0x391   : > { %v6563_v1 = vsel %vm5807_vm8, %v6464_v12, -inf  ;;  %v7846_v12 = vld [vmem:[#allocation3 + $0x98] sm:$0xfe]  ;;  %v7560_v63 = vrot.slane %v7523_v53, 1  ;;  %v7559_v61 = vrot.slane %v7521_v32, 1  ;;  %v7853_v36 = vunpack.c.l.bf16 %v7845_v44  ;;  %v5057_v20 = vpop.f32.mrb[96].mxu0 }
 0x392   : > { %v13678_v31 = vmax.f32 %v6563_v1, %v6564_v47  ;;  %v13683_v58 = vmax.f32 %v15207_v18, %v7342_v22  ;;  %v5474_v47 = vpack.c.bf16 %v13642_v19, %v13616_v13  ;;  %v7563_v1 = vrot.slane %v7524_v11, 1  ;;  %5593 = vst [vmem:[#allocation3 + $0x270] sm:$0xff] %v5473_v7  ;;  %v13692_v41 = vpop.f32.mrb[160].mxu1  ;;  %v5059_v7 = vpop.f32.mrb[97].mxu0 }
 0x393   : > { %v7855_v39 = vunpack.c.h.bf16 %v7845_v44  ;;  %v7856_v6 = vunpack.c.h.bf16 %v7846_v12  ;;  %v7854_v22 = vunpack.c.l.bf16 %v7846_v12  ;;  %v5503_v14 = vpack.c.bf16 %v4945_v50, %v4941_v28  ;;  %v7847_v44 = vld [vmem:[#allocation3 + $0x180] sm:$0xfe] }
 0x394   : > { %15204 = vst [vmem:[#allocation56_spill] sm:$0xff] %v13678_v31  ;;  %15208 = vst [vmem:[#allocation31_spill] sm:$0xff] %v13683_v58  ;;  %v5504_v18 = vpack.c.bf16 %v4947_v21, %v4943_v33  ;;  %v10637_v31 = vpack.i.bf16 %v7563_v1, %v7560_v63  ;;  %v7561_v15 = vsel %vm4126_vm3, %v7559_v61, %v7560_v63  ;;  %v7885_v53 = vrot.slane %v7853_v36, 3  ;;  %v5061_v33 = vpop.f32.mrb[98].mxu0  ;;  %v13699_v63 = vpop.f32.mrb[161].mxu1 }
 0x395   : > { %5594 = vst [vmem:[#allocation3 + $0x278] sm:$0xff] %v5474_v47  ;;  %v7564_v57 = vsel %vm4126_vm3, %v7562_v17, %v7563_v1  ;;  %v7886_v19 = vrot.slane %v7855_v39, 3  ;;  %v7889_v11 = vrot.slane %v7856_v6, 3  ;;  %v7888_v32 = vrot.slane %v7854_v22, 3  ;;  %5623 = vst [vmem:[#allocation3 + $0x360] sm:$0xff] %v5503_v14  ;;  %v13704_v61 = vpop.permute.xlu0 %8301  ;;  %v5063_v39 = vpop.f32.mrb[99].mxu0 }
 0x396   : > { %v10642_v13 = vpack.i.bf16 %v7564_v57, %v7561_v15  ;;  %5624 = vst [vmem:[#allocation3 + $0x368] sm:$0xff] %v5504_v18  ;;  %10638 = vrot.lane.b32.xlu0 %v10637_v31, %s11748_s20  ;;  %v7857_v21 = vunpack.c.l.bf16 %v7847_v44  ;;  %v7859_v28 = vunpack.c.h.bf16 %v7847_v44  ;;  %v5415_v50 = vpack.c.bf16 %v13531_v38, %v13510_v35  ;;  %15209 = vst [vmem:[#allocation21_spill] sm:$0xff] %v13704_v61  ;;  %v7848_v31 = vld [vmem:[#allocation3 + $0x188] sm:$0xfe] }
 0x397   : > { %v5416_v12 = vpack.c.bf16 %v13535_v5, %v13522_v23  ;;  %v10647_v17 = vpack.i.bf16 %v7889_v11, %v7886_v19  ;;  %v7887_v47 = vsel %vm6984_vm7, %v7885_v53, %v7886_v19  ;;  %v7890_v1 = vsel %vm6984_vm7, %v7888_v32, %v7889_v11  ;;  %v13708_v23 = vpop.f32.mrb[162].mxu1 }
 0x398   : > { %10643 = vrot.lane.b32.xlu1 %v10642_v13, %s11748_s20  ;;  %v5417_v36 = vpack.c.bf16 %v5061_v33, %v5057_v20  ;;  %v10652_v6 = vpack.i.bf16 %v7890_v1, %v7887_v47  ;;  %v7860_v35 = vunpack.c.h.bf16 %v7848_v31  ;;  %v7891_v5 = vrot.slane %v7857_v21, 3  ;;  %5535 = vst [vmem:[#allocation3 + $0xa0] sm:$0xff] %v5415_v50  ;;  %v13712_v57 = vpop.f32.mrb[163].mxu1  ;;  %v15210_v33 = vld [vmem:[#allocation25_spill] sm:$0xff]  ;;  %v15211_v50 = vld [vmem:[#allocation22_spill] sm:$0xff] }
 0x399   : > { %5536 = vst [vmem:[#allocation3 + $0xa8] sm:$0xff] %v5416_v12  ;;  %v7892_v22 = vrot.slane %v7859_v28, 3  ;;  %v7858_v14 = vunpack.c.l.bf16 %v7848_v31  ;;  %v5418_v18 = vpack.c.bf16 %v5063_v39, %v5059_v7  ;;  %v5445_v15 = vpack.c.bf16 %v13568_v54, %v13558_v27  ;;  %v7849_v20 = vld [vmem:[#allocation3 + $0x270] sm:$0xfe]  ;;  %v7344_v27 = vpop.permute.xlu0 %7343  ;;  %v5067_v12 = vpop.f32.mrb[100].mxu0 }
 0x39a   : > { %5537 = vst [vmem:[#allocation3 + $0xb0] sm:$0xff] %v5417_v36  ;;  %10648 = vrot.lane.b32.xlu0 %v10647_v17, %s11748_s20  ;;  %v7895_v53 = vrot.slane %v7860_v35, 3  ;;  %v5446_v19 = vpack.c.bf16 %v13574_v52, %v13564_v26  ;;  %v5475_v11 = vpack.c.bf16 %v13631_v60, %v13609_v16  ;;  %v5476_v32 = vpack.c.bf16 %v13644_v42, %v13618_v25  ;;  %v13728_v17 = vpop.f32.mrb[164].mxu1  ;;  %v5069_v36 = vpop.f32.mrb[101].mxu0 }
 0x39b   : > { %v7894_v44 = vrot.slane %v7858_v14, 3  ;;  %v7893_v54 = vsel %vm6984_vm7, %v7891_v5, %v7892_v22  ;;  %5538 = vst [vmem:[#allocation3 + $0xb8] sm:$0xff] %v5418_v18  ;;  %v7861_v7 = vunpack.c.l.bf16 %v7849_v20  ;;  %v7863_v21 = vunpack.c.h.bf16 %v7849_v20  ;;  %5565 = vst [vmem:[#allocation3 + $0x190] sm:$0xff] %v5445_v15  ;;  %v5071_v14 = vpop.f32.mrb[102].mxu0  ;;  %v13736_v20 = vpop.permute.xlu1 %8303 }
 0x39c   : > { %v7850_v13 = vld [vmem:[#allocation3 + $0x278] sm:$0xfe]  ;;  %10653 = vrot.lane.b32.xlu1 %v10652_v6, %s11748_s20  ;;  %v10657_v28 = vpack.i.bf16 %v7895_v53, %v7892_v22  ;;  %v15212_v26 = vmax.f32 %v15210_v33, %v15211_v50  ;;  %5566 = vst [vmem:[#allocation3 + $0x198] sm:$0xff] %v5446_v19  ;;  %v7851_v25 = vld [vmem:[#allocation3 + $0x360] sm:$0xfe]  ;;  %5595 = vst [vmem:[#allocation3 + $0x280] sm:$0xff] %v5475_v11  ;;  %v10520_v33 = vunpack.i.l.bf16 %v13587_v48 }
 0x39d   : > { %v7864_v16 = vunpack.c.h.bf16 %v7850_v13  ;;  %v7862_v60 = vunpack.c.l.bf16 %v7850_v13  ;;  %v7852_v42 = vld [vmem:[#allocation3 + $0x368] sm:$0xfe]  ;;  %5596 = vst [vmem:[#allocation3 + $0x288] sm:$0xff] %v5476_v32  ;;  %v7896_v47 = vsel %vm6984_vm7, %v7894_v44, %v7895_v53  ;;  %v7897_v1 = vrot.slane %v7861_v7, 3  ;;  %v13731_v6 = vpop.f32.mrb[165].mxu1  ;;  %15214 = vst [vmem:[#allocation22_spill] sm:$0xff] %v13736_v20 }
 0x39e   : > { %v13726_v52 = vmax.f32 %v15212_v26, %v7344_v27  ;;  %v7898_v31 = vrot.slane %v7863_v21, 3  ;;  %v7865_v39 = vunpack.c.l.bf16 %v7851_v25  ;;  %v10662_v35 = vpack.i.bf16 %v7896_v47, %v7893_v54  ;;  %v13733_v15 = vpop.f32.mrb[166].mxu1  ;;  %v5073_v19 = vpop.f32.mrb[103].mxu0  ;;  %v13739_v44 = vld [vmem:[#allocation8 + $0x4] ss:$8 sm:$0x3] }
 0x39f   : > { %v7901_v5 = vrot.slane %v7864_v16, 3  ;;  %v7900_v22 = vrot.slane %v7862_v60, 3  ;;  %v7867_v18 = vunpack.c.h.bf16 %v7851_v25  ;;  %v5447_v53 = vpack.c.bf16 %v5071_v14, %v5067_v12  ;;  %v15215_v25 = vld [vmem:[#allocation13_spill] sm:$0xff] }
 0x3a0   : > { %15213 = vst [vmem:[#allocation25_spill] sm:$0xff] %v13726_v52  ;;  %10658 = vrot.lane.b32.xlu1 %v10657_v28, %s11748_s20  ;;  %v7899_v13 = vsel %vm6984_vm7, %v7897_v1, %v7898_v31  ;;  %v7868_v11 = vunpack.c.h.bf16 %v7852_v42  ;;  %v7903_v32 = vrot.slane %v7865_v39, 3  ;;  %10663 = vrot.lane.b32.xlu0 %v10662_v35, %s11748_s20  ;;  %v5448_v21 = vpack.c.bf16 %v5073_v19, %v5069_v36  ;;  %v5146_v28 = vpop.f32.mrb[167].mxu1  ;;  %v7346_v39 = vpop.permute.xlu1 %7345  ;;  %v15216_v14 = vld [vmem:[#allocation33_spill] sm:$0xff] }
 0x3a1   : > { %v10667_v27 = vpack.i.bf16 %v7901_v5, %v7898_v31  ;;  %v7902_v7 = vsel %vm6984_vm7, %v7900_v22, %v7901_v5  ;;  %5567 = vst [vmem:[#allocation3 + $0x1a0] sm:$0xff] %v5447_v53  ;;  %v7904_v50 = vrot.slane %v7867_v18, 3  ;;  %v7866_v16 = vunpack.c.l.bf16 %v7852_v42  ;;  %v13746_v60 = vld [vmem:[#allocation3 + $0xb0] sm:$0x3f]  ;;  %v5077_v53 = vpop.f32.mrb[104].mxu0 }
 0x3a2   : > { %v7907_v26 = vrot.slane %v7868_v11, 3  ;;  %v10672_v12 = vpack.i.bf16 %v7902_v7, %v7899_v13  ;;  %5568 = vst [vmem:[#allocation3 + $0x1a8] sm:$0xff] %v5448_v21  ;;  %v9229_v47 = vrot.slane %v13739_v44, %v15215_v25  ;;  %v5505_v1 = vpack.c.bf16 %v13672_v40, %v13658_v62  ;;  %v8449_v36 = vld [vmem:[#allocation3 + $0xb8] sm:$0x3f]  ;;  %v5079_v11 = vpop.f32.mrb[105].mxu0 }
 0x3a3   : > { %v5506_v31 = vpack.c.bf16 %v13676_v34, %v13664_v30  ;;  %v7906_v5 = vrot.slane %v7866_v16, 3  ;;  %v7905_v42 = vsel %vm6984_vm7, %v7903_v32, %v7904_v50  ;;  %v15005_v22 = vunpack.c.l.bf16 %v13746_v60  ;;  %v5150_v34 = vpop.f32.mrb[168].mxu1 }
 0x3a4   : > { %10668 = vrot.lane.b32.xlu1 %v10667_v27, %s11748_s20  ;;  %v10677_v35 = vpack.i.bf16 %v7907_v26, %v7904_v50  ;;  %v15217_v18 = vmax.f32 %v12962_v59, %v15216_v14  ;;  %5625 = vst [vmem:[#allocation3 + $0x370] sm:$0xff] %v5505_v1  ;;  %v15006_v62 = vunpack.c.h.bf16 %v13746_v60  ;;  %v8454_v30 = vunpack.c.h.bf16 %v8449_v36  ;;  %v5152_v7 = vpop.f32.mrb[169].mxu1  ;;  %v5081_v50 = vpop.f32.mrb[106].mxu0 }
 0x3a5   : > { %5626 = vst [vmem:[#allocation3 + $0x378] sm:$0xff] %v5506_v31  ;;  %v8453_v40 = vunpack.c.l.bf16 %v8449_v36  ;;  %v7908_v19 = vsel %vm6984_vm7, %v7906_v5, %v7907_v26  ;;  %v5419_v32 = vpack.c.bf16 %v13708_v23, %v13692_v41  ;;  %v5420_v59 = vpack.c.bf16 %v13712_v57, %v13699_v63  ;;  %v5154_v26 = vpop.f32.mrb[170].mxu1  ;;  %v13776_v36 = vpop.permute.xlu0 %8305 }
 0x3a6   : > { %v13760_v13 = vmax.f32 %v15217_v18, %v7346_v39  ;;  %10678 = vrot.lane.b32.xlu0 %v10677_v35, %s11748_s20  ;;  %v8477_v27 = vrot.slane %v15005_v22, 1  ;;  %v10682_v21 = vpack.i.bf16 %v7908_v19, %v7905_v42  ;;  %v13773_v16 = vrot.slane %v15006_v62, 1  ;;  %15219 = vst [vmem:[#allocation33_spill] sm:$0xff] %v13776_v36  ;;  %v5083_v23 = vpop.f32.mrb[107].mxu0 }
 0x3a7   : > { %v8481_v1 = vrot.slane %v8454_v30, 1  ;;  %v8480_v31 = vrot.slane %v8453_v40, 1  ;;  %v5477_v41 = vpack.c.bf16 %v5081_v50, %v5077_v53  ;;  %5539 = vst [vmem:[#allocation3 + $0xc0] sm:$0xff] %v5419_v32  ;;  %5540 = vst [vmem:[#allocation3 + $0xc8] sm:$0xff] %v5420_v59  ;;  %v5449_v63 = vpack.c.bf16 %v13733_v15, %v13728_v17  ;;  %v5156_v53 = vpop.f32.mrb[171].mxu1  ;;  %v15221_v17 = vld [vmem:[#allocation12_spill] sm:$0xff]  ;;  %v13803_v50 = vpop.permute.xlu1 %8307 }
 0x3a8   : > { %15218 = vst [vmem:[#allocation13_spill] sm:$0xff] %v13760_v13  ;;  %10673 = vrot.lane.b32.xlu1 %v10672_v12, %s11748_s20  ;;  %v5450_v57 = vpack.c.bf16 %v5146_v28, %v13731_v6  ;;  %v5479_v39 = vpack.c.bf16 %v5154_v26, %v5150_v34  ;;  %v15220_v35 = vunpack.i.h.bf16 %v13587_v48  ;;  %v10525_v42 = vunpack.i.l.bf16 %v13593_v2  ;;  %v13787_v18 = vld [vmem:[#allocation3 + $0x1a0] sm:$0x3f]  ;;  %15223 = vst [vmem:[#allocation12_spill] sm:$0xff] %v13803_v50 }
 0x3a9   : > { %v5478_v14 = vpack.c.bf16 %v5083_v23, %v5079_v11  ;;  %5597 = vst [vmem:[#allocation3 + $0x290] sm:$0xff] %v5477_v41  ;;  %v9225_v6 = vrot.slane %v13739_v44, %v15221_v17  ;;  %5569 = vst [vmem:[#allocation3 + $0x1b0] sm:$0xff] %v5449_v63  ;;  %v15003_v48 = vunpack.c.l.bf16 %v13787_v18  ;;  %v15004_v15 = vunpack.c.h.bf16 %v13787_v18  ;;  %v8450_v28 = vld [vmem:[#allocation3 + $0x1a8] sm:$0x3f]  ;;  %v6868_v11 = vld [vmem:[#allocation3 + $0x50] sm:$0xfe] }
 0x3aa   : > { %v6222_v5 = vsel %vm5807_vm8, %v10520_v33, %v15220_v35  ;;  %10683 = vrot.lane.b32.xlu0 %v10682_v21, %s11748_s20  ;;  %5570 = vst [vmem:[#allocation3 + $0x1b8] sm:$0xff] %v5450_v57  ;;  %5599 = vst [vmem:[#allocation3 + $0x2a0] sm:$0xff] %v5479_v39  ;;  %v5480_v33 = vpack.c.bf16 %v5156_v53, %v5152_v7  ;;  %v8479_v30 = vsel %vm4126_vm3, %v8477_v27, %v13773_v16  ;;  %v7348_v21 = vpop.permute.xlu0 %7347  ;;  %v15225_v23 = vld [vmem:[#allocation37_spill] sm:$0xff]  ;;  %v15226_v63 = vld [vmem:[#allocation34_spill] sm:$0xff] }
 0x3ab   : > { %5598 = vst [vmem:[#allocation3 + $0x298] sm:$0xff] %v5478_v14  ;;  %v8482_v40 = vsel %vm4126_vm3, %v8480_v31, %v8481_v1  ;;  %v8456_v34 = vunpack.c.h.bf16 %v8450_v28  ;;  %v8455_v19 = vunpack.c.l.bf16 %v8450_v28  ;;  %v15222_v32 = vunpack.c.h.bf16 %v13599_v43  ;;  %v6869_v43 = vld [vmem:[#allocation3 + $0x58] sm:$0xfe] }
 0x3ac   : > { %9232 = vrot.lane.b32.xlu1 %v9229_v47, %s11748_s20  ;;  %v10687_v7 = vpack.i.bf16 %v8481_v1, %v13773_v16  ;;  %v13808_v27 = vrot.slane %v15004_v15, 1  ;;  %v8483_v31 = vrot.slane %v15003_v48, 1  ;;  %5600 = vst [vmem:[#allocation3 + $0x2a8] sm:$0xff] %v5480_v33  ;;  %v15224_v26 = vunpack.c.h.bf16 %v13080_v46  ;;  %v5087_v47 = vpop.f32.mrb[108].mxu0  ;;  %v5160_v1 = vpop.f32.mrb[172].mxu1 }
 0x3ad   : > { %v6363_v59 = vrot.slane %v15222_v32, 2  ;;  %v15227_v44 = vmax.f32 %v15225_v23, %v15226_v63  ;;  %v8487_v57 = vrot.slane %v8456_v34, 1  ;;  %v8486_v16 = vrot.slane %v8455_v19, 1  ;;  %v5089_v53 = vpop.f32.mrb[109].mxu0  ;;  %v5162_v17 = vpop.f32.mrb[173].mxu1 }
 0x3ae   : > { %v6253_v41 = vadd.f32 %v6222_v5, %v15224_v26  ;;  %v15229_v39 = vunpack.i.h.bf16 %v13593_v2  ;;  %9230 = vrot.lane.b32.xlu0 %v9225_v6, %s11748_s20  ;;  %v10692_v14 = vpack.i.bf16 %v8482_v40, %v8479_v30  ;;  %v8485_v5 = vsel %vm4126_vm3, %v8483_v31, %v13808_v27  ;;  %v5091_v32 = vpop.f32.mrb[110].mxu0  ;;  %v5164_v19 = vpop.f32.mrb[174].mxu1 }
 0x3af   : > { %v13817_v25 = vmax.f32 %v15227_v44, %v7348_v21  ;;  %v6876_v28 = vunpack.c.l.bf16 %v6868_v11  ;;  %v8488_v34 = vsel %vm4126_vm3, %v8486_v16, %v8487_v57  ;;  %v6878_v21 = vunpack.c.h.bf16 %v6868_v11  ;;  %v5093_v6 = vpop.f32.mrb[111].mxu0  ;;  %v5166_v26 = vpop.f32.mrb[175].mxu1 }
 0x3b0   : > { %v6221_v35 = vsel %vm5807_vm8, %v10525_v42, %v15229_v39  ;;  %v6877_v2 = vunpack.c.l.bf16 %v6869_v43  ;;  %10688 = vrot.lane.b32.xlu1 %v10687_v7, %s11748_s20  ;;  %v5507_v42 = vpack.c.bf16 %v5091_v32, %v5087_v47  ;;  %v10702_v30 = vpack.i.bf16 %v8488_v34, %v8485_v5  ;;  %v13833_v16 = vld [vmem:[#allocation3 + $0x290] sm:$0x3f] }
 0x3b1   : > { %15228 = vst [vmem:[#allocation37_spill] sm:$0xff] %v13817_v25  ;;  %v5509_v40 = vpack.c.bf16 %v5164_v19, %v5160_v1  ;;  %v6879_v23 = vunpack.c.h.bf16 %v6869_v43  ;;  %v6364_v31 = vsel %vm6275_vm6, %v13666_v56, %v6363_v59  ;;  %v15230_v63 = vunpack.c.l.bf16 %v13080_v46  ;;  %v13841_v1 = vld [vmem:[#allocation3 + $0x38] sm:$0x7f]  ;;  %v5203_v32 = vpop.f32.mrb[112].mxu0  ;;  %v5276_v34 = vpop.f32.mrb[176].mxu1 }
 0x3b2   : > { %v5508_v39 = vpack.c.bf16 %v5093_v6, %v5089_v53  ;;  %v5510_v33 = vpack.c.bf16 %v5166_v26, %v5162_v17  ;;  %v13835_v11 = vadd.f32 %v6363_v59, %v6253_v41  ;;  %10693 = vrot.lane.b32.xlu0 %v10692_v14, %s11748_s20  ;;  %5627 = vst [vmem:[#allocation3 + $0x380] sm:$0xff] %v5507_v42  ;;  %v15001_v43 = vunpack.c.l.bf16 %v13833_v16  ;;  %v8451_v56 = vld [vmem:[#allocation3 + $0x298] sm:$0x3f]  ;;  %v13843_v53 = vld [vmem:[#allocation3 + $0x40] sm:$0x7f]  ;;  %v5205_v6 = vpop.f32.mrb[113].mxu0 }
 0x3b3   : > { %v6251_v44 = vadd.f32 %v6221_v35, %v15230_v63  ;;  %v10697_v7 = vpack.i.bf16 %v8487_v57, %v13808_v27  ;;  %5629 = vst [vmem:[#allocation3 + $0x390] sm:$0xff] %v5509_v40  ;;  %v15002_v47 = vunpack.c.h.bf16 %v13833_v16  ;;  %v8458_v46 = vunpack.c.h.bf16 %v8451_v56  ;;  %v13847_v14 = vld [vmem:[#allocation3 + $0x128] sm:$0x7f]  ;;  %v13859_v42 = vld [vmem:[#allocation3 + $0x140] sm:$0xfe]  ;;  %v5207_v63 = vpop.f32.mrb[114].mxu0 }
 0x3b4   : > { %5628 = vst [vmem:[#allocation3 + $0x388] sm:$0xff] %v5508_v39  ;;  %5630 = vst [vmem:[#allocation3 + $0x398] sm:$0xff] %v5510_v33  ;;  %v8457_v35 = vunpack.c.l.bf16 %v8451_v56  ;;  %v6908_v59 = vrot.slane %v6876_v28, 2  ;;  %v13845_v41 = vrot.slane %v6878_v21, 2  ;;  %10703 = vrot.lane.b32.xlu1 %v10702_v30, %s11748_s20  ;;  %v8489_v57 = vrot.slane %v15001_v43, 1  ;;  %v5278_v30 = vpop.f32.mrb[177].mxu1 }
 0x3b5   : > { %v8490_v27 = vrot.slane %v15002_v47, 1  ;;  %v6911_v5 = vrot.slane %v6877_v2, 2  ;;  %v13854_v17 = vrot.slane %v6879_v23, 2  ;;  %v13856_v33 = vadd.f32 %v6364_v31, %v6251_v44  ;;  %v13866_v31 = vld [vmem:[#allocation3 + $0x148] sm:$0xfe]  ;;  %v5280_v39 = vpop.f32.mrb[178].mxu1 }
 0x3b6   : > { %v8493_v28 = vrot.slane %v8458_v46, 1  ;;  %v8492_v19 = vrot.slane %v8457_v35, 1  ;;  %v6606_v21 = vunpack.c.h.bf16 %v13841_v1  ;;  %10698 = vrot.lane.b32.xlu0 %v10697_v7, %s11748_s20  ;;  %v6607_v40 = vunpack.c.h.bf16 %v13843_v53  ;;  %v13874_v35 = vld [vmem:[#allocation3 + $0xc8] sm:$0x7e]  ;;  %v5209_v12 = vpop.f32.mrb[115].mxu0 }
 0x3b7   : > { %v6604_v2 = vunpack.c.l.bf16 %v13841_v1  ;;  %v6605_v26 = vunpack.c.l.bf16 %v13843_v53  ;;  %v8491_v56 = vsel %vm4126_vm3, %v8489_v57, %v8490_v27  ;;  %v13872_v7 = vsel %vm6275_vm6, %v6908_v59, %v13845_v41  ;;  %v5282_v53 = vpop.f32.mrb[179].mxu1 }
 0x3b8   : > { %v10707_v44 = vpack.i.bf16 %v8493_v28, %v8490_v27  ;;  %v8494_v46 = vsel %vm4126_vm3, %v8492_v19, %v8493_v28  ;;  %v5421_v1 = vpack.c.bf16 %v5207_v63, %v5203_v32  ;;  %v5423_v38 = vpack.c.bf16 %v5280_v39, %v5276_v34  ;;  %v10529_v32 = vpop.permute.xlu1 %10528  ;;  %v10534_v39 = vpop.permute.xlu0 %10533 }
 0x3b9   : > { %v13878_v54 = vsel %vm6275_vm6, %v6911_v5, %v13854_v17  ;;  %v6880_v43 = vunpack.c.l.bf16 %v13859_v42  ;;  %v5424_v47 = vpack.c.bf16 %v5282_v53, %v5278_v30  ;;  %v5422_v27 = vpack.c.bf16 %v5209_v12, %v5205_v6  ;;  %v13881_v57 = vld [vmem:[#allocation3 + $0x380] sm:$0x3f]  ;;  %v5213_v22 = vpop.f32.mrb[116].mxu0  ;;  %v5286_v62 = vpop.f32.mrb[180].mxu1 }
 0x3ba   : > { %5541 = vst [vmem:[#allocation3 + $0xd0] sm:$0xff] %v5421_v1  ;;  %10708 = vrot.lane.b32.xlu0 %v10707_v44, %s11748_s20  ;;  %5543 = vst [vmem:[#allocation3 + $0xe0] sm:$0xff] %v5423_v38  ;;  %v10712_v34 = vpack.i.bf16 %v8494_v46, %v8491_v56  ;;  %v15008_v19 = vunpack.c.l.bf16 %v13881_v57  ;;  %v15007_v5 = vunpack.c.h.bf16 %v13881_v57  ;;  %v10531_v12 = vunpack.i.h.bf16 %v10529_v32 }
 0x3bb   : > { %v8452_v63 = vld [vmem:[#allocation3 + $0x388] sm:$0x3f]  ;;  %v10530_v6 = vunpack.i.l.bf16 %v10529_v32  ;;  %5544 = vst [vmem:[#allocation3 + $0xe8] sm:$0xff] %v5424_v47  ;;  %5542 = vst [vmem:[#allocation3 + $0xd8] sm:$0xff] %v5422_v27  ;;  %v10536_v1 = vunpack.i.h.bf16 %v10534_v39  ;;  %v10535_v15 = vunpack.i.l.bf16 %v10534_v39  ;;  %v5288_v39 = vpop.f32.mrb[181].mxu1 }
 0x3bc   : > { %v8460_v53 = vunpack.c.h.bf16 %v8452_v63  ;;  %v8459_v48 = vunpack.c.l.bf16 %v8452_v63  ;;  %v8496_v38 = vrot.slane %v15007_v5, 1  ;;  %v8495_v44 = vrot.slane %v15008_v19, 1  ;;  %v5215_v63 = vpop.f32.mrb[117].mxu0 }
 0x3bd   : > { %v6781_v56 = vsel %vm5807_vm8, %v10530_v6, %v10531_v12  ;;  %v6806_v46 = vadd.f32 %v10530_v6, %v6606_v21  ;;  %v6780_v27 = vsel %vm5807_vm8, %v10535_v15, %v10536_v1  ;;  %v6804_v28 = vadd.f32 %v10535_v15, %v6604_v2  ;;  %v5217_v19 = vpop.f32.mrb[118].mxu0  ;;  %v5290_v12 = vpop.f32.mrb[182].mxu1 }
 0x3be   : > { %v8499_v59 = vrot.slane %v8460_v53, 1  ;;  %v8498_v32 = vrot.slane %v8459_v48, 1  ;;  %v6807_v47 = vadd.f32 %v6781_v56, %v6607_v40  ;;  %10713 = vrot.lane.b32.xlu0 %v10712_v34, %s11748_s20  ;;  %v8497_v23 = vsel %vm4126_vm3, %v8495_v44, %v8496_v38  ;;  %v5292_v1 = vpop.f32.mrb[183].mxu1  ;;  %v5219_v34 = vpop.f32.mrb[119].mxu0 }
 0x3bf   : > { %v6883_v6 = vunpack.c.h.bf16 %v13866_v31  ;;  %v6805_v48 = vadd.f32 %v6780_v27, %v6605_v26  ;;  %v5451_v40 = vpack.c.bf16 %v5217_v19, %v5213_v22  ;;  %v5453_v53 = vpack.c.bf16 %v5290_v12, %v5286_v62  ;;  %v10539_v5 = vpop.permute.xlu1 %10538 }
 0x3c0   : > { %v10717_v30 = vpack.i.bf16 %v8499_v59, %v8496_v38  ;;  %v8500_v21 = vsel %vm4126_vm3, %v8498_v32, %v8499_v59  ;;  %v13900_v56 = vrot.slane %v6880_v43, 2  ;;  %v6950_v50 = vadd.f32 %v13845_v41, %v6806_v46  ;;  %v10544_v46 = vpop.permute.xlu0 %10543 }
 0x3c1   : > { %v6951_v44 = vadd.f32 %v13854_v17, %v6807_v47  ;;  %v5454_v15 = vpack.c.bf16 %v5292_v1, %v5288_v39  ;;  %v10722_v2 = vpack.i.bf16 %v8500_v21, %v8497_v23  ;;  %v8761_v38 = vld [vmem:[#allocation3 + $0xd0] sm:$0x7e]  ;;  %5571 = vst [vmem:[#allocation3 + $0x1c0] sm:$0xff] %v5451_v40  ;;  %5573 = vst [vmem:[#allocation3 + $0x1d0] sm:$0xff] %v5453_v53  ;;  %v15231_v22 = vunpack.c.h.bf16 %v13874_v35 }
 0x3c2   : > { %10718 = vrot.lane.b32.xlu1 %v10717_v30, %s11748_s20  ;;  %v8766_v59 = vunpack.c.h.bf16 %v8761_v38  ;;  %v8765_v26 = vunpack.c.l.bf16 %v8761_v38  ;;  %v15232_v43 = vunpack.c.l.bf16 %v13874_v35  ;;  %v10541_v32 = vunpack.i.h.bf16 %v10539_v5 }
 0x3c3   : > { %v8782_v62 = vrot.slane %v15231_v22, 3  ;;  %v10540_v41 = vunpack.i.l.bf16 %v10539_v5  ;;  %v6948_v17 = vadd.f32 %v13872_v7, %v6804_v28  ;;  %5574 = vst [vmem:[#allocation3 + $0x1d8] sm:$0xff] %v5454_v15  ;;  %v5452_v30 = vpack.c.bf16 %v5219_v34, %v5215_v63  ;;  %v13914_v5 = vpop.f32.mrb[120].mxu0  ;;  %v13916_v28 = vld [vmem:[#allocation3 + $0x130] sm:$0x7f]  ;;  %v10549_v63 = vpop.permute.xlu1 %10548 }
 0x3c4   : > { %v8781_v19 = vrot.slane %v15232_v43, 3  ;;  %v6949_v23 = vadd.f32 %v13878_v54, %v6805_v48  ;;  %v8785_v47 = vrot.slane %v8766_v59, 3  ;;  %v8784_v27 = vrot.slane %v8765_v26, 3  ;;  %v13921_v15 = vpop.f32.mrb[121].mxu0  ;;  %v15235_v43 = vld [vmem:[#allocation18_spill] sm:$0xff] }
 0x3c5   : > { %v7126_v12 = vsel %vm5807_vm8, %v10540_v41, %v10541_v32  ;;  %v7151_v21 = vadd.f32 %v10540_v41, %v6950_v50  ;;  %v10546_v40 = vunpack.i.h.bf16 %v10544_v46  ;;  %v10545_v53 = vunpack.i.l.bf16 %v10544_v46  ;;  %5572 = vst [vmem:[#allocation3 + $0x1c8] sm:$0xff] %v5452_v30  ;;  %v15234_v50 = vld [vmem:[#allocation16_spill] sm:$0xff]  ;;  %v13925_v26 = vpop.f32.mrb[122].mxu0  ;;  %v10554_v41 = vpop.permute.xlu0 %10553 }
 0x3c6   : > { %v8783_v39 = vsel %vm6984_vm7, %v8781_v19, %v8782_v62  ;;  %10723 = vrot.lane.b32.xlu1 %v10722_v2, %s11748_s20  ;;  %v7152_v7 = vadd.f32 %v7126_v12, %v6951_v44  ;;  %v15233_v54 = vunpack.c.h.bf16 %v13859_v42  ;;  %v10727_v1 = vpack.i.bf16 %v8785_v47, %v8782_v62  ;;  %v13927_v44 = vpop.f32.mrb[184].mxu1  ;;  %v13930_v30 = vpop.f32.mrb[123].mxu0 }
 0x3c7   : > { %v8786_v34 = vsel %vm6984_vm7, %v8784_v27, %v8785_v47  ;;  %v7201_v38 = vadd.f32 %v15234_v50, %v7151_v21  ;;  %v7125_v59 = vsel %vm5807_vm8, %v10545_v53, %v10546_v40  ;;  %v7149_v2 = vadd.f32 %v10545_v53, %v6948_v17  ;;  %v13935_v17 = vpop.f32.mrb[185].mxu1 }
 0x3c8   : > { %v6915_v48 = vrot.slane %v15233_v54, 2  ;;  %v10551_v22 = vunpack.i.h.bf16 %v10549_v63  ;;  %v7202_v19 = vadd.f32 %v15235_v43, %v7152_v7  ;;  %v7150_v32 = vadd.f32 %v7125_v59, %v6949_v23  ;;  %v13942_v7 = vpop.f32.mrb[186].mxu1 }
 0x3c9   : > { %v10550_v42 = vunpack.i.l.bf16 %v10549_v63  ;;  %v10732_v62 = vpack.i.bf16 %v8786_v34, %v8783_v39  ;;  %v7217_v46 = vmax.f32 %v7201_v38, 0.0  ;;  %v7199_v47 = vadd.f32 %v15234_v50, %v7149_v2  ;;  %v13950_v59 = vpop.f32.mrb[187].mxu1  ;;  %v13955_v25 = vpop.f32.mrb[124].mxu0 }
 0x3ca   : > { %v6611_v27 = vunpack.c.h.bf16 %v13916_v28  ;;  %v10555_v12 = vunpack.i.l.bf16 %v10554_v41  ;;  %10728 = vrot.lane.b32.xlu1 %v10727_v1, %s11748_s20  ;;  %v15236_v40 = vunpack.c.h.bf16 %v13847_v14  ;;  %v6608_v53 = vunpack.c.l.bf16 %v13847_v14  ;;  %v13962_v61 = vpop.f32.mrb[125].mxu0 }
 0x3cb   : > { %v6783_v21 = vsel %vm5807_vm8, %v10550_v42, %v10551_v22  ;;  %v10556_v39 = vunpack.i.h.bf16 %v10554_v41  ;;  %10733 = vrot.lane.b32.xlu0 %v10732_v62, %s11748_s20  ;;  %v7215_v63 = vmax.f32 %v7199_v47, 0.0  ;;  %v15237_v54 = vunpack.c.l.bf16 %v13866_v31  ;;  %v10559_v41 = vpop.permute.xlu1 %10558 }
 0x3cc   : > { %v6810_v23 = vadd.f32 %v10550_v42, %v15236_v40  ;;  %v6918_v1 = vrot.slane %v6883_v6, 2  ;;  %v6916_v38 = vsel %vm6275_vm6, %v13900_v56, %v6915_v48  ;;  %v7218_v2 = vmax.f32 %v7202_v19, 0.0  ;;  %v10564_v19 = vpop.permute.xlu0 %10563 }
 0x3cd   : > { %v6917_v34 = vrot.slane %v15237_v54, 2  ;;  %v7270_v14 = vsel %vm7233_vm13, %v7217_v46, -inf  ;;  %v7200_v22 = vadd.f32 %v15235_v43, %v7150_v32  ;;  %v6808_v42 = vadd.f32 %v10555_v12, %v6608_v53  ;;  %v13969_v53 = vld [vmem:[#allocation3 + $0x220] sm:$0x7f] }
 0x3ce   : > { %v7269_v62 = vsel %vm7231_vm12, %v7215_v63, -inf  ;;  %v6811_v47 = vadd.f32 %v6783_v21, %v6611_v27  ;;  %v10560_v40 = vunpack.i.l.bf16 %v10559_v41  ;;  %v6954_v54 = vadd.f32 %v6915_v48, %v6810_v23  ;;  %v6600_v23 = vld [vmem:[#allocation3 + $0x218] sm:$0x7f]  ;;  %v13973_v63 = vpop.f32.mrb[188].mxu1 }
 0x3cf   : > { %v13959_v31 = vadd.f32 %v15182_v37, %v13835_v11  ;;  %v6782_v6 = vsel %vm5807_vm8, %v10555_v12, %v10556_v39  ;;  %v10561_v56 = vunpack.i.h.bf16 %v10559_v41  ;;  %v6952_v46 = vadd.f32 %v6916_v38, %v6808_v42  ;;  %v13971_v11 = vpop.f32.mrb[126].mxu0  ;;  %v10569_v41 = vpop.permute.xlu1 %10568 }
 0x3d0   : > { %v13966_v32 = vadd.f32 %v15182_v37, %v13856_v33  ;;  %v7271_v27 = vmax.f32 %v7269_v62, %v7270_v14  ;;  %v6609_v48 = vunpack.c.l.bf16 %v13916_v28  ;;  %v10565_v21 = vunpack.i.l.bf16 %v10564_v19  ;;  %v9066_v37 = vld [vmem:[#allocation3 + $0xe0] sm:$0xfc]  ;;  %v13977_v33 = vpop.f32.mrb[189].mxu1  ;;  %v13981_v13 = vpop.f32.mrb[127].mxu0 }
 0x3d1   : > { %v7278_v12 = vsel %vm6984_vm7, %v7218_v2, -inf  ;;  %v7216_v39 = vmax.f32 %v7200_v22, 0.0  ;;  %v7155_v38 = vadd.f32 %v10560_v40, %v6954_v54  ;;  %v6919_v42 = vsel %vm6275_vm6, %v6917_v34, %v6918_v1  ;;  %v13979_v36 = vpop.f32.mrb[190].mxu1 }
 0x3d2   : > { %v6809_v14 = vadd.f32 %v6782_v6, %v6609_v48  ;;  %v6955_v28 = vadd.f32 %v6918_v1, %v6811_v47  ;;  %v7153_v62 = vadd.f32 %v10565_v21, %v6952_v46  ;;  %v10571_v58 = vunpack.i.h.bf16 %v10569_v41  ;;  %v13984_v54 = vpop.f32.mrb[191].mxu1 }
 0x3d3   : > { %v7128_v20 = vsel %vm5807_vm8, %v10560_v40, %v10561_v56  ;;  %v10566_v52 = vunpack.i.h.bf16 %v10564_v19  ;;  %v6614_v2 = vunpack.c.h.bf16 %v6600_v23  ;;  %v10570_v22 = vunpack.i.l.bf16 %v10569_v41  ;;  %v10574_v56 = vpop.permute.xlu0 %10573  ;;  %v9067_v19 = vld [vmem:[#allocation3 + $0xe8] sm:$0xfc] }
 0x3d4   : > { %v7272_v34 = vrot.slane %v7271_v27, 4  ;;  %v6615_v55 = vunpack.c.h.bf16 %v13969_v53  ;;  %v5481_v6 = vpack.c.bf16 %v13925_v26, %v13914_v5  ;;  %v9074_v1 = vunpack.c.l.bf16 %v9066_v37 }
 0x3d5   : > { %v13989_v47 = vmax.f32 %v7216_v39, %v7278_v12  ;;  %v13992_v46 = vadd.f32 %v15234_v50, %v7155_v38  ;;  %v13995_v48 = vadd.f32 %v15234_v50, %v7153_v62  ;;  %v6612_v40 = vunpack.c.l.bf16 %v6600_v23 }
 0x3d6   : > { %v13997_v41 = vadd.f32 %v7128_v20, %v6955_v28  ;;  %v13999_v49 = vadd.f32 %v6919_v42, %v6809_v14  ;;  %v6785_v10 = vsel %vm5807_vm8, %v10570_v22, %v10571_v58  ;;  %v10576_v8 = vunpack.i.h.bf16 %v10574_v56  ;;  %5601 = vst [vmem:[#allocation3 + $0x2b0] sm:$0xff] %v5481_v6  ;;  %v6872_v20 = vld [vmem:[#allocation3 + $0x230] sm:$0xfe]  ;;  %v10579_v6 = vpop.permute.xlu1 %10578 }
 0x3d7   : > { %v14003_v5 = vsel %vm5807_vm8, %v10565_v21, %v10566_v52  ;;  %v6613_v26 = vunpack.c.l.bf16 %v13969_v53  ;;  %v10575_v12 = vunpack.i.l.bf16 %v10574_v56  ;;  %v9076_v39 = vunpack.c.h.bf16 %v9066_v37 }
 0x3d8   : > { %v14006_v38 = vmax.f32 %v7271_v27, %v7272_v34  ;;  %v9077_v23 = vunpack.c.h.bf16 %v9067_v19  ;;  %v9106_v62 = vrot.slane %v9074_v1, 5  ;;  %v9075_v9 = vunpack.c.l.bf16 %v9067_v19  ;;  %v6873_v34 = vld [vmem:[#allocation3 + $0x238] sm:$0xfe]  ;;  %v10584_v1 = vpop.permute.xlu0 %10583 }
 0x3d9   : > { %v6814_v58 = vadd.f32 %v10570_v22, %v6614_v2  ;;  %v6815_v28 = vadd.f32 %v6785_v10, %v6615_v55  ;;  %v6784_v52 = vsel %vm5807_vm8, %v10575_v12, %v10576_v8  ;;  %v9107_v21 = vrot.slane %v9076_v39, 5  ;;  %v14014_v39 = vld [vmem:[#allocation3 + $0x1b8] sm:$0x7e] }
 0x3da   : > { %v9110_v29 = vrot.slane %v9077_v23, 5  ;;  %v9109_v53 = vrot.slane %v9075_v9, 5  ;;  %v6812_v56 = vadd.f32 %v10575_v12, %v6612_v40  ;;  %v6884_v27 = vunpack.c.l.bf16 %v6872_v20 }
 0x3db   : > { %v6886_v37 = vunpack.c.h.bf16 %v6872_v20  ;;  %v9108_v45 = vsel %vm9021_vm15, %v9106_v62, %v9107_v21  ;;  %v10581_v14 = vunpack.i.h.bf16 %v10579_v6  ;;  %v6813_v2 = vadd.f32 %v6784_v52, %v6613_v26 }
 0x3dc   : > { %v10737_v19 = vpack.i.bf16 %v9110_v29, %v9107_v21  ;;  %v9111_v42 = vsel %vm9021_vm15, %v9109_v53, %v9110_v29  ;;  %v6920_v55 = vrot.slane %v6884_v27, 2  ;;  %v10580_v8 = vunpack.i.l.bf16 %v10579_v6 }
 0x3dd   : > { %v10742_v10 = vpack.i.bf16 %v9111_v42, %v9108_v45  ;;  %v6921_v22 = vrot.slane %v6886_v37, 2  ;;  %v6885_v9 = vunpack.c.l.bf16 %v6873_v34  ;;  %v6887_v40 = vunpack.c.h.bf16 %v6873_v34  ;;  %v8762_v45 = vld [vmem:[#allocation3 + $0x1c0] sm:$0x7e] }
 0x3de   : > { %10738 = vrot.lane.b32.xlu1 %v10737_v19, %s11748_s20  ;;  %v10586_v12 = vunpack.i.h.bf16 %v10584_v1  ;;  %v10585_v20 = vunpack.i.l.bf16 %v10584_v1  ;;  %v5482_v29 = vpack.c.bf16 %v13930_v30, %v13921_v15  ;;  %v7130_v52 = vsel %vm5807_vm8, %v10580_v8, %v10581_v14 }
 0x3df   : > { %10743 = vrot.lane.b32.xlu0 %v10742_v10, %s11748_s20  ;;  %v6958_v23 = vadd.f32 %v6921_v22, %v6814_v58  ;;  %v6922_v62 = vsel %vm6275_vm6, %v6920_v55, %v6921_v22  ;;  %v6923_v26 = vrot.slane %v6885_v9, 2  ;;  %v6924_v42 = vrot.slane %v6887_v40, 2 }
 0x3e0   : > { %v6956_v6 = vadd.f32 %v6922_v62, %v6812_v56  ;;  %v7129_v53 = vsel %vm5807_vm8, %v10585_v20, %v10586_v12  ;;  %5602 = vst [vmem:[#allocation3 + $0x2b8] sm:$0xff] %v5482_v29  ;;  %v15019_v27 = vunpack.c.l.bf16 %v14014_v39  ;;  %v15020_v58 = vunpack.c.h.bf16 %v14014_v39  ;;  %v10589_v12 = vpop.permute.xlu1 %10588 }
 0x3e1   : > { %v7159_v21 = vadd.f32 %v10580_v8, %v6958_v23  ;;  %v6959_v37 = vadd.f32 %v6924_v42, %v6815_v28  ;;  %v6925_v34 = vsel %vm6275_vm6, %v6923_v26, %v6924_v42  ;;  %v8768_v19 = vunpack.c.h.bf16 %v8762_v45 }
 0x3e2   : > { %v7157_v1 = vadd.f32 %v10585_v20, %v6956_v6  ;;  %v6957_v30 = vadd.f32 %v6925_v34, %v6813_v2  ;;  %v8788_v14 = vrot.slane %v15020_v58, 3  ;;  %v8767_v56 = vunpack.c.l.bf16 %v8762_v45 }
 0x3e3   : > { %v7209_v15 = vadd.f32 %v15234_v50, %v7159_v21  ;;  %v7160_v10 = vadd.f32 %v7130_v52, %v6959_v37  ;;  %v8791_v22 = vrot.slane %v8768_v19, 3  ;;  %v8787_v8 = vrot.slane %v15019_v27, 3 }
 0x3e4   : > { %v7207_v55 = vadd.f32 %v15234_v50, %v7157_v1  ;;  %v14033_v28 = vadd.f32 %v15235_v43, %v13997_v41  ;;  %v7154_v9 = vadd.f32 %v14003_v5, %v13999_v49  ;;  %v8790_v2 = vrot.slane %v8767_v56, 3  ;;  %v6602_v5 = vld [vmem:[#allocation3 + $0x308] sm:$0x7f] }
 0x3e5   : > { %v7225_v40 = vmax.f32 %v7209_v15, 0.0  ;;  %v7158_v23 = vadd.f32 %v7129_v53, %v6957_v30  ;;  %v10747_v20 = vpack.i.bf16 %v8791_v22, %v8788_v14  ;;  %v8789_v29 = vsel %vm6984_vm7, %v8787_v8, %v8788_v14  ;;  %v10594_v15 = vpop.permute.xlu0 %10593 }
 0x3e6   : > { %v7223_v62 = vmax.f32 %v7207_v55, 0.0  ;;  %v15238_v45 = vmax.f32 %v13992_v46, 0.0  ;;  %v15239_v42 = vmax.f32 %v13995_v48, 0.0  ;;  %v14045_v52 = vadd.f32 %v15235_v43, %v7160_v10  ;;  %v6603_v46 = vld [vmem:[#allocation3 + $0x310] sm:$0x7f] }
 0x3e7   : > { %v8792_v49 = vsel %vm6984_vm7, %v8790_v2, %v8791_v22  ;;  %v7304_v6 = vsel %vm7233_vm13, %v7225_v40, -inf  ;;  %10748 = vrot.lane.b32.xlu0 %v10747_v20, %s11748_s20  ;;  %v10591_v37 = vunpack.i.h.bf16 %v10589_v12  ;;  %v7222_v34 = vmax.f32 %v14033_v28, 0.0  ;;  %v9068_v55 = vld [vmem:[#allocation3 + $0x1d0] sm:$0xfc]  ;;  %v9069_v22 = vld [vmem:[#allocation3 + $0x1d8] sm:$0xfc] }
 0x3e8   : > { %v7287_v26 = vsel %vm7233_vm13, %v15238_v45, -inf  ;;  %v7286_v41 = vsel %vm7231_vm12, %v15239_v42, -inf  ;;  %v7303_v21 = vsel %vm7231_vm12, %v7223_v62, -inf  ;;  %v10752_v53 = vpack.i.bf16 %v8792_v49, %v8789_v29  ;;  %v10599_v45 = vpop.permute.xlu1 %10598 }
 0x3e9   : > { %v14053_v48 = vadd.f32 %v15235_v43, %v7154_v9  ;;  %v10590_v1 = vunpack.i.l.bf16 %v10589_v12  ;;  %v5511_v19 = vpack.c.bf16 %v13971_v11, %v13955_v25  ;;  %v14057_v30 = vmax.f32 %v7286_v41, %v7287_v26  ;;  %v6874_v11 = vld [vmem:[#allocation3 + $0x320] sm:$0xfe] }
 0x3ea   : > { %v14060_v14 = vadd.f32 %v15235_v43, %v7158_v23  ;;  %10753 = vrot.lane.b32.xlu1 %v10752_v53, %s11748_s20  ;;  %v6618_v56 = vunpack.c.h.bf16 %v6602_v5  ;;  %v5483_v10 = vpack.c.bf16 %v13942_v7, %v13927_v44  ;;  %v7226_v8 = vmax.f32 %v14045_v52, 0.0  ;;  %v14105_v52 = vld [vmem:[#allocation3 + $0x2a8] sm:$0x7e] }
 0x3eb   : > { %v14066_v9 = vmax.f32 %v7303_v21, %v7304_v6  ;;  %v6619_v40 = vunpack.c.h.bf16 %v6603_v46  ;;  %v6787_v25 = vsel %vm5807_vm8, %v10590_v1, %v10591_v37  ;;  %5631 = vst [vmem:[#allocation3 + $0x3a0] sm:$0xff] %v5511_v19  ;;  %v6616_v2 = vunpack.c.l.bf16 %v6602_v5  ;;  %v6875_v6 = vld [vmem:[#allocation3 + $0x328] sm:$0xfe]  ;;  %v10604_v19 = vpop.permute.xlu0 %10603 }
 0x3ec   : > { %5603 = vst [vmem:[#allocation3 + $0x2c0] sm:$0xff] %v5483_v10  ;;  %v10596_v12 = vunpack.i.h.bf16 %v10594_v15  ;;  %v10595_v23 = vunpack.i.l.bf16 %v10594_v15  ;;  %v5484_v62 = vpack.c.bf16 %v13950_v59, %v13935_v17  ;;  %v6818_v20 = vadd.f32 %v10590_v1, %v6618_v56 }
 0x3ed   : > { %v6617_v44 = vunpack.c.l.bf16 %v6603_v46  ;;  %v9080_v7 = vunpack.c.h.bf16 %v9068_v55  ;;  %v9081_v29 = vunpack.c.h.bf16 %v9069_v22  ;;  %v6819_v26 = vadd.f32 %v6787_v25, %v6619_v40 }
 0x3ee   : > { %v6786_v42 = vsel %vm5807_vm8, %v10595_v23, %v10596_v12  ;;  %5604 = vst [vmem:[#allocation3 + $0x2c8] sm:$0xff] %v5484_v62  ;;  %v9078_v41 = vunpack.c.l.bf16 %v9068_v55  ;;  %v6888_v49 = vunpack.c.l.bf16 %v6874_v11  ;;  %v6816_v21 = vadd.f32 %v10595_v23, %v6616_v2 }
 0x3ef   : > { %v9113_v53 = vrot.slane %v9080_v7, 5  ;;  %v9116_v5 = vrot.slane %v9081_v29, 5  ;;  %v9079_v37 = vunpack.c.l.bf16 %v9069_v22  ;;  %v6817_v15 = vadd.f32 %v6786_v42, %v6617_v44 }
 0x3f0   : > { %v6890_v10 = vunpack.c.h.bf16 %v6874_v11  ;;  %v6926_v17 = vrot.slane %v6888_v49, 2  ;;  %v10601_v59 = vunpack.i.h.bf16 %v10599_v45  ;;  %v10600_v1 = vunpack.i.l.bf16 %v10599_v45 }
 0x3f1   : > { %v10757_v46 = vpack.i.bf16 %v9116_v5, %v9113_v53  ;;  %v6889_v56 = vunpack.c.l.bf16 %v6875_v6  ;;  %v6891_v27 = vunpack.c.h.bf16 %v6875_v6  ;;  %v9112_v40 = vrot.slane %v9078_v41, 5 }
 0x3f2   : > { %v6927_v25 = vrot.slane %v6890_v10, 2  ;;  %v10606_v12 = vunpack.i.h.bf16 %v10604_v19  ;;  %v7274_v55 = vrot.slane %v14006_v38, 2  ;;  %v10605_v62 = vunpack.i.l.bf16 %v10604_v19 }
 0x3f3   : > { %10758 = vrot.lane.b32.xlu0 %v10757_v46, %s11748_s20  ;;  %v6929_v2 = vrot.slane %v6889_v56, 2  ;;  %v6930_v23 = vrot.slane %v6891_v27, 2  ;;  %v7280_v22 = vrot.slane %v13989_v47, 4  ;;  %v7132_v11 = vsel %vm5807_vm8, %v10600_v1, %v10601_v59 }
 0x3f4   : > { %v6962_v44 = vadd.f32 %v6927_v25, %v6818_v20  ;;  %v6928_v7 = vsel %vm6275_vm6, %v6926_v17, %v6927_v25  ;;  %v7275_v29 = vmax.f32 %v14006_v38, %v7274_v55  ;;  %v9115_v6 = vrot.slane %v9079_v37, 5 }
 0x3f5   : > { %v6963_v45 = vadd.f32 %v6930_v23, %v6819_v26  ;;  %v6931_v42 = vsel %vm6275_vm6, %v6929_v2, %v6930_v23  ;;  %v6960_v41 = vadd.f32 %v6928_v7, %v6816_v21  ;;  %v7281_v49 = vmax.f32 %v13989_v47, %v7280_v22 }
 0x3f6   : > { %v7163_v10 = vadd.f32 %v10600_v1, %v6962_v44  ;;  %v6961_v46 = vadd.f32 %v6931_v42, %v6817_v15  ;;  %v7276_v27 = vrot.slane %v7275_v29, 1  ;;  %v7131_v56 = vsel %vm5807_vm8, %v10605_v62, %v10606_v12  ;;  %v10609_v1 = vpop.permute.xlu0 %10608 }
 0x3f7   : > { %v7164_v19 = vadd.f32 %v7132_v11, %v6963_v45  ;;  %v7161_v20 = vadd.f32 %v10605_v62, %v6960_v41  ;;  %v7282_v58 = vrot.slane %v7281_v49, 2  ;;  %v7295_v17 = vsel %vm6984_vm7, %v7222_v34, -inf  ;;  %v14103_v62 = vld [vmem:[#allocation3 + $0x70] sm:$0x3f] }
 0x3f8   : > { %v7220_v38 = vmax.f32 %v14053_v48, 0.0  ;;  %v7289_v26 = vrot.slane %v14057_v30, 4  ;;  %v7277_v21 = vmax.f32 %v7275_v29, %v7276_v27  ;;  %v7224_v47 = vmax.f32 %v14060_v14, 0.0 }
 0x3f9   : > { %v7213_v37 = vadd.f32 %v15234_v50, %v7163_v10  ;;  %v7211_v15 = vadd.f32 %v15234_v50, %v7161_v20  ;;  %v7283_v59 = vmax.f32 %v7281_v49, %v7282_v58  ;;  %v7306_v25 = vrot.slane %v14066_v9, 4  ;;  %v14098_v58 = vld [vmem:[#allocation3 + $0x68] sm:$0x3f] }
 0x3fa   : > { %v7162_v12 = vadd.f32 %v7131_v56, %v6961_v46  ;;  %7365 = vrot.lane.b32.xlu1 %v7277_v21, %s11748_s20  ;;  %v9114_v28 = vsel %vm9021_vm15, %v9112_v40, %v9113_v53  ;;  %v9117_v34 = vsel %vm9021_vm15, %v9115_v6, %v9116_v5  ;;  %v7312_v14 = vsel %vm6984_vm7, %v7226_v8, -inf  ;;  %v8763_v8 = vld [vmem:[#allocation3 + $0x2b0] sm:$0x7e]  ;;  %v14126_v56 = vpop.permute.xlu1 %10613 }
 0x3fb   : > { %v7214_v55 = vadd.f32 %v15235_v43, %v7164_v19  ;;  %v7284_v50 = vrot.slane %v7283_v59, 1  ;;  %v7290_v2 = vmax.f32 %v14057_v30, %v7289_v26  ;;  %v14101_v23 = vmax.f32 %v7220_v38, %v7295_v17 }
 0x3fc   : > { %v10611_v53 = vunpack.i.h.bf16 %v10609_v1  ;;  %v10610_v40 = vunpack.i.l.bf16 %v10609_v1  ;;  %v7229_v5 = vmax.f32 %v7213_v37, 0.0  ;;  %v7227_v22 = vmax.f32 %v7211_v15, 0.0 }
 0x3fd   : > { %v7285_v44 = vmax.f32 %v7283_v59, %v7284_v50  ;;  %v10762_v11 = vpack.i.bf16 %v9117_v34, %v9114_v28  ;;  %v14108_v7 = vmax.f32 %v14066_v9, %v7306_v25  ;;  %v14110_v29 = vmax.f32 %v7224_v47, %v7312_v14  ;;  %v14139_v59 = vld [vmem:[#allocation3 + $0x398] sm:$0x7e]  ;;  %v10619_v50 = vpop.permute.xlu0 %10618 }
 0x3fe   : > { %v14113_v30 = vadd.f32 %v15235_v43, %v7162_v12  ;;  %v7423_v45 = vunpack.c.h.bf16 %v14098_v58  ;;  %v7230_v42 = vmax.f32 %v7214_v55, 0.0  ;;  %v7424_v41 = vunpack.c.h.bf16 %v14103_v62  ;;  %v8764_v12 = vld [vmem:[#allocation3 + $0x3a0] sm:$0x7e] }
 0x3ff   : > { %7367 = vrot.lane.b32.xlu0 %v7285_v44, %s11748_s20  ;;  %10763 = vrot.lane.b32.xlu1 %v10762_v11, %s11748_s20  ;;  %v5513_v49 = vpack.c.bf16 %v13979_v36, %v13973_v63  ;;  %v15023_v9 = vunpack.c.l.bf16 %v14105_v52  ;;  %v7598_v6 = vsel %vm5807_vm8, %v10610_v40, %v10611_v53  ;;  %v15024_v10 = vunpack.c.h.bf16 %v14105_v52 }
 0x400   : > { %v8770_v43 = vunpack.c.h.bf16 %v8763_v8  ;;  %v8769_v46 = vunpack.c.l.bf16 %v8763_v8  ;;  %v7321_v27 = vsel %vm7233_vm13, %v7229_v5, -inf  ;;  %v7320_v19 = vsel %vm7231_vm12, %v7227_v22, -inf }
 0x401   : > { %5633 = vst [vmem:[#allocation3 + $0x3b0] sm:$0xff] %v5513_v49  ;;  %v5514_v20 = vpack.c.bf16 %v13984_v54, %v13977_v33  ;;  %v7291_v17 = vrot.slane %v7290_v2, 2  ;;  %v7228_v36 = vmax.f32 %v14113_v30, 0.0  ;;  %v14131_v63 = vadd.f32 %v10610_v40, %v7423_v45  ;;  %v9070_v45 = vld [vmem:[#allocation3 + $0x2c0] sm:$0xfc] }
 0x402   : > { %v8794_v38 = vrot.slane %v15024_v10, 3  ;;  %v8797_v26 = vrot.slane %v8770_v43, 3  ;;  %v14135_v21 = vadd.f32 %v7598_v6, %v7424_v41  ;;  %v8796_v47 = vrot.slane %v8769_v46, 3  ;;  %v14151_v49 = vld [vmem:[#allocation3 + $0x158] sm:$0x3f] }
 0x403   : > { %5634 = vst [vmem:[#allocation3 + $0x3b8] sm:$0xff] %v5514_v20  ;;  %v7292_v37 = vmax.f32 %v7290_v2, %v7291_v17  ;;  %v8793_v15 = vrot.slane %v15023_v9, 3  ;;  %v7329_v33 = vsel %vm6984_vm7, %v7230_v42, -inf  ;;  %v7322_v54 = vmax.f32 %v7320_v19, %v7321_v27  ;;  %v9071_v42 = vld [vmem:[#allocation3 + $0x2c8] sm:$0xfc]  ;;  %v10624_v20 = vpop.permute.xlu1 %10623 }
 0x404   : > { %v10616_v1 = vunpack.i.h.bf16 %v14126_v56  ;;  %v10767_v25 = vpack.i.bf16 %v8797_v26, %v8794_v38  ;;  %v10615_v28 = vunpack.i.l.bf16 %v14126_v56  ;;  %v8798_v55 = vsel %vm6984_vm7, %v8796_v47, %v8797_v26  ;;  %v14153_v6 = vld [vmem:[#allocation3 + $0x160] sm:$0x3f] }
 0x405   : > { %v7293_v34 = vrot.slane %v7292_v37, 1  ;;  %v8795_v14 = vsel %vm6984_vm7, %v8793_v15, %v8794_v38  ;;  %v7421_v2 = vunpack.c.l.bf16 %v14098_v58  ;;  %v15021_v40 = vunpack.c.l.bf16 %v14139_v59 }
 0x406   : > { %10768 = vrot.lane.b32.xlu0 %v10767_v25, %s11748_s20  ;;  %v10772_v53 = vpack.i.bf16 %v8798_v55, %v8795_v14  ;;  %v15022_v5 = vunpack.c.h.bf16 %v14139_v59  ;;  %v7422_v22 = vunpack.c.l.bf16 %v14103_v62  ;;  %v8772_v11 = vunpack.c.h.bf16 %v8764_v12 }
 0x407   : > { %v7294_v44 = vmax.f32 %v7292_v37, %v7293_v34  ;;  %v8771_v8 = vunpack.c.l.bf16 %v8764_v12  ;;  %v7323_v41 = vrot.slane %v7322_v54, 4  ;;  %v10621_v58 = vunpack.i.h.bf16 %v10619_v50 }
 0x408   : > { %v10620_v43 = vunpack.i.l.bf16 %v10619_v50  ;;  %v8800_v46 = vrot.slane %v15022_v5, 3  ;;  %v7597_v27 = vsel %vm5807_vm8, %v10615_v28, %v10616_v1  ;;  %v8803_v62 = vrot.slane %v8772_v11, 3 }
 0x409   : > { %7369 = vrot.lane.b32.xlu1 %v7294_v44, %s11748_s20  ;;  %v8802_v19 = vrot.slane %v8771_v8, 3  ;;  %v9082_v56 = vunpack.c.l.bf16 %v9070_v45  ;;  %v9084_v17 = vunpack.c.h.bf16 %v9070_v45  ;;  %v9085_v38 = vunpack.c.h.bf16 %v9071_v42 }
 0x40a   : > { %10773 = vrot.lane.b32.xlu0 %v10772_v53, %s11748_s20  ;;  %v9083_v26 = vunpack.c.l.bf16 %v9071_v42  ;;  %v8799_v47 = vrot.slane %v15021_v40, 3  ;;  %v7427_v37 = vunpack.c.h.bf16 %v14151_v49  ;;  %v7428_v15 = vunpack.c.h.bf16 %v14153_v6 }
 0x40b   : > { %v10787_v25 = vpack.i.bf16 %v8803_v62, %v8800_v46  ;;  %v9118_v1 = vrot.slane %v9082_v56, 5  ;;  %v7600_v12 = vsel %vm5807_vm8, %v10620_v43, %v10621_v58  ;;  %v9119_v34 = vrot.slane %v9084_v17, 5 }
 0x40c   : > { %v9122_v14 = vrot.slane %v9085_v38, 5  ;;  %v9121_v55 = vrot.slane %v9083_v26, 5  ;;  %v10626_v50 = vunpack.i.h.bf16 %v10624_v20  ;;  %v10625_v53 = vunpack.i.l.bf16 %v10624_v20  ;;  %v10629_v38 = vpop.permute.xlu0 %10628 }
 0x40d   : > { %10788 = vrot.lane.b32.xlu1 %v10787_v25, %s11748_s20  ;;  %v8801_v44 = vsel %vm6984_vm7, %v8799_v47, %v8800_v46  ;;  %v8804_v11 = vsel %vm6984_vm7, %v8802_v19, %v8803_v62  ;;  %v9120_v42 = vsel %vm9021_vm15, %v9118_v1, %v9119_v34  ;;  %v14170_v56 = vmax.f32 %v7322_v54, %v7323_v41  ;;  %v10634_v54 = vpop.permute.xlu1 %10633  ;;  %v9072_v41 = vld [vmem:[#allocation3 + $0x3b0] sm:$0xfc] }
 0x40e   : > { %v10777_v8 = vpack.i.bf16 %v9122_v14, %v9119_v34  ;;  %v10792_v45 = vpack.i.bf16 %v8804_v11, %v8801_v44  ;;  %v9123_v48 = vsel %vm9021_vm15, %v9121_v55, %v9122_v14  ;;  %v14174_v58 = vmax.f32 %v7228_v36, %v7329_v33 }
 0x40f   : > { %v14176_v17 = vadd.f32 %v10615_v28, %v7421_v2  ;;  %v7308_v20 = vrot.slane %v14108_v7, 2  ;;  %v14179_v46 = vadd.f32 %v7597_v27, %v7422_v22  ;;  %v14181_v62 = vadd.f32 %v10620_v43, %v7427_v37  ;;  %v9073_v2 = vld [vmem:[#allocation3 + $0x3b8] sm:$0xfc] }
 0x410   : > { %v14183_v19 = vadd.f32 %v7600_v12, %v7428_v15  ;;  %10778 = vrot.lane.b32.xlu0 %v10777_v8, %s11748_s20  ;;  %v10782_v26 = vpack.i.bf16 %v9123_v48, %v9120_v42  ;;  %v7425_v30 = vunpack.c.l.bf16 %v14151_v49  ;;  %v7426_v36 = vunpack.c.l.bf16 %v14153_v6  ;;  %v7417_v49 = vld [vmem:[#allocation3 + $0x248] sm:$0x3f]  ;;  %v7418_v6 = vld [vmem:[#allocation3 + $0x250] sm:$0x3f] }
 0x411   : > { %10793 = vrot.lane.b32.xlu1 %v10792_v45, %s11748_s20  ;;  %v7309_v33 = vmax.f32 %v14108_v7, %v7308_v20  ;;  %v7297_v28 = vrot.slane %v14101_v23, 4  ;;  %v7599_v22 = vsel %vm5807_vm8, %v10625_v53, %v10626_v50  ;;  %v10631_v43 = vunpack.i.h.bf16 %v10629_v38 }
 0x412   : > { %v10630_v27 = vunpack.i.l.bf16 %v10629_v38  ;;  %v9086_v47 = vunpack.c.l.bf16 %v9072_v41  ;;  %v10636_v48 = vunpack.i.h.bf16 %v10634_v54  ;;  %v9088_v25 = vunpack.c.h.bf16 %v9072_v41 }
 0x413   : > { %v7310_v37 = vrot.slane %v7309_v33, 1  ;;  %v7298_v15 = vmax.f32 %v14101_v23, %v7297_v28  ;;  %v9089_v1 = vunpack.c.h.bf16 %v9073_v2  ;;  %v9087_v7 = vunpack.c.l.bf16 %v9073_v2 }
 0x414   : > { %10783 = vrot.lane.b32.xlu0 %v10782_v26, %s11748_s20  ;;  %v9124_v12 = vrot.slane %v9086_v47, 5  ;;  %v7314_v34 = vrot.slane %v14110_v29, 4  ;;  %v10635_v55 = vunpack.i.l.bf16 %v10634_v54  ;;  %v9125_v44 = vrot.slane %v9088_v25, 5 }
 0x415   : > { %v7311_v14 = vmax.f32 %v7309_v33, %v7310_v37  ;;  %v7299_v50 = vrot.slane %v7298_v15, 2  ;;  %v14195_v11 = vadd.f32 %v10625_v53, %v7425_v30  ;;  %v9128_v8 = vrot.slane %v9089_v1, 5  ;;  %v14211_v1 = vld [vmem:[#allocation3 + $0x340] sm:$0x3f] }
 0x416   : > { %v9127_v45 = vrot.slane %v9087_v7, 5  ;;  %v7315_v23 = vmax.f32 %v14110_v29, %v7314_v34  ;;  %v7431_v42 = vunpack.c.h.bf16 %v7417_v49  ;;  %v7432_v38 = vunpack.c.h.bf16 %v7418_v6  ;;  %v14205_v29 = vld [vmem:[#allocation3 + $0x338] sm:$0x3f]  ;;  %v7685_v7 = vld [vmem:[#allocation3 + $0x80] sm:$0x7e] }
 0x417   : > { %v7602_v20 = vsel %vm5807_vm8, %v10630_v27, %v10631_v43  ;;  %7373 = vrot.lane.b32.xlu1 %v7311_v14, %s11748_s20  ;;  %v7300_v26 = vmax.f32 %v7298_v15, %v7299_v50  ;;  %v10797_v41 = vpack.i.bf16 %v9128_v8, %v9125_v44  ;;  %v9126_v33 = vsel %vm9021_vm15, %v9124_v12, %v9125_v44  ;;  %v7686_v34 = vld [vmem:[#allocation3 + $0x88] sm:$0x7e] }
 0x418   : > { %v7316_v28 = vrot.slane %v7315_v23, 2  ;;  %v9129_v54 = vsel %vm9021_vm15, %v9127_v45, %v9128_v8  ;;  %v14202_v2 = vadd.f32 %v7599_v22, %v7426_v36  ;;  %v7429_v53 = vunpack.c.l.bf16 %v7417_v49  ;;  %v10639_v36 = vpop.permute.xlu0 %10638  ;;  %v14223_v8 = vpop.permute.xlu1 %10643 }
 0x419   : > { %v7601_v30 = vsel %vm5807_vm8, %v10635_v55, %v10636_v48  ;;  %v7301_v47 = vrot.slane %v7300_v26, 1  ;;  %v14207_v37 = vadd.f32 %v10630_v27, %v7431_v42  ;;  %v14209_v43 = vadd.f32 %v7602_v20, %v7432_v38  ;;  %v8030_v38 = vld [vmem:[#allocation3 + $0x98] sm:$0xfc] }
 0x41a   : > { %v7430_v25 = vunpack.c.l.bf16 %v7418_v6  ;;  %v7317_v15 = vmax.f32 %v7315_v23, %v7316_v28  ;;  %v10802_v22 = vpack.i.bf16 %v9129_v54, %v9126_v33  ;;  %v7331_v49 = vrot.slane %v14174_v58, 4 }
 0x41b   : > { %v7302_v12 = vmax.f32 %v7300_v26, %v7301_v47  ;;  %10798 = vrot.lane.b32.xlu1 %v10797_v41, %s11748_s20  ;;  %v7325_v48 = vrot.slane %v14170_v56, 2  ;;  %v14216_v14 = vadd.f32 %v10635_v55, %v7429_v53  ;;  %v7435_v6 = vunpack.c.h.bf16 %v14205_v29 }
 0x41c   : > { %v14218_v27 = vadd.f32 %v7601_v30, %v7430_v25  ;;  %v7318_v50 = vrot.slane %v7317_v15, 1  ;;  %v7332_v45 = vmax.f32 %v14174_v58, %v7331_v49  ;;  %v7695_v42 = vunpack.c.h.bf16 %v7685_v7  ;;  %v8031_v30 = vld [vmem:[#allocation3 + $0xa0] sm:$0xfc] }
 0x41d   : > { %7371 = vrot.lane.b32.xlu0 %v7302_v12, %s11748_s20  ;;  %v7326_v23 = vmax.f32 %v14170_v56, %v7325_v48  ;;  %v10641_v20 = vunpack.i.h.bf16 %v10639_v36  ;;  %v7693_v55 = vunpack.c.l.bf16 %v7685_v7  ;;  %v7694_v26 = vunpack.c.l.bf16 %v7686_v34  ;;  %v10649_v12 = vpop.permute.xlu0 %10648 }
 0x41e   : > { %v7696_v41 = vunpack.c.h.bf16 %v7686_v34  ;;  %v7319_v28 = vmax.f32 %v7317_v15, %v7318_v50  ;;  %v10640_v33 = vunpack.i.l.bf16 %v10639_v36  ;;  %v7333_v54 = vrot.slane %v7332_v45, 2 }
 0x41f   : > { %10803 = vrot.lane.b32.xlu1 %v10802_v22, %s11748_s20  ;;  %v7327_v53 = vrot.slane %v7326_v23, 1  ;;  %v7433_v47 = vunpack.c.l.bf16 %v14205_v29  ;;  %v10646_v25 = vunpack.i.h.bf16 %v14223_v8  ;;  %v10645_v58 = vunpack.i.l.bf16 %v14223_v8  ;;  %v10654_v8 = vpop.permute.xlu1 %10653 }
 0x420   : > { %v8038_v56 = vunpack.c.l.bf16 %v8030_v38  ;;  %v7334_v7 = vmax.f32 %v7332_v45, %v7333_v54  ;;  %v7726_v48 = vrot.slane %v7695_v42, 2  ;;  %v8040_v15 = vunpack.c.h.bf16 %v8030_v38 }
 0x421   : > { %7375 = vrot.lane.b32.xlu0 %v7319_v28, %s11748_s20  ;;  %v7328_v49 = vmax.f32 %v7326_v23, %v7327_v53  ;;  %v7725_v36 = vrot.slane %v7693_v55, 2  ;;  %v7728_v34 = vrot.slane %v7694_v26, 2  ;;  %v7729_v22 = vrot.slane %v7696_v41, 2 }
 0x422   : > { %v8039_v50 = vunpack.c.l.bf16 %v8031_v30  ;;  %v7335_v40 = vrot.slane %v7334_v7, 1  ;;  %v7767_v29 = vadd.f32 %v7726_v48, %v14131_v63  ;;  %v10651_v5 = vunpack.i.h.bf16 %v10649_v12 }
 0x423   : > { %7377 = vrot.lane.b32.xlu1 %v7328_v49, %s11748_s20  ;;  %v10650_v9 = vunpack.i.l.bf16 %v10649_v12  ;;  %v7768_v10 = vadd.f32 %v7729_v22, %v14135_v21  ;;  %v8041_v44 = vunpack.c.h.bf16 %v8031_v30  ;;  %v8070_v28 = vrot.slane %v8038_v56, 4 }
 0x424   : > { %v5512_v45 = vpack.c.bf16 %v13981_v13, %v13962_v61  ;;  %v7336_v23 = vmax.f32 %v7334_v7, %v7335_v40  ;;  %v8071_v42 = vrot.slane %v8040_v15, 4  ;;  %v7604_v26 = vsel %vm5807_vm8, %v10640_v33, %v10641_v20  ;;  %v7687_v13 = vld [vmem:[#allocation3 + $0x170] sm:$0x7e]  ;;  %v8032_v15 = vld [vmem:[#allocation3 + $0x188] sm:$0xfc] }
 0x425   : > { %v7942_v38 = vsel %vm5807_vm8, %v10650_v9, %v10651_v5  ;;  %v7967_v55 = vadd.f32 %v10650_v9, %v7767_v29  ;;  %v7727_v63 = vsel %vm6275_vm6, %v7725_v36, %v7726_v48  ;;  %v10656_v54 = vunpack.i.h.bf16 %v10654_v8  ;;  %v15240_v36 = vld [vmem:[#allocation17_spill] sm:$0xff] }
 0x426   : > { %v7968_v41 = vadd.f32 %v7942_v38, %v7768_v10  ;;  %5632 = vst [vmem:[#allocation3 + $0x3a8] sm:$0xff] %v5512_v45  ;;  %v14240_v53 = vadd.f32 %v10640_v33, %v7435_v6  ;;  %7379 = vrot.lane.b32.xlu0 %v7336_v23, %s11748_s20  ;;  %v7765_v30 = vadd.f32 %v7727_v63, %v14176_v17  ;;  %v10655_v61 = vunpack.i.l.bf16 %v10654_v8  ;;  %v7688_v10 = vld [vmem:[#allocation3 + $0x178] sm:$0x7e]  ;;  %v15242_v63 = vld [vmem:[#allocation20_spill] sm:$0xff] }
 0x427   : > { %v8112_v21 = vadd.f32 %v8071_v42, %v7967_v55  ;;  %v7434_v40 = vunpack.c.l.bf16 %v14211_v1  ;;  %v7603_v9 = vsel %vm5807_vm8, %v10645_v58, %v10646_v25  ;;  %v8073_v5 = vrot.slane %v8039_v50, 4 }
 0x428   : > { %v8074_v20 = vrot.slane %v8041_v44, 4  ;;  %v7730_v56 = vsel %vm6275_vm6, %v7728_v34, %v7729_v22  ;;  %v8072_v12 = vsel %vm8001_vm11, %v8070_v28, %v8071_v42  ;;  %v7941_v6 = vsel %vm5807_vm8, %v10655_v61, %v10656_v54  ;;  %v8033_v44 = vld [vmem:[#allocation3 + $0x190] sm:$0xfc]  ;;  %v10659_v42 = vpop.permute.xlu1 %10658 }
 0x429   : > { %v7965_v33 = vadd.f32 %v10655_v61, %v7765_v30  ;;  %v7766_v49 = vadd.f32 %v7730_v56, %v14179_v46  ;;  %v7697_v17 = vunpack.c.l.bf16 %v7687_v13  ;;  %v7699_v48 = vunpack.c.h.bf16 %v7687_v13 }
 0x42a   : > { %v8113_v7 = vadd.f32 %v8074_v20, %v7968_v41  ;;  %v8162_v29 = vadd.f32 %v15240_v36, %v8112_v21  ;;  %v7698_v25 = vunpack.c.l.bf16 %v7688_v10  ;;  %v7700_v50 = vunpack.c.h.bf16 %v7688_v10 }
 0x42b   : > { %v8110_v8 = vadd.f32 %v8072_v12, %v7965_v33  ;;  %v15241_v45 = vunpack.c.h.bf16 %v14211_v1  ;;  %v14255_v22 = vadd.f32 %v10645_v58, %v7433_v47  ;;  %v14257_v28 = vadd.f32 %v7603_v9, %v7434_v40 }
 0x42c   : > { %v7966_v23 = vadd.f32 %v7941_v6, %v7766_v49  ;;  %v8075_v46 = vsel %vm8001_vm11, %v8073_v5, %v8074_v20  ;;  %v8042_v55 = vunpack.c.l.bf16 %v8032_v15  ;;  %v8044_v41 = vunpack.c.h.bf16 %v8032_v15  ;;  %v10664_v5 = vpop.permute.xlu0 %10663 }
 0x42d   : > { %v14253_v34 = vadd.f32 %v7604_v26, %v15241_v45  ;;  %v8160_v38 = vadd.f32 %v15240_v36, %v8110_v8  ;;  %v14262_v54 = vadd.f32 %v15242_v63, %v8113_v7  ;;  %v7731_v21 = vrot.slane %v7697_v17, 2  ;;  %v7690_v45 = vld [vmem:[#allocation3 + $0x268] sm:$0x7e] }
 0x42e   : > { %v7732_v30 = vrot.slane %v7699_v48, 2  ;;  %v8045_v1 = vunpack.c.h.bf16 %v8033_v44  ;;  %v8178_v26 = vmax.f32 %v8162_v29, 0.0  ;;  %v7734_v61 = vrot.slane %v7698_v25, 2 }
 0x42f   : > { %v7735_v47 = vrot.slane %v7700_v50, 2  ;;  %v10661_v58 = vunpack.i.h.bf16 %v10659_v42  ;;  %v8111_v13 = vadd.f32 %v8075_v46, %v7966_v23  ;;  %v8043_v9 = vunpack.c.l.bf16 %v8033_v44 }
 0x430   : > { %v7771_v40 = vadd.f32 %v7732_v30, %v14181_v62  ;;  %v10660_v10 = vunpack.i.l.bf16 %v10659_v42  ;;  %v8176_v20 = vmax.f32 %v8160_v38, 0.0  ;;  %v8076_v12 = vrot.slane %v8042_v55, 4  ;;  %v7689_v62 = vld [vmem:[#allocation3 + $0x260] sm:$0x7e] }
 0x431   : > { %v7772_v56 = vadd.f32 %v7735_v47, %v14183_v19  ;;  %v8077_v6 = vrot.slane %v8044_v41, 4  ;;  %v8080_v33 = vrot.slane %v8045_v1, 4  ;;  %v7733_v17 = vsel %vm6275_vm6, %v7731_v21, %v7732_v30  ;;  %v10669_v30 = vpop.permute.xlu1 %10668 }
 0x432   : > { %v7944_v7 = vsel %vm5807_vm8, %v10660_v10, %v10661_v58  ;;  %v7971_v49 = vadd.f32 %v10660_v10, %v7771_v40  ;;  %v7769_v15 = vadd.f32 %v7733_v17, %v14195_v11  ;;  %v10666_v29 = vunpack.i.h.bf16 %v10664_v5 }
 0x433   : > { %v7972_v48 = vadd.f32 %v7944_v7, %v7772_v56  ;;  %v10665_v8 = vunpack.i.l.bf16 %v10664_v5  ;;  %v8230_v25 = vsel %vm8193_vm14, %v8178_v26, -inf  ;;  %v8079_v50 = vrot.slane %v8043_v9, 4 }
 0x434   : > { %v8116_v44 = vadd.f32 %v8077_v6, %v7971_v49  ;;  %v7736_v19 = vsel %vm6275_vm6, %v7734_v61, %v7735_v47  ;;  %v8229_v23 = vsel %vm7231_vm12, %v8176_v20, -inf  ;;  %v8078_v41 = vsel %vm8001_vm11, %v8076_v12, %v8077_v6  ;;  %v8034_v61 = vld [vmem:[#allocation3 + $0x278] sm:$0xfc]  ;;  %v8035_v47 = vld [vmem:[#allocation3 + $0x280] sm:$0xfc] }
 0x435   : > { %v8117_v42 = vadd.f32 %v8080_v33, %v7972_v48  ;;  %v7943_v46 = vsel %vm5807_vm8, %v10665_v8, %v10666_v29  ;;  %v7969_v38 = vadd.f32 %v10665_v8, %v7769_v15  ;;  %v7770_v11 = vadd.f32 %v7736_v19, %v14202_v2 }
 0x436   : > { %v8166_v55 = vadd.f32 %v15240_v36, %v8116_v44  ;;  %v7703_v21 = vunpack.c.h.bf16 %v7689_v62  ;;  %v7701_v26 = vunpack.c.l.bf16 %v7689_v62  ;;  %v7702_v58 = vunpack.c.l.bf16 %v7690_v45 }
 0x437   : > { %v8114_v1 = vadd.f32 %v8078_v41, %v7969_v38  ;;  %v7704_v40 = vunpack.c.h.bf16 %v7690_v45  ;;  %v8179_v9 = vmax.f32 %v14262_v54, 0.0  ;;  %v14278_v10 = vadd.f32 %v15242_v63, %v8111_v13 }
 0x438   : > { %v8167_v5 = vadd.f32 %v15242_v63, %v8117_v42  ;;  %v7970_v20 = vadd.f32 %v7943_v46, %v7770_v11  ;;  %v14281_v56 = vmax.f32 %v8229_v23, %v8230_v25  ;;  %v8182_v2 = vmax.f32 %v8166_v55, 0.0  ;;  %v10674_v25 = vpop.permute.xlu1 %10673 }
 0x439   : > { %v8081_v12 = vsel %vm8001_vm11, %v8079_v50, %v8080_v33  ;;  %v8164_v6 = vadd.f32 %v15240_v36, %v8114_v1  ;;  %v7738_v7 = vrot.slane %v7703_v21, 2  ;;  %v8046_v49 = vunpack.c.l.bf16 %v8034_v61 }
 0x43a   : > { %v8048_v17 = vunpack.c.h.bf16 %v8034_v61  ;;  %v8049_v48 = vunpack.c.h.bf16 %v8035_v47  ;;  %v7737_v29 = vrot.slane %v7701_v26, 2  ;;  %v7740_v54 = vrot.slane %v7702_v58, 2  ;;  %v10679_v26 = vpop.permute.xlu0 %10678 }
 0x43b   : > { %v8180_v15 = vmax.f32 %v8164_v6, 0.0  ;;  %v7741_v8 = vrot.slane %v7704_v40, 2  ;;  %v8183_v13 = vmax.f32 %v8167_v5, 0.0  ;;  %v8115_v62 = vadd.f32 %v8081_v12, %v7970_v20 }
 0x43c   : > { %v7775_v44 = vadd.f32 %v7738_v7, %v14207_v37  ;;  %v10671_v19 = vunpack.i.h.bf16 %v10669_v30  ;;  %v8247_v45 = vsel %vm8193_vm14, %v8182_v2, -inf  ;;  %v8047_v50 = vunpack.c.l.bf16 %v8035_v47  ;;  %v7691_v37 = vld [vmem:[#allocation3 + $0x350] sm:$0x7e]  ;;  %v7692_v2 = vld [vmem:[#allocation3 + $0x358] sm:$0x7e] }
 0x43d   : > { %v7776_v33 = vadd.f32 %v7741_v8, %v14209_v43  ;;  %v10670_v23 = vunpack.i.l.bf16 %v10669_v30  ;;  %v8246_v42 = vsel %vm7231_vm12, %v8180_v15, -inf  ;;  %v8082_v46 = vrot.slane %v8046_v49, 4 }
 0x43e   : > { %v8083_v38 = vrot.slane %v8048_v17, 4  ;;  %v8086_v55 = vrot.slane %v8049_v48, 4  ;;  %v7739_v21 = vsel %vm6275_vm6, %v7737_v29, %v7738_v7  ;;  %v10676_v1 = vunpack.i.h.bf16 %v10674_v25 }
 0x43f   : > { %v7946_v11 = vsel %vm5807_vm8, %v10670_v23, %v10671_v19  ;;  %v7975_v41 = vadd.f32 %v10670_v23, %v7775_v44  ;;  %v7742_v40 = vsel %vm6275_vm6, %v7740_v54, %v7741_v8  ;;  %v7773_v43 = vadd.f32 %v7739_v21, %v14216_v14  ;;  %v8036_v44 = vld [vmem:[#allocation3 + $0x368] sm:$0xfc] }
 0x440   : > { %v7976_v58 = vadd.f32 %v7946_v11, %v7776_v33  ;;  %v10675_v61 = vunpack.i.l.bf16 %v10674_v25  ;;  %v14294_v30 = vadd.f32 %v15242_v63, %v8115_v62  ;;  %v8085_v47 = vrot.slane %v8047_v50, 4 }
 0x441   : > { %v8120_v5 = vadd.f32 %v8083_v38, %v7975_v41  ;;  %v7774_v20 = vadd.f32 %v7742_v40, %v14218_v27  ;;  %v7707_v49 = vunpack.c.h.bf16 %v7691_v37  ;;  %v8238_v17 = vsel %vm8001_vm11, %v8179_v9, -inf  ;;  %v10684_v9 = vpop.permute.xlu0 %10683 }
 0x442   : > { %v8121_v12 = vadd.f32 %v8086_v55, %v7976_v58  ;;  %v7945_v6 = vsel %vm5807_vm8, %v10675_v61, %v10676_v1  ;;  %v7973_v7 = vadd.f32 %v10675_v61, %v7773_v43  ;;  %v14299_v48 = vmax.f32 %v8246_v42, %v8247_v45  ;;  %v8037_v42 = vld [vmem:[#allocation3 + $0x370] sm:$0xfc] }
 0x443   : > { %v7974_v15 = vadd.f32 %v7945_v6, %v7774_v20  ;;  %v7705_v14 = vunpack.c.l.bf16 %v7691_v37  ;;  %v8177_v29 = vmax.f32 %v14278_v10, 0.0  ;;  %v8084_v54 = vsel %vm8001_vm11, %v8082_v46, %v8083_v38 }
 0x444   : > { %v7706_v8 = vunpack.c.l.bf16 %v7692_v2  ;;  %v7708_v62 = vunpack.c.h.bf16 %v7692_v2  ;;  %v8232_v27 = vrot.slane %v14281_v56, 4  ;;  %v14305_v19 = vsel %vm8001_vm11, %v8183_v13, -inf }
 0x445   : > { %v8181_v25 = vmax.f32 %v14294_v30, 0.0  ;;  %v8118_v33 = vadd.f32 %v8084_v54, %v7973_v7  ;;  %v8170_v45 = vadd.f32 %v15240_v36, %v8120_v5  ;;  %v14310_v50 = vadd.f32 %v15242_v63, %v8121_v12  ;;  %v8373_v30 = vld [vmem:[#allocation3 + $0xa8] sm:$0x3f] }
 0x446   : > { %v8087_v10 = vsel %vm8001_vm11, %v8085_v47, %v8086_v55  ;;  %v7744_v23 = vrot.slane %v7707_v49, 2  ;;  %v8249_v46 = vrot.slane %v14299_v48, 4  ;;  %v7743_v11 = vrot.slane %v7705_v14, 2 }
 0x447   : > { %v8119_v38 = vadd.f32 %v8087_v10, %v7974_v15  ;;  %v8052_v41 = vunpack.c.h.bf16 %v8036_v44  ;;  %v7746_v13 = vrot.slane %v7706_v8, 2  ;;  %v7747_v21 = vrot.slane %v7708_v62, 2 }
 0x448   : > { %v7779_v1 = vadd.f32 %v7744_v23, %v14240_v53  ;;  %v8050_v37 = vunpack.c.l.bf16 %v8036_v44  ;;  %v8168_v58 = vadd.f32 %v15240_v36, %v8118_v33  ;;  %v8051_v40 = vunpack.c.l.bf16 %v8037_v42  ;;  %v9231_v53 = vpop.permute.xlu0 %9230  ;;  %v14323_v33 = vpop.permute.xlu1 %9232 }
 0x449   : > { %v10681_v43 = vunpack.i.h.bf16 %v10679_v26  ;;  %v10680_v61 = vunpack.i.l.bf16 %v10679_v26  ;;  %v8186_v5 = vmax.f32 %v8170_v45, 0.0  ;;  %v8187_v55 = vmax.f32 %v14310_v50, 0.0 }
 0x44a   : > { %v8233_v47 = vmax.f32 %v14281_v56, %v8232_v27  ;;  %v8239_v20 = vmax.f32 %v8177_v29, %v8238_v17  ;;  %v14319_v2 = vadd.f32 %v15242_v63, %v8119_v38  ;;  %v7780_v12 = vadd.f32 %v7747_v21, %v14253_v34 }
 0x44b   : > { %v8089_v6 = vrot.slane %v8052_v41, 4  ;;  %v7979_v7 = vadd.f32 %v10680_v61, %v7779_v1  ;;  %v8053_v49 = vunpack.c.h.bf16 %v8037_v42  ;;  %v7948_v15 = vsel %vm5807_vm8, %v10680_v61, %v10681_v43 }
 0x44c   : > { %v8234_v14 = vrot.slane %v8233_v47, 2  ;;  %v8240_v54 = vrot.slane %v8239_v20, 4  ;;  %v8184_v26 = vmax.f32 %v8168_v58, 0.0  ;;  %v8088_v8 = vrot.slane %v8050_v37, 4 }
 0x44d   : > { %v8091_v62 = vrot.slane %v8051_v40, 4  ;;  %v8124_v44 = vadd.f32 %v8089_v6, %v7979_v7  ;;  %v7745_v29 = vsel %vm6275_vm6, %v7743_v11, %v7744_v23  ;;  %v7748_v34 = vsel %vm6275_vm6, %v7746_v13, %v7747_v21  ;;  %v14332_v23 = vpop.permute.xlu0 %10693 }
 0x44e   : > { %v8235_v56 = vmax.f32 %v8233_v47, %v8234_v14  ;;  %v8241_v17 = vmax.f32 %v8239_v20, %v8240_v54  ;;  %v7980_v27 = vadd.f32 %v7948_v15, %v7780_v12  ;;  %v7777_v45 = vadd.f32 %v7745_v29, %v14255_v22  ;;  %v10689_v20 = vpop.permute.xlu1 %10688 }
 0x44f   : > { %v10686_v50 = vunpack.i.h.bf16 %v10684_v9  ;;  %v10685_v10 = vunpack.i.l.bf16 %v10684_v9  ;;  %v8092_v42 = vrot.slane %v8053_v49, 4  ;;  %v7778_v1 = vadd.f32 %v7748_v34, %v14257_v28 }
 0x450   : > { %v8236_v38 = vrot.slane %v8235_v56, 1  ;;  %v8242_v41 = vrot.slane %v8241_v17, 2  ;;  %v8263_v37 = vsel %vm7231_vm12, %v8184_v26, -inf  ;;  %v8174_v58 = vadd.f32 %v15240_v36, %v8124_v44 }
 0x451   : > { %v7947_v40 = vsel %vm5807_vm8, %v10685_v10, %v10686_v50  ;;  %v7977_v43 = vadd.f32 %v10685_v10, %v7777_v45  ;;  %v8090_v22 = vsel %vm8001_vm11, %v8088_v8, %v8089_v6  ;;  %v8264_v61 = vsel %vm8193_vm14, %v8186_v5, -inf }
 0x452   : > { %v8237_v11 = vmax.f32 %v8235_v56, %v8236_v38  ;;  %v8243_v13 = vmax.f32 %v8241_v17, %v8242_v41  ;;  %v7978_v21 = vadd.f32 %v7947_v40, %v7778_v1  ;;  %v8125_v47 = vadd.f32 %v8092_v42, %v7980_v27 }
 0x453   : > { %v8122_v28 = vadd.f32 %v8090_v22, %v7977_v43  ;;  %v8265_v12 = vmax.f32 %v8263_v37, %v8264_v61  ;;  %v8093_v49 = vsel %vm8001_vm11, %v8091_v62, %v8092_v42  ;;  %v8250_v15 = vmax.f32 %v14299_v48, %v8249_v46  ;;  %v10699_v48 = vpop.permute.xlu0 %10698  ;;  %v14347_v46 = vpop.permute.xlu1 %10703 }
 0x454   : > { %8325 = vrot.lane.b32.xlu0 %v8237_v11, %s11748_s20  ;;  %v8244_v7 = vrot.slane %v8243_v13, 1  ;;  %v8190_v14 = vmax.f32 %v8174_v58, 0.0  ;;  %v8123_v54 = vadd.f32 %v8093_v49, %v7978_v21  ;;  %v8256_v26 = vmax.f32 %v8181_v25, %v14305_v19 }
 0x455   : > { %v8172_v6 = vadd.f32 %v15240_v36, %v8122_v28  ;;  %v8272_v5 = vsel %vm8001_vm11, %v8187_v55, -inf  ;;  %v8185_v8 = vmax.f32 %v14319_v2, 0.0  ;;  %v8251_v56 = vrot.slane %v8250_v15, 2  ;;  %v8375_v28 = vld [vmem:[#allocation3 + $0x198] sm:$0x3f] }
 0x456   : > { %v8245_v44 = vmax.f32 %v8243_v13, %v8244_v7  ;;  %v8175_v17 = vadd.f32 %v15242_v63, %v8125_v47  ;;  %v10691_v62 = vunpack.i.h.bf16 %v10689_v20  ;;  %v8257_v34 = vrot.slane %v8256_v26, 4 }
 0x457   : > { %v8188_v29 = vmax.f32 %v8172_v6, 0.0  ;;  %v8266_v27 = vrot.slane %v8265_v12, 4  ;;  %v14352_v36 = vsel %vm5807_vm8, %v9231_v53, %v14323_v33  ;;  %v10690_v19 = vunpack.i.l.bf16 %v10689_v20  ;;  %v10709_v43 = vpop.permute.xlu0 %10708  ;;  %v14363_v11 = vpop.permute.xlu1 %10718 }
 0x458   : > { %8327 = vrot.lane.b32.xlu1 %v8245_v44, %s11748_s20  ;;  %v8252_v25 = vmax.f32 %v8250_v15, %v8251_v56  ;;  %v8281_v55 = vsel %vm8193_vm14, %v8190_v14, -inf  ;;  %v8173_v2 = vadd.f32 %v15242_v63, %v8123_v54  ;;  %v8258_v50 = vmax.f32 %v8256_v26, %v8257_v34 }
 0x459   : > { %v8280_v45 = vsel %vm7231_vm12, %v8188_v29, -inf  ;;  %v10696_v38 = vunpack.i.h.bf16 %v14332_v23  ;;  %v10695_v41 = vunpack.i.l.bf16 %v14332_v23  ;;  %v8191_v1 = vmax.f32 %v8175_v17, 0.0 }
 0x45a   : > { %v8282_v10 = vmax.f32 %v8280_v45, %v8281_v55  ;;  %v8253_v42 = vrot.slane %v8252_v25, 1  ;;  %v8383_v37 = vunpack.c.h.bf16 %v8373_v30  ;;  %v15243_v53 = vunpack.c.h.bf16 %v13746_v60 }
 0x45b   : > { %v8259_v40 = vrot.slane %v8258_v50, 2  ;;  %v8534_v63 = vsel %vm5807_vm8, %v10690_v19, %v10691_v62  ;;  %v8381_v22 = vunpack.c.l.bf16 %v8373_v30  ;;  %v8267_v21 = vmax.f32 %v8265_v12, %v8266_v27  ;;  %v10714_v27 = vpop.permute.xlu0 %10713  ;;  %v14379_v30 = vpop.permute.xlu1 %10723 }
 0x45c   : > { %v14361_v58 = vadd.f32 %v10691_v62, %v15243_v53  ;;  %v8254_v13 = vmax.f32 %v8252_v25, %v8253_v42  ;;  %v8189_v61 = vmax.f32 %v8173_v2, 0.0  ;;  %v10701_v20 = vunpack.i.h.bf16 %v10699_v48 }
 0x45d   : > { %v8260_v47 = vmax.f32 %v8258_v50, %v8259_v40  ;;  %v8273_v23 = vmax.f32 %v8185_v8, %v8272_v5  ;;  %v8283_v7 = vrot.slane %v8282_v10, 4  ;;  %v8533_v49 = vsel %vm5807_vm8, %v10695_v41, %v10696_v38  ;;  %v14388_v50 = vld [vmem:[#allocation3 + $0x288] sm:$0x3f] }
 0x45e   : > { %8329 = vrot.lane.b32.xlu0 %v8254_v13, %s11748_s20  ;;  %v10700_v15 = vunpack.i.l.bf16 %v10699_v48  ;;  %v8268_v14 = vrot.slane %v8267_v21, 2  ;;  %v10706_v6 = vunpack.i.h.bf16 %v14347_v46  ;;  %v10705_v26 = vunpack.i.l.bf16 %v14347_v46 }
 0x45f   : > { %v8261_v54 = vrot.slane %v8260_v47, 1  ;;  %v8274_v44 = vrot.slane %v8273_v23, 4  ;;  %v8289_v12 = vsel %vm8001_vm11, %v8191_v1, -inf  ;;  %v14371_v56 = vadd.f32 %v8534_v63, %v8383_v37 }
 0x460   : > { %v8387_v17 = vunpack.c.h.bf16 %v8375_v28  ;;  %v8269_v29 = vmax.f32 %v8267_v21, %v8268_v14  ;;  %v15244_v8 = vunpack.c.l.bf16 %v13746_v60  ;;  %v14377_v34 = vadd.f32 %v8533_v49, %v8381_v22 }
 0x461   : > { %v8262_v5 = vmax.f32 %v8260_v47, %v8261_v54  ;;  %v8275_v48 = vmax.f32 %v8273_v23, %v8274_v44  ;;  %v15245_v46 = vunpack.c.h.bf16 %v13787_v18  ;;  %v8536_v25 = vsel %vm5807_vm8, %v10700_v15, %v10701_v20  ;;  %v10729_v15 = vpop.permute.xlu1 %10728 }
 0x462   : > { %v14375_v62 = vadd.f32 %v10696_v38, %v15244_v8  ;;  %v8270_v55 = vrot.slane %v8269_v29, 1  ;;  %v8284_v2 = vmax.f32 %v8282_v10, %v8283_v7  ;;  %v8535_v60 = vsel %vm5807_vm8, %v10705_v26, %v10706_v6  ;;  %v10734_v8 = vpop.permute.xlu0 %10733 }
 0x463   : > { %v14383_v19 = vadd.f32 %v10701_v20, %v15245_v46  ;;  %8331 = vrot.lane.b32.xlu1 %v8262_v5, %s11748_s20  ;;  %v8276_v45 = vrot.slane %v8275_v48, 2  ;;  %v10711_v42 = vunpack.i.h.bf16 %v10709_v43  ;;  %v8290_v38 = vmax.f32 %v8189_v61, %v8289_v12  ;;  %v8621_v61 = vld [vmem:[#allocation3 + $0xc0] sm:$0x7e] }
 0x464   : > { %v8271_v41 = vmax.f32 %v8269_v29, %v8270_v55  ;;  %v10710_v1 = vunpack.i.l.bf16 %v10709_v43  ;;  %v10716_v37 = vunpack.i.h.bf16 %v10714_v27  ;;  %v8285_v53 = vrot.slane %v8284_v2, 2 }
 0x465   : > { %v8385_v40 = vunpack.c.l.bf16 %v8375_v28  ;;  %v8277_v63 = vmax.f32 %v8275_v48, %v8276_v45  ;;  %v10715_v13 = vunpack.i.l.bf16 %v10714_v27  ;;  %v8291_v22 = vrot.slane %v8290_v38, 4 }
 0x466   : > { %v14390_v21 = vadd.f32 %v8536_v25, %v8387_v17  ;;  %v15246_v10 = vunpack.c.l.bf16 %v13787_v18  ;;  %8333 = vrot.lane.b32.xlu0 %v8271_v41, %s11748_s20  ;;  %v8391_v20 = vunpack.c.h.bf16 %v14388_v50  ;;  %v8286_v23 = vmax.f32 %v8284_v2, %v8285_v53  ;;  %v14417_v2 = vld [vmem:[#allocation2 + $0x90] sm:$0x7e] }
 0x467   : > { %v14398_v7 = vadd.f32 %v8535_v60, %v8385_v40  ;;  %v8278_v43 = vrot.slane %v8277_v63, 1  ;;  %v8389_v28 = vunpack.c.l.bf16 %v14388_v50  ;;  %v8292_v49 = vmax.f32 %v8290_v38, %v8291_v22 }
 0x468   : > { %v14394_v47 = vadd.f32 %v10706_v6, %v15246_v10  ;;  %v15247_v14 = vunpack.c.h.bf16 %v13833_v16  ;;  %v14406_v18 = vsel %vm5807_vm8, %v10710_v1, %v10711_v42  ;;  %v15248_v6 = vunpack.c.l.bf16 %v13833_v16  ;;  %v14427_v10 = vld [vmem:[#allocation2 + $0xe0] sm:$0x7e] }
 0x469   : > { %v8287_v44 = vrot.slane %v8286_v23, 1  ;;  %v8279_v12 = vmax.f32 %v8277_v63, %v8278_v43  ;;  %v14413_v17 = vsel %vm5807_vm8, %v10715_v13, %v10716_v37  ;;  %v8293_v29 = vrot.slane %v8292_v49, 2 }
 0x46a   : > { %v14403_v54 = vadd.f32 %v10711_v42, %v15247_v14  ;;  %v14410_v26 = vadd.f32 %v10716_v37, %v15248_v6  ;;  %v8629_v5 = vunpack.c.l.bf16 %v8621_v61  ;;  %v8631_v27 = vunpack.c.h.bf16 %v8621_v61 }
 0x46b   : > { %v8288_v48 = vmax.f32 %v8286_v23, %v8287_v44  ;;  %v15249_v46 = vunpack.c.h.bf16 %v13874_v35  ;;  %v10731_v55 = vunpack.i.h.bf16 %v10729_v15  ;;  %8335 = vrot.lane.b32.xlu1 %v8279_v12, %s11748_s20  ;;  %v8294_v16 = vmax.f32 %v8292_v49, %v8293_v29  ;;  %v8926_v49 = vld [vmem:[#allocation3 + $0xe0] sm:$0xfc]  ;;  %v10739_v44 = vpop.permute.xlu1 %10738  ;;  %v15251_v12 = vld [vmem:[#allocation35_spill] sm:$0xff] }
 0x46c   : > { %v8661_v60 = vrot.slane %v8629_v5, 2  ;;  %v10730_v45 = vunpack.i.l.bf16 %v10729_v15  ;;  %v15250_v42 = vunpack.c.l.bf16 %v13874_v35  ;;  %v8662_v41 = vrot.slane %v8631_v27, 2  ;;  %v15252_v29 = vld [vmem:[#allocation39_spill] sm:$0xff] }
 0x46d   : > { %v8665_v25 = vrot.slane %v15249_v46, 2  ;;  %8337 = vrot.lane.b32.xlu0 %v8288_v48, %s11748_s20  ;;  %v10736_v37 = vunpack.i.h.bf16 %v10734_v8  ;;  %v10735_v53 = vunpack.i.l.bf16 %v10734_v8  ;;  %v8295_v40 = vrot.slane %v8294_v16, 1 }
 0x46e   : > { %v8664_v38 = vrot.slane %v15250_v42, 2  ;;  %v10721_v63 = vunpack.i.h.bf16 %v14363_v11  ;;  %v10720_v13 = vunpack.i.l.bf16 %v14363_v11  ;;  %v15037_v22 = vunpack.c.l.bf16 %v14417_v2 }
 0x46f   : > { %v8704_v1 = vadd.f32 %v8665_v25, %v14361_v58  ;;  %v8703_v23 = vadd.f32 %v8662_v41, %v14371_v56  ;;  %v8838_v61 = vsel %vm5807_vm8, %v10730_v45, %v10731_v55  ;;  %v8296_v58 = vmax.f32 %v8294_v16, %v8295_v40  ;;  %v8925_v16 = vld [vmem:[#allocation3 + $0xd8] sm:$0xfc] }
 0x470   : > { %v8666_v43 = vsel %vm6275_vm6, %v8664_v38, %v8665_v25  ;;  %v8663_v15 = vsel %vm6275_vm6, %v8661_v60, %v8662_v41  ;;  %v15035_v6 = vunpack.c.h.bf16 %v14417_v2  ;;  %v15253_v5 = vpack.i.bf16 %v15251_v12, %v15252_v29  ;;  %v10744_v38 = vpop.permute.xlu0 %10743  ;;  %v14457_v12 = vld [vmem:[#allocation2 + $0x40] sm:$0x7e] }
 0x471   : > { %v8864_v35 = vadd.f32 %v10731_v55, %v8704_v1  ;;  %v8702_v14 = vadd.f32 %v8666_v43, %v14375_v62  ;;  %v8701_v56 = vadd.f32 %v8663_v15, %v14377_v34  ;;  %v8837_v8 = vsel %vm5807_vm8, %v10735_v53, %v10736_v37  ;;  %8339 = vrot.lane.b32.xlu1 %v8296_v58, %s11748_s20 }
 0x472   : > { %10808 = vrot.lane.b32.xlu0 %v15253_v5, %s11748_s20  ;;  %v8720_v48 = vrot.slane %v15037_v22, 3  ;;  %v15034_v27 = vunpack.c.l.bf16 %v14427_v10  ;;  %v8863_v62 = vadd.f32 %v8838_v61, %v8703_v23  ;;  %v8721_v46 = vrot.slane %v15035_v6, 3  ;;  %v15254_v23 = vld [vmem:[#allocation32_spill] sm:$0xff]  ;;  %v15255_v61 = vld [vmem:[#allocation38_spill] sm:$0xff] }
 0x473   : > { %v15025_v25 = vunpack.c.h.bf16 %v14427_v10  ;;  %v8934_v55 = vunpack.c.l.bf16 %v8926_v49  ;;  %v8862_v60 = vadd.f32 %v10736_v37, %v8702_v14  ;;  %v8936_v45 = vunpack.c.h.bf16 %v8926_v49 }
 0x474   : > { %v8723_v34 = vrot.slane %v15034_v27, 3  ;;  %v10741_v42 = vunpack.i.h.bf16 %v10739_v44  ;;  %v8722_v41 = vsel %vm6984_vm7, %v8720_v48, %v8721_v46  ;;  %v10740_v40 = vunpack.i.l.bf16 %v10739_v44 }
 0x475   : > { %v8724_v1 = vrot.slane %v15025_v25, 3  ;;  %v8968_v53 = vrot.slane %v8934_v55, 4  ;;  %v15256_v43 = vpack.i.bf16 %v15254_v23, %v15255_v61  ;;  %v8861_v58 = vadd.f32 %v8837_v8, %v8701_v56  ;;  %v14465_v8 = vld [vmem:[#allocation2 + $0x130] sm:$0x7e] }
 0x476   : > { %v8969_v37 = vrot.slane %v8936_v45, 4  ;;  %v8933_v15 = vunpack.c.l.bf16 %v8925_v16  ;;  %v8935_v14 = vunpack.c.h.bf16 %v8925_v16  ;;  %v15257_v49 = vpack.i.bf16 %v13036_v4, %v13067_v24 }
 0x477   : > { %10818 = vrot.lane.b32.xlu0 %v15256_v43, %s11748_s20  ;;  %v10827_v29 = vpack.i.bf16 %v8721_v46, %v8722_v41  ;;  %v8725_v5 = vsel %vm6984_vm7, %v8723_v34, %v8724_v1  ;;  %v10746_v44 = vunpack.i.h.bf16 %v10744_v38  ;;  %v10745_v48 = vunpack.i.l.bf16 %v10744_v38  ;;  %v15258_v41 = vld [vmem:[#allocation19_spill] sm:$0xff] }
 0x478   : > { %10813 = vrot.lane.b32.xlu1 %v15257_v49, %s11748_s20  ;;  %v8965_v55 = vrot.slane %v8933_v15, 4  ;;  %v8966_v25 = vrot.slane %v8935_v14, 4  ;;  %v9008_v23 = vadd.f32 %v8969_v37, %v8864_v35  ;;  %v9163_v56 = vsel %vm5807_vm8, %v10740_v40, %v10741_v42  ;;  %v14473_v35 = vld [vmem:[#allocation3 + $0x378] sm:$0x3f] }
 0x479   : > { %v8970_v16 = vsel %vm8001_vm11, %v8968_v53, %v8969_v37  ;;  %v9162_v45 = vsel %vm5807_vm8, %v10745_v48, %v10746_v44  ;;  %v15033_v61 = vunpack.c.l.bf16 %v14457_v12  ;;  %v15032_v4 = vunpack.c.h.bf16 %v14457_v12 }
 0x47a   : > { %v9007_v24 = vadd.f32 %v8966_v25, %v8863_v62  ;;  %v9189_v46 = vadd.f32 %v10741_v42, %v9008_v23  ;;  %v8967_v34 = vsel %vm8001_vm11, %v8965_v55, %v8966_v25  ;;  %v9006_v38 = vadd.f32 %v8970_v16, %v8862_v60  ;;  %v10749_v16 = vpop.permute.xlu0 %10748 }
 0x47b   : > { %10828 = vrot.lane.b32.xlu0 %v10827_v29, %s11748_s20  ;;  %v15259_v40 = vpack.i.bf16 %v13076_v0, %v15258_v41  ;;  %v9005_v53 = vadd.f32 %v8967_v34, %v8861_v58  ;;  %v8717_v43 = vrot.slane %v15033_v61, 3  ;;  %v8718_v37 = vrot.slane %v15032_v4, 3  ;;  %v8623_v29 = vld [vmem:[#allocation3 + $0x1b0] sm:$0x7e] }
 0x47c   : > { %v15031_v62 = vunpack.c.l.bf16 %v14465_v8  ;;  %v10832_v42 = vpack.i.bf16 %v8724_v1, %v8725_v5  ;;  %v9188_v15 = vadd.f32 %v9163_v56, %v9007_v24  ;;  %v9240_v25 = vadd.f32 %v14323_v33, %v9189_v46 }
 0x47d   : > { %10823 = vrot.lane.b32.xlu1 %v15259_v40, %s11748_s20  ;;  %v15027_v60 = vunpack.c.h.bf16 %v14465_v8  ;;  %v9186_v14 = vadd.f32 %v9162_v45, %v9005_v53  ;;  %v9187_v49 = vadd.f32 %v10746_v44, %v9006_v38  ;;  %v8719_v0 = vsel %vm6984_vm7, %v8717_v43, %v8718_v37 }
 0x47e   : > { %v8726_v58 = vrot.slane %v15031_v62, 3  ;;  %v14492_v48 = vadd.f32 %v14406_v18, %v8391_v20  ;;  %v14497_v1 = vadd.f32 %v14413_v17, %v8389_v28  ;;  %v8395_v5 = vunpack.c.h.bf16 %v14473_v35 }
 0x47f   : > { %v10837_v55 = vpack.i.bf16 %v8718_v37, %v8719_v0  ;;  %v8540_v44 = vsel %vm5807_vm8, %v10720_v13, %v10721_v63  ;;  %v10726_v56 = vunpack.i.h.bf16 %v14379_v30  ;;  %v8727_v50 = vrot.slane %v15027_v60, 3  ;;  %v14543_v0 = vld [vmem:[#allocation2 + $0xe8] sm:$0xfc] }
 0x480   : > { %v10725_v20 = vunpack.i.l.bf16 %v14379_v30  ;;  %v14512_v28 = vadd.f32 %v14352_v36, %v9188_v15  ;;  %v8633_v18 = vunpack.c.l.bf16 %v8623_v29  ;;  %v8635_v17 = vunpack.c.h.bf16 %v8623_v29 }
 0x481   : > { %10833 = vrot.lane.b32.xlu1 %v10832_v42, %s11748_s20  ;;  %10838 = vrot.lane.b32.xlu0 %v10837_v55, %s11748_s20  ;;  %v9256_v13 = vmax.f32 %v9240_v25, 0.0  ;;  %v14516_v45 = vadd.f32 %v14352_v36, %v9186_v14  ;;  %v14519_v24 = vadd.f32 %v14323_v33, %v9187_v49  ;;  %v8728_v46 = vsel %vm6984_vm7, %v8726_v58, %v8727_v50  ;;  %v14536_v25 = vld [vmem:[#allocation2 + $0x98] sm:$0xfc]  ;;  %v14551_v55 = vpop.permute.xlu1 %10753 }
 0x482   : > { %v15260_v34 = vunpack.c.h.bf16 %v13881_v57  ;;  %v14528_v38 = vadd.f32 %v8540_v44, %v8395_v5  ;;  %v10842_v41 = vpack.i.bf16 %v8727_v50, %v8728_v46  ;;  %v15261_v40 = vunpack.c.l.bf16 %v13881_v57 }
 0x483   : > { %v15262_v43 = vunpack.c.h.bf16 %v14014_v39  ;;  %v10751_v42 = vunpack.i.h.bf16 %v10749_v16  ;;  %v10750_v15 = vunpack.i.l.bf16 %v10749_v16  ;;  %v14539_v14 = vsel %vm5807_vm8, %v10725_v20, %v10726_v56 }
 0x484   : > { %v14526_v30 = vadd.f32 %v10721_v63, %v15260_v34  ;;  %v14532_v53 = vadd.f32 %v10726_v56, %v15261_v40  ;;  %v8667_v63 = vrot.slane %v8633_v18, 2  ;;  %v8668_v49 = vrot.slane %v8635_v17, 2  ;;  %v14558_v17 = vld [vmem:[#allocation3 + $0x1d0] sm:$0xfc] }
 0x485   : > { %v8671_v37 = vrot.slane %v15262_v43, 2  ;;  %10843 = vrot.lane.b32.xlu1 %v10842_v41, %s11748_s20  ;;  %v14546_v57 = vsel %vm9270_vm0, %v9256_v13, -inf  ;;  %v15263_v56 = vunpack.c.l.bf16 %v14014_v39  ;;  %v15026_v20 = vunpack.c.l.bf16 %v14536_v25 }
 0x486   : > { %v8707_v44 = vadd.f32 %v8668_v49, %v14390_v21  ;;  %v15028_v18 = vunpack.c.h.bf16 %v14536_v25  ;;  %v8840_v13 = vsel %vm5807_vm8, %v10750_v15, %v10751_v42  ;;  %v15029_v46 = vunpack.c.l.bf16 %v14543_v0 }
 0x487   : > { %v8708_v5 = vadd.f32 %v8671_v37, %v14383_v19  ;;  %v8670_v50 = vrot.slane %v15263_v56, 2  ;;  %v15030_v19 = vunpack.c.h.bf16 %v14543_v0  ;;  %v8669_v34 = vsel %vm6275_vm6, %v8667_v63, %v8668_v49  ;;  %v8927_v63 = vld [vmem:[#allocation3 + $0x1c8] sm:$0xfc] }
 0x488   : > { %v10756_v21 = vunpack.i.h.bf16 %v14551_v55  ;;  %v9025_v39 = vrot.slane %v15026_v20, 5  ;;  %v9026_v41 = vrot.slane %v15028_v18, 5  ;;  %v8705_v40 = vadd.f32 %v8669_v34, %v14398_v7  ;;  %v14575_v49 = vld [vmem:[#allocation2 + $0x48] sm:$0xfc]  ;;  %v14580_v7 = vld [vmem:[#allocation2 + $0x138] sm:$0xfc] }
 0x489   : > { %v8868_v16 = vadd.f32 %v10751_v42, %v8708_v5  ;;  %v9028_v43 = vrot.slane %v15029_v46, 5  ;;  %v9029_v42 = vrot.slane %v15030_v19, 5  ;;  %v8940_v15 = vunpack.c.h.bf16 %v14558_v17  ;;  %v10759_v5 = vpop.permute.xlu0 %10758  ;;  %15264 = vst [vmem:[#allocation34_spill] sm:$0xff] %v14575_v49  ;;  %15265 = vst [vmem:[#allocation16_spill] sm:$0xff] %v14580_v7 }
 0x48a   : > { %v8867_v56 = vadd.f32 %v8840_v13, %v8707_v44  ;;  %v8672_v20 = vsel %vm6275_vm6, %v8670_v50, %v8671_v37  ;;  %v10755_v60 = vunpack.i.l.bf16 %v14551_v55  ;;  %v9027_v18 = vsel %vm9021_vm15, %v9025_v39, %v9026_v41  ;;  %v14587_v50 = vpop.permute.xlu1 %7365  ;;  %v15267_v39 = vld [vmem:[#allocation26_spill] sm:$0xff] }
 0x48b   : > { %v8706_v34 = vadd.f32 %v8672_v20, %v14394_v47  ;;  %v10847_v46 = vpack.i.bf16 %v9026_v41, %v9027_v18  ;;  %v9030_v19 = vsel %vm9021_vm15, %v9028_v43, %v9029_v42  ;;  %v8938_v62 = vunpack.c.l.bf16 %v14558_v17 }
 0x48c   : > { %v10852_v4 = vpack.i.bf16 %v9029_v42, %v9030_v19  ;;  %v10761_v61 = vunpack.i.h.bf16 %v10759_v5  ;;  %v8939_v27 = vunpack.c.h.bf16 %v8927_v63  ;;  %v15036_v44 = vunpack.c.l.bf16 %v14575_v49  ;;  %v15266_v19 = vld [vmem:[#allocation27_spill] sm:$0xff] }
 0x48d   : > { %10848 = vrot.lane.b32.xlu0 %v10847_v46, %s11748_s20  ;;  %v8975_v37 = vrot.slane %v8940_v15, 4  ;;  %v10760_v55 = vunpack.i.l.bf16 %v10759_v5  ;;  %v15039_v13 = vunpack.c.h.bf16 %v14575_v49  ;;  %v15038_v47 = vunpack.c.l.bf16 %v14580_v7  ;;  %v15269_v5 = vld [vmem:[#allocation40_spill] sm:$0xff] }
 0x48e   : > { %10853 = vrot.lane.b32.xlu1 %v10852_v4, %s11748_s20  ;;  %v8937_v20 = vunpack.c.l.bf16 %v8927_v63  ;;  %v9022_v18 = vrot.slane %v15036_v44, 5  ;;  %v15040_v17 = vunpack.c.h.bf16 %v14580_v7  ;;  %v15268_v41 = vmax.f32 %v15267_v39, 0.0 }
 0x48f   : > { %v9012_v43 = vadd.f32 %v8975_v37, %v8868_v16  ;;  %v9023_v42 = vrot.slane %v15039_v13, 5  ;;  %v9031_v15 = vrot.slane %v15038_v47, 5  ;;  %v5962_v6 = vrot.slane %v15269_v5, 4  ;;  %v14613_v13 = vpop.permute.xlu0 %7367 }
 0x490   : > { %v5952_v46 = vmax.f32 %v15268_v41, %v15266_v19  ;;  %v8972_v4 = vrot.slane %v8939_v27, 4  ;;  %v9032_v63 = vrot.slane %v15040_v17, 5  ;;  %v15270_v22 = vmax.f32 %v13480_v51, 0.0 }
 0x491   : > { %v8839_v19 = vsel %vm5807_vm8, %v10755_v60, %v10756_v21  ;;  %v9165_v16 = vsel %vm5807_vm8, %v10760_v55, %v10761_v61  ;;  %v9024_v39 = vsel %vm9021_vm15, %v9022_v18, %v9023_v42  ;;  %v15271_v41 = vmax.f32 %v13483_v3, 0.0  ;;  %v10764_v60 = vpop.permute.xlu1 %10763  ;;  %v15272_v3 = vld [vmem:[#allocation46_spill] sm:$0xff] }
 0x492   : > { %v5953_v44 = vrot.slane %v5952_v46, 4  ;;  %v6504_v9 = vsel %vm6275_vm6, %v15270_v22, -inf  ;;  %v9011_v27 = vadd.f32 %v8972_v4, %v8867_v56  ;;  %v10857_v58 = vpack.i.bf16 %v9023_v42, %v9024_v39 }
 0x493   : > { %v6505_v47 = vmax.f32 %v15271_v41, %v6504_v9  ;;  %v9033_v17 = vsel %vm9021_vm15, %v9031_v15, %v9032_v63  ;;  %v8971_v29 = vrot.slane %v8937_v20, 4  ;;  %v5963_v22 = vmax.f32 %v15269_v5, %v5962_v6  ;;  %v15273_v9 = vld [vmem:[#allocation23_spill] sm:$0xff] }
 0x494   : > { %v5954_v23 = vmax.f32 %v5952_v46, %v5953_v44  ;;  %v10862_v51 = vpack.i.bf16 %v9032_v63, %v9033_v17  ;;  %v8865_v7 = vadd.f32 %v8839_v19, %v8705_v40  ;;  %v8974_v55 = vrot.slane %v8938_v62, 4  ;;  %10858 = vrot.lane.b32.xlu0 %v10857_v58, %s11748_s20 }
 0x495   : > { %v6506_v11 = vrot.slane %v6505_v47, 4  ;;  %v9193_v49 = vadd.f32 %v10761_v61, %v9012_v43  ;;  %v6514_v18 = vmax.f32 %v15273_v9, %v15272_v3  ;;  %v15274_v56 = vmax.f32 %v14512_v28, 0.0  ;;  %v10769_v28 = vpop.permute.xlu0 %10768 }
 0x496   : > { %v8866_v15 = vadd.f32 %v10756_v21, %v8706_v34  ;;  %10863 = vrot.lane.b32.xlu1 %v10862_v51, %s11748_s20  ;;  %v5955_v44 = vrot.slane %v5954_v23, 2  ;;  %v15275_v6 = vmax.f32 %v14519_v24, 0.0  ;;  %v9192_v62 = vadd.f32 %v9165_v16, %v9011_v27  ;;  %v8625_v51 = vld [vmem:[#allocation3 + $0x2a0] sm:$0x7e] }
 0x497   : > { %v9306_v42 = vsel %vm9021_vm15, %v15274_v56, -inf  ;;  %v6507_v20 = vmax.f32 %v6505_v47, %v6506_v11  ;;  %v6515_v61 = vrot.slane %v6514_v18, 4  ;;  %v10766_v17 = vunpack.i.h.bf16 %v10764_v60 }
 0x498   : > { %v9314_v40 = vsel %vm5807_vm8, %v15275_v6, -inf  ;;  %v5964_v58 = vrot.slane %v5963_v22, 2  ;;  %v10765_v43 = vunpack.i.l.bf16 %v10764_v60  ;;  %v8973_v5 = vsel %vm8001_vm11, %v8971_v29, %v8972_v4 }
 0x499   : > { %v6508_v46 = vrot.slane %v6507_v20, 2  ;;  %v9244_v63 = vadd.f32 %v14323_v33, %v9193_v49  ;;  %v6516_v21 = vmax.f32 %v6514_v18, %v6515_v61  ;;  %v8976_v34 = vsel %vm8001_vm11, %v8974_v55, %v8975_v37 }
 0x49a   : > { %v9009_v19 = vadd.f32 %v8973_v5, %v8865_v7  ;;  %v5956_v11 = vmax.f32 %v5954_v23, %v5955_v44  ;;  %v9010_v24 = vadd.f32 %v8976_v34, %v8866_v15  ;;  %v9164_v39 = vsel %vm5807_vm8, %v10765_v43, %v10766_v17  ;;  %v10774_v44 = vpop.permute.xlu0 %10773 }
 0x49b   : > { %v6509_v47 = vmax.f32 %v6507_v20, %v6508_v46  ;;  %v15276_v16 = vunpack.c.l.bf16 %v14473_v35  ;;  %v9243_v27 = vadd.f32 %v14352_v36, %v9192_v62  ;;  %v6517_v29 = vrot.slane %v6516_v21, 2 }
 0x49c   : > { %v9190_v4 = vadd.f32 %v9164_v39, %v9009_v19  ;;  %v14638_v49 = vmax.f32 %v9314_v40, %v14546_v57  ;;  %v5965_v37 = vmax.f32 %v5963_v22, %v5964_v58  ;;  %v9191_v23 = vadd.f32 %v10766_v17, %v9010_v24 }
 0x49d   : > { %v14634_v41 = vadd.f32 %v14539_v14, %v15276_v16  ;;  %v6510_v7 = vrot.slane %v6509_v47, 1  ;;  %v15277_v60 = vmax.f32 %v14516_v45, 0.0  ;;  %v9260_v3 = vmax.f32 %v9244_v63, 0.0  ;;  %v14658_v16 = vpop.permute.xlu1 %7369 }
 0x49e   : > { %v6518_v35 = vmax.f32 %v6516_v21, %v6517_v29  ;;  %v9241_v14 = vadd.f32 %v14352_v36, %v9190_v4  ;;  %v5957_v9 = vrot.slane %v5956_v11, 1  ;;  %v9242_v18 = vadd.f32 %v14323_v33, %v9191_v23  ;;  %v8930_v4 = vld [vmem:[#allocation3 + $0x2c0] sm:$0xfc] }
 0x49f   : > { %v14642_v55 = vmax.f32 %v15277_v60, %v9306_v42  ;;  %v8637_v56 = vunpack.c.l.bf16 %v8625_v51  ;;  %v8639_v15 = vunpack.c.h.bf16 %v8625_v51  ;;  %v9259_v20 = vmax.f32 %v9243_v27, 0.0  ;;  %v10779_v51 = vpop.permute.xlu0 %10778 }
 0x4a0   : > { %v6519_v57 = vrot.slane %v6518_v35, 1  ;;  %v10771_v6 = vunpack.i.h.bf16 %v10769_v28  ;;  %v10770_v22 = vunpack.i.l.bf16 %v10769_v28  ;;  %v9317_v40 = vrot.slane %v14638_v49, 4 }
 0x4a1   : > { %v5966_v62 = vrot.slane %v5965_v37, 1  ;;  %v6511_v45 = vmax.f32 %v6509_v47, %v6510_v7  ;;  %v9258_v42 = vmax.f32 %v9242_v18, 0.0  ;;  %v9332_v61 = vsel %vm9270_vm0, %v9260_v3, -inf  ;;  %v8627_v3 = vld [vmem:[#allocation3 + $0x390] sm:$0x7e] }
 0x4a2   : > { %v7381_v17 = vsel %vm5807_vm8, %v14587_v50, %v14613_v13  ;;  %v9257_v58 = vmax.f32 %v9241_v14, 0.0  ;;  %v15278_v46 = vunpack.c.h.bf16 %v14105_v52  ;;  %v5958_v5 = vmax.f32 %v5956_v11, %v5957_v9  ;;  %v8929_v9 = vld [vmem:[#allocation3 + $0x2b8] sm:$0xfc] }
 0x4a3   : > { %v8673_v63 = vrot.slane %v8637_v56, 2  ;;  %v8674_v21 = vrot.slane %v8639_v15, 2  ;;  %v15279_v28 = vunpack.c.l.bf16 %v14105_v52  ;;  %v9323_v19 = vsel %vm9021_vm15, %v9259_v20, -inf }
 0x4a4   : > { %v8677_v43 = vrot.slane %v15278_v46, 2  ;;  %v6520_v47 = vmax.f32 %v6518_v35, %v6519_v57  ;;  %v8842_v39 = vsel %vm5807_vm8, %v10770_v22, %v10771_v6  ;;  %v5967_v50 = vmax.f32 %v5965_v37, %v5966_v62  ;;  %v14673_v62 = vpop.permute.xlu1 %10788 }
 0x4a5   : > { %v8676_v34 = vrot.slane %v15279_v28, 2  ;;  %v6576_v27 = vmax.f32 %v5958_v5, %v6511_v45  ;;  %v9331_v29 = vsel %vm5807_vm8, %v9258_v42, -inf  ;;  %v8711_v11 = vadd.f32 %v8674_v21, %v14492_v48 }
 0x4a6   : > { %v8712_v24 = vadd.f32 %v8677_v43, %v14403_v54  ;;  %v14662_v7 = vmax.f32 %v9257_v58, %v9323_v19  ;;  %v10776_v23 = vunpack.i.h.bf16 %v10774_v44  ;;  %v10775_v60 = vunpack.i.l.bf16 %v10774_v44 }
 0x4a7   : > { %v14664_v35 = vmax.f32 %v6576_v27, %v7381_v17  ;;  %v8871_v54 = vadd.f32 %v8842_v39, %v8711_v11  ;;  %v8675_v14 = vsel %vm6275_vm6, %v8673_v63, %v8674_v21  ;;  %v8678_v37 = vsel %vm6275_vm6, %v8676_v34, %v8677_v43 }
 0x4a8   : > { %v8872_v52 = vadd.f32 %v10771_v6, %v8712_v24  ;;  %v6577_v18 = vmax.f32 %v5967_v50, %v6520_v47  ;;  %v14668_v56 = vmax.f32 %v9331_v29, %v9332_v61  ;;  %v8709_v48 = vadd.f32 %v8675_v14, %v14497_v1  ;;  %v10784_v1 = vpop.permute.xlu0 %10783 }
 0x4a9   : > { %v8942_v15 = vunpack.c.l.bf16 %v8930_v4  ;;  %v8710_v20 = vadd.f32 %v8678_v37, %v14410_v26  ;;  %v8641_v57 = vunpack.c.l.bf16 %v8627_v3  ;;  %v8643_v6 = vunpack.c.h.bf16 %v8627_v3 }
 0x4aa   : > { %v8944_v44 = vunpack.c.h.bf16 %v8930_v4  ;;  %v8841_v22 = vsel %vm5807_vm8, %v10775_v60, %v10776_v23  ;;  %v10781_v45 = vunpack.i.h.bf16 %v10779_v51  ;;  %v10780_v42 = vunpack.i.l.bf16 %v10779_v51  ;;  %v10794_v60 = vpop.permute.xlu1 %10793 }
 0x4ab   : > { %v8941_v17 = vunpack.c.l.bf16 %v8929_v9  ;;  %v14676_v58 = vmax.f32 %v6577_v18, %v14613_v13  ;;  %v8980_v61 = vrot.slane %v8942_v15, 4  ;;  %v8943_v43 = vunpack.c.h.bf16 %v8929_v9 }
 0x4ac   : > { %v8981_v46 = vrot.slane %v8944_v44, 4  ;;  %v9334_v5 = vrot.slane %v14668_v56, 4  ;;  %v8870_v26 = vadd.f32 %v10776_v23, %v8710_v20  ;;  %v15280_v63 = vunpack.c.h.bf16 %v14139_v59  ;;  %v15281_v20 = vld [vmem:[#allocation41_spill] sm:$0xff]  ;;  %v15284_v44 = vld [vmem:[#allocation42_spill] sm:$0xff] }
 0x4ad   : > { %v8977_v28 = vrot.slane %v8941_v17, 4  ;;  %v8869_v34 = vadd.f32 %v8841_v22, %v8709_v48  ;;  %v10791_v19 = vunpack.i.h.bf16 %v14673_v62  ;;  %v8978_v24 = vrot.slane %v8943_v43, 4 }
 0x4ae   : > { %v8683_v21 = vrot.slane %v15280_v63, 2  ;;  %v9016_v47 = vadd.f32 %v8981_v46, %v8872_v52  ;;  %v8679_v39 = vrot.slane %v8641_v57, 2  ;;  %v9167_v13 = vsel %vm5807_vm8, %v10780_v42, %v10781_v45  ;;  %v15282_v57 = vld [vmem:[#allocation29_spill] sm:$0xff] }
 0x4af   : > { %v10786_v50 = vunpack.i.h.bf16 %v10784_v1  ;;  %v10785_v27 = vunpack.i.l.bf16 %v10784_v1  ;;  %v8680_v29 = vrot.slane %v8643_v6, 2  ;;  %v9015_v4 = vadd.f32 %v8978_v24, %v8871_v54  ;;  %v15288_v1 = vld [vmem:[#allocation49_spill] sm:$0xff] }
 0x4b0   : > { %v9197_v11 = vadd.f32 %v10781_v45, %v9016_v47  ;;  %v8982_v51 = vsel %vm8001_vm11, %v8980_v61, %v8981_v46  ;;  %v8716_v23 = vadd.f32 %v8683_v21, %v14526_v30  ;;  %v8979_v3 = vsel %vm8001_vm11, %v8977_v28, %v8978_v24  ;;  %v15285_v30 = vld [vmem:[#allocation47_spill] sm:$0xff]  ;;  %v15290_v24 = vld [vmem:[#allocation48_spill] sm:$0xff] }
 0x4b1   : > { %v9014_v14 = vadd.f32 %v8982_v51, %v8870_v26  ;;  %v9166_v37 = vsel %vm5807_vm8, %v10785_v27, %v10786_v50  ;;  %v10790_v52 = vunpack.i.l.bf16 %v14673_v62  ;;  %v9196_v18 = vadd.f32 %v9167_v13, %v9015_v4  ;;  %v15291_v13 = vld [vmem:[#allocation52_spill] sm:$0xff]  ;;  %v15292_v62 = vld [vmem:[#allocation30_spill] sm:$0xff] }
 0x4b2   : > { %v9248_v9 = vadd.f32 %v14323_v33, %v9197_v11  ;;  %v9013_v48 = vadd.f32 %v8979_v3, %v8869_v34  ;;  %v15283_v54 = vmax.f32 %v15282_v57, 0.0  ;;  %v5979_v22 = vrot.slane %v15284_v44, 4 }
 0x4b3   : > { %v9195_v15 = vadd.f32 %v10786_v50, %v9014_v14  ;;  %v15286_v45 = vmax.f32 %v15285_v30, 0.0  ;;  %v9247_v17 = vadd.f32 %v14352_v36, %v9196_v18  ;;  %v15287_v61 = vunpack.c.l.bf16 %v14139_v59  ;;  %v14706_v14 = vpop.permute.xlu1 %7373 }
 0x4b4   : > { %v5969_v6 = vmax.f32 %v15283_v54, %v15281_v20  ;;  %v9194_v43 = vadd.f32 %v9166_v37, %v9013_v48  ;;  %v15289_v26 = vmax.f32 %v15288_v1, 0.0  ;;  %v5980_v47 = vmax.f32 %v15284_v44, %v5979_v22 }
 0x4b5   : > { %v6521_v42 = vsel %vm6275_vm6, %v15286_v45, -inf  ;;  %v8682_v46 = vrot.slane %v15287_v61, 2  ;;  %v9246_v28 = vadd.f32 %v14323_v33, %v9195_v15  ;;  %v6531_v50 = vmax.f32 %v15291_v13, %v15290_v24 }
 0x4b6   : > { %v6522_v63 = vmax.f32 %v15289_v26, %v6521_v42  ;;  %v5970_v34 = vrot.slane %v5969_v6, 4  ;;  %v10796_v27 = vunpack.i.h.bf16 %v10794_v60  ;;  %v10795_v11 = vunpack.i.l.bf16 %v10794_v60  ;;  %v8932_v26 = vld [vmem:[#allocation3 + $0x3b0] sm:$0xfc] }
 0x4b7   : > { %v9245_v4 = vadd.f32 %v14352_v36, %v9194_v43  ;;  %v9264_v3 = vmax.f32 %v9248_v9, 0.0  ;;  %v9262_v59 = vmax.f32 %v9246_v28, 0.0  ;;  %v6532_v18 = vrot.slane %v6531_v50, 4  ;;  %v14718_v43 = vpop.permute.xlu0 %7371 }
 0x4b8   : > { %v6523_v51 = vrot.slane %v6522_v63, 4  ;;  %v5971_v37 = vmax.f32 %v5969_v6, %v5970_v34  ;;  %v8715_v48 = vadd.f32 %v8680_v29, %v14528_v38  ;;  %v8844_v15 = vsel %vm5807_vm8, %v10790_v52, %v10791_v19 }
 0x4b9   : > { %v5981_v20 = vrot.slane %v5980_v47, 2  ;;  %v9263_v54 = vmax.f32 %v9247_v17, 0.0  ;;  %v8681_v60 = vsel %vm6275_vm6, %v8679_v39, %v8680_v29  ;;  %v9348_v44 = vsel %vm5807_vm8, %v9262_v59, -inf }
 0x4ba   : > { %v6524_v57 = vmax.f32 %v6522_v63, %v6523_v51  ;;  %v6533_v22 = vmax.f32 %v6531_v50, %v6532_v18  ;;  %v8843_v9 = vsel %vm5807_vm8, %v10795_v11, %v10796_v27  ;;  %v9261_v30 = vmax.f32 %v9245_v4, 0.0 }
 0x4bb   : > { %v5972_v45 = vrot.slane %v5971_v37, 2  ;;  %v9349_v42 = vsel %vm9270_vm0, %v9264_v3, -inf  ;;  %v8684_v38 = vsel %vm6275_vm6, %v8682_v46, %v8683_v21  ;;  %v8713_v61 = vadd.f32 %v8681_v60, %v14634_v41  ;;  %v10799_v21 = vpop.permute.xlu1 %10798  ;;  %v15296_v60 = vld [vmem:[#allocation50_spill] sm:$0xff] }
 0x4bc   : > { %v6525_v6 = vrot.slane %v6524_v57, 2  ;;  %v6534_v52 = vrot.slane %v6533_v22, 2  ;;  %v8714_v17 = vadd.f32 %v8684_v38, %v14532_v53  ;;  %v14721_v39 = vmax.f32 %v9348_v44, %v9349_v42 }
 0x4bd   : > { %v5982_v29 = vmax.f32 %v5980_v47, %v5981_v20  ;;  %v8876_v63 = vadd.f32 %v10791_v19, %v8716_v23  ;;  %v8875_v28 = vadd.f32 %v8844_v15, %v8715_v48  ;;  %v9340_v34 = vsel %vm9021_vm15, %v9263_v54, -inf  ;;  %v8931_v47 = vld [vmem:[#allocation3 + $0x3a8] sm:$0xfc]  ;;  %v15293_v19 = vld [vmem:[#allocation44_spill] sm:$0xff]  ;;  %v15295_v20 = vld [vmem:[#allocation43_spill] sm:$0xff] }
 0x4be   : > { %v6526_v1 = vmax.f32 %v6524_v57, %v6525_v6  ;;  %v8873_v24 = vadd.f32 %v8843_v9, %v8713_v61  ;;  %v8874_v46 = vadd.f32 %v10796_v27, %v8714_v17  ;;  %v14726_v41 = vmax.f32 %v9261_v30, %v9340_v34  ;;  %v15298_v9 = vld [vmem:[#allocation54_spill] sm:$0xff]  ;;  %v15299_v30 = vld [vmem:[#allocation55_spill] sm:$0xff] }
 0x4bf   : > { %v5973_v13 = vmax.f32 %v5971_v37, %v5972_v45  ;;  %v14731_v53 = vsel %vm5807_vm8, %v14658_v16, %v14718_v43  ;;  %v6535_v50 = vmax.f32 %v6533_v22, %v6534_v52  ;;  %v8946_v11 = vunpack.c.l.bf16 %v8932_v26 }
 0x4c0   : > { %v8948_v4 = vunpack.c.h.bf16 %v8932_v26  ;;  %v15294_v23 = vmax.f32 %v15293_v19, 0.0  ;;  %v5983_v59 = vrot.slane %v5982_v29, 1  ;;  %v6527_v27 = vrot.slane %v6526_v1, 1  ;;  %v15300_v26 = vld [vmem:[#allocation53_spill] sm:$0xff] }
 0x4c1   : > { %v10801_v18 = vunpack.i.h.bf16 %v10799_v21  ;;  %v8945_v48 = vunpack.c.l.bf16 %v8931_v47  ;;  %v8947_v37 = vunpack.c.h.bf16 %v8931_v47  ;;  %v5996_v57 = vrot.slane %v15295_v20, 4 }
 0x4c2   : > { %v5986_v51 = vmax.f32 %v15294_v23, %v15292_v62  ;;  %v5974_v16 = vrot.slane %v5973_v13, 1  ;;  %v10800_v54 = vunpack.i.l.bf16 %v10799_v21  ;;  %v15297_v44 = vmax.f32 %v15296_v60, 0.0 }
 0x4c3   : > { %v6548_v45 = vmax.f32 %v15299_v30, %v15298_v9  ;;  %v6536_v6 = vrot.slane %v6535_v50, 1  ;;  %v8986_v42 = vrot.slane %v8946_v11, 4  ;;  %v8987_v38 = vrot.slane %v8948_v4, 4 }
 0x4c4   : > { %v5987_v15 = vrot.slane %v5986_v51, 4  ;;  %v6538_v22 = vsel %vm6275_vm6, %v15297_v44, -inf  ;;  %v14743_v52 = vmax.f32 %v5982_v29, %v5983_v59  ;;  %v5997_v17 = vmax.f32 %v15295_v20, %v5996_v57  ;;  %v10804_v44 = vpop.permute.xlu1 %10803 }
 0x4c5   : > { %v15301_v34 = vmax.f32 %v15300_v26, 0.0  ;;  %v6549_v62 = vrot.slane %v6548_v45, 4  ;;  %v6528_v21 = vmax.f32 %v6526_v1, %v6527_v27  ;;  %v9020_v19 = vadd.f32 %v8987_v38, %v8876_v63 }
 0x4c6   : > { %v5988_v61 = vmax.f32 %v5986_v51, %v5987_v15  ;;  %v8983_v23 = vrot.slane %v8945_v48, 4  ;;  %v8984_v60 = vrot.slane %v8947_v37, 4  ;;  %v5975_v3 = vmax.f32 %v5973_v13, %v5974_v16 }
 0x4c7   : > { %v6539_v47 = vmax.f32 %v15301_v34, %v6538_v22  ;;  %v9169_v9 = vsel %vm5807_vm8, %v10800_v54, %v10801_v18  ;;  %v6550_v11 = vmax.f32 %v6548_v45, %v6549_v62  ;;  %v6537_v4 = vmax.f32 %v6535_v50, %v6536_v6  ;;  %v7376_v62 = vpop.permute.xlu0 %7375 }
 0x4c8   : > { %v9201_v51 = vadd.f32 %v10801_v18, %v9020_v19  ;;  %v9019_v29 = vadd.f32 %v8984_v60, %v8875_v28  ;;  %v5989_v59 = vrot.slane %v5988_v61, 2  ;;  %v5998_v15 = vrot.slane %v5997_v17, 2  ;;  %v15303_v19 = vld [vmem:[#allocation56_spill] sm:$0xff] }
 0x4c9   : > { %v6540_v30 = vrot.slane %v6539_v47, 4  ;;  %v6551_v57 = vrot.slane %v6550_v11, 2  ;;  %v10806_v26 = vunpack.i.h.bf16 %v10804_v44  ;;  %v6578_v22 = vmax.f32 %v5975_v3, %v6528_v21 }
 0x4ca   : > { %v9200_v34 = vadd.f32 %v9169_v9, %v9019_v29  ;;  %v10805_v1 = vunpack.i.l.bf16 %v10804_v44  ;;  %v8985_v63 = vsel %vm8001_vm11, %v8983_v23, %v8984_v60  ;;  %v8988_v13 = vsel %vm8001_vm11, %v8986_v42, %v8987_v38  ;;  %v15304_v60 = vld [vmem:[#allocation24_spill] sm:$0xff]  ;;  %v15305_v44 = vld [vmem:[#allocation45_spill] sm:$0xff] }
 0x4cb   : > { %v6541_v20 = vmax.f32 %v6539_v47, %v6540_v30  ;;  %v6552_v48 = vmax.f32 %v6550_v11, %v6551_v57  ;;  %v9017_v37 = vadd.f32 %v8985_v63, %v8873_v24  ;;  %v9252_v16 = vadd.f32 %v14323_v33, %v9201_v51  ;;  %v15302_v47 = vld [vmem:[#allocation51_spill] sm:$0xff] }
 0x4cc   : > { %v5990_v50 = vmax.f32 %v5988_v61, %v5989_v59  ;;  %v9018_v18 = vadd.f32 %v8988_v13, %v8874_v46  ;;  %v9168_v28 = vsel %vm5807_vm8, %v10805_v1, %v10806_v26  ;;  %v5999_v54 = vmax.f32 %v5997_v17, %v5998_v15 }
 0x4cd   : > { %v6542_v27 = vrot.slane %v6541_v20, 2  ;;  %v9198_v6 = vadd.f32 %v9168_v28, %v9017_v37  ;;  %v6013_v3 = vrot.slane %v15302_v47, 4  ;;  %v6566_v23 = vrot.slane %v15303_v19, 4 }
 0x4ce   : > { %v9199_v21 = vadd.f32 %v10806_v26, %v9018_v18  ;;  %v15306_v9 = vmax.f32 %v15305_v44, 0.0  ;;  %v15307_v24 = vmax.f32 %v13959_v31, 0.0  ;;  %v9251_v46 = vadd.f32 %v14352_v36, %v9200_v34 }
 0x4cf   : > { %v6543_v45 = vmax.f32 %v6541_v20, %v6542_v27  ;;  %v6553_v17 = vrot.slane %v6552_v48, 1  ;;  %v6014_v30 = vmax.f32 %v15302_v47, %v6013_v3  ;;  %v6567_v51 = vmax.f32 %v15303_v19, %v6566_v23  ;;  %v7378_v3 = vpop.permute.xlu1 %7377 }
 0x4d0   : > { %v6003_v42 = vmax.f32 %v15306_v9, %v15304_v60  ;;  %v6555_v38 = vsel %vm6275_vm6, %v15307_v24, -inf  ;;  %v9250_v11 = vadd.f32 %v14323_v33, %v9199_v21  ;;  %v15308_v59 = vmax.f32 %v13966_v32, 0.0 }
 0x4d1   : > { %v6544_v61 = vrot.slane %v6543_v45, 1  ;;  %v6579_v20 = vmax.f32 %v14743_v52, %v6537_v4  ;;  %v5991_v57 = vrot.slane %v5990_v50, 1  ;;  %v6000_v31 = vrot.slane %v5999_v54, 1  ;;  %v14775_v52 = vpop.permute.xlu0 %7379 }
 0x4d2   : > { %v6004_v29 = vrot.slane %v6003_v42, 4  ;;  %v6556_v15 = vmax.f32 %v15308_v59, %v6555_v38  ;;  %v9249_v26 = vadd.f32 %v14352_v36, %v9198_v6  ;;  %v9266_v1 = vmax.f32 %v9250_v11, 0.0 }
 0x4d3   : > { %v6015_v34 = vrot.slane %v6014_v30, 2  ;;  %v14770_v13 = vmax.f32 %v6578_v22, %v14731_v53  ;;  %v9268_v33 = vmax.f32 %v9252_v16, 0.0  ;;  %v9267_v37 = vmax.f32 %v9251_v46, 0.0  ;;  %v14784_v24 = vpop.permute.xlu1 %8327 }
 0x4d4   : > { %v6005_v63 = vmax.f32 %v6003_v42, %v6004_v29  ;;  %v6557_v27 = vrot.slane %v6556_v15, 4  ;;  %v6554_v18 = vmax.f32 %v6552_v48, %v6553_v17  ;;  %v14773_v28 = vmax.f32 %v6579_v20, %v14718_v43 }
 0x4d5   : > { %v6545_v32 = vmax.f32 %v6543_v45, %v6544_v61  ;;  %v6568_v47 = vrot.slane %v6567_v51, 2  ;;  %v5992_v36 = vmax.f32 %v5990_v50, %v5991_v57  ;;  %v6001_v6 = vmax.f32 %v5999_v54, %v6000_v31  ;;  %v8326_v54 = vpop.permute.xlu0 %8325 }
 0x4d6   : > { %v6558_v4 = vmax.f32 %v6556_v15, %v6557_v27  ;;  %v9365_v21 = vsel %vm5807_vm8, %v9266_v1, -inf  ;;  %v6006_v19 = vrot.slane %v6005_v63, 2  ;;  %v9265_v23 = vmax.f32 %v9249_v26, 0.0 }
 0x4d7   : > { %v6016_v53 = vmax.f32 %v6014_v30, %v6015_v34  ;;  %v9308_v16 = vrot.slane %v14642_v55, 4  ;;  %v9366_v48 = vsel %vm9270_vm0, %v9268_v33, -inf  ;;  %v9357_v43 = vsel %vm9021_vm15, %v9267_v37, -inf  ;;  %v8332_v31 = vpop.permute.xlu1 %8331 }
 0x4d8   : > { %v6559_v22 = vrot.slane %v6558_v4, 2  ;;  %v6581_v45 = vmax.f32 %v6001_v6, %v6554_v18  ;;  %v7383_v60 = vsel %vm5807_vm8, %v14706_v14, %v7376_v62  ;;  %v6580_v44 = vmax.f32 %v5992_v36, %v6545_v32 }
 0x4d9   : > { %v9367_v9 = vmax.f32 %v9365_v21, %v9366_v48  ;;  %v6569_v50 = vmax.f32 %v6567_v51, %v6568_v47  ;;  %v9309_v42 = vmax.f32 %v14642_v55, %v9308_v16  ;;  %v6007_v46 = vmax.f32 %v6005_v63, %v6006_v19  ;;  %v8330_v57 = vpop.permute.xlu0 %8329 }
 0x4da   : > { %v14786_v38 = vmax.f32 %v6581_v45, %v7376_v62  ;;  %v9318_v61 = vmax.f32 %v14638_v49, %v9317_v40  ;;  %v9325_v17 = vrot.slane %v14662_v7, 4  ;;  %v9358_v30 = vmax.f32 %v9265_v23, %v9357_v43 }
 0x4db   : > { %v6017_v11 = vrot.slane %v6016_v53, 1  ;;  %v6560_v14 = vmax.f32 %v6558_v4, %v6559_v22  ;;  %v9310_v29 = vrot.slane %v9309_v42, 2  ;;  %v7397_v59 = vmax.f32 %v6580_v44, %v7383_v60 }
 0x4dc   : > { %v9326_v51 = vmax.f32 %v14662_v7, %v9325_v17  ;;  %v9335_v55 = vmax.f32 %v14668_v56, %v9334_v5  ;;  %v9342_v62 = vrot.slane %v14726_v41, 4  ;;  %v9368_v15 = vrot.slane %v9367_v9, 4 }
 0x4dd   : > { %v6570_v20 = vrot.slane %v6569_v50, 1  ;;  %v7384_v49 = vsel %vm5807_vm8, %v7378_v3, %v14775_v52  ;;  %v14801_v40 = vsel %vm5807_vm8, %v8326_v54, %v14784_v24  ;;  %v6008_v26 = vrot.slane %v6007_v46, 1  ;;  %v8334_v36 = vpop.permute.xlu0 %8333 }
 0x4de   : > { %v9319_v1 = vrot.slane %v9318_v61, 2  ;;  %v9327_v7 = vrot.slane %v9326_v51, 2  ;;  %v9336_v34 = vrot.slane %v9335_v55, 2  ;;  %v6018_v63 = vmax.f32 %v6016_v53, %v6017_v11 }
 0x4df   : > { %v6561_v27 = vrot.slane %v6560_v14, 1  ;;  %v9311_v56 = vmax.f32 %v9309_v42, %v9310_v29  ;;  %v9343_v5 = vmax.f32 %v14726_v41, %v9342_v62  ;;  %v8342_v18 = vsel %vm5807_vm8, %v8330_v57, %v8332_v31 }
 0x4e0   : > { %v9328_v33 = vmax.f32 %v9326_v51, %v9327_v7  ;;  %v9337_v37 = vmax.f32 %v9335_v55, %v9336_v34  ;;  %v15309_v32 = vrot.slane %v14721_v39, 4  ;;  %v6571_v4 = vmax.f32 %v6569_v50, %v6570_v20  ;;  %v8336_v50 = vpop.permute.xlu1 %8335 }
 0x4e1   : > { %v8353_v3 = vmax.f32 %v14664_v35, %v14801_v40  ;;  %v9344_v6 = vrot.slane %v9343_v5, 2  ;;  %v9359_v21 = vrot.slane %v9358_v30, 4  ;;  %v6009_v19 = vmax.f32 %v6007_v46, %v6008_v26  ;;  %v8338_v17 = vpop.permute.xlu0 %8337 }
 0x4e2   : > { %v9352_v47 = vmax.f32 %v14721_v39, %v15309_v32  ;;  %v9320_v23 = vmax.f32 %v9318_v61, %v9319_v1  ;;  %v9329_v53 = vrot.slane %v9328_v33, 1  ;;  %v8355_v41 = vmax.f32 %v14770_v13, %v8342_v18 }
 0x4e3   : > { %v9345_v16 = vmax.f32 %v9343_v5, %v9344_v6  ;;  %v9360_v48 = vmax.f32 %v9358_v30, %v9359_v21  ;;  %v9369_v43 = vmax.f32 %v9367_v9, %v9368_v15  ;;  %v6562_v45 = vmax.f32 %v6560_v14, %v6561_v27 }
 0x4e4   : > { %v9353_v22 = vrot.slane %v9352_v47, 2  ;;  %v9312_v60 = vrot.slane %v9311_v56, 1  ;;  %v9338_v44 = vrot.slane %v9337_v37, 1  ;;  %v9330_v54 = vmax.f32 %v9328_v33, %v9329_v53 }
 0x4e5   : > { %v9346_v42 = vrot.slane %v9345_v16, 1  ;;  %v8343_v35 = vsel %vm5807_vm8, %v8334_v36, %v8336_v50  ;;  %v9361_v11 = vrot.slane %v9360_v48, 2  ;;  %v8356_v46 = vmax.f32 %v14773_v28, %v8332_v31  ;;  %v10809_v7 = vpop.permute.xlu0 %10808  ;;  %v8340_v31 = vpop.permute.xlu1 %8339 }
 0x4e6   : > { %v9354_v39 = vmax.f32 %v9352_v47, %v9353_v22  ;;  %v8357_v29 = vmax.f32 %v7397_v59, %v8343_v35  ;;  %v8358_v13 = vmax.f32 %v14786_v38, %v8336_v50  ;;  %v9380_v51 = vmax.f32 %v8355_v41, %v9330_v54 }
 0x4e7   : > { %v9347_v30 = vmax.f32 %v9345_v16, %v9346_v42  ;;  %v9362_v9 = vmax.f32 %v9360_v48, %v9361_v11  ;;  %v9370_v14 = vrot.slane %v9369_v43, 2  ;;  %v6583_v55 = vmax.f32 %v6018_v63, %v6571_v4 }
 0x4e8   : > { %v9355_v61 = vrot.slane %v9354_v39, 1  ;;  %v6582_v62 = vmax.f32 %v6009_v19, %v6562_v45  ;;  %v9321_v15 = vrot.slane %v9320_v23, 1  ;;  %v9339_v20 = vmax.f32 %v9337_v37, %v9338_v44 }
 0x4e9   : > { %v9382_v57 = vmax.f32 %v8357_v29, %v9347_v30  ;;  %v9363_v26 = vrot.slane %v9362_v9, 1  ;;  %v9371_v1 = vmax.f32 %v9369_v43, %v9370_v14  ;;  %v7400_v34 = vmax.f32 %v6583_v55, %v14775_v52 }
 0x4ea   : > { %v9356_v40 = vmax.f32 %v9354_v39, %v9355_v61  ;;  %v7399_v28 = vmax.f32 %v6582_v62, %v7384_v49  ;;  %v8354_v59 = vmax.f32 %v14676_v58, %v14784_v24  ;;  %v9381_v38 = vmax.f32 %v8356_v46, %v9339_v20  ;;  %v10814_v19 = vpop.permute.xlu1 %10813  ;;  %v10819_v58 = vpop.permute.xlu0 %10818  ;;  %v15310_v39 = vld [vmem:[#allocation14_spill] sm:$0xff]  ;;  %v15317_v62 = vld [vmem:[#allocation15_spill] sm:$0xff] }
 0x4eb   : > { %v9313_v27 = vmax.f32 %v9311_v56, %v9312_v60  ;;  %v9408_v5 = vrot.slane %v9380_v51, 7  ;;  %v8344_v63 = vsel %vm5807_vm8, %v8338_v17, %v8340_v31  ;;  %v8360_v37 = vmax.f32 %v7400_v34, %v8340_v31 }
 0x4ec   : > { %v9383_v33 = vmax.f32 %v8358_v13, %v9356_v40  ;;  %v8359_v18 = vmax.f32 %v7399_v28, %v8344_v63  ;;  %v9364_v32 = vmax.f32 %v9362_v9, %v9363_v26  ;;  %v9372_v47 = vrot.slane %v9371_v1, 1 }
 0x4ed   : > { %v9322_v4 = vmax.f32 %v9320_v23, %v9321_v15  ;;  %v9378_v36 = vmax.f32 %v8353_v3, %v9313_v27  ;;  %v9410_v6 = vrot.slane %v9382_v57, 6  ;;  %v9414_v52 = vrot.slane %v9381_v38, 7  ;;  %v15320_v57 = vld [vmem:[#allocation28_spill] sm:$0xff] }
 0x4ee   : > { %v9373_v49 = vmax.f32 %v9371_v1, %v9372_v47  ;;  %v9384_v21 = vmax.f32 %v8359_v18, %v9364_v32  ;;  %v9416_v24 = vrot.slane %v9383_v33, 6  ;;  %vm9397_vm3 = vcmask 1043459   ;;  %v10829_v44 = vpop.permute.xlu0 %10828  ;;  %v15325_v33 = vld [vmem:[#allocation36_spill] sm:$0xff] }
 0x4ef   : > { %v9379_v56 = vmax.f32 %v8354_v59, %v9322_v4  ;;  %v9409_v41 = vsel %vm9391_vm1, %v9408_v5, %v9378_v36  ;;  %v10824_v43 = vpop.permute.xlu1 %10823  ;;  %v15311_v50 = vunpack.c.h.bf16 %v15310_v39  ;;  %v15312_v42 = vunpack.c.l.bf16 %v14417_v2 }
 0x4f0   : > { %v9385_v53 = vmax.f32 %v8360_v37, %v9373_v49  ;;  %v9412_v22 = vrot.slane %v9384_v21, 5  ;;  %v9411_v16 = vsel %vm9394_vm2, %v9410_v6, %v9409_v41  ;;  %v15313_v17 = vunpack.c.h.bf16 %v14417_v2 }
 0x4f1   : > { %v9415_v3 = vsel %vm9391_vm1, %v9414_v52, %v9379_v56  ;;  %v11615_v54 = vadd.high.f32.bf16 %v15311_v50, %v10809_v7  ;;  %v8596_v35 = vrot.slane %v15312_v42, 2  ;;  %v15314_v46 = vunpack.c.l.bf16 %v15310_v39 }
 0x4f2   : > { %v9418_v48 = vrot.slane %v9385_v53, 5  ;;  %v9413_v23 = vsel %vm9397_vm3, %v9412_v22, %v9411_v16  ;;  %v9417_v45 = vsel %vm9394_vm2, %v9416_v24, %v9415_v3  ;;  %v8597_v11 = vrot.slane %v15313_v17, 2 }
 0x4f3   : > { %9420 = vrot.lane.b32.xlu0 %v9413_v23, %s11748_s20  ;;  %v11616_v61 = vadd.low.f32.bf16 %v15314_v46, %v10809_v7  ;;  %v15315_v51 = vunpack.c.l.bf16 %v14427_v10  ;;  %v15316_v9 = vunpack.c.h.bf16 %v14427_v10  ;;  %v10834_v55 = vpop.permute.xlu1 %10833  ;;  %v15318_v15 = vunpack.c.h.bf16 %v15317_v62  ;;  %v10839_v5 = vpop.permute.xlu0 %10838 }
 0x4f4   : > { %v9419_v60 = vsel %vm9397_vm3, %v9418_v48, %v9417_v45  ;;  %v8598_v29 = vsel %vm6275_vm6, %v8596_v35, %v8597_v11  ;;  %v8616_v13 = vadd.f32 %v11615_v54, %v8597_v11  ;;  %v15319_v40 = vunpack.c.l.bf16 %v15317_v62  ;;  %v9202_v62 = vld [vmem:[#allocation8 + $0x4] ss:$0 sm:$0xff] }
 0x4f5   : > { %9422 = vrot.lane.b32.xlu1 %v9419_v60, %s11748_s20  ;;  %v8599_v30 = vrot.slane %v15315_v51, 2  ;;  %v8600_v14 = vrot.slane %v15316_v9, 2  ;;  %v11617_v20 = vadd.high.f32.bf16 %v15318_v15, %v10814_v19  ;;  %v15321_v26 = vunpack.c.h.bf16 %v15320_v57  ;;  %v15337_v9 = vld [vmem:[#allocation16_spill] sm:$0xff] }
 0x4f6   : > { %v11618_v2 = vadd.low.f32.bf16 %v15319_v40, %v10814_v19  ;;  %v8615_v7 = vadd.f32 %v11616_v61, %v8598_v29  ;;  %v15322_v34 = vunpack.c.l.bf16 %v15320_v57  ;;  %v11621_v59 = vadd.high.f32.bf16 %v8616_v13, %v10829_v44  ;;  %v15334_v61 = vld [vmem:[#allocation34_spill] sm:$0xff] }
 0x4f7   : > { %v11619_v1 = vadd.high.f32.bf16 %v15321_v26, %v10819_v58  ;;  %v15323_v38 = vunpack.c.l.bf16 %v14457_v12  ;;  %v15324_v10 = vunpack.c.h.bf16 %v14457_v12  ;;  %v15326_v63 = vunpack.c.h.bf16 %v15325_v33  ;;  %v10844_v24 = vpop.permute.xlu1 %10843 }
 0x4f8   : > { %v11620_v28 = vadd.low.f32.bf16 %v15322_v34, %v10819_v58  ;;  %v15327_v37 = vunpack.c.l.bf16 %v15325_v33  ;;  %v11624_v47 = vadd.low.f32.bf16 %v8615_v7, %v10829_v44  ;;  %v8601_v4 = vsel %vm6275_vm6, %v8599_v30, %v8600_v14 }
 0x4f9   : > { %v8593_v31 = vrot.slane %v15323_v38, 2  ;;  %v8594_v27 = vrot.slane %v15324_v10, 2  ;;  %v11622_v18 = vadd.high.f32.bf16 %v15326_v63, %v10824_v43  ;;  %v15328_v36 = vunpack.c.l.bf16 %v14465_v8 }
 0x4fa   : > { %v11623_v32 = vadd.low.f32.bf16 %v15327_v37, %v10824_v43  ;;  %v15329_v52 = vunpack.c.h.bf16 %v14465_v8  ;;  %v8617_v21 = vadd.f32 %v11618_v2, %v8601_v4  ;;  %v8618_v19 = vadd.f32 %v11617_v20, %v8600_v14 }
 0x4fb   : > { %v8602_v6 = vrot.slane %v15328_v36, 2  ;;  %v8595_v12 = vsel %vm6275_vm6, %v8593_v31, %v8594_v27  ;;  %v8614_v58 = vadd.f32 %v11619_v1, %v8594_v27  ;;  %v15330_v56 = vunpack.c.l.bf16 %v14536_v25 }
 0x4fc   : > { %v8603_v49 = vrot.slane %v15329_v52, 2  ;;  %v15331_v22 = vunpack.c.h.bf16 %v14536_v25  ;;  %v11625_v16 = vadd.high.f32.bf16 %v8618_v19, %v10834_v55  ;;  %v8613_v48 = vadd.f32 %v11620_v28, %v8595_v12 }
 0x4fd   : > { %v8900_v53 = vrot.slane %v15330_v56, 4  ;;  %v15332_v3 = vunpack.c.l.bf16 %v14543_v0  ;;  %v15333_v8 = vunpack.c.h.bf16 %v14543_v0  ;;  %v11626_v45 = vadd.low.f32.bf16 %v8617_v21, %v10834_v55 }
 0x4fe   : > { %v8901_v41 = vrot.slane %v15331_v22, 4  ;;  %v8604_v60 = vsel %vm6275_vm6, %v8602_v6, %v8603_v49  ;;  %v11627_v44 = vadd.low.f32.bf16 %v8613_v48, %v10839_v5  ;;  %v11628_v39 = vadd.high.f32.bf16 %v8614_v58, %v10839_v5 }
 0x4ff   : > { %v8903_v23 = vrot.slane %v15332_v3, 4  ;;  %v8904_v43 = vrot.slane %v15333_v8, 4  ;;  %v8619_v50 = vadd.f32 %v11623_v32, %v8604_v60  ;;  %v8620_v54 = vadd.f32 %v11622_v18, %v8603_v49  ;;  %v10849_v25 = vpop.permute.xlu0 %10848 }
 0x500   : > { %v8902_v42 = vsel %vm8001_vm11, %v8900_v53, %v8901_v41  ;;  %v8920_v35 = vadd.f32 %v11621_v59, %v8901_v41  ;;  %v15335_v29 = vunpack.c.l.bf16 %v15334_v61  ;;  %v10854_v0 = vpop.permute.xlu1 %10853  ;;  %v15336_v51 = vunpack.c.h.bf16 %v15334_v61 }
 0x501   : > { %v8919_v17 = vadd.f32 %v11624_v47, %v8902_v42  ;;  %v8905_v11 = vsel %vm8001_vm11, %v8903_v23, %v8904_v43  ;;  %v8922_v46 = vadd.f32 %v11625_v16, %v8904_v43  ;;  %v15338_v14 = vunpack.c.l.bf16 %v15337_v9 }
 0x502   : > { %v8897_v13 = vrot.slane %v15335_v29, 4  ;;  %v8898_v30 = vrot.slane %v15336_v51, 4  ;;  %v8921_v15 = vadd.f32 %v11626_v45, %v8905_v11  ;;  %v15339_v20 = vunpack.c.h.bf16 %v15337_v9 }
 0x503   : > { %v8906_v55 = vrot.slane %v15338_v14, 4  ;;  %v11629_v2 = vadd.low.f32.bf16 %v8619_v50, %v10844_v24  ;;  %v11630_v57 = vadd.high.f32.bf16 %v8620_v54, %v10844_v24  ;;  %v11631_v26 = vadd.low.f32.bf16 %v8919_v17, %v10849_v25 }
 0x504   : > { %v8907_v40 = vrot.slane %v15339_v20, 4  ;;  %v11632_v1 = vadd.high.f32.bf16 %v8920_v35, %v10849_v25  ;;  %v11633_v7 = vadd.low.f32.bf16 %v8921_v15, %v10854_v0  ;;  %v11634_v34 = vadd.high.f32.bf16 %v8922_v46, %v10854_v0 }
 0x505   : > { %v9205_v28 = vadd.f32 %v11631_v26, %v9202_v62  ;;  %v8899_v38 = vsel %vm8001_vm11, %v8897_v13, %v8898_v30  ;;  %v8918_v31 = vadd.f32 %v11628_v39, %v8898_v30 }
 0x506   : > { %v9206_v59 = vadd.f32 %v11632_v1, %v9202_v62  ;;  %v9207_v10 = vadd.f32 %v11633_v7, %v9202_v62  ;;  %v9208_v27 = vadd.f32 %v11634_v34, %v9202_v62  ;;  %v8917_v5 = vadd.f32 %v11627_v44, %v8899_v38  ;;  %v10859_v37 = vpop.permute.xlu0 %10858  ;;  %v15340_v7 = vld [vmem:[#allocation25_spill] sm:$0xff]  ;;  %v15341_v34 = vld [vmem:[#allocation22_spill] sm:$0xff] }
 0x507   : > { %v8908_v33 = vsel %vm8001_vm11, %v8906_v55, %v8907_v40  ;;  %v9213_v63 = vmax.f32 %v9205_v28, 0.0  ;;  %v8924_v47 = vadd.f32 %v11630_v57, %v8907_v40  ;;  %v11636_v56 = vadd.high.f32.bf16 %v8918_v31, %v10859_v37  ;;  %v15343_v38 = vld [vmem:[#allocation13_spill] sm:$0xff] }
 0x508   : > { %v9214_v18 = vmax.f32 %v9206_v59, 0.0  ;;  %v8923_v32 = vadd.f32 %v11629_v2, %v8908_v33  ;;  %v9215_v4 = vmax.f32 %v9207_v10, 0.0  ;;  %v9216_v36 = vmax.f32 %v9208_v27, 0.0  ;;  %v10864_v6 = vpop.permute.xlu1 %10863  ;;  %v15344_v31 = vld [vmem:[#allocation33_spill] sm:$0xff] }
 0x509   : > { %v9279_v52 = vsel %vm5807_vm8, %v9213_v63, -inf  ;;  %v11635_v58 = vadd.low.f32.bf16 %v8917_v5, %v10859_v37  ;;  %v11638_v22 = vadd.high.f32.bf16 %v8924_v47, %v10864_v6  ;;  %v9204_v3 = vadd.f32 %v11636_v56, %v9202_v62  ;;  %v15346_v63 = vld [vmem:[#allocation31_spill] sm:$0xff]  ;;  %v15349_v47 = vld [vmem:[#allocation37_spill] sm:$0xff] }
 0x50a   : > { %v9280_v49 = vsel %vm9270_vm0, %v9214_v18, -inf  ;;  %v9288_v19 = vsel %vm5807_vm8, %v9215_v4, -inf  ;;  %v9289_v12 = vsel %vm9270_vm0, %v9216_v36, -inf  ;;  %v11637_v53 = vadd.low.f32.bf16 %v8923_v32, %v10864_v6  ;;  %v15347_v18 = vld [vmem:[#allocation21_spill] sm:$0xff]  ;;  %v15350_v4 = vld [vmem:[#allocation12_spill] sm:$0xff] }
 0x50b   : > { %v9281_v21 = vmax.f32 %v9279_v52, %v9280_v49  ;;  %v9290_v24 = vmax.f32 %v9288_v19, %v9289_v12  ;;  %v9203_v16 = vadd.f32 %v11635_v58, %v9202_v62  ;;  %v9210_v8 = vadd.f32 %v11638_v22, %v9202_v62 }
 0x50c   : > { %v9209_v23 = vadd.f32 %v11637_v53, %v9202_v62  ;;  %v9212_v44 = vmax.f32 %v9204_v3, 0.0  ;;  %v15342_v28 = vmax.f32 %v15340_v7, %v15341_v34  ;;  %v15345_v10 = vmax.f32 %v15343_v38, %v15344_v31 }
 0x50d   : > { %v9282_v41 = vrot.slane %v9281_v21, 4  ;;  %v9291_v48 = vrot.slane %v9290_v24, 4  ;;  %v9211_v45 = vmax.f32 %v9203_v16, 0.0  ;;  %v9218_v50 = vmax.f32 %v9210_v8, 0.0 }
 0x50e   : > { %v9217_v39 = vmax.f32 %v9209_v23, 0.0  ;;  %v9271_v25 = vsel %vm9270_vm0, %v9212_v44, -inf  ;;  %v15348_v37 = vmax.f32 %v15346_v63, %v15347_v18  ;;  %v15351_v36 = vmax.f32 %v15349_v47, %v15350_v4 }
 0x50f   : > { %v9283_v43 = vmax.f32 %v9281_v21, %v9282_v41  ;;  %v9292_v60 = vmax.f32 %v9290_v24, %v9291_v48  ;;  %v9269_v42 = vsel %vm5807_vm8, %v9211_v45, -inf  ;;  %v9298_v11 = vsel %vm9270_vm0, %v9218_v50, -inf  ;;  %v15352_v48 = vld [vmem:[#allocation11_spill] sm:$0xff] }
 0x510   : > { %v9297_v17 = vsel %vm5807_vm8, %v9217_v39, -inf  ;;  %v9272_v61 = vmax.f32 %v9269_v42, %v9271_v25  ;;  %v11749_v24 = vmov 1966171168   ;;  %v15353_v45 = vlaneseq }
 0x511   : > { %v9284_v54 = vrot.slane %v9283_v43, 2  ;;  %v9293_v35 = vrot.slane %v9292_v60, 2  ;;  %v9299_v29 = vmax.f32 %v9297_v17, %v9298_v11  ;;  %v9430_v56 = vunpack.c.l.s4 %v11749_v24 }
 0x512   : > { %v9273_v51 = vrot.slane %v9272_v61, 4  ;;  %vm9459_vm4 = vcmp.lt.s32.totalorder %v15353_v45, 256 }
 0x513   : > { %v9285_v46 = vmax.f32 %v9283_v43, %v9284_v54  ;;  %v9294_v13 = vmax.f32 %v9292_v60, %v9293_v35  ;;  %v9300_v30 = vrot.slane %v9299_v29, 4  ;;  %v9431_v53 = vunpack.c.0.s8 %v9430_v56 }
 0x514   : > { %v9274_v14 = vmax.f32 %v9272_v61, %v9273_v51 }
 0x515   : > { %v9286_v0 = vrot.slane %v9285_v46, 1  ;;  %v9295_v9 = vrot.slane %v9294_v13, 1  ;;  %v9301_v55 = vmax.f32 %v9299_v29, %v9300_v30  ;;  %v9434_v3 = vsub.s32 %v9431_v53, %v15352_v48 }
 0x516   : > { %v9275_v15 = vrot.slane %v9274_v14, 2 }
 0x517   : > { %v9287_v62 = vmax.f32 %v9285_v46, %v9286_v0  ;;  %v9302_v20 = vrot.slane %v9301_v55, 2  ;;  %v9296_v40 = vmax.f32 %v9294_v13, %v9295_v9 }
 0x518   : > { %v9276_v2 = vmax.f32 %v9274_v14, %v9275_v15 }
 0x519   : > { %v9303_v57 = vmax.f32 %v9301_v55, %v9302_v20  ;;  %v9375_v59 = vmax.f32 %v15342_v28, %v9287_v62  ;;  %v9376_v27 = vmax.f32 %v15345_v10, %v9296_v40 }
 0x51a   : > { %v9277_v26 = vrot.slane %v9276_v2, 1 }
 0x51b   : > { %v9304_v1 = vrot.slane %v9303_v57, 1  ;;  %v9390_v52 = vrot.slane %v9375_v59, 7  ;;  %v9393_v49 = vrot.slane %v9376_v27, 6 }
 0x51c   : > { %v9278_v5 = vmax.f32 %v9276_v2, %v9277_v26 }
 0x51d   : > { %v9305_v33 = vmax.f32 %v9303_v57, %v9304_v1 }
 0x51e   : > { %v9374_v32 = vmax.f32 %v15348_v37, %v9278_v5 }
 0x51f   : > { %v9377_v6 = vmax.f32 %v15351_v36, %v9305_v33 }
 0x520   : > { %v9392_v21 = vsel %vm9391_vm1, %v9390_v52, %v9374_v32 }
 0x521   : > { %v9396_v19 = vrot.slane %v9377_v6, 5  ;;  %v9395_v12 = vsel %vm9394_vm2, %v9393_v49, %v9392_v21 }
 0x523   : > { %v9398_v58 = vsel %vm9397_vm3, %v9396_v19, %v9395_v12 }
 0x565   : > { %v9421_v22 = vpop.permute.xlu0 %9420 }
 0x566   : > { %v9426_v41 = vsel %vm5807_vm8, %v9398_v58, %v9421_v22 }
 0x567   : > { %v9423_v16 = vpop.permute.xlu1 %9422 }
 0x568   : > { %v9424_v23 = vsel %vm5807_vm8, %v9421_v22, %v9423_v16 }
 0x569   : > { %v9428_v8 = vcombine.low %v9426_v41, %v9424_v23 }
 0x56b   : > { %v9435_v43 = vrot.slane %v9428_v8, %v9434_v3 }
 0x56d   : > { %v9436_v60 = vcombine.high %v9435_v43, %v9435_v43  ;;  %v9443_v44 = vrot.slane %v9435_v43, %v9434_v3 }
 0x56f   : > { %v9450_v39 = vrot.slane %v9436_v60, %v9434_v3  ;;  %v9451_v50 = vcombine.high %v9443_v44, %v9443_v44  ;;  %9461 = vst.msk [vmem:[%s296_s11] sm:$0x3] %vm9459_vm4, %v9443_v44 }
 0x571   : > { %v9452_v54 = vcombine.high %v9450_v39, %v9450_v39  ;;  %9462 = vst.msk [vmem:[%s296_s11 + $0x2] sm:$0x3] %vm9459_vm4, %v9450_v39  ;;  %9463 = vst.msk [vmem:[%s296_s11 + $0x4] sm:$0x3] %vm9459_vm4, %v9451_v50 }
 0x573   : > { %9464 = vst.msk [vmem:[%s296_s11 + $0x6] sm:$0x3] %vm9459_vm4, %v9452_v54 }
 0x574 PF: > { %s17_s18 = sadd.s32 1, %s11737_s18  }
 0x575   : > { %p14_p3 = scmp.ge.s32.totalorder %s17_s18, 4  }
 0x577   :  { %16 = sbr.rel (!%p14_p3) target bundleno = 2 (0x2), region = 90 }
 0x57e   :  { %9487 = vsyncpa [#allocation5], 1 }
 0x57f   :  { %9489 = vsyncpa [#allocation5 + $0x1], 1 }
 0x580   :  { %9490 = vsyncpa [#allocation7], 1 }

</bundles_post_ra>
